<compile_context>
chip_gen: v7x
topology: tpu7x:2x2x1
jax: 0.10.0
libtpu: 0.0.40
codegen_flags: <defaults>
</compile_context>

<pallas_src>
import jax
import jax.numpy as jnp
from jax import lax
from jax.experimental import pallas as pl
from jax.experimental.pallas import tpu as pltpu


# ---------------------------------------------------------------------------
# In-kernel im2col: taps gathered with static slices of a padded [N*Hp*Wp, C]
# VMEM ref (rows = (n, ih, iw), lanes = channels).  Stride only ever appears
# on the sublane axis.
# ---------------------------------------------------------------------------
def _row_taps(src_ref, base, stride, wo):
    """Four kw-taps of one padded input row -> list of 4 values [wo, Cin]."""
    if stride == 1:
        rows = src_ref[pl.ds(base, wo + 3), :]                # whole padded row
        return [rows[kw:kw + wo, :] for kw in range(4)]
    # stride == 2: one strided load for the even iw's, one for the odd iw's.
    even = src_ref[pl.ds(base, wo + 1, stride=2), :]          # iw = 0,2,4,...
    odd = src_ref[pl.ds(base + 1, wo + 1, stride=2), :]       # iw = 1,3,5,...
    return [even[0:wo, :], odd[0:wo, :], even[1:wo + 1, :], odd[1:wo + 1, :]]


def _gather_patches(src_ref, n_batch, hi, wi, stride):
    """Build P[N*Ho*Wo, 16*Cin] (cols ordered (kh, kw, ci)) from padded src."""
    hp, wp = hi + 2, wi + 2
    ho = (hi - 2) // stride + 1
    wo = (wi - 2) // stride + 1
    blocks = []
    for n in range(n_batch):
        for oh in range(ho):
            taps = []
            for kh in range(4):
                base = (n * hp + stride * oh + kh) * wp
                taps += _row_taps(src_ref, base, stride, wo)
            blocks.append(jnp.concatenate(taps, axis=1))      # [wo, 16*Cin]
    return jnp.concatenate(blocks, axis=0), ho, wo            # [M_out, 16*Cin]


# ---------------------------------------------------------------------------
# Fused kernel: all conv(+BN)+act layers, activations never leave VMEM/vregs.
# ---------------------------------------------------------------------------
def _make_fused_kernel(cfg, n_batch, h0, w0, mm_dtype):
    def kernel(x0_ref, w_ref, v_ref, out_ref, *pad_refs):
        src, hi, wi = x0_ref, h0, w0
        for li, c in enumerate(cfg):
            cin, cout = c["cin"], c["cout"]
            p, ho, wo = _gather_patches(src, n_batch, hi, wi, c["stride"])
            w = w_ref[c["w_off"]:c["w_off"] + 16 * cin, 0:cout]   # [16*Cin, Cout]
            y = jnp.dot(p.astype(mm_dtype), w,
                        preferred_element_type=jnp.float32)       # [M, Cout]
            if c["use_bn"]:
                # Single-pass batch stats + folded scale/shift (bias cancels).
                gamma = v_ref[c["v_off"]:c["v_off"] + 1, 0:cout]
                beta = v_ref[c["v_off"] + 1:c["v_off"] + 2, 0:cout]
                inv_m = 1.0 / y.shape[0]
                mean = jnp.sum(y, axis=0, keepdims=True) * inv_m
                ex2 = jnp.sum(y * y, axis=0, keepdims=True) * inv_m
                scale = gamma * lax.rsqrt(ex2 - mean * mean + 1e-5)
                y = y * scale + (beta - mean * scale)
            else:
                y = y + v_ref[c["v_off"]:c["v_off"] + 1, 0:cout]
            y = jnp.maximum(y, 0.0) if c["act"] == "relu" else jax.nn.sigmoid(y)
            if li + 1 < len(cfg):
                # Write y zero-padded into the next layer's [N*Hp*Wp, C] scratch.
                dst = pad_refs[li]
                hp, wp = ho + 2, wo + 2
                dst[...] = jnp.zeros_like(dst)
                for n in range(n_batch):
                    for h in range(ho):
                        dst[pl.ds((n * hp + h + 1) * wp + 1, wo), :] = \
                            y[(n * ho + h) * wo:(n * ho + h) * wo + wo, :]
                src = dst
            else:
                out_ref[...] = y.astype(out_ref.dtype)
            hi, wi = ho, wo
    return kernel


# ---------------------------------------------------------------------------
# Module structure / parameters (mirrors the PyTorch Basic_D constructor).
# ---------------------------------------------------------------------------
def make_layer_configs(input_channels, output_channels, num_filters):
    max_layers = len(num_filters)
    cfg = []
    cin = input_channels + output_channels
    cfg.append((cin, num_filters[0], 2, False, "relu"))               # initial
    prev = num_filters[0]
    for idx in range(1, max_layers - 1):                              # pyramid
        cfg.append((prev, num_filters[idx], 2, True, "relu"))
        prev = num_filters[idx]
    cfg.append((prev, num_filters[max_layers - 1], 1, True, "relu"))  # last
    cfg.append((num_filters[max_layers - 1], 1, 1, False, "sigmoid")) # output
    return cfg


def init_params(key, input_channels, output_channels, num_filters):
    params = []
    for (ci, co, stride, use_bn, act) in make_layer_configs(
            input_channels, output_channels, num_filters):
        key, kw, kb, kg, kbe = jax.random.split(key, 5)
        params.append(dict(
            w=0.02 * jax.random.normal(kw, (4, 4, ci, co), jnp.float32),  # HWIO
            b=0.1 * jax.random.normal(kb, (co,), jnp.float32),
            gamma=1.0 + 0.1 * jax.random.normal(kg, (co,), jnp.float32),
            beta=0.1 * jax.random.normal(kbe, (co,), jnp.float32),
            stride=stride, use_bn=use_bn, act=act))
    return params


# ---------------------------------------------------------------------------
# Basic_D forward: one pallas_call for the whole network.
# ---------------------------------------------------------------------------
def basic_d_forward(a, b, params, mm_dtype=jnp.float32):
    x = jnp.concatenate([a, b], axis=1)            # torch.cat((a, b), dim=1), NCHW
    x = jnp.transpose(x, (0, 2, 3, 1))             # -> NHWC
    n, h0, w0, c0 = x.shape
    # Padded rows-spatial layout [N*Hp*Wp, C]; the only pre-kernel data prep.
    x0 = jnp.pad(x, ((0, 0), (1, 1), (1, 1), (0, 0))).reshape(
        n * (h0 + 2) * (w0 + 2), c0)

    cmax = max(p["w"].shape[3] for p in params)
    cfg, wblocks, vrows, scratch_shapes = [], [], [], []
    w_off = v_off = 0
    hi, wi = h0, w0
    for li, p in enumerate(params):
        ci, co, s = p["w"].shape[2], p["w"].shape[3], p["stride"]
        # HWIO (4,4,ci,co) -> rows ordered ((kh*4+kw)*ci + ci_idx), padded lanes.
        wblocks.append(jnp.pad(p["w"].reshape(16 * ci, co), ((0, 0), (0, cmax - co))))
        cfg.append(dict(cin=ci, cout=co, stride=s, use_bn=p["use_bn"],
                        act=p["act"], w_off=w_off, v_off=v_off))
        w_off += 16 * ci
        if p["use_bn"]:
            vrows += [jnp.pad(p["gamma"], (0, cmax - co)),
                      jnp.pad(p["beta"], (0, cmax - co))]
            v_off += 2
        else:
            vrows.append(jnp.pad(p["b"], (0, cmax - co)))
            v_off += 1
        ho, wo = (hi - 2) // s + 1, (wi - 2) // s + 1
        if li + 1 < len(params):
            scratch_shapes.append(
                pltpu.VMEM((n * (ho + 2) * (wo + 2), co), jnp.float32))
        hi, wi = ho, wo

    wpack = jnp.concatenate(wblocks, axis=0).astype(mm_dtype)   # one weight operand
    vpack = jnp.stack(vrows, axis=0)                            # one bias/BN operand
    c_last, m_last = params[-1]["w"].shape[3], n * hi * wi

    out = pl.pallas_call(
        _make_fused_kernel(cfg, n, h0, w0, mm_dtype),
        out_shape=jax.ShapeDtypeStruct((m_last, c_last), jnp.float32),
        grid=(1,),   # whole working set (~hundreds of KiB) is one VMEM tile
        in_specs=[pl.BlockSpec(x0.shape, lambda i: (0, 0)),
                  pl.BlockSpec(wpack.shape, lambda i: (0, 0)),
                  pl.BlockSpec(vpack.shape, lambda i: (0, 0))],
        out_specs=pl.BlockSpec((m_last, c_last), lambda i: (0, 0)),
        scratch_shapes=scratch_shapes,
        compiler_params=pltpu.CompilerParams(
            dimension_semantics=("arbitrary",)),
    )(x0, wpack, vpack)

    # [N*Ho*Wo, 1] -> NCHW
    return jnp.transpose(out.reshape(n, hi, wi, c_last), (0, 3, 1, 2))


# Pure-JAX reference (correctness validation only).
def basic_d_reference(a, b, params):
    x = jnp.concatenate([a, b], axis=1)
    x = jnp.transpose(x, (0, 2, 3, 1))
    for p in params:
        s = p["stride"]
        y = lax.conv_general_dilated(
            x, p["w"], (s, s), [(1, 1), (1, 1)],
            dimension_numbers=("NHWC", "HWIO", "NHWC"))
        y = y + p["b"].reshape(1, 1, 1, -1)
        if p["use_bn"]:
            mean = jnp.mean(y, axis=(0, 1, 2), keepdims=True)
            var = jnp.mean(jnp.square(y - mean), axis=(0, 1, 2), keepdims=True)
            y = ((y - mean) * lax.rsqrt(var + 1e-5)
                 * p["gamma"].reshape(1, 1, 1, -1) + p["beta"].reshape(1, 1, 1, -1))
        y = jnp.maximum(y, 0.0) if p["act"] == "relu" else jax.nn.sigmoid(y)
        x = y
    return jnp.transpose(x, (0, 3, 1, 2))


if __name__ == "__main__":
    # Basic_D(input_channels=2, output_channels=2, num_filters=[8, 16, 16])
    input_channels, output_channels = 2, 2
    num_filters = [8, 16, 16]
    batch, spatial = 2, 16

    root = jax.random.PRNGKey(0)
    k_a, k_b, k_p = jax.random.split(root, 3)
    a = jax.random.normal(k_a, (batch, input_channels, spatial, spatial), jnp.float32)
    b = jax.random.normal(k_b, (batch, output_channels, spatial, spatial), jnp.float32)
    params = init_params(k_p, input_channels, output_channels, num_filters)

    out = jax.block_until_ready(basic_d_forward(a, b, params))
    ref = jax.block_until_ready(basic_d_reference(a, b, params))

    assert out.shape == (batch, 1, 2, 2), out.shape
    err = float(jnp.max(jnp.abs(out - ref)))
    assert err < 1e-4, err
    print("KERNEL_OK")
</pallas_src>

<mosaic_0001>
module attributes {stable_mosaic.version = 11 : i64} {
  func.func @kernel(%arg0: i32, %arg1: memref<648x4xf32, #tpu.memory_space<vmem>>, %arg2: memref<704x16xf32, #tpu.memory_space<vmem>>, %arg3: memref<6x16xf32, #tpu.memory_space<vmem>>, %arg4: memref<8x1xf32, #tpu.memory_space<vmem>>, %arg5: memref<200x8xf32, #tpu.memory_space<vmem>>, %arg6: memref<72x16xf32, #tpu.memory_space<vmem>>, %arg7: memref<50x16xf32, #tpu.memory_space<vmem>>) attributes {dimension_semantics = [#tpu.dimension_semantics<arbitrary>], iteration_bounds = array<i64: 1>, scalar_prefetch = 0 : i64, scratch_operands = 3 : i64, tpu.core_type = #tpu.core_type<tc>, window_params = [{pipeline_mode = #tpu.pipeline_mode<synchronous>, transform_indices = @transform_0, window_bounds = array<i64: 648, 4>}, {pipeline_mode = #tpu.pipeline_mode<synchronous>, transform_indices = @transform_1, window_bounds = array<i64: 704, 16>}, {pipeline_mode = #tpu.pipeline_mode<synchronous>, transform_indices = @transform_2, window_bounds = array<i64: 6, 16>}, {pipeline_mode = #tpu.pipeline_mode<synchronous>, transform_indices = @transform_3, window_bounds = array<i64: 8, 1>}]} {
    %c0 = arith.constant 0 : index
    %c0_0 = arith.constant 0 : index
    %0 = tpu.strided_load %arg1[%c0, %c0_0] {strides = array<i32: 2, 1>} : memref<648x4xf32, #tpu.memory_space<vmem>>, vector<9x4xf32>
    %c1 = arith.constant 1 : index
    %c0_1 = arith.constant 0 : index
    %1 = tpu.strided_load %arg1[%c1, %c0_1] {strides = array<i32: 2, 1>} : memref<648x4xf32, #tpu.memory_space<vmem>>, vector<9x4xf32>
    %2 = vector.extract_strided_slice %0 {offsets = [0, 0], sizes = [8, 4], strides = [1, 1]} : vector<9x4xf32> to vector<8x4xf32>
    %3 = vector.extract_strided_slice %1 {offsets = [0, 0], sizes = [8, 4], strides = [1, 1]} : vector<9x4xf32> to vector<8x4xf32>
    %4 = vector.extract_strided_slice %0 {offsets = [1, 0], sizes = [8, 4], strides = [1, 1]} : vector<9x4xf32> to vector<8x4xf32>
    %5 = vector.extract_strided_slice %1 {offsets = [1, 0], sizes = [8, 4], strides = [1, 1]} : vector<9x4xf32> to vector<8x4xf32>
    %c18 = arith.constant 18 : index
    %c0_2 = arith.constant 0 : index
    %6 = tpu.strided_load %arg1[%c18, %c0_2] {strides = array<i32: 2, 1>} : memref<648x4xf32, #tpu.memory_space<vmem>>, vector<9x4xf32>
    %c19 = arith.constant 19 : index
    %c0_3 = arith.constant 0 : index
    %7 = tpu.strided_load %arg1[%c19, %c0_3] {strides = array<i32: 2, 1>} : memref<648x4xf32, #tpu.memory_space<vmem>>, vector<9x4xf32>
    %8 = vector.extract_strided_slice %6 {offsets = [0, 0], sizes = [8, 4], strides = [1, 1]} : vector<9x4xf32> to vector<8x4xf32>
    %9 = vector.extract_strided_slice %7 {offsets = [0, 0], sizes = [8, 4], strides = [1, 1]} : vector<9x4xf32> to vector<8x4xf32>
    %10 = vector.extract_strided_slice %6 {offsets = [1, 0], sizes = [8, 4], strides = [1, 1]} : vector<9x4xf32> to vector<8x4xf32>
    %11 = vector.extract_strided_slice %7 {offsets = [1, 0], sizes = [8, 4], strides = [1, 1]} : vector<9x4xf32> to vector<8x4xf32>
    %c36 = arith.constant 36 : index
    %c0_4 = arith.constant 0 : index
    %12 = tpu.strided_load %arg1[%c36, %c0_4] {strides = array<i32: 2, 1>} : memref<648x4xf32, #tpu.memory_space<vmem>>, vector<9x4xf32>
    %c37 = arith.constant 37 : index
    %c0_5 = arith.constant 0 : index
    %13 = tpu.strided_load %arg1[%c37, %c0_5] {strides = array<i32: 2, 1>} : memref<648x4xf32, #tpu.memory_space<vmem>>, vector<9x4xf32>
    %14 = vector.extract_strided_slice %12 {offsets = [0, 0], sizes = [8, 4], strides = [1, 1]} : vector<9x4xf32> to vector<8x4xf32>
    %15 = vector.extract_strided_slice %13 {offsets = [0, 0], sizes = [8, 4], strides = [1, 1]} : vector<9x4xf32> to vector<8x4xf32>
    %16 = vector.extract_strided_slice %12 {offsets = [1, 0], sizes = [8, 4], strides = [1, 1]} : vector<9x4xf32> to vector<8x4xf32>
    %17 = vector.extract_strided_slice %13 {offsets = [1, 0], sizes = [8, 4], strides = [1, 1]} : vector<9x4xf32> to vector<8x4xf32>
    %c54 = arith.constant 54 : index
    %c0_6 = arith.constant 0 : index
    %18 = tpu.strided_load %arg1[%c54, %c0_6] {strides = array<i32: 2, 1>} : memref<648x4xf32, #tpu.memory_space<vmem>>, vector<9x4xf32>
    %c55 = arith.constant 55 : index
    %c0_7 = arith.constant 0 : index
    %19 = tpu.strided_load %arg1[%c55, %c0_7] {strides = array<i32: 2, 1>} : memref<648x4xf32, #tpu.memory_space<vmem>>, vector<9x4xf32>
    %20 = vector.extract_strided_slice %18 {offsets = [0, 0], sizes = [8, 4], strides = [1, 1]} : vector<9x4xf32> to vector<8x4xf32>
    %21 = vector.extract_strided_slice %19 {offsets = [0, 0], sizes = [8, 4], strides = [1, 1]} : vector<9x4xf32> to vector<8x4xf32>
    %22 = vector.extract_strided_slice %18 {offsets = [1, 0], sizes = [8, 4], strides = [1, 1]} : vector<9x4xf32> to vector<8x4xf32>
    %23 = vector.extract_strided_slice %19 {offsets = [1, 0], sizes = [8, 4], strides = [1, 1]} : vector<9x4xf32> to vector<8x4xf32>
    %24 = tpu.concatenate %2, %3, %4, %5, %8, %9, %10, %11, %14, %15, %16, %17, %20, %21, %22, %23 in 1 : vector<8x4xf32>, vector<8x4xf32>, vector<8x4xf32>, vector<8x4xf32>, vector<8x4xf32>, vector<8x4xf32>, vector<8x4xf32>, vector<8x4xf32>, vector<8x4xf32>, vector<8x4xf32>, vector<8x4xf32>, vector<8x4xf32>, vector<8x4xf32>, vector<8x4xf32>, vector<8x4xf32>, vector<8x4xf32> -> vector<8x64xf32>
    %c36_8 = arith.constant 36 : index
    %c0_9 = arith.constant 0 : index
    %25 = tpu.strided_load %arg1[%c36_8, %c0_9] {strides = array<i32: 2, 1>} : memref<648x4xf32, #tpu.memory_space<vmem>>, vector<9x4xf32>
    %c37_10 = arith.constant 37 : index
    %c0_11 = arith.constant 0 : index
    %26 = tpu.strided_load %arg1[%c37_10, %c0_11] {strides = array<i32: 2, 1>} : memref<648x4xf32, #tpu.memory_space<vmem>>, vector<9x4xf32>
    %27 = vector.extract_strided_slice %25 {offsets = [0, 0], sizes = [8, 4], strides = [1, 1]} : vector<9x4xf32> to vector<8x4xf32>
    %28 = vector.extract_strided_slice %26 {offsets = [0, 0], sizes = [8, 4], strides = [1, 1]} : vector<9x4xf32> to vector<8x4xf32>
    %29 = vector.extract_strided_slice %25 {offsets = [1, 0], sizes = [8, 4], strides = [1, 1]} : vector<9x4xf32> to vector<8x4xf32>
    %30 = vector.extract_strided_slice %26 {offsets = [1, 0], sizes = [8, 4], strides = [1, 1]} : vector<9x4xf32> to vector<8x4xf32>
    %c54_12 = arith.constant 54 : index
    %c0_13 = arith.constant 0 : index
    %31 = tpu.strided_load %arg1[%c54_12, %c0_13] {strides = array<i32: 2, 1>} : memref<648x4xf32, #tpu.memory_space<vmem>>, vector<9x4xf32>
    %c55_14 = arith.constant 55 : index
    %c0_15 = arith.constant 0 : index
    %32 = tpu.strided_load %arg1[%c55_14, %c0_15] {strides = array<i32: 2, 1>} : memref<648x4xf32, #tpu.memory_space<vmem>>, vector<9x4xf32>
    %33 = vector.extract_strided_slice %31 {offsets = [0, 0], sizes = [8, 4], strides = [1, 1]} : vector<9x4xf32> to vector<8x4xf32>
    %34 = vector.extract_strided_slice %32 {offsets = [0, 0], sizes = [8, 4], strides = [1, 1]} : vector<9x4xf32> to vector<8x4xf32>
    %35 = vector.extract_strided_slice %31 {offsets = [1, 0], sizes = [8, 4], strides = [1, 1]} : vector<9x4xf32> to vector<8x4xf32>
    %36 = vector.extract_strided_slice %32 {offsets = [1, 0], sizes = [8, 4], strides = [1, 1]} : vector<9x4xf32> to vector<8x4xf32>
    %c72 = arith.constant 72 : index
    %c0_16 = arith.constant 0 : index
    %37 = tpu.strided_load %arg1[%c72, %c0_16] {strides = array<i32: 2, 1>} : memref<648x4xf32, #tpu.memory_space<vmem>>, vector<9x4xf32>
    %c73 = arith.constant 73 : index
    %c0_17 = arith.constant 0 : index
    %38 = tpu.strided_load %arg1[%c73, %c0_17] {strides = array<i32: 2, 1>} : memref<648x4xf32, #tpu.memory_space<vmem>>, vector<9x4xf32>
    %39 = vector.extract_strided_slice %37 {offsets = [0, 0], sizes = [8, 4], strides = [1, 1]} : vector<9x4xf32> to vector<8x4xf32>
    %40 = vector.extract_strided_slice %38 {offsets = [0, 0], sizes = [8, 4], strides = [1, 1]} : vector<9x4xf32> to vector<8x4xf32>
    %41 = vector.extract_strided_slice %37 {offsets = [1, 0], sizes = [8, 4], strides = [1, 1]} : vector<9x4xf32> to vector<8x4xf32>
    %42 = vector.extract_strided_slice %38 {offsets = [1, 0], sizes = [8, 4], strides = [1, 1]} : vector<9x4xf32> to vector<8x4xf32>
    %c90 = arith.constant 90 : index
    %c0_18 = arith.constant 0 : index
    %43 = tpu.strided_load %arg1[%c90, %c0_18] {strides = array<i32: 2, 1>} : memref<648x4xf32, #tpu.memory_space<vmem>>, vector<9x4xf32>
    %c91 = arith.constant 91 : index
    %c0_19 = arith.constant 0 : index
    %44 = tpu.strided_load %arg1[%c91, %c0_19] {strides = array<i32: 2, 1>} : memref<648x4xf32, #tpu.memory_space<vmem>>, vector<9x4xf32>
    %45 = vector.extract_strided_slice %43 {offsets = [0, 0], sizes = [8, 4], strides = [1, 1]} : vector<9x4xf32> to vector<8x4xf32>
    %46 = vector.extract_strided_slice %44 {offsets = [0, 0], sizes = [8, 4], strides = [1, 1]} : vector<9x4xf32> to vector<8x4xf32>
    %47 = vector.extract_strided_slice %43 {offsets = [1, 0], sizes = [8, 4], strides = [1, 1]} : vector<9x4xf32> to vector<8x4xf32>
    %48 = vector.extract_strided_slice %44 {offsets = [1, 0], sizes = [8, 4], strides = [1, 1]} : vector<9x4xf32> to vector<8x4xf32>
    %49 = tpu.concatenate %27, %28, %29, %30, %33, %34, %35, %36, %39, %40, %41, %42, %45, %46, %47, %48 in 1 : vector<8x4xf32>, vector<8x4xf32>, vector<8x4xf32>, vector<8x4xf32>, vector<8x4xf32>, vector<8x4xf32>, vector<8x4xf32>, vector<8x4xf32>, vector<8x4xf32>, vector<8x4xf32>, vector<8x4xf32>, vector<8x4xf32>, vector<8x4xf32>, vector<8x4xf32>, vector<8x4xf32>, vector<8x4xf32> -> vector<8x64xf32>
    %c72_20 = arith.constant 72 : index
    %c0_21 = arith.constant 0 : index
    %50 = tpu.strided_load %arg1[%c72_20, %c0_21] {strides = array<i32: 2, 1>} : memref<648x4xf32, #tpu.memory_space<vmem>>, vector<9x4xf32>
    %c73_22 = arith.constant 73 : index
    %c0_23 = arith.constant 0 : index
    %51 = tpu.strided_load %arg1[%c73_22, %c0_23] {strides = array<i32: 2, 1>} : memref<648x4xf32, #tpu.memory_space<vmem>>, vector<9x4xf32>
    %52 = vector.extract_strided_slice %50 {offsets = [0, 0], sizes = [8, 4], strides = [1, 1]} : vector<9x4xf32> to vector<8x4xf32>
    %53 = vector.extract_strided_slice %51 {offsets = [0, 0], sizes = [8, 4], strides = [1, 1]} : vector<9x4xf32> to vector<8x4xf32>
    %54 = vector.extract_strided_slice %50 {offsets = [1, 0], sizes = [8, 4], strides = [1, 1]} : vector<9x4xf32> to vector<8x4xf32>
    %55 = vector.extract_strided_slice %51 {offsets = [1, 0], sizes = [8, 4], strides = [1, 1]} : vector<9x4xf32> to vector<8x4xf32>
    %c90_24 = arith.constant 90 : index
    %c0_25 = arith.constant 0 : index
    %56 = tpu.strided_load %arg1[%c90_24, %c0_25] {strides = array<i32: 2, 1>} : memref<648x4xf32, #tpu.memory_space<vmem>>, vector<9x4xf32>
    %c91_26 = arith.constant 91 : index
    %c0_27 = arith.constant 0 : index
    %57 = tpu.strided_load %arg1[%c91_26, %c0_27] {strides = array<i32: 2, 1>} : memref<648x4xf32, #tpu.memory_space<vmem>>, vector<9x4xf32>
    %58 = vector.extract_strided_slice %56 {offsets = [0, 0], sizes = [8, 4], strides = [1, 1]} : vector<9x4xf32> to vector<8x4xf32>
    %59 = vector.extract_strided_slice %57 {offsets = [0, 0], sizes = [8, 4], strides = [1, 1]} : vector<9x4xf32> to vector<8x4xf32>
    %60 = vector.extract_strided_slice %56 {offsets = [1, 0], sizes = [8, 4], strides = [1, 1]} : vector<9x4xf32> to vector<8x4xf32>
    %61 = vector.extract_strided_slice %57 {offsets = [1, 0], sizes = [8, 4], strides = [1, 1]} : vector<9x4xf32> to vector<8x4xf32>
    %c108 = arith.constant 108 : index
    %c0_28 = arith.constant 0 : index
    %62 = tpu.strided_load %arg1[%c108, %c0_28] {strides = array<i32: 2, 1>} : memref<648x4xf32, #tpu.memory_space<vmem>>, vector<9x4xf32>
    %c109 = arith.constant 109 : index
    %c0_29 = arith.constant 0 : index
    %63 = tpu.strided_load %arg1[%c109, %c0_29] {strides = array<i32: 2, 1>} : memref<648x4xf32, #tpu.memory_space<vmem>>, vector<9x4xf32>
    %64 = vector.extract_strided_slice %62 {offsets = [0, 0], sizes = [8, 4], strides = [1, 1]} : vector<9x4xf32> to vector<8x4xf32>
    %65 = vector.extract_strided_slice %63 {offsets = [0, 0], sizes = [8, 4], strides = [1, 1]} : vector<9x4xf32> to vector<8x4xf32>
    %66 = vector.extract_strided_slice %62 {offsets = [1, 0], sizes = [8, 4], strides = [1, 1]} : vector<9x4xf32> to vector<8x4xf32>
    %67 = vector.extract_strided_slice %63 {offsets = [1, 0], sizes = [8, 4], strides = [1, 1]} : vector<9x4xf32> to vector<8x4xf32>
    %c126 = arith.constant 126 : index
    %c0_30 = arith.constant 0 : index
    %68 = tpu.strided_load %arg1[%c126, %c0_30] {strides = array<i32: 2, 1>} : memref<648x4xf32, #tpu.memory_space<vmem>>, vector<9x4xf32>
    %c127 = arith.constant 127 : index
    %c0_31 = arith.constant 0 : index
    %69 = tpu.strided_load %arg1[%c127, %c0_31] {strides = array<i32: 2, 1>} : memref<648x4xf32, #tpu.memory_space<vmem>>, vector<9x4xf32>
    %70 = vector.extract_strided_slice %68 {offsets = [0, 0], sizes = [8, 4], strides = [1, 1]} : vector<9x4xf32> to vector<8x4xf32>
    %71 = vector.extract_strided_slice %69 {offsets = [0, 0], sizes = [8, 4], strides = [1, 1]} : vector<9x4xf32> to vector<8x4xf32>
    %72 = vector.extract_strided_slice %68 {offsets = [1, 0], sizes = [8, 4], strides = [1, 1]} : vector<9x4xf32> to vector<8x4xf32>
    %73 = vector.extract_strided_slice %69 {offsets = [1, 0], sizes = [8, 4], strides = [1, 1]} : vector<9x4xf32> to vector<8x4xf32>
    %74 = tpu.concatenate %52, %53, %54, %55, %58, %59, %60, %61, %64, %65, %66, %67, %70, %71, %72, %73 in 1 : vector<8x4xf32>, vector<8x4xf32>, vector<8x4xf32>, vector<8x4xf32>, vector<8x4xf32>, vector<8x4xf32>, vector<8x4xf32>, vector<8x4xf32>, vector<8x4xf32>, vector<8x4xf32>, vector<8x4xf32>, vector<8x4xf32>, vector<8x4xf32>, vector<8x4xf32>, vector<8x4xf32>, vector<8x4xf32> -> vector<8x64xf32>
    %c108_32 = arith.constant 108 : index
    %c0_33 = arith.constant 0 : index
    %75 = tpu.strided_load %arg1[%c108_32, %c0_33] {strides = array<i32: 2, 1>} : memref<648x4xf32, #tpu.memory_space<vmem>>, vector<9x4xf32>
    %c109_34 = arith.constant 109 : index
    %c0_35 = arith.constant 0 : index
    %76 = tpu.strided_load %arg1[%c109_34, %c0_35] {strides = array<i32: 2, 1>} : memref<648x4xf32, #tpu.memory_space<vmem>>, vector<9x4xf32>
    %77 = vector.extract_strided_slice %75 {offsets = [0, 0], sizes = [8, 4], strides = [1, 1]} : vector<9x4xf32> to vector<8x4xf32>
    %78 = vector.extract_strided_slice %76 {offsets = [0, 0], sizes = [8, 4], strides = [1, 1]} : vector<9x4xf32> to vector<8x4xf32>
    %79 = vector.extract_strided_slice %75 {offsets = [1, 0], sizes = [8, 4], strides = [1, 1]} : vector<9x4xf32> to vector<8x4xf32>
    %80 = vector.extract_strided_slice %76 {offsets = [1, 0], sizes = [8, 4], strides = [1, 1]} : vector<9x4xf32> to vector<8x4xf32>
    %c126_36 = arith.constant 126 : index
    %c0_37 = arith.constant 0 : index
    %81 = tpu.strided_load %arg1[%c126_36, %c0_37] {strides = array<i32: 2, 1>} : memref<648x4xf32, #tpu.memory_space<vmem>>, vector<9x4xf32>
    %c127_38 = arith.constant 127 : index
    %c0_39 = arith.constant 0 : index
    %82 = tpu.strided_load %arg1[%c127_38, %c0_39] {strides = array<i32: 2, 1>} : memref<648x4xf32, #tpu.memory_space<vmem>>, vector<9x4xf32>
    %83 = vector.extract_strided_slice %81 {offsets = [0, 0], sizes = [8, 4], strides = [1, 1]} : vector<9x4xf32> to vector<8x4xf32>
    %84 = vector.extract_strided_slice %82 {offsets = [0, 0], sizes = [8, 4], strides = [1, 1]} : vector<9x4xf32> to vector<8x4xf32>
    %85 = vector.extract_strided_slice %81 {offsets = [1, 0], sizes = [8, 4], strides = [1, 1]} : vector<9x4xf32> to vector<8x4xf32>
    %86 = vector.extract_strided_slice %82 {offsets = [1, 0], sizes = [8, 4], strides = [1, 1]} : vector<9x4xf32> to vector<8x4xf32>
    %c144 = arith.constant 144 : index
    %c0_40 = arith.constant 0 : index
    %87 = tpu.strided_load %arg1[%c144, %c0_40] {strides = array<i32: 2, 1>} : memref<648x4xf32, #tpu.memory_space<vmem>>, vector<9x4xf32>
    %c145 = arith.constant 145 : index
    %c0_41 = arith.constant 0 : index
    %88 = tpu.strided_load %arg1[%c145, %c0_41] {strides = array<i32: 2, 1>} : memref<648x4xf32, #tpu.memory_space<vmem>>, vector<9x4xf32>
    %89 = vector.extract_strided_slice %87 {offsets = [0, 0], sizes = [8, 4], strides = [1, 1]} : vector<9x4xf32> to vector<8x4xf32>
    %90 = vector.extract_strided_slice %88 {offsets = [0, 0], sizes = [8, 4], strides = [1, 1]} : vector<9x4xf32> to vector<8x4xf32>
    %91 = vector.extract_strided_slice %87 {offsets = [1, 0], sizes = [8, 4], strides = [1, 1]} : vector<9x4xf32> to vector<8x4xf32>
    %92 = vector.extract_strided_slice %88 {offsets = [1, 0], sizes = [8, 4], strides = [1, 1]} : vector<9x4xf32> to vector<8x4xf32>
    %c162 = arith.constant 162 : index
    %c0_42 = arith.constant 0 : index
    %93 = tpu.strided_load %arg1[%c162, %c0_42] {strides = array<i32: 2, 1>} : memref<648x4xf32, #tpu.memory_space<vmem>>, vector<9x4xf32>
    %c163 = arith.constant 163 : index
    %c0_43 = arith.constant 0 : index
    %94 = tpu.strided_load %arg1[%c163, %c0_43] {strides = array<i32: 2, 1>} : memref<648x4xf32, #tpu.memory_space<vmem>>, vector<9x4xf32>
    %95 = vector.extract_strided_slice %93 {offsets = [0, 0], sizes = [8, 4], strides = [1, 1]} : vector<9x4xf32> to vector<8x4xf32>
    %96 = vector.extract_strided_slice %94 {offsets = [0, 0], sizes = [8, 4], strides = [1, 1]} : vector<9x4xf32> to vector<8x4xf32>
    %97 = vector.extract_strided_slice %93 {offsets = [1, 0], sizes = [8, 4], strides = [1, 1]} : vector<9x4xf32> to vector<8x4xf32>
    %98 = vector.extract_strided_slice %94 {offsets = [1, 0], sizes = [8, 4], strides = [1, 1]} : vector<9x4xf32> to vector<8x4xf32>
    %99 = tpu.concatenate %77, %78, %79, %80, %83, %84, %85, %86, %89, %90, %91, %92, %95, %96, %97, %98 in 1 : vector<8x4xf32>, vector<8x4xf32>, vector<8x4xf32>, vector<8x4xf32>, vector<8x4xf32>, vector<8x4xf32>, vector<8x4xf32>, vector<8x4xf32>, vector<8x4xf32>, vector<8x4xf32>, vector<8x4xf32>, vector<8x4xf32>, vector<8x4xf32>, vector<8x4xf32>, vector<8x4xf32>, vector<8x4xf32> -> vector<8x64xf32>
    %c144_44 = arith.constant 144 : index
    %c0_45 = arith.constant 0 : index
    %100 = tpu.strided_load %arg1[%c144_44, %c0_45] {strides = array<i32: 2, 1>} : memref<648x4xf32, #tpu.memory_space<vmem>>, vector<9x4xf32>
    %c145_46 = arith.constant 145 : index
    %c0_47 = arith.constant 0 : index
    %101 = tpu.strided_load %arg1[%c145_46, %c0_47] {strides = array<i32: 2, 1>} : memref<648x4xf32, #tpu.memory_space<vmem>>, vector<9x4xf32>
    %102 = vector.extract_strided_slice %100 {offsets = [0, 0], sizes = [8, 4], strides = [1, 1]} : vector<9x4xf32> to vector<8x4xf32>
    %103 = vector.extract_strided_slice %101 {offsets = [0, 0], sizes = [8, 4], strides = [1, 1]} : vector<9x4xf32> to vector<8x4xf32>
    %104 = vector.extract_strided_slice %100 {offsets = [1, 0], sizes = [8, 4], strides = [1, 1]} : vector<9x4xf32> to vector<8x4xf32>
    %105 = vector.extract_strided_slice %101 {offsets = [1, 0], sizes = [8, 4], strides = [1, 1]} : vector<9x4xf32> to vector<8x4xf32>
    %c162_48 = arith.constant 162 : index
    %c0_49 = arith.constant 0 : index
    %106 = tpu.strided_load %arg1[%c162_48, %c0_49] {strides = array<i32: 2, 1>} : memref<648x4xf32, #tpu.memory_space<vmem>>, vector<9x4xf32>
    %c163_50 = arith.constant 163 : index
    %c0_51 = arith.constant 0 : index
    %107 = tpu.strided_load %arg1[%c163_50, %c0_51] {strides = array<i32: 2, 1>} : memref<648x4xf32, #tpu.memory_space<vmem>>, vector<9x4xf32>
    %108 = vector.extract_strided_slice %106 {offsets = [0, 0], sizes = [8, 4], strides = [1, 1]} : vector<9x4xf32> to vector<8x4xf32>
    %109 = vector.extract_strided_slice %107 {offsets = [0, 0], sizes = [8, 4], strides = [1, 1]} : vector<9x4xf32> to vector<8x4xf32>
    %110 = vector.extract_strided_slice %106 {offsets = [1, 0], sizes = [8, 4], strides = [1, 1]} : vector<9x4xf32> to vector<8x4xf32>
    %111 = vector.extract_strided_slice %107 {offsets = [1, 0], sizes = [8, 4], strides = [1, 1]} : vector<9x4xf32> to vector<8x4xf32>
    %c180 = arith.constant 180 : index
    %c0_52 = arith.constant 0 : index
    %112 = tpu.strided_load %arg1[%c180, %c0_52] {strides = array<i32: 2, 1>} : memref<648x4xf32, #tpu.memory_space<vmem>>, vector<9x4xf32>
    %c181 = arith.constant 181 : index
    %c0_53 = arith.constant 0 : index
    %113 = tpu.strided_load %arg1[%c181, %c0_53] {strides = array<i32: 2, 1>} : memref<648x4xf32, #tpu.memory_space<vmem>>, vector<9x4xf32>
    %114 = vector.extract_strided_slice %112 {offsets = [0, 0], sizes = [8, 4], strides = [1, 1]} : vector<9x4xf32> to vector<8x4xf32>
    %115 = vector.extract_strided_slice %113 {offsets = [0, 0], sizes = [8, 4], strides = [1, 1]} : vector<9x4xf32> to vector<8x4xf32>
    %116 = vector.extract_strided_slice %112 {offsets = [1, 0], sizes = [8, 4], strides = [1, 1]} : vector<9x4xf32> to vector<8x4xf32>
    %117 = vector.extract_strided_slice %113 {offsets = [1, 0], sizes = [8, 4], strides = [1, 1]} : vector<9x4xf32> to vector<8x4xf32>
    %c198 = arith.constant 198 : index
    %c0_54 = arith.constant 0 : index
    %118 = tpu.strided_load %arg1[%c198, %c0_54] {strides = array<i32: 2, 1>} : memref<648x4xf32, #tpu.memory_space<vmem>>, vector<9x4xf32>
    %c199 = arith.constant 199 : index
    %c0_55 = arith.constant 0 : index
    %119 = tpu.strided_load %arg1[%c199, %c0_55] {strides = array<i32: 2, 1>} : memref<648x4xf32, #tpu.memory_space<vmem>>, vector<9x4xf32>
    %120 = vector.extract_strided_slice %118 {offsets = [0, 0], sizes = [8, 4], strides = [1, 1]} : vector<9x4xf32> to vector<8x4xf32>
    %121 = vector.extract_strided_slice %119 {offsets = [0, 0], sizes = [8, 4], strides = [1, 1]} : vector<9x4xf32> to vector<8x4xf32>
    %122 = vector.extract_strided_slice %118 {offsets = [1, 0], sizes = [8, 4], strides = [1, 1]} : vector<9x4xf32> to vector<8x4xf32>
    %123 = vector.extract_strided_slice %119 {offsets = [1, 0], sizes = [8, 4], strides = [1, 1]} : vector<9x4xf32> to vector<8x4xf32>
    %124 = tpu.concatenate %102, %103, %104, %105, %108, %109, %110, %111, %114, %115, %116, %117, %120, %121, %122, %123 in 1 : vector<8x4xf32>, vector<8x4xf32>, vector<8x4xf32>, vector<8x4xf32>, vector<8x4xf32>, vector<8x4xf32>, vector<8x4xf32>, vector<8x4xf32>, vector<8x4xf32>, vector<8x4xf32>, vector<8x4xf32>, vector<8x4xf32>, vector<8x4xf32>, vector<8x4xf32>, vector<8x4xf32>, vector<8x4xf32> -> vector<8x64xf32>
    %c180_56 = arith.constant 180 : index
    %c0_57 = arith.constant 0 : index
    %125 = tpu.strided_load %arg1[%c180_56, %c0_57] {strides = array<i32: 2, 1>} : memref<648x4xf32, #tpu.memory_space<vmem>>, vector<9x4xf32>
    %c181_58 = arith.constant 181 : index
    %c0_59 = arith.constant 0 : index
    %126 = tpu.strided_load %arg1[%c181_58, %c0_59] {strides = array<i32: 2, 1>} : memref<648x4xf32, #tpu.memory_space<vmem>>, vector<9x4xf32>
    %127 = vector.extract_strided_slice %125 {offsets = [0, 0], sizes = [8, 4], strides = [1, 1]} : vector<9x4xf32> to vector<8x4xf32>
    %128 = vector.extract_strided_slice %126 {offsets = [0, 0], sizes = [8, 4], strides = [1, 1]} : vector<9x4xf32> to vector<8x4xf32>
    %129 = vector.extract_strided_slice %125 {offsets = [1, 0], sizes = [8, 4], strides = [1, 1]} : vector<9x4xf32> to vector<8x4xf32>
    %130 = vector.extract_strided_slice %126 {offsets = [1, 0], sizes = [8, 4], strides = [1, 1]} : vector<9x4xf32> to vector<8x4xf32>
    %c198_60 = arith.constant 198 : index
    %c0_61 = arith.constant 0 : index
    %131 = tpu.strided_load %arg1[%c198_60, %c0_61] {strides = array<i32: 2, 1>} : memref<648x4xf32, #tpu.memory_space<vmem>>, vector<9x4xf32>
    %c199_62 = arith.constant 199 : index
    %c0_63 = arith.constant 0 : index
    %132 = tpu.strided_load %arg1[%c199_62, %c0_63] {strides = array<i32: 2, 1>} : memref<648x4xf32, #tpu.memory_space<vmem>>, vector<9x4xf32>
    %133 = vector.extract_strided_slice %131 {offsets = [0, 0], sizes = [8, 4], strides = [1, 1]} : vector<9x4xf32> to vector<8x4xf32>
    %134 = vector.extract_strided_slice %132 {offsets = [0, 0], sizes = [8, 4], strides = [1, 1]} : vector<9x4xf32> to vector<8x4xf32>
    %135 = vector.extract_strided_slice %131 {offsets = [1, 0], sizes = [8, 4], strides = [1, 1]} : vector<9x4xf32> to vector<8x4xf32>
    %136 = vector.extract_strided_slice %132 {offsets = [1, 0], sizes = [8, 4], strides = [1, 1]} : vector<9x4xf32> to vector<8x4xf32>
    %c216 = arith.constant 216 : index
    %c0_64 = arith.constant 0 : index
    %137 = tpu.strided_load %arg1[%c216, %c0_64] {strides = array<i32: 2, 1>} : memref<648x4xf32, #tpu.memory_space<vmem>>, vector<9x4xf32>
    %c217 = arith.constant 217 : index
    %c0_65 = arith.constant 0 : index
    %138 = tpu.strided_load %arg1[%c217, %c0_65] {strides = array<i32: 2, 1>} : memref<648x4xf32, #tpu.memory_space<vmem>>, vector<9x4xf32>
    %139 = vector.extract_strided_slice %137 {offsets = [0, 0], sizes = [8, 4], strides = [1, 1]} : vector<9x4xf32> to vector<8x4xf32>
    %140 = vector.extract_strided_slice %138 {offsets = [0, 0], sizes = [8, 4], strides = [1, 1]} : vector<9x4xf32> to vector<8x4xf32>
    %141 = vector.extract_strided_slice %137 {offsets = [1, 0], sizes = [8, 4], strides = [1, 1]} : vector<9x4xf32> to vector<8x4xf32>
    %142 = vector.extract_strided_slice %138 {offsets = [1, 0], sizes = [8, 4], strides = [1, 1]} : vector<9x4xf32> to vector<8x4xf32>
    %c234 = arith.constant 234 : index
    %c0_66 = arith.constant 0 : index
    %143 = tpu.strided_load %arg1[%c234, %c0_66] {strides = array<i32: 2, 1>} : memref<648x4xf32, #tpu.memory_space<vmem>>, vector<9x4xf32>
    %c235 = arith.constant 235 : index
    %c0_67 = arith.constant 0 : index
    %144 = tpu.strided_load %arg1[%c235, %c0_67] {strides = array<i32: 2, 1>} : memref<648x4xf32, #tpu.memory_space<vmem>>, vector<9x4xf32>
    %145 = vector.extract_strided_slice %143 {offsets = [0, 0], sizes = [8, 4], strides = [1, 1]} : vector<9x4xf32> to vector<8x4xf32>
    %146 = vector.extract_strided_slice %144 {offsets = [0, 0], sizes = [8, 4], strides = [1, 1]} : vector<9x4xf32> to vector<8x4xf32>
    %147 = vector.extract_strided_slice %143 {offsets = [1, 0], sizes = [8, 4], strides = [1, 1]} : vector<9x4xf32> to vector<8x4xf32>
    %148 = vector.extract_strided_slice %144 {offsets = [1, 0], sizes = [8, 4], strides = [1, 1]} : vector<9x4xf32> to vector<8x4xf32>
    %149 = tpu.concatenate %127, %128, %129, %130, %133, %134, %135, %136, %139, %140, %141, %142, %145, %146, %147, %148 in 1 : vector<8x4xf32>, vector<8x4xf32>, vector<8x4xf32>, vector<8x4xf32>, vector<8x4xf32>, vector<8x4xf32>, vector<8x4xf32>, vector<8x4xf32>, vector<8x4xf32>, vector<8x4xf32>, vector<8x4xf32>, vector<8x4xf32>, vector<8x4xf32>, vector<8x4xf32>, vector<8x4xf32>, vector<8x4xf32> -> vector<8x64xf32>
    %c216_68 = arith.constant 216 : index
    %c0_69 = arith.constant 0 : index
    %150 = tpu.strided_load %arg1[%c216_68, %c0_69] {strides = array<i32: 2, 1>} : memref<648x4xf32, #tpu.memory_space<vmem>>, vector<9x4xf32>
    %c217_70 = arith.constant 217 : index
    %c0_71 = arith.constant 0 : index
    %151 = tpu.strided_load %arg1[%c217_70, %c0_71] {strides = array<i32: 2, 1>} : memref<648x4xf32, #tpu.memory_space<vmem>>, vector<9x4xf32>
    %152 = vector.extract_strided_slice %150 {offsets = [0, 0], sizes = [8, 4], strides = [1, 1]} : vector<9x4xf32> to vector<8x4xf32>
    %153 = vector.extract_strided_slice %151 {offsets = [0, 0], sizes = [8, 4], strides = [1, 1]} : vector<9x4xf32> to vector<8x4xf32>
    %154 = vector.extract_strided_slice %150 {offsets = [1, 0], sizes = [8, 4], strides = [1, 1]} : vector<9x4xf32> to vector<8x4xf32>
    %155 = vector.extract_strided_slice %151 {offsets = [1, 0], sizes = [8, 4], strides = [1, 1]} : vector<9x4xf32> to vector<8x4xf32>
    %c234_72 = arith.constant 234 : index
    %c0_73 = arith.constant 0 : index
    %156 = tpu.strided_load %arg1[%c234_72, %c0_73] {strides = array<i32: 2, 1>} : memref<648x4xf32, #tpu.memory_space<vmem>>, vector<9x4xf32>
    %c235_74 = arith.constant 235 : index
    %c0_75 = arith.constant 0 : index
    %157 = tpu.strided_load %arg1[%c235_74, %c0_75] {strides = array<i32: 2, 1>} : memref<648x4xf32, #tpu.memory_space<vmem>>, vector<9x4xf32>
    %158 = vector.extract_strided_slice %156 {offsets = [0, 0], sizes = [8, 4], strides = [1, 1]} : vector<9x4xf32> to vector<8x4xf32>
    %159 = vector.extract_strided_slice %157 {offsets = [0, 0], sizes = [8, 4], strides = [1, 1]} : vector<9x4xf32> to vector<8x4xf32>
    %160 = vector.extract_strided_slice %156 {offsets = [1, 0], sizes = [8, 4], strides = [1, 1]} : vector<9x4xf32> to vector<8x4xf32>
    %161 = vector.extract_strided_slice %157 {offsets = [1, 0], sizes = [8, 4], strides = [1, 1]} : vector<9x4xf32> to vector<8x4xf32>
    %c252 = arith.constant 252 : index
    %c0_76 = arith.constant 0 : index
    %162 = tpu.strided_load %arg1[%c252, %c0_76] {strides = array<i32: 2, 1>} : memref<648x4xf32, #tpu.memory_space<vmem>>, vector<9x4xf32>
    %c253 = arith.constant 253 : index
    %c0_77 = arith.constant 0 : index
    %163 = tpu.strided_load %arg1[%c253, %c0_77] {strides = array<i32: 2, 1>} : memref<648x4xf32, #tpu.memory_space<vmem>>, vector<9x4xf32>
    %164 = vector.extract_strided_slice %162 {offsets = [0, 0], sizes = [8, 4], strides = [1, 1]} : vector<9x4xf32> to vector<8x4xf32>
    %165 = vector.extract_strided_slice %163 {offsets = [0, 0], sizes = [8, 4], strides = [1, 1]} : vector<9x4xf32> to vector<8x4xf32>
    %166 = vector.extract_strided_slice %162 {offsets = [1, 0], sizes = [8, 4], strides = [1, 1]} : vector<9x4xf32> to vector<8x4xf32>
    %167 = vector.extract_strided_slice %163 {offsets = [1, 0], sizes = [8, 4], strides = [1, 1]} : vector<9x4xf32> to vector<8x4xf32>
    %c270 = arith.constant 270 : index
    %c0_78 = arith.constant 0 : index
    %168 = tpu.strided_load %arg1[%c270, %c0_78] {strides = array<i32: 2, 1>} : memref<648x4xf32, #tpu.memory_space<vmem>>, vector<9x4xf32>
    %c271 = arith.constant 271 : index
    %c0_79 = arith.constant 0 : index
    %169 = tpu.strided_load %arg1[%c271, %c0_79] {strides = array<i32: 2, 1>} : memref<648x4xf32, #tpu.memory_space<vmem>>, vector<9x4xf32>
    %170 = vector.extract_strided_slice %168 {offsets = [0, 0], sizes = [8, 4], strides = [1, 1]} : vector<9x4xf32> to vector<8x4xf32>
    %171 = vector.extract_strided_slice %169 {offsets = [0, 0], sizes = [8, 4], strides = [1, 1]} : vector<9x4xf32> to vector<8x4xf32>
    %172 = vector.extract_strided_slice %168 {offsets = [1, 0], sizes = [8, 4], strides = [1, 1]} : vector<9x4xf32> to vector<8x4xf32>
    %173 = vector.extract_strided_slice %169 {offsets = [1, 0], sizes = [8, 4], strides = [1, 1]} : vector<9x4xf32> to vector<8x4xf32>
    %174 = tpu.concatenate %152, %153, %154, %155, %158, %159, %160, %161, %164, %165, %166, %167, %170, %171, %172, %173 in 1 : vector<8x4xf32>, vector<8x4xf32>, vector<8x4xf32>, vector<8x4xf32>, vector<8x4xf32>, vector<8x4xf32>, vector<8x4xf32>, vector<8x4xf32>, vector<8x4xf32>, vector<8x4xf32>, vector<8x4xf32>, vector<8x4xf32>, vector<8x4xf32>, vector<8x4xf32>, vector<8x4xf32>, vector<8x4xf32> -> vector<8x64xf32>
    %c252_80 = arith.constant 252 : index
    %c0_81 = arith.constant 0 : index
    %175 = tpu.strided_load %arg1[%c252_80, %c0_81] {strides = array<i32: 2, 1>} : memref<648x4xf32, #tpu.memory_space<vmem>>, vector<9x4xf32>
    %c253_82 = arith.constant 253 : index
    %c0_83 = arith.constant 0 : index
    %176 = tpu.strided_load %arg1[%c253_82, %c0_83] {strides = array<i32: 2, 1>} : memref<648x4xf32, #tpu.memory_space<vmem>>, vector<9x4xf32>
    %177 = vector.extract_strided_slice %175 {offsets = [0, 0], sizes = [8, 4], strides = [1, 1]} : vector<9x4xf32> to vector<8x4xf32>
    %178 = vector.extract_strided_slice %176 {offsets = [0, 0], sizes = [8, 4], strides = [1, 1]} : vector<9x4xf32> to vector<8x4xf32>
    %179 = vector.extract_strided_slice %175 {offsets = [1, 0], sizes = [8, 4], strides = [1, 1]} : vector<9x4xf32> to vector<8x4xf32>
    %180 = vector.extract_strided_slice %176 {offsets = [1, 0], sizes = [8, 4], strides = [1, 1]} : vector<9x4xf32> to vector<8x4xf32>
    %c270_84 = arith.constant 270 : index
    %c0_85 = arith.constant 0 : index
    %181 = tpu.strided_load %arg1[%c270_84, %c0_85] {strides = array<i32: 2, 1>} : memref<648x4xf32, #tpu.memory_space<vmem>>, vector<9x4xf32>
    %c271_86 = arith.constant 271 : index
    %c0_87 = arith.constant 0 : index
    %182 = tpu.strided_load %arg1[%c271_86, %c0_87] {strides = array<i32: 2, 1>} : memref<648x4xf32, #tpu.memory_space<vmem>>, vector<9x4xf32>
    %183 = vector.extract_strided_slice %181 {offsets = [0, 0], sizes = [8, 4], strides = [1, 1]} : vector<9x4xf32> to vector<8x4xf32>
    %184 = vector.extract_strided_slice %182 {offsets = [0, 0], sizes = [8, 4], strides = [1, 1]} : vector<9x4xf32> to vector<8x4xf32>
    %185 = vector.extract_strided_slice %181 {offsets = [1, 0], sizes = [8, 4], strides = [1, 1]} : vector<9x4xf32> to vector<8x4xf32>
    %186 = vector.extract_strided_slice %182 {offsets = [1, 0], sizes = [8, 4], strides = [1, 1]} : vector<9x4xf32> to vector<8x4xf32>
    %c288 = arith.constant 288 : index
    %c0_88 = arith.constant 0 : index
    %187 = tpu.strided_load %arg1[%c288, %c0_88] {strides = array<i32: 2, 1>} : memref<648x4xf32, #tpu.memory_space<vmem>>, vector<9x4xf32>
    %c289 = arith.constant 289 : index
    %c0_89 = arith.constant 0 : index
    %188 = tpu.strided_load %arg1[%c289, %c0_89] {strides = array<i32: 2, 1>} : memref<648x4xf32, #tpu.memory_space<vmem>>, vector<9x4xf32>
    %189 = vector.extract_strided_slice %187 {offsets = [0, 0], sizes = [8, 4], strides = [1, 1]} : vector<9x4xf32> to vector<8x4xf32>
    %190 = vector.extract_strided_slice %188 {offsets = [0, 0], sizes = [8, 4], strides = [1, 1]} : vector<9x4xf32> to vector<8x4xf32>
    %191 = vector.extract_strided_slice %187 {offsets = [1, 0], sizes = [8, 4], strides = [1, 1]} : vector<9x4xf32> to vector<8x4xf32>
    %192 = vector.extract_strided_slice %188 {offsets = [1, 0], sizes = [8, 4], strides = [1, 1]} : vector<9x4xf32> to vector<8x4xf32>
    %c306 = arith.constant 306 : index
    %c0_90 = arith.constant 0 : index
    %193 = tpu.strided_load %arg1[%c306, %c0_90] {strides = array<i32: 2, 1>} : memref<648x4xf32, #tpu.memory_space<vmem>>, vector<9x4xf32>
    %c307 = arith.constant 307 : index
    %c0_91 = arith.constant 0 : index
    %194 = tpu.strided_load %arg1[%c307, %c0_91] {strides = array<i32: 2, 1>} : memref<648x4xf32, #tpu.memory_space<vmem>>, vector<9x4xf32>
    %195 = vector.extract_strided_slice %193 {offsets = [0, 0], sizes = [8, 4], strides = [1, 1]} : vector<9x4xf32> to vector<8x4xf32>
    %196 = vector.extract_strided_slice %194 {offsets = [0, 0], sizes = [8, 4], strides = [1, 1]} : vector<9x4xf32> to vector<8x4xf32>
    %197 = vector.extract_strided_slice %193 {offsets = [1, 0], sizes = [8, 4], strides = [1, 1]} : vector<9x4xf32> to vector<8x4xf32>
    %198 = vector.extract_strided_slice %194 {offsets = [1, 0], sizes = [8, 4], strides = [1, 1]} : vector<9x4xf32> to vector<8x4xf32>
    %199 = tpu.concatenate %177, %178, %179, %180, %183, %184, %185, %186, %189, %190, %191, %192, %195, %196, %197, %198 in 1 : vector<8x4xf32>, vector<8x4xf32>, vector<8x4xf32>, vector<8x4xf32>, vector<8x4xf32>, vector<8x4xf32>, vector<8x4xf32>, vector<8x4xf32>, vector<8x4xf32>, vector<8x4xf32>, vector<8x4xf32>, vector<8x4xf32>, vector<8x4xf32>, vector<8x4xf32>, vector<8x4xf32>, vector<8x4xf32> -> vector<8x64xf32>
    %c324 = arith.constant 324 : index
    %c0_92 = arith.constant 0 : index
    %200 = tpu.strided_load %arg1[%c324, %c0_92] {strides = array<i32: 2, 1>} : memref<648x4xf32, #tpu.memory_space<vmem>>, vector<9x4xf32>
    %c325 = arith.constant 325 : index
    %c0_93 = arith.constant 0 : index
    %201 = tpu.strided_load %arg1[%c325, %c0_93] {strides = array<i32: 2, 1>} : memref<648x4xf32, #tpu.memory_space<vmem>>, vector<9x4xf32>
    %202 = vector.extract_strided_slice %200 {offsets = [0, 0], sizes = [8, 4], strides = [1, 1]} : vector<9x4xf32> to vector<8x4xf32>
    %203 = vector.extract_strided_slice %201 {offsets = [0, 0], sizes = [8, 4], strides = [1, 1]} : vector<9x4xf32> to vector<8x4xf32>
    %204 = vector.extract_strided_slice %200 {offsets = [1, 0], sizes = [8, 4], strides = [1, 1]} : vector<9x4xf32> to vector<8x4xf32>
    %205 = vector.extract_strided_slice %201 {offsets = [1, 0], sizes = [8, 4], strides = [1, 1]} : vector<9x4xf32> to vector<8x4xf32>
    %c342 = arith.constant 342 : index
    %c0_94 = arith.constant 0 : index
    %206 = tpu.strided_load %arg1[%c342, %c0_94] {strides = array<i32: 2, 1>} : memref<648x4xf32, #tpu.memory_space<vmem>>, vector<9x4xf32>
    %c343 = arith.constant 343 : index
    %c0_95 = arith.constant 0 : index
    %207 = tpu.strided_load %arg1[%c343, %c0_95] {strides = array<i32: 2, 1>} : memref<648x4xf32, #tpu.memory_space<vmem>>, vector<9x4xf32>
    %208 = vector.extract_strided_slice %206 {offsets = [0, 0], sizes = [8, 4], strides = [1, 1]} : vector<9x4xf32> to vector<8x4xf32>
    %209 = vector.extract_strided_slice %207 {offsets = [0, 0], sizes = [8, 4], strides = [1, 1]} : vector<9x4xf32> to vector<8x4xf32>
    %210 = vector.extract_strided_slice %206 {offsets = [1, 0], sizes = [8, 4], strides = [1, 1]} : vector<9x4xf32> to vector<8x4xf32>
    %211 = vector.extract_strided_slice %207 {offsets = [1, 0], sizes = [8, 4], strides = [1, 1]} : vector<9x4xf32> to vector<8x4xf32>
    %c360 = arith.constant 360 : index
    %c0_96 = arith.constant 0 : index
    %212 = tpu.strided_load %arg1[%c360, %c0_96] {strides = array<i32: 2, 1>} : memref<648x4xf32, #tpu.memory_space<vmem>>, vector<9x4xf32>
    %c361 = arith.constant 361 : index
    %c0_97 = arith.constant 0 : index
    %213 = tpu.strided_load %arg1[%c361, %c0_97] {strides = array<i32: 2, 1>} : memref<648x4xf32, #tpu.memory_space<vmem>>, vector<9x4xf32>
    %214 = vector.extract_strided_slice %212 {offsets = [0, 0], sizes = [8, 4], strides = [1, 1]} : vector<9x4xf32> to vector<8x4xf32>
    %215 = vector.extract_strided_slice %213 {offsets = [0, 0], sizes = [8, 4], strides = [1, 1]} : vector<9x4xf32> to vector<8x4xf32>
    %216 = vector.extract_strided_slice %212 {offsets = [1, 0], sizes = [8, 4], strides = [1, 1]} : vector<9x4xf32> to vector<8x4xf32>
    %217 = vector.extract_strided_slice %213 {offsets = [1, 0], sizes = [8, 4], strides = [1, 1]} : vector<9x4xf32> to vector<8x4xf32>
    %c378 = arith.constant 378 : index
    %c0_98 = arith.constant 0 : index
    %218 = tpu.strided_load %arg1[%c378, %c0_98] {strides = array<i32: 2, 1>} : memref<648x4xf32, #tpu.memory_space<vmem>>, vector<9x4xf32>
    %c379 = arith.constant 379 : index
    %c0_99 = arith.constant 0 : index
    %219 = tpu.strided_load %arg1[%c379, %c0_99] {strides = array<i32: 2, 1>} : memref<648x4xf32, #tpu.memory_space<vmem>>, vector<9x4xf32>
    %220 = vector.extract_strided_slice %218 {offsets = [0, 0], sizes = [8, 4], strides = [1, 1]} : vector<9x4xf32> to vector<8x4xf32>
    %221 = vector.extract_strided_slice %219 {offsets = [0, 0], sizes = [8, 4], strides = [1, 1]} : vector<9x4xf32> to vector<8x4xf32>
    %222 = vector.extract_strided_slice %218 {offsets = [1, 0], sizes = [8, 4], strides = [1, 1]} : vector<9x4xf32> to vector<8x4xf32>
    %223 = vector.extract_strided_slice %219 {offsets = [1, 0], sizes = [8, 4], strides = [1, 1]} : vector<9x4xf32> to vector<8x4xf32>
    %224 = tpu.concatenate %202, %203, %204, %205, %208, %209, %210, %211, %214, %215, %216, %217, %220, %221, %222, %223 in 1 : vector<8x4xf32>, vector<8x4xf32>, vector<8x4xf32>, vector<8x4xf32>, vector<8x4xf32>, vector<8x4xf32>, vector<8x4xf32>, vector<8x4xf32>, vector<8x4xf32>, vector<8x4xf32>, vector<8x4xf32>, vector<8x4xf32>, vector<8x4xf32>, vector<8x4xf32>, vector<8x4xf32>, vector<8x4xf32> -> vector<8x64xf32>
    %c360_100 = arith.constant 360 : index
    %c0_101 = arith.constant 0 : index
    %225 = tpu.strided_load %arg1[%c360_100, %c0_101] {strides = array<i32: 2, 1>} : memref<648x4xf32, #tpu.memory_space<vmem>>, vector<9x4xf32>
    %c361_102 = arith.constant 361 : index
    %c0_103 = arith.constant 0 : index
    %226 = tpu.strided_load %arg1[%c361_102, %c0_103] {strides = array<i32: 2, 1>} : memref<648x4xf32, #tpu.memory_space<vmem>>, vector<9x4xf32>
    %227 = vector.extract_strided_slice %225 {offsets = [0, 0], sizes = [8, 4], strides = [1, 1]} : vector<9x4xf32> to vector<8x4xf32>
    %228 = vector.extract_strided_slice %226 {offsets = [0, 0], sizes = [8, 4], strides = [1, 1]} : vector<9x4xf32> to vector<8x4xf32>
    %229 = vector.extract_strided_slice %225 {offsets = [1, 0], sizes = [8, 4], strides = [1, 1]} : vector<9x4xf32> to vector<8x4xf32>
    %230 = vector.extract_strided_slice %226 {offsets = [1, 0], sizes = [8, 4], strides = [1, 1]} : vector<9x4xf32> to vector<8x4xf32>
    %c378_104 = arith.constant 378 : index
    %c0_105 = arith.constant 0 : index
    %231 = tpu.strided_load %arg1[%c378_104, %c0_105] {strides = array<i32: 2, 1>} : memref<648x4xf32, #tpu.memory_space<vmem>>, vector<9x4xf32>
    %c379_106 = arith.constant 379 : index
    %c0_107 = arith.constant 0 : index
    %232 = tpu.strided_load %arg1[%c379_106, %c0_107] {strides = array<i32: 2, 1>} : memref<648x4xf32, #tpu.memory_space<vmem>>, vector<9x4xf32>
    %233 = vector.extract_strided_slice %231 {offsets = [0, 0], sizes = [8, 4], strides = [1, 1]} : vector<9x4xf32> to vector<8x4xf32>
    %234 = vector.extract_strided_slice %232 {offsets = [0, 0], sizes = [8, 4], strides = [1, 1]} : vector<9x4xf32> to vector<8x4xf32>
    %235 = vector.extract_strided_slice %231 {offsets = [1, 0], sizes = [8, 4], strides = [1, 1]} : vector<9x4xf32> to vector<8x4xf32>
    %236 = vector.extract_strided_slice %232 {offsets = [1, 0], sizes = [8, 4], strides = [1, 1]} : vector<9x4xf32> to vector<8x4xf32>
    %c396 = arith.constant 396 : index
    %c0_108 = arith.constant 0 : index
    %237 = tpu.strided_load %arg1[%c396, %c0_108] {strides = array<i32: 2, 1>} : memref<648x4xf32, #tpu.memory_space<vmem>>, vector<9x4xf32>
    %c397 = arith.constant 397 : index
    %c0_109 = arith.constant 0 : index
    %238 = tpu.strided_load %arg1[%c397, %c0_109] {strides = array<i32: 2, 1>} : memref<648x4xf32, #tpu.memory_space<vmem>>, vector<9x4xf32>
    %239 = vector.extract_strided_slice %237 {offsets = [0, 0], sizes = [8, 4], strides = [1, 1]} : vector<9x4xf32> to vector<8x4xf32>
    %240 = vector.extract_strided_slice %238 {offsets = [0, 0], sizes = [8, 4], strides = [1, 1]} : vector<9x4xf32> to vector<8x4xf32>
    %241 = vector.extract_strided_slice %237 {offsets = [1, 0], sizes = [8, 4], strides = [1, 1]} : vector<9x4xf32> to vector<8x4xf32>
    %242 = vector.extract_strided_slice %238 {offsets = [1, 0], sizes = [8, 4], strides = [1, 1]} : vector<9x4xf32> to vector<8x4xf32>
    %c414 = arith.constant 414 : index
    %c0_110 = arith.constant 0 : index
    %243 = tpu.strided_load %arg1[%c414, %c0_110] {strides = array<i32: 2, 1>} : memref<648x4xf32, #tpu.memory_space<vmem>>, vector<9x4xf32>
    %c415 = arith.constant 415 : index
    %c0_111 = arith.constant 0 : index
    %244 = tpu.strided_load %arg1[%c415, %c0_111] {strides = array<i32: 2, 1>} : memref<648x4xf32, #tpu.memory_space<vmem>>, vector<9x4xf32>
    %245 = vector.extract_strided_slice %243 {offsets = [0, 0], sizes = [8, 4], strides = [1, 1]} : vector<9x4xf32> to vector<8x4xf32>
    %246 = vector.extract_strided_slice %244 {offsets = [0, 0], sizes = [8, 4], strides = [1, 1]} : vector<9x4xf32> to vector<8x4xf32>
    %247 = vector.extract_strided_slice %243 {offsets = [1, 0], sizes = [8, 4], strides = [1, 1]} : vector<9x4xf32> to vector<8x4xf32>
    %248 = vector.extract_strided_slice %244 {offsets = [1, 0], sizes = [8, 4], strides = [1, 1]} : vector<9x4xf32> to vector<8x4xf32>
    %249 = tpu.concatenate %227, %228, %229, %230, %233, %234, %235, %236, %239, %240, %241, %242, %245, %246, %247, %248 in 1 : vector<8x4xf32>, vector<8x4xf32>, vector<8x4xf32>, vector<8x4xf32>, vector<8x4xf32>, vector<8x4xf32>, vector<8x4xf32>, vector<8x4xf32>, vector<8x4xf32>, vector<8x4xf32>, vector<8x4xf32>, vector<8x4xf32>, vector<8x4xf32>, vector<8x4xf32>, vector<8x4xf32>, vector<8x4xf32> -> vector<8x64xf32>
    %c396_112 = arith.constant 396 : index
    %c0_113 = arith.constant 0 : index
    %250 = tpu.strided_load %arg1[%c396_112, %c0_113] {strides = array<i32: 2, 1>} : memref<648x4xf32, #tpu.memory_space<vmem>>, vector<9x4xf32>
    %c397_114 = arith.constant 397 : index
    %c0_115 = arith.constant 0 : index
    %251 = tpu.strided_load %arg1[%c397_114, %c0_115] {strides = array<i32: 2, 1>} : memref<648x4xf32, #tpu.memory_space<vmem>>, vector<9x4xf32>
    %252 = vector.extract_strided_slice %250 {offsets = [0, 0], sizes = [8, 4], strides = [1, 1]} : vector<9x4xf32> to vector<8x4xf32>
    %253 = vector.extract_strided_slice %251 {offsets = [0, 0], sizes = [8, 4], strides = [1, 1]} : vector<9x4xf32> to vector<8x4xf32>
    %254 = vector.extract_strided_slice %250 {offsets = [1, 0], sizes = [8, 4], strides = [1, 1]} : vector<9x4xf32> to vector<8x4xf32>
    %255 = vector.extract_strided_slice %251 {offsets = [1, 0], sizes = [8, 4], strides = [1, 1]} : vector<9x4xf32> to vector<8x4xf32>
    %c414_116 = arith.constant 414 : index
    %c0_117 = arith.constant 0 : index
    %256 = tpu.strided_load %arg1[%c414_116, %c0_117] {strides = array<i32: 2, 1>} : memref<648x4xf32, #tpu.memory_space<vmem>>, vector<9x4xf32>
    %c415_118 = arith.constant 415 : index
    %c0_119 = arith.constant 0 : index
    %257 = tpu.strided_load %arg1[%c415_118, %c0_119] {strides = array<i32: 2, 1>} : memref<648x4xf32, #tpu.memory_space<vmem>>, vector<9x4xf32>
    %258 = vector.extract_strided_slice %256 {offsets = [0, 0], sizes = [8, 4], strides = [1, 1]} : vector<9x4xf32> to vector<8x4xf32>
    %259 = vector.extract_strided_slice %257 {offsets = [0, 0], sizes = [8, 4], strides = [1, 1]} : vector<9x4xf32> to vector<8x4xf32>
    %260 = vector.extract_strided_slice %256 {offsets = [1, 0], sizes = [8, 4], strides = [1, 1]} : vector<9x4xf32> to vector<8x4xf32>
    %261 = vector.extract_strided_slice %257 {offsets = [1, 0], sizes = [8, 4], strides = [1, 1]} : vector<9x4xf32> to vector<8x4xf32>
    %c432 = arith.constant 432 : index
    %c0_120 = arith.constant 0 : index
    %262 = tpu.strided_load %arg1[%c432, %c0_120] {strides = array<i32: 2, 1>} : memref<648x4xf32, #tpu.memory_space<vmem>>, vector<9x4xf32>
    %c433 = arith.constant 433 : index
    %c0_121 = arith.constant 0 : index
    %263 = tpu.strided_load %arg1[%c433, %c0_121] {strides = array<i32: 2, 1>} : memref<648x4xf32, #tpu.memory_space<vmem>>, vector<9x4xf32>
    %264 = vector.extract_strided_slice %262 {offsets = [0, 0], sizes = [8, 4], strides = [1, 1]} : vector<9x4xf32> to vector<8x4xf32>
    %265 = vector.extract_strided_slice %263 {offsets = [0, 0], sizes = [8, 4], strides = [1, 1]} : vector<9x4xf32> to vector<8x4xf32>
    %266 = vector.extract_strided_slice %262 {offsets = [1, 0], sizes = [8, 4], strides = [1, 1]} : vector<9x4xf32> to vector<8x4xf32>
    %267 = vector.extract_strided_slice %263 {offsets = [1, 0], sizes = [8, 4], strides = [1, 1]} : vector<9x4xf32> to vector<8x4xf32>
    %c450 = arith.constant 450 : index
    %c0_122 = arith.constant 0 : index
    %268 = tpu.strided_load %arg1[%c450, %c0_122] {strides = array<i32: 2, 1>} : memref<648x4xf32, #tpu.memory_space<vmem>>, vector<9x4xf32>
    %c451 = arith.constant 451 : index
    %c0_123 = arith.constant 0 : index
    %269 = tpu.strided_load %arg1[%c451, %c0_123] {strides = array<i32: 2, 1>} : memref<648x4xf32, #tpu.memory_space<vmem>>, vector<9x4xf32>
    %270 = vector.extract_strided_slice %268 {offsets = [0, 0], sizes = [8, 4], strides = [1, 1]} : vector<9x4xf32> to vector<8x4xf32>
    %271 = vector.extract_strided_slice %269 {offsets = [0, 0], sizes = [8, 4], strides = [1, 1]} : vector<9x4xf32> to vector<8x4xf32>
    %272 = vector.extract_strided_slice %268 {offsets = [1, 0], sizes = [8, 4], strides = [1, 1]} : vector<9x4xf32> to vector<8x4xf32>
    %273 = vector.extract_strided_slice %269 {offsets = [1, 0], sizes = [8, 4], strides = [1, 1]} : vector<9x4xf32> to vector<8x4xf32>
    %274 = tpu.concatenate %252, %253, %254, %255, %258, %259, %260, %261, %264, %265, %266, %267, %270, %271, %272, %273 in 1 : vector<8x4xf32>, vector<8x4xf32>, vector<8x4xf32>, vector<8x4xf32>, vector<8x4xf32>, vector<8x4xf32>, vector<8x4xf32>, vector<8x4xf32>, vector<8x4xf32>, vector<8x4xf32>, vector<8x4xf32>, vector<8x4xf32>, vector<8x4xf32>, vector<8x4xf32>, vector<8x4xf32>, vector<8x4xf32> -> vector<8x64xf32>
    %c432_124 = arith.constant 432 : index
    %c0_125 = arith.constant 0 : index
    %275 = tpu.strided_load %arg1[%c432_124, %c0_125] {strides = array<i32: 2, 1>} : memref<648x4xf32, #tpu.memory_space<vmem>>, vector<9x4xf32>
    %c433_126 = arith.constant 433 : index
    %c0_127 = arith.constant 0 : index
    %276 = tpu.strided_load %arg1[%c433_126, %c0_127] {strides = array<i32: 2, 1>} : memref<648x4xf32, #tpu.memory_space<vmem>>, vector<9x4xf32>
    %277 = vector.extract_strided_slice %275 {offsets = [0, 0], sizes = [8, 4], strides = [1, 1]} : vector<9x4xf32> to vector<8x4xf32>
    %278 = vector.extract_strided_slice %276 {offsets = [0, 0], sizes = [8, 4], strides = [1, 1]} : vector<9x4xf32> to vector<8x4xf32>
    %279 = vector.extract_strided_slice %275 {offsets = [1, 0], sizes = [8, 4], strides = [1, 1]} : vector<9x4xf32> to vector<8x4xf32>
    %280 = vector.extract_strided_slice %276 {offsets = [1, 0], sizes = [8, 4], strides = [1, 1]} : vector<9x4xf32> to vector<8x4xf32>
    %c450_128 = arith.constant 450 : index
    %c0_129 = arith.constant 0 : index
    %281 = tpu.strided_load %arg1[%c450_128, %c0_129] {strides = array<i32: 2, 1>} : memref<648x4xf32, #tpu.memory_space<vmem>>, vector<9x4xf32>
    %c451_130 = arith.constant 451 : index
    %c0_131 = arith.constant 0 : index
    %282 = tpu.strided_load %arg1[%c451_130, %c0_131] {strides = array<i32: 2, 1>} : memref<648x4xf32, #tpu.memory_space<vmem>>, vector<9x4xf32>
    %283 = vector.extract_strided_slice %281 {offsets = [0, 0], sizes = [8, 4], strides = [1, 1]} : vector<9x4xf32> to vector<8x4xf32>
    %284 = vector.extract_strided_slice %282 {offsets = [0, 0], sizes = [8, 4], strides = [1, 1]} : vector<9x4xf32> to vector<8x4xf32>
    %285 = vector.extract_strided_slice %281 {offsets = [1, 0], sizes = [8, 4], strides = [1, 1]} : vector<9x4xf32> to vector<8x4xf32>
    %286 = vector.extract_strided_slice %282 {offsets = [1, 0], sizes = [8, 4], strides = [1, 1]} : vector<9x4xf32> to vector<8x4xf32>
    %c468 = arith.constant 468 : index
    %c0_132 = arith.constant 0 : index
    %287 = tpu.strided_load %arg1[%c468, %c0_132] {strides = array<i32: 2, 1>} : memref<648x4xf32, #tpu.memory_space<vmem>>, vector<9x4xf32>
    %c469 = arith.constant 469 : index
    %c0_133 = arith.constant 0 : index
    %288 = tpu.strided_load %arg1[%c469, %c0_133] {strides = array<i32: 2, 1>} : memref<648x4xf32, #tpu.memory_space<vmem>>, vector<9x4xf32>
    %289 = vector.extract_strided_slice %287 {offsets = [0, 0], sizes = [8, 4], strides = [1, 1]} : vector<9x4xf32> to vector<8x4xf32>
    %290 = vector.extract_strided_slice %288 {offsets = [0, 0], sizes = [8, 4], strides = [1, 1]} : vector<9x4xf32> to vector<8x4xf32>
    %291 = vector.extract_strided_slice %287 {offsets = [1, 0], sizes = [8, 4], strides = [1, 1]} : vector<9x4xf32> to vector<8x4xf32>
    %292 = vector.extract_strided_slice %288 {offsets = [1, 0], sizes = [8, 4], strides = [1, 1]} : vector<9x4xf32> to vector<8x4xf32>
    %c486 = arith.constant 486 : index
    %c0_134 = arith.constant 0 : index
    %293 = tpu.strided_load %arg1[%c486, %c0_134] {strides = array<i32: 2, 1>} : memref<648x4xf32, #tpu.memory_space<vmem>>, vector<9x4xf32>
    %c487 = arith.constant 487 : index
    %c0_135 = arith.constant 0 : index
    %294 = tpu.strided_load %arg1[%c487, %c0_135] {strides = array<i32: 2, 1>} : memref<648x4xf32, #tpu.memory_space<vmem>>, vector<9x4xf32>
    %295 = vector.extract_strided_slice %293 {offsets = [0, 0], sizes = [8, 4], strides = [1, 1]} : vector<9x4xf32> to vector<8x4xf32>
    %296 = vector.extract_strided_slice %294 {offsets = [0, 0], sizes = [8, 4], strides = [1, 1]} : vector<9x4xf32> to vector<8x4xf32>
    %297 = vector.extract_strided_slice %293 {offsets = [1, 0], sizes = [8, 4], strides = [1, 1]} : vector<9x4xf32> to vector<8x4xf32>
    %298 = vector.extract_strided_slice %294 {offsets = [1, 0], sizes = [8, 4], strides = [1, 1]} : vector<9x4xf32> to vector<8x4xf32>
    %299 = tpu.concatenate %277, %278, %279, %280, %283, %284, %285, %286, %289, %290, %291, %292, %295, %296, %297, %298 in 1 : vector<8x4xf32>, vector<8x4xf32>, vector<8x4xf32>, vector<8x4xf32>, vector<8x4xf32>, vector<8x4xf32>, vector<8x4xf32>, vector<8x4xf32>, vector<8x4xf32>, vector<8x4xf32>, vector<8x4xf32>, vector<8x4xf32>, vector<8x4xf32>, vector<8x4xf32>, vector<8x4xf32>, vector<8x4xf32> -> vector<8x64xf32>
    %c468_136 = arith.constant 468 : index
    %c0_137 = arith.constant 0 : index
    %300 = tpu.strided_load %arg1[%c468_136, %c0_137] {strides = array<i32: 2, 1>} : memref<648x4xf32, #tpu.memory_space<vmem>>, vector<9x4xf32>
    %c469_138 = arith.constant 469 : index
    %c0_139 = arith.constant 0 : index
    %301 = tpu.strided_load %arg1[%c469_138, %c0_139] {strides = array<i32: 2, 1>} : memref<648x4xf32, #tpu.memory_space<vmem>>, vector<9x4xf32>
    %302 = vector.extract_strided_slice %300 {offsets = [0, 0], sizes = [8, 4], strides = [1, 1]} : vector<9x4xf32> to vector<8x4xf32>
    %303 = vector.extract_strided_slice %301 {offsets = [0, 0], sizes = [8, 4], strides = [1, 1]} : vector<9x4xf32> to vector<8x4xf32>
    %304 = vector.extract_strided_slice %300 {offsets = [1, 0], sizes = [8, 4], strides = [1, 1]} : vector<9x4xf32> to vector<8x4xf32>
    %305 = vector.extract_strided_slice %301 {offsets = [1, 0], sizes = [8, 4], strides = [1, 1]} : vector<9x4xf32> to vector<8x4xf32>
    %c486_140 = arith.constant 486 : index
    %c0_141 = arith.constant 0 : index
    %306 = tpu.strided_load %arg1[%c486_140, %c0_141] {strides = array<i32: 2, 1>} : memref<648x4xf32, #tpu.memory_space<vmem>>, vector<9x4xf32>
    %c487_142 = arith.constant 487 : index
    %c0_143 = arith.constant 0 : index
    %307 = tpu.strided_load %arg1[%c487_142, %c0_143] {strides = array<i32: 2, 1>} : memref<648x4xf32, #tpu.memory_space<vmem>>, vector<9x4xf32>
    %308 = vector.extract_strided_slice %306 {offsets = [0, 0], sizes = [8, 4], strides = [1, 1]} : vector<9x4xf32> to vector<8x4xf32>
    %309 = vector.extract_strided_slice %307 {offsets = [0, 0], sizes = [8, 4], strides = [1, 1]} : vector<9x4xf32> to vector<8x4xf32>
    %310 = vector.extract_strided_slice %306 {offsets = [1, 0], sizes = [8, 4], strides = [1, 1]} : vector<9x4xf32> to vector<8x4xf32>
    %311 = vector.extract_strided_slice %307 {offsets = [1, 0], sizes = [8, 4], strides = [1, 1]} : vector<9x4xf32> to vector<8x4xf32>
    %c504 = arith.constant 504 : index
    %c0_144 = arith.constant 0 : index
    %312 = tpu.strided_load %arg1[%c504, %c0_144] {strides = array<i32: 2, 1>} : memref<648x4xf32, #tpu.memory_space<vmem>>, vector<9x4xf32>
    %c505 = arith.constant 505 : index
    %c0_145 = arith.constant 0 : index
    %313 = tpu.strided_load %arg1[%c505, %c0_145] {strides = array<i32: 2, 1>} : memref<648x4xf32, #tpu.memory_space<vmem>>, vector<9x4xf32>
    %314 = vector.extract_strided_slice %312 {offsets = [0, 0], sizes = [8, 4], strides = [1, 1]} : vector<9x4xf32> to vector<8x4xf32>
    %315 = vector.extract_strided_slice %313 {offsets = [0, 0], sizes = [8, 4], strides = [1, 1]} : vector<9x4xf32> to vector<8x4xf32>
    %316 = vector.extract_strided_slice %312 {offsets = [1, 0], sizes = [8, 4], strides = [1, 1]} : vector<9x4xf32> to vector<8x4xf32>
    %317 = vector.extract_strided_slice %313 {offsets = [1, 0], sizes = [8, 4], strides = [1, 1]} : vector<9x4xf32> to vector<8x4xf32>
    %c522 = arith.constant 522 : index
    %c0_146 = arith.constant 0 : index
    %318 = tpu.strided_load %arg1[%c522, %c0_146] {strides = array<i32: 2, 1>} : memref<648x4xf32, #tpu.memory_space<vmem>>, vector<9x4xf32>
    %c523 = arith.constant 523 : index
    %c0_147 = arith.constant 0 : index
    %319 = tpu.strided_load %arg1[%c523, %c0_147] {strides = array<i32: 2, 1>} : memref<648x4xf32, #tpu.memory_space<vmem>>, vector<9x4xf32>
    %320 = vector.extract_strided_slice %318 {offsets = [0, 0], sizes = [8, 4], strides = [1, 1]} : vector<9x4xf32> to vector<8x4xf32>
    %321 = vector.extract_strided_slice %319 {offsets = [0, 0], sizes = [8, 4], strides = [1, 1]} : vector<9x4xf32> to vector<8x4xf32>
    %322 = vector.extract_strided_slice %318 {offsets = [1, 0], sizes = [8, 4], strides = [1, 1]} : vector<9x4xf32> to vector<8x4xf32>
    %323 = vector.extract_strided_slice %319 {offsets = [1, 0], sizes = [8, 4], strides = [1, 1]} : vector<9x4xf32> to vector<8x4xf32>
    %324 = tpu.concatenate %302, %303, %304, %305, %308, %309, %310, %311, %314, %315, %316, %317, %320, %321, %322, %323 in 1 : vector<8x4xf32>, vector<8x4xf32>, vector<8x4xf32>, vector<8x4xf32>, vector<8x4xf32>, vector<8x4xf32>, vector<8x4xf32>, vector<8x4xf32>, vector<8x4xf32>, vector<8x4xf32>, vector<8x4xf32>, vector<8x4xf32>, vector<8x4xf32>, vector<8x4xf32>, vector<8x4xf32>, vector<8x4xf32> -> vector<8x64xf32>
    %c504_148 = arith.constant 504 : index
    %c0_149 = arith.constant 0 : index
    %325 = tpu.strided_load %arg1[%c504_148, %c0_149] {strides = array<i32: 2, 1>} : memref<648x4xf32, #tpu.memory_space<vmem>>, vector<9x4xf32>
    %c505_150 = arith.constant 505 : index
    %c0_151 = arith.constant 0 : index
    %326 = tpu.strided_load %arg1[%c505_150, %c0_151] {strides = array<i32: 2, 1>} : memref<648x4xf32, #tpu.memory_space<vmem>>, vector<9x4xf32>
    %327 = vector.extract_strided_slice %325 {offsets = [0, 0], sizes = [8, 4], strides = [1, 1]} : vector<9x4xf32> to vector<8x4xf32>
    %328 = vector.extract_strided_slice %326 {offsets = [0, 0], sizes = [8, 4], strides = [1, 1]} : vector<9x4xf32> to vector<8x4xf32>
    %329 = vector.extract_strided_slice %325 {offsets = [1, 0], sizes = [8, 4], strides = [1, 1]} : vector<9x4xf32> to vector<8x4xf32>
    %330 = vector.extract_strided_slice %326 {offsets = [1, 0], sizes = [8, 4], strides = [1, 1]} : vector<9x4xf32> to vector<8x4xf32>
    %c522_152 = arith.constant 522 : index
    %c0_153 = arith.constant 0 : index
    %331 = tpu.strided_load %arg1[%c522_152, %c0_153] {strides = array<i32: 2, 1>} : memref<648x4xf32, #tpu.memory_space<vmem>>, vector<9x4xf32>
    %c523_154 = arith.constant 523 : index
    %c0_155 = arith.constant 0 : index
    %332 = tpu.strided_load %arg1[%c523_154, %c0_155] {strides = array<i32: 2, 1>} : memref<648x4xf32, #tpu.memory_space<vmem>>, vector<9x4xf32>
    %333 = vector.extract_strided_slice %331 {offsets = [0, 0], sizes = [8, 4], strides = [1, 1]} : vector<9x4xf32> to vector<8x4xf32>
    %334 = vector.extract_strided_slice %332 {offsets = [0, 0], sizes = [8, 4], strides = [1, 1]} : vector<9x4xf32> to vector<8x4xf32>
    %335 = vector.extract_strided_slice %331 {offsets = [1, 0], sizes = [8, 4], strides = [1, 1]} : vector<9x4xf32> to vector<8x4xf32>
    %336 = vector.extract_strided_slice %332 {offsets = [1, 0], sizes = [8, 4], strides = [1, 1]} : vector<9x4xf32> to vector<8x4xf32>
    %c540 = arith.constant 540 : index
    %c0_156 = arith.constant 0 : index
    %337 = tpu.strided_load %arg1[%c540, %c0_156] {strides = array<i32: 2, 1>} : memref<648x4xf32, #tpu.memory_space<vmem>>, vector<9x4xf32>
    %c541 = arith.constant 541 : index
    %c0_157 = arith.constant 0 : index
    %338 = tpu.strided_load %arg1[%c541, %c0_157] {strides = array<i32: 2, 1>} : memref<648x4xf32, #tpu.memory_space<vmem>>, vector<9x4xf32>
    %339 = vector.extract_strided_slice %337 {offsets = [0, 0], sizes = [8, 4], strides = [1, 1]} : vector<9x4xf32> to vector<8x4xf32>
    %340 = vector.extract_strided_slice %338 {offsets = [0, 0], sizes = [8, 4], strides = [1, 1]} : vector<9x4xf32> to vector<8x4xf32>
    %341 = vector.extract_strided_slice %337 {offsets = [1, 0], sizes = [8, 4], strides = [1, 1]} : vector<9x4xf32> to vector<8x4xf32>
    %342 = vector.extract_strided_slice %338 {offsets = [1, 0], sizes = [8, 4], strides = [1, 1]} : vector<9x4xf32> to vector<8x4xf32>
    %c558 = arith.constant 558 : index
    %c0_158 = arith.constant 0 : index
    %343 = tpu.strided_load %arg1[%c558, %c0_158] {strides = array<i32: 2, 1>} : memref<648x4xf32, #tpu.memory_space<vmem>>, vector<9x4xf32>
    %c559 = arith.constant 559 : index
    %c0_159 = arith.constant 0 : index
    %344 = tpu.strided_load %arg1[%c559, %c0_159] {strides = array<i32: 2, 1>} : memref<648x4xf32, #tpu.memory_space<vmem>>, vector<9x4xf32>
    %345 = vector.extract_strided_slice %343 {offsets = [0, 0], sizes = [8, 4], strides = [1, 1]} : vector<9x4xf32> to vector<8x4xf32>
    %346 = vector.extract_strided_slice %344 {offsets = [0, 0], sizes = [8, 4], strides = [1, 1]} : vector<9x4xf32> to vector<8x4xf32>
    %347 = vector.extract_strided_slice %343 {offsets = [1, 0], sizes = [8, 4], strides = [1, 1]} : vector<9x4xf32> to vector<8x4xf32>
    %348 = vector.extract_strided_slice %344 {offsets = [1, 0], sizes = [8, 4], strides = [1, 1]} : vector<9x4xf32> to vector<8x4xf32>
    %349 = tpu.concatenate %327, %328, %329, %330, %333, %334, %335, %336, %339, %340, %341, %342, %345, %346, %347, %348 in 1 : vector<8x4xf32>, vector<8x4xf32>, vector<8x4xf32>, vector<8x4xf32>, vector<8x4xf32>, vector<8x4xf32>, vector<8x4xf32>, vector<8x4xf32>, vector<8x4xf32>, vector<8x4xf32>, vector<8x4xf32>, vector<8x4xf32>, vector<8x4xf32>, vector<8x4xf32>, vector<8x4xf32>, vector<8x4xf32> -> vector<8x64xf32>
    %c540_160 = arith.constant 540 : index
    %c0_161 = arith.constant 0 : index
    %350 = tpu.strided_load %arg1[%c540_160, %c0_161] {strides = array<i32: 2, 1>} : memref<648x4xf32, #tpu.memory_space<vmem>>, vector<9x4xf32>
    %c541_162 = arith.constant 541 : index
    %c0_163 = arith.constant 0 : index
    %351 = tpu.strided_load %arg1[%c541_162, %c0_163] {strides = array<i32: 2, 1>} : memref<648x4xf32, #tpu.memory_space<vmem>>, vector<9x4xf32>
    %352 = vector.extract_strided_slice %350 {offsets = [0, 0], sizes = [8, 4], strides = [1, 1]} : vector<9x4xf32> to vector<8x4xf32>
    %353 = vector.extract_strided_slice %351 {offsets = [0, 0], sizes = [8, 4], strides = [1, 1]} : vector<9x4xf32> to vector<8x4xf32>
    %354 = vector.extract_strided_slice %350 {offsets = [1, 0], sizes = [8, 4], strides = [1, 1]} : vector<9x4xf32> to vector<8x4xf32>
    %355 = vector.extract_strided_slice %351 {offsets = [1, 0], sizes = [8, 4], strides = [1, 1]} : vector<9x4xf32> to vector<8x4xf32>
    %c558_164 = arith.constant 558 : index
    %c0_165 = arith.constant 0 : index
    %356 = tpu.strided_load %arg1[%c558_164, %c0_165] {strides = array<i32: 2, 1>} : memref<648x4xf32, #tpu.memory_space<vmem>>, vector<9x4xf32>
    %c559_166 = arith.constant 559 : index
    %c0_167 = arith.constant 0 : index
    %357 = tpu.strided_load %arg1[%c559_166, %c0_167] {strides = array<i32: 2, 1>} : memref<648x4xf32, #tpu.memory_space<vmem>>, vector<9x4xf32>
    %358 = vector.extract_strided_slice %356 {offsets = [0, 0], sizes = [8, 4], strides = [1, 1]} : vector<9x4xf32> to vector<8x4xf32>
    %359 = vector.extract_strided_slice %357 {offsets = [0, 0], sizes = [8, 4], strides = [1, 1]} : vector<9x4xf32> to vector<8x4xf32>
    %360 = vector.extract_strided_slice %356 {offsets = [1, 0], sizes = [8, 4], strides = [1, 1]} : vector<9x4xf32> to vector<8x4xf32>
    %361 = vector.extract_strided_slice %357 {offsets = [1, 0], sizes = [8, 4], strides = [1, 1]} : vector<9x4xf32> to vector<8x4xf32>
    %c576 = arith.constant 576 : index
    %c0_168 = arith.constant 0 : index
    %362 = tpu.strided_load %arg1[%c576, %c0_168] {strides = array<i32: 2, 1>} : memref<648x4xf32, #tpu.memory_space<vmem>>, vector<9x4xf32>
    %c577 = arith.constant 577 : index
    %c0_169 = arith.constant 0 : index
    %363 = tpu.strided_load %arg1[%c577, %c0_169] {strides = array<i32: 2, 1>} : memref<648x4xf32, #tpu.memory_space<vmem>>, vector<9x4xf32>
    %364 = vector.extract_strided_slice %362 {offsets = [0, 0], sizes = [8, 4], strides = [1, 1]} : vector<9x4xf32> to vector<8x4xf32>
    %365 = vector.extract_strided_slice %363 {offsets = [0, 0], sizes = [8, 4], strides = [1, 1]} : vector<9x4xf32> to vector<8x4xf32>
    %366 = vector.extract_strided_slice %362 {offsets = [1, 0], sizes = [8, 4], strides = [1, 1]} : vector<9x4xf32> to vector<8x4xf32>
    %367 = vector.extract_strided_slice %363 {offsets = [1, 0], sizes = [8, 4], strides = [1, 1]} : vector<9x4xf32> to vector<8x4xf32>
    %c594 = arith.constant 594 : index
    %c0_170 = arith.constant 0 : index
    %368 = tpu.strided_load %arg1[%c594, %c0_170] {strides = array<i32: 2, 1>} : memref<648x4xf32, #tpu.memory_space<vmem>>, vector<9x4xf32>
    %c595 = arith.constant 595 : index
    %c0_171 = arith.constant 0 : index
    %369 = tpu.strided_load %arg1[%c595, %c0_171] {strides = array<i32: 2, 1>} : memref<648x4xf32, #tpu.memory_space<vmem>>, vector<9x4xf32>
    %370 = vector.extract_strided_slice %368 {offsets = [0, 0], sizes = [8, 4], strides = [1, 1]} : vector<9x4xf32> to vector<8x4xf32>
    %371 = vector.extract_strided_slice %369 {offsets = [0, 0], sizes = [8, 4], strides = [1, 1]} : vector<9x4xf32> to vector<8x4xf32>
    %372 = vector.extract_strided_slice %368 {offsets = [1, 0], sizes = [8, 4], strides = [1, 1]} : vector<9x4xf32> to vector<8x4xf32>
    %373 = vector.extract_strided_slice %369 {offsets = [1, 0], sizes = [8, 4], strides = [1, 1]} : vector<9x4xf32> to vector<8x4xf32>
    %374 = tpu.concatenate %352, %353, %354, %355, %358, %359, %360, %361, %364, %365, %366, %367, %370, %371, %372, %373 in 1 : vector<8x4xf32>, vector<8x4xf32>, vector<8x4xf32>, vector<8x4xf32>, vector<8x4xf32>, vector<8x4xf32>, vector<8x4xf32>, vector<8x4xf32>, vector<8x4xf32>, vector<8x4xf32>, vector<8x4xf32>, vector<8x4xf32>, vector<8x4xf32>, vector<8x4xf32>, vector<8x4xf32>, vector<8x4xf32> -> vector<8x64xf32>
    %c576_172 = arith.constant 576 : index
    %c0_173 = arith.constant 0 : index
    %375 = tpu.strided_load %arg1[%c576_172, %c0_173] {strides = array<i32: 2, 1>} : memref<648x4xf32, #tpu.memory_space<vmem>>, vector<9x4xf32>
    %c577_174 = arith.constant 577 : index
    %c0_175 = arith.constant 0 : index
    %376 = tpu.strided_load %arg1[%c577_174, %c0_175] {strides = array<i32: 2, 1>} : memref<648x4xf32, #tpu.memory_space<vmem>>, vector<9x4xf32>
    %377 = vector.extract_strided_slice %375 {offsets = [0, 0], sizes = [8, 4], strides = [1, 1]} : vector<9x4xf32> to vector<8x4xf32>
    %378 = vector.extract_strided_slice %376 {offsets = [0, 0], sizes = [8, 4], strides = [1, 1]} : vector<9x4xf32> to vector<8x4xf32>
    %379 = vector.extract_strided_slice %375 {offsets = [1, 0], sizes = [8, 4], strides = [1, 1]} : vector<9x4xf32> to vector<8x4xf32>
    %380 = vector.extract_strided_slice %376 {offsets = [1, 0], sizes = [8, 4], strides = [1, 1]} : vector<9x4xf32> to vector<8x4xf32>
    %c594_176 = arith.constant 594 : index
    %c0_177 = arith.constant 0 : index
    %381 = tpu.strided_load %arg1[%c594_176, %c0_177] {strides = array<i32: 2, 1>} : memref<648x4xf32, #tpu.memory_space<vmem>>, vector<9x4xf32>
    %c595_178 = arith.constant 595 : index
    %c0_179 = arith.constant 0 : index
    %382 = tpu.strided_load %arg1[%c595_178, %c0_179] {strides = array<i32: 2, 1>} : memref<648x4xf32, #tpu.memory_space<vmem>>, vector<9x4xf32>
    %383 = vector.extract_strided_slice %381 {offsets = [0, 0], sizes = [8, 4], strides = [1, 1]} : vector<9x4xf32> to vector<8x4xf32>
    %384 = vector.extract_strided_slice %382 {offsets = [0, 0], sizes = [8, 4], strides = [1, 1]} : vector<9x4xf32> to vector<8x4xf32>
    %385 = vector.extract_strided_slice %381 {offsets = [1, 0], sizes = [8, 4], strides = [1, 1]} : vector<9x4xf32> to vector<8x4xf32>
    %386 = vector.extract_strided_slice %382 {offsets = [1, 0], sizes = [8, 4], strides = [1, 1]} : vector<9x4xf32> to vector<8x4xf32>
    %c612 = arith.constant 612 : index
    %c0_180 = arith.constant 0 : index
    %387 = tpu.strided_load %arg1[%c612, %c0_180] {strides = array<i32: 2, 1>} : memref<648x4xf32, #tpu.memory_space<vmem>>, vector<9x4xf32>
    %c613 = arith.constant 613 : index
    %c0_181 = arith.constant 0 : index
    %388 = tpu.strided_load %arg1[%c613, %c0_181] {strides = array<i32: 2, 1>} : memref<648x4xf32, #tpu.memory_space<vmem>>, vector<9x4xf32>
    %389 = vector.extract_strided_slice %387 {offsets = [0, 0], sizes = [8, 4], strides = [1, 1]} : vector<9x4xf32> to vector<8x4xf32>
    %390 = vector.extract_strided_slice %388 {offsets = [0, 0], sizes = [8, 4], strides = [1, 1]} : vector<9x4xf32> to vector<8x4xf32>
    %391 = vector.extract_strided_slice %387 {offsets = [1, 0], sizes = [8, 4], strides = [1, 1]} : vector<9x4xf32> to vector<8x4xf32>
    %392 = vector.extract_strided_slice %388 {offsets = [1, 0], sizes = [8, 4], strides = [1, 1]} : vector<9x4xf32> to vector<8x4xf32>
    %c630 = arith.constant 630 : index
    %c0_182 = arith.constant 0 : index
    %393 = tpu.strided_load %arg1[%c630, %c0_182] {strides = array<i32: 2, 1>} : memref<648x4xf32, #tpu.memory_space<vmem>>, vector<9x4xf32>
    %c631 = arith.constant 631 : index
    %c0_183 = arith.constant 0 : index
    %394 = tpu.strided_load %arg1[%c631, %c0_183] {strides = array<i32: 2, 1>} : memref<648x4xf32, #tpu.memory_space<vmem>>, vector<9x4xf32>
    %395 = vector.extract_strided_slice %393 {offsets = [0, 0], sizes = [8, 4], strides = [1, 1]} : vector<9x4xf32> to vector<8x4xf32>
    %396 = vector.extract_strided_slice %394 {offsets = [0, 0], sizes = [8, 4], strides = [1, 1]} : vector<9x4xf32> to vector<8x4xf32>
    %397 = vector.extract_strided_slice %393 {offsets = [1, 0], sizes = [8, 4], strides = [1, 1]} : vector<9x4xf32> to vector<8x4xf32>
    %398 = vector.extract_strided_slice %394 {offsets = [1, 0], sizes = [8, 4], strides = [1, 1]} : vector<9x4xf32> to vector<8x4xf32>
    %399 = tpu.concatenate %377, %378, %379, %380, %383, %384, %385, %386, %389, %390, %391, %392, %395, %396, %397, %398 in 1 : vector<8x4xf32>, vector<8x4xf32>, vector<8x4xf32>, vector<8x4xf32>, vector<8x4xf32>, vector<8x4xf32>, vector<8x4xf32>, vector<8x4xf32>, vector<8x4xf32>, vector<8x4xf32>, vector<8x4xf32>, vector<8x4xf32>, vector<8x4xf32>, vector<8x4xf32>, vector<8x4xf32>, vector<8x4xf32> -> vector<8x64xf32>
    %400 = tpu.concatenate %24, %49, %74, %99, %124, %149, %174, %199, %224, %249, %274, %299, %324, %349, %374, %399 in 0 : vector<8x64xf32>, vector<8x64xf32>, vector<8x64xf32>, vector<8x64xf32>, vector<8x64xf32>, vector<8x64xf32>, vector<8x64xf32>, vector<8x64xf32>, vector<8x64xf32>, vector<8x64xf32>, vector<8x64xf32>, vector<8x64xf32>, vector<8x64xf32>, vector<8x64xf32>, vector<8x64xf32>, vector<8x64xf32> -> vector<128x64xf32>
    %c0_184 = arith.constant 0 : index
    %c0_185 = arith.constant 0 : index
    %401 = vector.load %arg2[%c0_184, %c0_185] : memref<704x16xf32, #tpu.memory_space<vmem>>, vector<64x8xf32>
    %cst = arith.constant dense<0.000000e+00> : vector<128x8xf32>
    %402 = tpu.matmul %400, %401, %cst {dimension_numbers = #tpu.dot_dimension_numbers<[1], [0], [0], [1], [0, 0, 1, 1], [], []>} : vector<128x64xf32>, vector<64x8xf32>, vector<128x8xf32> -> vector<128x8xf32>
    %c0_186 = arith.constant 0 : index
    %c0_187 = arith.constant 0 : index
    %403 = vector.load %arg3[%c0_186, %c0_187] : memref<6x16xf32, #tpu.memory_space<vmem>>, vector<1x8xf32>
    %404 = vector.broadcast %403 : vector<1x8xf32> to vector<128x8xf32>
    %405 = arith.addf %402, %404 : vector<128x8xf32>
    %cst_188 = arith.constant 0.000000e+00 : f32
    %406 = vector.broadcast %cst_188 : f32 to vector<128x8xf32>
    %407 = arith.maximumf %405, %406 : vector<128x8xf32>
    %cst_189 = arith.constant 0.000000e+00 : f32
    %408 = vector.broadcast %cst_189 : f32 to vector<200x8xf32>
    %c0_190 = arith.constant 0 : index
    %c0_191 = arith.constant 0 : index
    %409 = vector.load %arg5[%c0_190, %c0_191] : memref<200x8xf32, #tpu.memory_space<vmem>>, vector<200x8xf32>
    tpu.vector_store %arg5[%c0_190, %c0_191], %408 {strides = array<i32>} : memref<200x8xf32, #tpu.memory_space<vmem>>, vector<200x8xf32>,
    %410 = vector.extract_strided_slice %407 {offsets = [0, 0], sizes = [8, 8], strides = [1, 1]} : vector<128x8xf32> to vector<8x8xf32>
    %c11 = arith.constant 11 : index
    %c0_192 = arith.constant 0 : index
    %411 = vector.load %arg5[%c11, %c0_192] : memref<200x8xf32, #tpu.memory_space<vmem>>, vector<8x8xf32>
    tpu.vector_store %arg5[%c11, %c0_192], %410 {strides = array<i32>} : memref<200x8xf32, #tpu.memory_space<vmem>>, vector<8x8xf32>,
    %412 = vector.extract_strided_slice %407 {offsets = [8, 0], sizes = [8, 8], strides = [1, 1]} : vector<128x8xf32> to vector<8x8xf32>
    %c21 = arith.constant 21 : index
    %c0_193 = arith.constant 0 : index
    %413 = vector.load %arg5[%c21, %c0_193] : memref<200x8xf32, #tpu.memory_space<vmem>>, vector<8x8xf32>
    tpu.vector_store %arg5[%c21, %c0_193], %412 {strides = array<i32>} : memref<200x8xf32, #tpu.memory_space<vmem>>, vector<8x8xf32>,
    %414 = vector.extract_strided_slice %407 {offsets = [16, 0], sizes = [8, 8], strides = [1, 1]} : vector<128x8xf32> to vector<8x8xf32>
    %c31 = arith.constant 31 : index
    %c0_194 = arith.constant 0 : index
    %415 = vector.load %arg5[%c31, %c0_194] : memref<200x8xf32, #tpu.memory_space<vmem>>, vector<8x8xf32>
    tpu.vector_store %arg5[%c31, %c0_194], %414 {strides = array<i32>} : memref<200x8xf32, #tpu.memory_space<vmem>>, vector<8x8xf32>,
    %416 = vector.extract_strided_slice %407 {offsets = [24, 0], sizes = [8, 8], strides = [1, 1]} : vector<128x8xf32> to vector<8x8xf32>
    %c41 = arith.constant 41 : index
    %c0_195 = arith.constant 0 : index
    %417 = vector.load %arg5[%c41, %c0_195] : memref<200x8xf32, #tpu.memory_space<vmem>>, vector<8x8xf32>
    tpu.vector_store %arg5[%c41, %c0_195], %416 {strides = array<i32>} : memref<200x8xf32, #tpu.memory_space<vmem>>, vector<8x8xf32>,
    %418 = vector.extract_strided_slice %407 {offsets = [32, 0], sizes = [8, 8], strides = [1, 1]} : vector<128x8xf32> to vector<8x8xf32>
    %c51 = arith.constant 51 : index
    %c0_196 = arith.constant 0 : index
    %419 = vector.load %arg5[%c51, %c0_196] : memref<200x8xf32, #tpu.memory_space<vmem>>, vector<8x8xf32>
    tpu.vector_store %arg5[%c51, %c0_196], %418 {strides = array<i32>} : memref<200x8xf32, #tpu.memory_space<vmem>>, vector<8x8xf32>,
    %420 = vector.extract_strided_slice %407 {offsets = [40, 0], sizes = [8, 8], strides = [1, 1]} : vector<128x8xf32> to vector<8x8xf32>
    %c61 = arith.constant 61 : index
    %c0_197 = arith.constant 0 : index
    %421 = vector.load %arg5[%c61, %c0_197] : memref<200x8xf32, #tpu.memory_space<vmem>>, vector<8x8xf32>
    tpu.vector_store %arg5[%c61, %c0_197], %420 {strides = array<i32>} : memref<200x8xf32, #tpu.memory_space<vmem>>, vector<8x8xf32>,
    %422 = vector.extract_strided_slice %407 {offsets = [48, 0], sizes = [8, 8], strides = [1, 1]} : vector<128x8xf32> to vector<8x8xf32>
    %c71 = arith.constant 71 : index
    %c0_198 = arith.constant 0 : index
    %423 = vector.load %arg5[%c71, %c0_198] : memref<200x8xf32, #tpu.memory_space<vmem>>, vector<8x8xf32>
    tpu.vector_store %arg5[%c71, %c0_198], %422 {strides = array<i32>} : memref<200x8xf32, #tpu.memory_space<vmem>>, vector<8x8xf32>,
    %424 = vector.extract_strided_slice %407 {offsets = [56, 0], sizes = [8, 8], strides = [1, 1]} : vector<128x8xf32> to vector<8x8xf32>
    %c81 = arith.constant 81 : index
    %c0_199 = arith.constant 0 : index
    %425 = vector.load %arg5[%c81, %c0_199] : memref<200x8xf32, #tpu.memory_space<vmem>>, vector<8x8xf32>
    tpu.vector_store %arg5[%c81, %c0_199], %424 {strides = array<i32>} : memref<200x8xf32, #tpu.memory_space<vmem>>, vector<8x8xf32>,
    %426 = vector.extract_strided_slice %407 {offsets = [64, 0], sizes = [8, 8], strides = [1, 1]} : vector<128x8xf32> to vector<8x8xf32>
    %c111 = arith.constant 111 : index
    %c0_200 = arith.constant 0 : index
    %427 = vector.load %arg5[%c111, %c0_200] : memref<200x8xf32, #tpu.memory_space<vmem>>, vector<8x8xf32>
    tpu.vector_store %arg5[%c111, %c0_200], %426 {strides = array<i32>} : memref<200x8xf32, #tpu.memory_space<vmem>>, vector<8x8xf32>,
    %428 = vector.extract_strided_slice %407 {offsets = [72, 0], sizes = [8, 8], strides = [1, 1]} : vector<128x8xf32> to vector<8x8xf32>
    %c121 = arith.constant 121 : index
    %c0_201 = arith.constant 0 : index
    %429 = vector.load %arg5[%c121, %c0_201] : memref<200x8xf32, #tpu.memory_space<vmem>>, vector<8x8xf32>
    tpu.vector_store %arg5[%c121, %c0_201], %428 {strides = array<i32>} : memref<200x8xf32, #tpu.memory_space<vmem>>, vector<8x8xf32>,
    %430 = vector.extract_strided_slice %407 {offsets = [80, 0], sizes = [8, 8], strides = [1, 1]} : vector<128x8xf32> to vector<8x8xf32>
    %c131 = arith.constant 131 : index
    %c0_202 = arith.constant 0 : index
    %431 = vector.load %arg5[%c131, %c0_202] : memref<200x8xf32, #tpu.memory_space<vmem>>, vector<8x8xf32>
    tpu.vector_store %arg5[%c131, %c0_202], %430 {strides = array<i32>} : memref<200x8xf32, #tpu.memory_space<vmem>>, vector<8x8xf32>,
    %432 = vector.extract_strided_slice %407 {offsets = [88, 0], sizes = [8, 8], strides = [1, 1]} : vector<128x8xf32> to vector<8x8xf32>
    %c141 = arith.constant 141 : index
    %c0_203 = arith.constant 0 : index
    %433 = vector.load %arg5[%c141, %c0_203] : memref<200x8xf32, #tpu.memory_space<vmem>>, vector<8x8xf32>
    tpu.vector_store %arg5[%c141, %c0_203], %432 {strides = array<i32>} : memref<200x8xf32, #tpu.memory_space<vmem>>, vector<8x8xf32>,
    %434 = vector.extract_strided_slice %407 {offsets = [96, 0], sizes = [8, 8], strides = [1, 1]} : vector<128x8xf32> to vector<8x8xf32>
    %c151 = arith.constant 151 : index
    %c0_204 = arith.constant 0 : index
    %435 = vector.load %arg5[%c151, %c0_204] : memref<200x8xf32, #tpu.memory_space<vmem>>, vector<8x8xf32>
    tpu.vector_store %arg5[%c151, %c0_204], %434 {strides = array<i32>} : memref<200x8xf32, #tpu.memory_space<vmem>>, vector<8x8xf32>,
    %436 = vector.extract_strided_slice %407 {offsets = [104, 0], sizes = [8, 8], strides = [1, 1]} : vector<128x8xf32> to vector<8x8xf32>
    %c161 = arith.constant 161 : index
    %c0_205 = arith.constant 0 : index
    %437 = vector.load %arg5[%c161, %c0_205] : memref<200x8xf32, #tpu.memory_space<vmem>>, vector<8x8xf32>
    tpu.vector_store %arg5[%c161, %c0_205], %436 {strides = array<i32>} : memref<200x8xf32, #tpu.memory_space<vmem>>, vector<8x8xf32>,
    %438 = vector.extract_strided_slice %407 {offsets = [112, 0], sizes = [8, 8], strides = [1, 1]} : vector<128x8xf32> to vector<8x8xf32>
    %c171 = arith.constant 171 : index
    %c0_206 = arith.constant 0 : index
    %439 = vector.load %arg5[%c171, %c0_206] : memref<200x8xf32, #tpu.memory_space<vmem>>, vector<8x8xf32>
    tpu.vector_store %arg5[%c171, %c0_206], %438 {strides = array<i32>} : memref<200x8xf32, #tpu.memory_space<vmem>>, vector<8x8xf32>,
    %440 = vector.extract_strided_slice %407 {offsets = [120, 0], sizes = [8, 8], strides = [1, 1]} : vector<128x8xf32> to vector<8x8xf32>
    %c181_207 = arith.constant 181 : index
    %c0_208 = arith.constant 0 : index
    %441 = vector.load %arg5[%c181_207, %c0_208] : memref<200x8xf32, #tpu.memory_space<vmem>>, vector<8x8xf32>
    tpu.vector_store %arg5[%c181_207, %c0_208], %440 {strides = array<i32>} : memref<200x8xf32, #tpu.memory_space<vmem>>, vector<8x8xf32>,
    %c0_209 = arith.constant 0 : index
    %c0_210 = arith.constant 0 : index
    %442 = tpu.strided_load %arg5[%c0_209, %c0_210] {strides = array<i32: 2, 1>} : memref<200x8xf32, #tpu.memory_space<vmem>>, vector<5x8xf32>
    %c1_211 = arith.constant 1 : index
    %c0_212 = arith.constant 0 : index
    %443 = tpu.strided_load %arg5[%c1_211, %c0_212] {strides = array<i32: 2, 1>} : memref<200x8xf32, #tpu.memory_space<vmem>>, vector<5x8xf32>
    %444 = vector.extract_strided_slice %442 {offsets = [0, 0], sizes = [4, 8], strides = [1, 1]} : vector<5x8xf32> to vector<4x8xf32>
    %445 = vector.extract_strided_slice %443 {offsets = [0, 0], sizes = [4, 8], strides = [1, 1]} : vector<5x8xf32> to vector<4x8xf32>
    %446 = vector.extract_strided_slice %442 {offsets = [1, 0], sizes = [4, 8], strides = [1, 1]} : vector<5x8xf32> to vector<4x8xf32>
    %447 = vector.extract_strided_slice %443 {offsets = [1, 0], sizes = [4, 8], strides = [1, 1]} : vector<5x8xf32> to vector<4x8xf32>
    %c10 = arith.constant 10 : index
    %c0_213 = arith.constant 0 : index
    %448 = tpu.strided_load %arg5[%c10, %c0_213] {strides = array<i32: 2, 1>} : memref<200x8xf32, #tpu.memory_space<vmem>>, vector<5x8xf32>
    %c11_214 = arith.constant 11 : index
    %c0_215 = arith.constant 0 : index
    %449 = tpu.strided_load %arg5[%c11_214, %c0_215] {strides = array<i32: 2, 1>} : memref<200x8xf32, #tpu.memory_space<vmem>>, vector<5x8xf32>
    %450 = vector.extract_strided_slice %448 {offsets = [0, 0], sizes = [4, 8], strides = [1, 1]} : vector<5x8xf32> to vector<4x8xf32>
    %451 = vector.extract_strided_slice %449 {offsets = [0, 0], sizes = [4, 8], strides = [1, 1]} : vector<5x8xf32> to vector<4x8xf32>
    %452 = vector.extract_strided_slice %448 {offsets = [1, 0], sizes = [4, 8], strides = [1, 1]} : vector<5x8xf32> to vector<4x8xf32>
    %453 = vector.extract_strided_slice %449 {offsets = [1, 0], sizes = [4, 8], strides = [1, 1]} : vector<5x8xf32> to vector<4x8xf32>
    %c20 = arith.constant 20 : index
    %c0_216 = arith.constant 0 : index
    %454 = tpu.strided_load %arg5[%c20, %c0_216] {strides = array<i32: 2, 1>} : memref<200x8xf32, #tpu.memory_space<vmem>>, vector<5x8xf32>
    %c21_217 = arith.constant 21 : index
    %c0_218 = arith.constant 0 : index
    %455 = tpu.strided_load %arg5[%c21_217, %c0_218] {strides = array<i32: 2, 1>} : memref<200x8xf32, #tpu.memory_space<vmem>>, vector<5x8xf32>
    %456 = vector.extract_strided_slice %454 {offsets = [0, 0], sizes = [4, 8], strides = [1, 1]} : vector<5x8xf32> to vector<4x8xf32>
    %457 = vector.extract_strided_slice %455 {offsets = [0, 0], sizes = [4, 8], strides = [1, 1]} : vector<5x8xf32> to vector<4x8xf32>
    %458 = vector.extract_strided_slice %454 {offsets = [1, 0], sizes = [4, 8], strides = [1, 1]} : vector<5x8xf32> to vector<4x8xf32>
    %459 = vector.extract_strided_slice %455 {offsets = [1, 0], sizes = [4, 8], strides = [1, 1]} : vector<5x8xf32> to vector<4x8xf32>
    %c30 = arith.constant 30 : index
    %c0_219 = arith.constant 0 : index
    %460 = tpu.strided_load %arg5[%c30, %c0_219] {strides = array<i32: 2, 1>} : memref<200x8xf32, #tpu.memory_space<vmem>>, vector<5x8xf32>
    %c31_220 = arith.constant 31 : index
    %c0_221 = arith.constant 0 : index
    %461 = tpu.strided_load %arg5[%c31_220, %c0_221] {strides = array<i32: 2, 1>} : memref<200x8xf32, #tpu.memory_space<vmem>>, vector<5x8xf32>
    %462 = vector.extract_strided_slice %460 {offsets = [0, 0], sizes = [4, 8], strides = [1, 1]} : vector<5x8xf32> to vector<4x8xf32>
    %463 = vector.extract_strided_slice %461 {offsets = [0, 0], sizes = [4, 8], strides = [1, 1]} : vector<5x8xf32> to vector<4x8xf32>
    %464 = vector.extract_strided_slice %460 {offsets = [1, 0], sizes = [4, 8], strides = [1, 1]} : vector<5x8xf32> to vector<4x8xf32>
    %465 = vector.extract_strided_slice %461 {offsets = [1, 0], sizes = [4, 8], strides = [1, 1]} : vector<5x8xf32> to vector<4x8xf32>
    %466 = tpu.concatenate %444, %445, %446, %447, %450, %451, %452, %453, %456, %457, %458, %459, %462, %463, %464, %465 in 1 : vector<4x8xf32>, vector<4x8xf32>, vector<4x8xf32>, vector<4x8xf32>, vector<4x8xf32>, vector<4x8xf32>, vector<4x8xf32>, vector<4x8xf32>, vector<4x8xf32>, vector<4x8xf32>, vector<4x8xf32>, vector<4x8xf32>, vector<4x8xf32>, vector<4x8xf32>, vector<4x8xf32>, vector<4x8xf32> -> vector<4x128xf32>
    %c20_222 = arith.constant 20 : index
    %c0_223 = arith.constant 0 : index
    %467 = tpu.strided_load %arg5[%c20_222, %c0_223] {strides = array<i32: 2, 1>} : memref<200x8xf32, #tpu.memory_space<vmem>>, vector<5x8xf32>
    %c21_224 = arith.constant 21 : index
    %c0_225 = arith.constant 0 : index
    %468 = tpu.strided_load %arg5[%c21_224, %c0_225] {strides = array<i32: 2, 1>} : memref<200x8xf32, #tpu.memory_space<vmem>>, vector<5x8xf32>
    %469 = vector.extract_strided_slice %467 {offsets = [0, 0], sizes = [4, 8], strides = [1, 1]} : vector<5x8xf32> to vector<4x8xf32>
    %470 = vector.extract_strided_slice %468 {offsets = [0, 0], sizes = [4, 8], strides = [1, 1]} : vector<5x8xf32> to vector<4x8xf32>
    %471 = vector.extract_strided_slice %467 {offsets = [1, 0], sizes = [4, 8], strides = [1, 1]} : vector<5x8xf32> to vector<4x8xf32>
    %472 = vector.extract_strided_slice %468 {offsets = [1, 0], sizes = [4, 8], strides = [1, 1]} : vector<5x8xf32> to vector<4x8xf32>
    %c30_226 = arith.constant 30 : index
    %c0_227 = arith.constant 0 : index
    %473 = tpu.strided_load %arg5[%c30_226, %c0_227] {strides = array<i32: 2, 1>} : memref<200x8xf32, #tpu.memory_space<vmem>>, vector<5x8xf32>
    %c31_228 = arith.constant 31 : index
    %c0_229 = arith.constant 0 : index
    %474 = tpu.strided_load %arg5[%c31_228, %c0_229] {strides = array<i32: 2, 1>} : memref<200x8xf32, #tpu.memory_space<vmem>>, vector<5x8xf32>
    %475 = vector.extract_strided_slice %473 {offsets = [0, 0], sizes = [4, 8], strides = [1, 1]} : vector<5x8xf32> to vector<4x8xf32>
    %476 = vector.extract_strided_slice %474 {offsets = [0, 0], sizes = [4, 8], strides = [1, 1]} : vector<5x8xf32> to vector<4x8xf32>
    %477 = vector.extract_strided_slice %473 {offsets = [1, 0], sizes = [4, 8], strides = [1, 1]} : vector<5x8xf32> to vector<4x8xf32>
    %478 = vector.extract_strided_slice %474 {offsets = [1, 0], sizes = [4, 8], strides = [1, 1]} : vector<5x8xf32> to vector<4x8xf32>
    %c40 = arith.constant 40 : index
    %c0_230 = arith.constant 0 : index
    %479 = tpu.strided_load %arg5[%c40, %c0_230] {strides = array<i32: 2, 1>} : memref<200x8xf32, #tpu.memory_space<vmem>>, vector<5x8xf32>
    %c41_231 = arith.constant 41 : index
    %c0_232 = arith.constant 0 : index
    %480 = tpu.strided_load %arg5[%c41_231, %c0_232] {strides = array<i32: 2, 1>} : memref<200x8xf32, #tpu.memory_space<vmem>>, vector<5x8xf32>
    %481 = vector.extract_strided_slice %479 {offsets = [0, 0], sizes = [4, 8], strides = [1, 1]} : vector<5x8xf32> to vector<4x8xf32>
    %482 = vector.extract_strided_slice %480 {offsets = [0, 0], sizes = [4, 8], strides = [1, 1]} : vector<5x8xf32> to vector<4x8xf32>
    %483 = vector.extract_strided_slice %479 {offsets = [1, 0], sizes = [4, 8], strides = [1, 1]} : vector<5x8xf32> to vector<4x8xf32>
    %484 = vector.extract_strided_slice %480 {offsets = [1, 0], sizes = [4, 8], strides = [1, 1]} : vector<5x8xf32> to vector<4x8xf32>
    %c50 = arith.constant 50 : index
    %c0_233 = arith.constant 0 : index
    %485 = tpu.strided_load %arg5[%c50, %c0_233] {strides = array<i32: 2, 1>} : memref<200x8xf32, #tpu.memory_space<vmem>>, vector<5x8xf32>
    %c51_234 = arith.constant 51 : index
    %c0_235 = arith.constant 0 : index
    %486 = tpu.strided_load %arg5[%c51_234, %c0_235] {strides = array<i32: 2, 1>} : memref<200x8xf32, #tpu.memory_space<vmem>>, vector<5x8xf32>
    %487 = vector.extract_strided_slice %485 {offsets = [0, 0], sizes = [4, 8], strides = [1, 1]} : vector<5x8xf32> to vector<4x8xf32>
    %488 = vector.extract_strided_slice %486 {offsets = [0, 0], sizes = [4, 8], strides = [1, 1]} : vector<5x8xf32> to vector<4x8xf32>
    %489 = vector.extract_strided_slice %485 {offsets = [1, 0], sizes = [4, 8], strides = [1, 1]} : vector<5x8xf32> to vector<4x8xf32>
    %490 = vector.extract_strided_slice %486 {offsets = [1, 0], sizes = [4, 8], strides = [1, 1]} : vector<5x8xf32> to vector<4x8xf32>
    %491 = tpu.concatenate %469, %470, %471, %472, %475, %476, %477, %478, %481, %482, %483, %484, %487, %488, %489, %490 in 1 : vector<4x8xf32>, vector<4x8xf32>, vector<4x8xf32>, vector<4x8xf32>, vector<4x8xf32>, vector<4x8xf32>, vector<4x8xf32>, vector<4x8xf32>, vector<4x8xf32>, vector<4x8xf32>, vector<4x8xf32>, vector<4x8xf32>, vector<4x8xf32>, vector<4x8xf32>, vector<4x8xf32>, vector<4x8xf32> -> vector<4x128xf32>
    %c40_236 = arith.constant 40 : index
    %c0_237 = arith.constant 0 : index
    %492 = tpu.strided_load %arg5[%c40_236, %c0_237] {strides = array<i32: 2, 1>} : memref<200x8xf32, #tpu.memory_space<vmem>>, vector<5x8xf32>
    %c41_238 = arith.constant 41 : index
    %c0_239 = arith.constant 0 : index
    %493 = tpu.strided_load %arg5[%c41_238, %c0_239] {strides = array<i32: 2, 1>} : memref<200x8xf32, #tpu.memory_space<vmem>>, vector<5x8xf32>
    %494 = vector.extract_strided_slice %492 {offsets = [0, 0], sizes = [4, 8], strides = [1, 1]} : vector<5x8xf32> to vector<4x8xf32>
    %495 = vector.extract_strided_slice %493 {offsets = [0, 0], sizes = [4, 8], strides = [1, 1]} : vector<5x8xf32> to vector<4x8xf32>
    %496 = vector.extract_strided_slice %492 {offsets = [1, 0], sizes = [4, 8], strides = [1, 1]} : vector<5x8xf32> to vector<4x8xf32>
    %497 = vector.extract_strided_slice %493 {offsets = [1, 0], sizes = [4, 8], strides = [1, 1]} : vector<5x8xf32> to vector<4x8xf32>
    %c50_240 = arith.constant 50 : index
    %c0_241 = arith.constant 0 : index
    %498 = tpu.strided_load %arg5[%c50_240, %c0_241] {strides = array<i32: 2, 1>} : memref<200x8xf32, #tpu.memory_space<vmem>>, vector<5x8xf32>
    %c51_242 = arith.constant 51 : index
    %c0_243 = arith.constant 0 : index
    %499 = tpu.strided_load %arg5[%c51_242, %c0_243] {strides = array<i32: 2, 1>} : memref<200x8xf32, #tpu.memory_space<vmem>>, vector<5x8xf32>
    %500 = vector.extract_strided_slice %498 {offsets = [0, 0], sizes = [4, 8], strides = [1, 1]} : vector<5x8xf32> to vector<4x8xf32>
    %501 = vector.extract_strided_slice %499 {offsets = [0, 0], sizes = [4, 8], strides = [1, 1]} : vector<5x8xf32> to vector<4x8xf32>
    %502 = vector.extract_strided_slice %498 {offsets = [1, 0], sizes = [4, 8], strides = [1, 1]} : vector<5x8xf32> to vector<4x8xf32>
    %503 = vector.extract_strided_slice %499 {offsets = [1, 0], sizes = [4, 8], strides = [1, 1]} : vector<5x8xf32> to vector<4x8xf32>
    %c60 = arith.constant 60 : index
    %c0_244 = arith.constant 0 : index
    %504 = tpu.strided_load %arg5[%c60, %c0_244] {strides = array<i32: 2, 1>} : memref<200x8xf32, #tpu.memory_space<vmem>>, vector<5x8xf32>
    %c61_245 = arith.constant 61 : index
    %c0_246 = arith.constant 0 : index
    %505 = tpu.strided_load %arg5[%c61_245, %c0_246] {strides = array<i32: 2, 1>} : memref<200x8xf32, #tpu.memory_space<vmem>>, vector<5x8xf32>
    %506 = vector.extract_strided_slice %504 {offsets = [0, 0], sizes = [4, 8], strides = [1, 1]} : vector<5x8xf32> to vector<4x8xf32>
    %507 = vector.extract_strided_slice %505 {offsets = [0, 0], sizes = [4, 8], strides = [1, 1]} : vector<5x8xf32> to vector<4x8xf32>
    %508 = vector.extract_strided_slice %504 {offsets = [1, 0], sizes = [4, 8], strides = [1, 1]} : vector<5x8xf32> to vector<4x8xf32>
    %509 = vector.extract_strided_slice %505 {offsets = [1, 0], sizes = [4, 8], strides = [1, 1]} : vector<5x8xf32> to vector<4x8xf32>
    %c70 = arith.constant 70 : index
    %c0_247 = arith.constant 0 : index
    %510 = tpu.strided_load %arg5[%c70, %c0_247] {strides = array<i32: 2, 1>} : memref<200x8xf32, #tpu.memory_space<vmem>>, vector<5x8xf32>
    %c71_248 = arith.constant 71 : index
    %c0_249 = arith.constant 0 : index
    %511 = tpu.strided_load %arg5[%c71_248, %c0_249] {strides = array<i32: 2, 1>} : memref<200x8xf32, #tpu.memory_space<vmem>>, vector<5x8xf32>
    %512 = vector.extract_strided_slice %510 {offsets = [0, 0], sizes = [4, 8], strides = [1, 1]} : vector<5x8xf32> to vector<4x8xf32>
    %513 = vector.extract_strided_slice %511 {offsets = [0, 0], sizes = [4, 8], strides = [1, 1]} : vector<5x8xf32> to vector<4x8xf32>
    %514 = vector.extract_strided_slice %510 {offsets = [1, 0], sizes = [4, 8], strides = [1, 1]} : vector<5x8xf32> to vector<4x8xf32>
    %515 = vector.extract_strided_slice %511 {offsets = [1, 0], sizes = [4, 8], strides = [1, 1]} : vector<5x8xf32> to vector<4x8xf32>
    %516 = tpu.concatenate %494, %495, %496, %497, %500, %501, %502, %503, %506, %507, %508, %509, %512, %513, %514, %515 in 1 : vector<4x8xf32>, vector<4x8xf32>, vector<4x8xf32>, vector<4x8xf32>, vector<4x8xf32>, vector<4x8xf32>, vector<4x8xf32>, vector<4x8xf32>, vector<4x8xf32>, vector<4x8xf32>, vector<4x8xf32>, vector<4x8xf32>, vector<4x8xf32>, vector<4x8xf32>, vector<4x8xf32>, vector<4x8xf32> -> vector<4x128xf32>
    %c60_250 = arith.constant 60 : index
    %c0_251 = arith.constant 0 : index
    %517 = tpu.strided_load %arg5[%c60_250, %c0_251] {strides = array<i32: 2, 1>} : memref<200x8xf32, #tpu.memory_space<vmem>>, vector<5x8xf32>
    %c61_252 = arith.constant 61 : index
    %c0_253 = arith.constant 0 : index
    %518 = tpu.strided_load %arg5[%c61_252, %c0_253] {strides = array<i32: 2, 1>} : memref<200x8xf32, #tpu.memory_space<vmem>>, vector<5x8xf32>
    %519 = vector.extract_strided_slice %517 {offsets = [0, 0], sizes = [4, 8], strides = [1, 1]} : vector<5x8xf32> to vector<4x8xf32>
    %520 = vector.extract_strided_slice %518 {offsets = [0, 0], sizes = [4, 8], strides = [1, 1]} : vector<5x8xf32> to vector<4x8xf32>
    %521 = vector.extract_strided_slice %517 {offsets = [1, 0], sizes = [4, 8], strides = [1, 1]} : vector<5x8xf32> to vector<4x8xf32>
    %522 = vector.extract_strided_slice %518 {offsets = [1, 0], sizes = [4, 8], strides = [1, 1]} : vector<5x8xf32> to vector<4x8xf32>
    %c70_254 = arith.constant 70 : index
    %c0_255 = arith.constant 0 : index
    %523 = tpu.strided_load %arg5[%c70_254, %c0_255] {strides = array<i32: 2, 1>} : memref<200x8xf32, #tpu.memory_space<vmem>>, vector<5x8xf32>
    %c71_256 = arith.constant 71 : index
    %c0_257 = arith.constant 0 : index
    %524 = tpu.strided_load %arg5[%c71_256, %c0_257] {strides = array<i32: 2, 1>} : memref<200x8xf32, #tpu.memory_space<vmem>>, vector<5x8xf32>
    %525 = vector.extract_strided_slice %523 {offsets = [0, 0], sizes = [4, 8], strides = [1, 1]} : vector<5x8xf32> to vector<4x8xf32>
    %526 = vector.extract_strided_slice %524 {offsets = [0, 0], sizes = [4, 8], strides = [1, 1]} : vector<5x8xf32> to vector<4x8xf32>
    %527 = vector.extract_strided_slice %523 {offsets = [1, 0], sizes = [4, 8], strides = [1, 1]} : vector<5x8xf32> to vector<4x8xf32>
    %528 = vector.extract_strided_slice %524 {offsets = [1, 0], sizes = [4, 8], strides = [1, 1]} : vector<5x8xf32> to vector<4x8xf32>
    %c80 = arith.constant 80 : index
    %c0_258 = arith.constant 0 : index
    %529 = tpu.strided_load %arg5[%c80, %c0_258] {strides = array<i32: 2, 1>} : memref<200x8xf32, #tpu.memory_space<vmem>>, vector<5x8xf32>
    %c81_259 = arith.constant 81 : index
    %c0_260 = arith.constant 0 : index
    %530 = tpu.strided_load %arg5[%c81_259, %c0_260] {strides = array<i32: 2, 1>} : memref<200x8xf32, #tpu.memory_space<vmem>>, vector<5x8xf32>
    %531 = vector.extract_strided_slice %529 {offsets = [0, 0], sizes = [4, 8], strides = [1, 1]} : vector<5x8xf32> to vector<4x8xf32>
    %532 = vector.extract_strided_slice %530 {offsets = [0, 0], sizes = [4, 8], strides = [1, 1]} : vector<5x8xf32> to vector<4x8xf32>
    %533 = vector.extract_strided_slice %529 {offsets = [1, 0], sizes = [4, 8], strides = [1, 1]} : vector<5x8xf32> to vector<4x8xf32>
    %534 = vector.extract_strided_slice %530 {offsets = [1, 0], sizes = [4, 8], strides = [1, 1]} : vector<5x8xf32> to vector<4x8xf32>
    %c90_261 = arith.constant 90 : index
    %c0_262 = arith.constant 0 : index
    %535 = tpu.strided_load %arg5[%c90_261, %c0_262] {strides = array<i32: 2, 1>} : memref<200x8xf32, #tpu.memory_space<vmem>>, vector<5x8xf32>
    %c91_263 = arith.constant 91 : index
    %c0_264 = arith.constant 0 : index
    %536 = tpu.strided_load %arg5[%c91_263, %c0_264] {strides = array<i32: 2, 1>} : memref<200x8xf32, #tpu.memory_space<vmem>>, vector<5x8xf32>
    %537 = vector.extract_strided_slice %535 {offsets = [0, 0], sizes = [4, 8], strides = [1, 1]} : vector<5x8xf32> to vector<4x8xf32>
    %538 = vector.extract_strided_slice %536 {offsets = [0, 0], sizes = [4, 8], strides = [1, 1]} : vector<5x8xf32> to vector<4x8xf32>
    %539 = vector.extract_strided_slice %535 {offsets = [1, 0], sizes = [4, 8], strides = [1, 1]} : vector<5x8xf32> to vector<4x8xf32>
    %540 = vector.extract_strided_slice %536 {offsets = [1, 0], sizes = [4, 8], strides = [1, 1]} : vector<5x8xf32> to vector<4x8xf32>
    %541 = tpu.concatenate %519, %520, %521, %522, %525, %526, %527, %528, %531, %532, %533, %534, %537, %538, %539, %540 in 1 : vector<4x8xf32>, vector<4x8xf32>, vector<4x8xf32>, vector<4x8xf32>, vector<4x8xf32>, vector<4x8xf32>, vector<4x8xf32>, vector<4x8xf32>, vector<4x8xf32>, vector<4x8xf32>, vector<4x8xf32>, vector<4x8xf32>, vector<4x8xf32>, vector<4x8xf32>, vector<4x8xf32>, vector<4x8xf32> -> vector<4x128xf32>
    %c100 = arith.constant 100 : index
    %c0_265 = arith.constant 0 : index
    %542 = tpu.strided_load %arg5[%c100, %c0_265] {strides = array<i32: 2, 1>} : memref<200x8xf32, #tpu.memory_space<vmem>>, vector<5x8xf32>
    %c101 = arith.constant 101 : index
    %c0_266 = arith.constant 0 : index
    %543 = tpu.strided_load %arg5[%c101, %c0_266] {strides = array<i32: 2, 1>} : memref<200x8xf32, #tpu.memory_space<vmem>>, vector<5x8xf32>
    %544 = vector.extract_strided_slice %542 {offsets = [0, 0], sizes = [4, 8], strides = [1, 1]} : vector<5x8xf32> to vector<4x8xf32>
    %545 = vector.extract_strided_slice %543 {offsets = [0, 0], sizes = [4, 8], strides = [1, 1]} : vector<5x8xf32> to vector<4x8xf32>
    %546 = vector.extract_strided_slice %542 {offsets = [1, 0], sizes = [4, 8], strides = [1, 1]} : vector<5x8xf32> to vector<4x8xf32>
    %547 = vector.extract_strided_slice %543 {offsets = [1, 0], sizes = [4, 8], strides = [1, 1]} : vector<5x8xf32> to vector<4x8xf32>
    %c110 = arith.constant 110 : index
    %c0_267 = arith.constant 0 : index
    %548 = tpu.strided_load %arg5[%c110, %c0_267] {strides = array<i32: 2, 1>} : memref<200x8xf32, #tpu.memory_space<vmem>>, vector<5x8xf32>
    %c111_268 = arith.constant 111 : index
    %c0_269 = arith.constant 0 : index
    %549 = tpu.strided_load %arg5[%c111_268, %c0_269] {strides = array<i32: 2, 1>} : memref<200x8xf32, #tpu.memory_space<vmem>>, vector<5x8xf32>
    %550 = vector.extract_strided_slice %548 {offsets = [0, 0], sizes = [4, 8], strides = [1, 1]} : vector<5x8xf32> to vector<4x8xf32>
    %551 = vector.extract_strided_slice %549 {offsets = [0, 0], sizes = [4, 8], strides = [1, 1]} : vector<5x8xf32> to vector<4x8xf32>
    %552 = vector.extract_strided_slice %548 {offsets = [1, 0], sizes = [4, 8], strides = [1, 1]} : vector<5x8xf32> to vector<4x8xf32>
    %553 = vector.extract_strided_slice %549 {offsets = [1, 0], sizes = [4, 8], strides = [1, 1]} : vector<5x8xf32> to vector<4x8xf32>
    %c120 = arith.constant 120 : index
    %c0_270 = arith.constant 0 : index
    %554 = tpu.strided_load %arg5[%c120, %c0_270] {strides = array<i32: 2, 1>} : memref<200x8xf32, #tpu.memory_space<vmem>>, vector<5x8xf32>
    %c121_271 = arith.constant 121 : index
    %c0_272 = arith.constant 0 : index
    %555 = tpu.strided_load %arg5[%c121_271, %c0_272] {strides = array<i32: 2, 1>} : memref<200x8xf32, #tpu.memory_space<vmem>>, vector<5x8xf32>
    %556 = vector.extract_strided_slice %554 {offsets = [0, 0], sizes = [4, 8], strides = [1, 1]} : vector<5x8xf32> to vector<4x8xf32>
    %557 = vector.extract_strided_slice %555 {offsets = [0, 0], sizes = [4, 8], strides = [1, 1]} : vector<5x8xf32> to vector<4x8xf32>
    %558 = vector.extract_strided_slice %554 {offsets = [1, 0], sizes = [4, 8], strides = [1, 1]} : vector<5x8xf32> to vector<4x8xf32>
    %559 = vector.extract_strided_slice %555 {offsets = [1, 0], sizes = [4, 8], strides = [1, 1]} : vector<5x8xf32> to vector<4x8xf32>
    %c130 = arith.constant 130 : index
    %c0_273 = arith.constant 0 : index
    %560 = tpu.strided_load %arg5[%c130, %c0_273] {strides = array<i32: 2, 1>} : memref<200x8xf32, #tpu.memory_space<vmem>>, vector<5x8xf32>
    %c131_274 = arith.constant 131 : index
    %c0_275 = arith.constant 0 : index
    %561 = tpu.strided_load %arg5[%c131_274, %c0_275] {strides = array<i32: 2, 1>} : memref<200x8xf32, #tpu.memory_space<vmem>>, vector<5x8xf32>
    %562 = vector.extract_strided_slice %560 {offsets = [0, 0], sizes = [4, 8], strides = [1, 1]} : vector<5x8xf32> to vector<4x8xf32>
    %563 = vector.extract_strided_slice %561 {offsets = [0, 0], sizes = [4, 8], strides = [1, 1]} : vector<5x8xf32> to vector<4x8xf32>
    %564 = vector.extract_strided_slice %560 {offsets = [1, 0], sizes = [4, 8], strides = [1, 1]} : vector<5x8xf32> to vector<4x8xf32>
    %565 = vector.extract_strided_slice %561 {offsets = [1, 0], sizes = [4, 8], strides = [1, 1]} : vector<5x8xf32> to vector<4x8xf32>
    %566 = tpu.concatenate %544, %545, %546, %547, %550, %551, %552, %553, %556, %557, %558, %559, %562, %563, %564, %565 in 1 : vector<4x8xf32>, vector<4x8xf32>, vector<4x8xf32>, vector<4x8xf32>, vector<4x8xf32>, vector<4x8xf32>, vector<4x8xf32>, vector<4x8xf32>, vector<4x8xf32>, vector<4x8xf32>, vector<4x8xf32>, vector<4x8xf32>, vector<4x8xf32>, vector<4x8xf32>, vector<4x8xf32>, vector<4x8xf32> -> vector<4x128xf32>
    %c120_276 = arith.constant 120 : index
    %c0_277 = arith.constant 0 : index
    %567 = tpu.strided_load %arg5[%c120_276, %c0_277] {strides = array<i32: 2, 1>} : memref<200x8xf32, #tpu.memory_space<vmem>>, vector<5x8xf32>
    %c121_278 = arith.constant 121 : index
    %c0_279 = arith.constant 0 : index
    %568 = tpu.strided_load %arg5[%c121_278, %c0_279] {strides = array<i32: 2, 1>} : memref<200x8xf32, #tpu.memory_space<vmem>>, vector<5x8xf32>
    %569 = vector.extract_strided_slice %567 {offsets = [0, 0], sizes = [4, 8], strides = [1, 1]} : vector<5x8xf32> to vector<4x8xf32>
    %570 = vector.extract_strided_slice %568 {offsets = [0, 0], sizes = [4, 8], strides = [1, 1]} : vector<5x8xf32> to vector<4x8xf32>
    %571 = vector.extract_strided_slice %567 {offsets = [1, 0], sizes = [4, 8], strides = [1, 1]} : vector<5x8xf32> to vector<4x8xf32>
    %572 = vector.extract_strided_slice %568 {offsets = [1, 0], sizes = [4, 8], strides = [1, 1]} : vector<5x8xf32> to vector<4x8xf32>
    %c130_280 = arith.constant 130 : index
    %c0_281 = arith.constant 0 : index
    %573 = tpu.strided_load %arg5[%c130_280, %c0_281] {strides = array<i32: 2, 1>} : memref<200x8xf32, #tpu.memory_space<vmem>>, vector<5x8xf32>
    %c131_282 = arith.constant 131 : index
    %c0_283 = arith.constant 0 : index
    %574 = tpu.strided_load %arg5[%c131_282, %c0_283] {strides = array<i32: 2, 1>} : memref<200x8xf32, #tpu.memory_space<vmem>>, vector<5x8xf32>
    %575 = vector.extract_strided_slice %573 {offsets = [0, 0], sizes = [4, 8], strides = [1, 1]} : vector<5x8xf32> to vector<4x8xf32>
    %576 = vector.extract_strided_slice %574 {offsets = [0, 0], sizes = [4, 8], strides = [1, 1]} : vector<5x8xf32> to vector<4x8xf32>
    %577 = vector.extract_strided_slice %573 {offsets = [1, 0], sizes = [4, 8], strides = [1, 1]} : vector<5x8xf32> to vector<4x8xf32>
    %578 = vector.extract_strided_slice %574 {offsets = [1, 0], sizes = [4, 8], strides = [1, 1]} : vector<5x8xf32> to vector<4x8xf32>
    %c140 = arith.constant 140 : index
    %c0_284 = arith.constant 0 : index
    %579 = tpu.strided_load %arg5[%c140, %c0_284] {strides = array<i32: 2, 1>} : memref<200x8xf32, #tpu.memory_space<vmem>>, vector<5x8xf32>
    %c141_285 = arith.constant 141 : index
    %c0_286 = arith.constant 0 : index
    %580 = tpu.strided_load %arg5[%c141_285, %c0_286] {strides = array<i32: 2, 1>} : memref<200x8xf32, #tpu.memory_space<vmem>>, vector<5x8xf32>
    %581 = vector.extract_strided_slice %579 {offsets = [0, 0], sizes = [4, 8], strides = [1, 1]} : vector<5x8xf32> to vector<4x8xf32>
    %582 = vector.extract_strided_slice %580 {offsets = [0, 0], sizes = [4, 8], strides = [1, 1]} : vector<5x8xf32> to vector<4x8xf32>
    %583 = vector.extract_strided_slice %579 {offsets = [1, 0], sizes = [4, 8], strides = [1, 1]} : vector<5x8xf32> to vector<4x8xf32>
    %584 = vector.extract_strided_slice %580 {offsets = [1, 0], sizes = [4, 8], strides = [1, 1]} : vector<5x8xf32> to vector<4x8xf32>
    %c150 = arith.constant 150 : index
    %c0_287 = arith.constant 0 : index
    %585 = tpu.strided_load %arg5[%c150, %c0_287] {strides = array<i32: 2, 1>} : memref<200x8xf32, #tpu.memory_space<vmem>>, vector<5x8xf32>
    %c151_288 = arith.constant 151 : index
    %c0_289 = arith.constant 0 : index
    %586 = tpu.strided_load %arg5[%c151_288, %c0_289] {strides = array<i32: 2, 1>} : memref<200x8xf32, #tpu.memory_space<vmem>>, vector<5x8xf32>
    %587 = vector.extract_strided_slice %585 {offsets = [0, 0], sizes = [4, 8], strides = [1, 1]} : vector<5x8xf32> to vector<4x8xf32>
    %588 = vector.extract_strided_slice %586 {offsets = [0, 0], sizes = [4, 8], strides = [1, 1]} : vector<5x8xf32> to vector<4x8xf32>
    %589 = vector.extract_strided_slice %585 {offsets = [1, 0], sizes = [4, 8], strides = [1, 1]} : vector<5x8xf32> to vector<4x8xf32>
    %590 = vector.extract_strided_slice %586 {offsets = [1, 0], sizes = [4, 8], strides = [1, 1]} : vector<5x8xf32> to vector<4x8xf32>
    %591 = tpu.concatenate %569, %570, %571, %572, %575, %576, %577, %578, %581, %582, %583, %584, %587, %588, %589, %590 in 1 : vector<4x8xf32>, vector<4x8xf32>, vector<4x8xf32>, vector<4x8xf32>, vector<4x8xf32>, vector<4x8xf32>, vector<4x8xf32>, vector<4x8xf32>, vector<4x8xf32>, vector<4x8xf32>, vector<4x8xf32>, vector<4x8xf32>, vector<4x8xf32>, vector<4x8xf32>, vector<4x8xf32>, vector<4x8xf32> -> vector<4x128xf32>
    %c140_290 = arith.constant 140 : index
    %c0_291 = arith.constant 0 : index
    %592 = tpu.strided_load %arg5[%c140_290, %c0_291] {strides = array<i32: 2, 1>} : memref<200x8xf32, #tpu.memory_space<vmem>>, vector<5x8xf32>
    %c141_292 = arith.constant 141 : index
    %c0_293 = arith.constant 0 : index
    %593 = tpu.strided_load %arg5[%c141_292, %c0_293] {strides = array<i32: 2, 1>} : memref<200x8xf32, #tpu.memory_space<vmem>>, vector<5x8xf32>
    %594 = vector.extract_strided_slice %592 {offsets = [0, 0], sizes = [4, 8], strides = [1, 1]} : vector<5x8xf32> to vector<4x8xf32>
    %595 = vector.extract_strided_slice %593 {offsets = [0, 0], sizes = [4, 8], strides = [1, 1]} : vector<5x8xf32> to vector<4x8xf32>
    %596 = vector.extract_strided_slice %592 {offsets = [1, 0], sizes = [4, 8], strides = [1, 1]} : vector<5x8xf32> to vector<4x8xf32>
    %597 = vector.extract_strided_slice %593 {offsets = [1, 0], sizes = [4, 8], strides = [1, 1]} : vector<5x8xf32> to vector<4x8xf32>
    %c150_294 = arith.constant 150 : index
    %c0_295 = arith.constant 0 : index
    %598 = tpu.strided_load %arg5[%c150_294, %c0_295] {strides = array<i32: 2, 1>} : memref<200x8xf32, #tpu.memory_space<vmem>>, vector<5x8xf32>
    %c151_296 = arith.constant 151 : index
    %c0_297 = arith.constant 0 : index
    %599 = tpu.strided_load %arg5[%c151_296, %c0_297] {strides = array<i32: 2, 1>} : memref<200x8xf32, #tpu.memory_space<vmem>>, vector<5x8xf32>
    %600 = vector.extract_strided_slice %598 {offsets = [0, 0], sizes = [4, 8], strides = [1, 1]} : vector<5x8xf32> to vector<4x8xf32>
    %601 = vector.extract_strided_slice %599 {offsets = [0, 0], sizes = [4, 8], strides = [1, 1]} : vector<5x8xf32> to vector<4x8xf32>
    %602 = vector.extract_strided_slice %598 {offsets = [1, 0], sizes = [4, 8], strides = [1, 1]} : vector<5x8xf32> to vector<4x8xf32>
    %603 = vector.extract_strided_slice %599 {offsets = [1, 0], sizes = [4, 8], strides = [1, 1]} : vector<5x8xf32> to vector<4x8xf32>
    %c160 = arith.constant 160 : index
    %c0_298 = arith.constant 0 : index
    %604 = tpu.strided_load %arg5[%c160, %c0_298] {strides = array<i32: 2, 1>} : memref<200x8xf32, #tpu.memory_space<vmem>>, vector<5x8xf32>
    %c161_299 = arith.constant 161 : index
    %c0_300 = arith.constant 0 : index
    %605 = tpu.strided_load %arg5[%c161_299, %c0_300] {strides = array<i32: 2, 1>} : memref<200x8xf32, #tpu.memory_space<vmem>>, vector<5x8xf32>
    %606 = vector.extract_strided_slice %604 {offsets = [0, 0], sizes = [4, 8], strides = [1, 1]} : vector<5x8xf32> to vector<4x8xf32>
    %607 = vector.extract_strided_slice %605 {offsets = [0, 0], sizes = [4, 8], strides = [1, 1]} : vector<5x8xf32> to vector<4x8xf32>
    %608 = vector.extract_strided_slice %604 {offsets = [1, 0], sizes = [4, 8], strides = [1, 1]} : vector<5x8xf32> to vector<4x8xf32>
    %609 = vector.extract_strided_slice %605 {offsets = [1, 0], sizes = [4, 8], strides = [1, 1]} : vector<5x8xf32> to vector<4x8xf32>
    %c170 = arith.constant 170 : index
    %c0_301 = arith.constant 0 : index
    %610 = tpu.strided_load %arg5[%c170, %c0_301] {strides = array<i32: 2, 1>} : memref<200x8xf32, #tpu.memory_space<vmem>>, vector<5x8xf32>
    %c171_302 = arith.constant 171 : index
    %c0_303 = arith.constant 0 : index
    %611 = tpu.strided_load %arg5[%c171_302, %c0_303] {strides = array<i32: 2, 1>} : memref<200x8xf32, #tpu.memory_space<vmem>>, vector<5x8xf32>
    %612 = vector.extract_strided_slice %610 {offsets = [0, 0], sizes = [4, 8], strides = [1, 1]} : vector<5x8xf32> to vector<4x8xf32>
    %613 = vector.extract_strided_slice %611 {offsets = [0, 0], sizes = [4, 8], strides = [1, 1]} : vector<5x8xf32> to vector<4x8xf32>
    %614 = vector.extract_strided_slice %610 {offsets = [1, 0], sizes = [4, 8], strides = [1, 1]} : vector<5x8xf32> to vector<4x8xf32>
    %615 = vector.extract_strided_slice %611 {offsets = [1, 0], sizes = [4, 8], strides = [1, 1]} : vector<5x8xf32> to vector<4x8xf32>
    %616 = tpu.concatenate %594, %595, %596, %597, %600, %601, %602, %603, %606, %607, %608, %609, %612, %613, %614, %615 in 1 : vector<4x8xf32>, vector<4x8xf32>, vector<4x8xf32>, vector<4x8xf32>, vector<4x8xf32>, vector<4x8xf32>, vector<4x8xf32>, vector<4x8xf32>, vector<4x8xf32>, vector<4x8xf32>, vector<4x8xf32>, vector<4x8xf32>, vector<4x8xf32>, vector<4x8xf32>, vector<4x8xf32>, vector<4x8xf32> -> vector<4x128xf32>
    %c160_304 = arith.constant 160 : index
    %c0_305 = arith.constant 0 : index
    %617 = tpu.strided_load %arg5[%c160_304, %c0_305] {strides = array<i32: 2, 1>} : memref<200x8xf32, #tpu.memory_space<vmem>>, vector<5x8xf32>
    %c161_306 = arith.constant 161 : index
    %c0_307 = arith.constant 0 : index
    %618 = tpu.strided_load %arg5[%c161_306, %c0_307] {strides = array<i32: 2, 1>} : memref<200x8xf32, #tpu.memory_space<vmem>>, vector<5x8xf32>
    %619 = vector.extract_strided_slice %617 {offsets = [0, 0], sizes = [4, 8], strides = [1, 1]} : vector<5x8xf32> to vector<4x8xf32>
    %620 = vector.extract_strided_slice %618 {offsets = [0, 0], sizes = [4, 8], strides = [1, 1]} : vector<5x8xf32> to vector<4x8xf32>
    %621 = vector.extract_strided_slice %617 {offsets = [1, 0], sizes = [4, 8], strides = [1, 1]} : vector<5x8xf32> to vector<4x8xf32>
    %622 = vector.extract_strided_slice %618 {offsets = [1, 0], sizes = [4, 8], strides = [1, 1]} : vector<5x8xf32> to vector<4x8xf32>
    %c170_308 = arith.constant 170 : index
    %c0_309 = arith.constant 0 : index
    %623 = tpu.strided_load %arg5[%c170_308, %c0_309] {strides = array<i32: 2, 1>} : memref<200x8xf32, #tpu.memory_space<vmem>>, vector<5x8xf32>
    %c171_310 = arith.constant 171 : index
    %c0_311 = arith.constant 0 : index
    %624 = tpu.strided_load %arg5[%c171_310, %c0_311] {strides = array<i32: 2, 1>} : memref<200x8xf32, #tpu.memory_space<vmem>>, vector<5x8xf32>
    %625 = vector.extract_strided_slice %623 {offsets = [0, 0], sizes = [4, 8], strides = [1, 1]} : vector<5x8xf32> to vector<4x8xf32>
    %626 = vector.extract_strided_slice %624 {offsets = [0, 0], sizes = [4, 8], strides = [1, 1]} : vector<5x8xf32> to vector<4x8xf32>
    %627 = vector.extract_strided_slice %623 {offsets = [1, 0], sizes = [4, 8], strides = [1, 1]} : vector<5x8xf32> to vector<4x8xf32>
    %628 = vector.extract_strided_slice %624 {offsets = [1, 0], sizes = [4, 8], strides = [1, 1]} : vector<5x8xf32> to vector<4x8xf32>
    %c180_312 = arith.constant 180 : index
    %c0_313 = arith.constant 0 : index
    %629 = tpu.strided_load %arg5[%c180_312, %c0_313] {strides = array<i32: 2, 1>} : memref<200x8xf32, #tpu.memory_space<vmem>>, vector<5x8xf32>
    %c181_314 = arith.constant 181 : index
    %c0_315 = arith.constant 0 : index
    %630 = tpu.strided_load %arg5[%c181_314, %c0_315] {strides = array<i32: 2, 1>} : memref<200x8xf32, #tpu.memory_space<vmem>>, vector<5x8xf32>
    %631 = vector.extract_strided_slice %629 {offsets = [0, 0], sizes = [4, 8], strides = [1, 1]} : vector<5x8xf32> to vector<4x8xf32>
    %632 = vector.extract_strided_slice %630 {offsets = [0, 0], sizes = [4, 8], strides = [1, 1]} : vector<5x8xf32> to vector<4x8xf32>
    %633 = vector.extract_strided_slice %629 {offsets = [1, 0], sizes = [4, 8], strides = [1, 1]} : vector<5x8xf32> to vector<4x8xf32>
    %634 = vector.extract_strided_slice %630 {offsets = [1, 0], sizes = [4, 8], strides = [1, 1]} : vector<5x8xf32> to vector<4x8xf32>
    %c190 = arith.constant 190 : index
    %c0_316 = arith.constant 0 : index
    %635 = tpu.strided_load %arg5[%c190, %c0_316] {strides = array<i32: 2, 1>} : memref<200x8xf32, #tpu.memory_space<vmem>>, vector<5x8xf32>
    %c191 = arith.constant 191 : index
    %c0_317 = arith.constant 0 : index
    %636 = tpu.strided_load %arg5[%c191, %c0_317] {strides = array<i32: 2, 1>} : memref<200x8xf32, #tpu.memory_space<vmem>>, vector<5x8xf32>
    %637 = vector.extract_strided_slice %635 {offsets = [0, 0], sizes = [4, 8], strides = [1, 1]} : vector<5x8xf32> to vector<4x8xf32>
    %638 = vector.extract_strided_slice %636 {offsets = [0, 0], sizes = [4, 8], strides = [1, 1]} : vector<5x8xf32> to vector<4x8xf32>
    %639 = vector.extract_strided_slice %635 {offsets = [1, 0], sizes = [4, 8], strides = [1, 1]} : vector<5x8xf32> to vector<4x8xf32>
    %640 = vector.extract_strided_slice %636 {offsets = [1, 0], sizes = [4, 8], strides = [1, 1]} : vector<5x8xf32> to vector<4x8xf32>
    %641 = tpu.concatenate %619, %620, %621, %622, %625, %626, %627, %628, %631, %632, %633, %634, %637, %638, %639, %640 in 1 : vector<4x8xf32>, vector<4x8xf32>, vector<4x8xf32>, vector<4x8xf32>, vector<4x8xf32>, vector<4x8xf32>, vector<4x8xf32>, vector<4x8xf32>, vector<4x8xf32>, vector<4x8xf32>, vector<4x8xf32>, vector<4x8xf32>, vector<4x8xf32>, vector<4x8xf32>, vector<4x8xf32>, vector<4x8xf32> -> vector<4x128xf32>
    %642 = tpu.concatenate %466, %491, %516, %541, %566, %591, %616, %641 in 0 : vector<4x128xf32>, vector<4x128xf32>, vector<4x128xf32>, vector<4x128xf32>, vector<4x128xf32>, vector<4x128xf32>, vector<4x128xf32>, vector<4x128xf32> -> vector<32x128xf32>
    %c64 = arith.constant 64 : index
    %c0_318 = arith.constant 0 : index
    %643 = vector.load %arg2[%c64, %c0_318] : memref<704x16xf32, #tpu.memory_space<vmem>>, vector<128x16xf32>
    %cst_319 = arith.constant dense<0.000000e+00> : vector<32x16xf32>
    %644 = tpu.matmul %642, %643, %cst_319 {dimension_numbers = #tpu.dot_dimension_numbers<[1], [0], [0], [1], [0, 0, 1, 1], [], []>} : vector<32x128xf32>, vector<128x16xf32>, vector<32x16xf32> -> vector<32x16xf32>
    %c1_320 = arith.constant 1 : index
    %c0_321 = arith.constant 0 : index
    %645 = vector.load %arg3[%c1_320, %c0_321] : memref<6x16xf32, #tpu.memory_space<vmem>>, vector<1x16xf32>
    %c2 = arith.constant 2 : index
    %c0_322 = arith.constant 0 : index
    %646 = vector.load %arg3[%c2, %c0_322] : memref<6x16xf32, #tpu.memory_space<vmem>>, vector<1x16xf32>
    %cst_323 = arith.constant dense<0.000000e+00> : vector<16xf32>
    %647 = vector.multi_reduction <add>, %644, %cst_323 [0] : vector<32x16xf32> to vector<16xf32>
    %648 = vector.shape_cast %647 : vector<16xf32> to vector<1x16xf32>
    %cst_324 = arith.constant 3.125000e-02 : f32
    %649 = vector.broadcast %cst_324 : f32 to vector<1x16xf32>
    %650 = arith.mulf %648, %649 : vector<1x16xf32>
    %651 = arith.mulf %644, %644 : vector<32x16xf32>
    %cst_325 = arith.constant dense<0.000000e+00> : vector<16xf32>
    %652 = vector.multi_reduction <add>, %651, %cst_325 [0] : vector<32x16xf32> to vector<16xf32>
    %653 = vector.shape_cast %652 : vector<16xf32> to vector<1x16xf32>
    %cst_326 = arith.constant 3.125000e-02 : f32
    %654 = vector.broadcast %cst_326 : f32 to vector<1x16xf32>
    %655 = arith.mulf %653, %654 : vector<1x16xf32>
    %656 = arith.mulf %650, %650 : vector<1x16xf32>
    %657 = arith.subf %655, %656 : vector<1x16xf32>
    %cst_327 = arith.constant 9.99999974E-6 : f32
    %658 = vector.broadcast %cst_327 : f32 to vector<1x16xf32>
    %659 = arith.addf %657, %658 : vector<1x16xf32>
    %660 = math.rsqrt %659 : vector<1x16xf32>
    %661 = arith.mulf %645, %660 : vector<1x16xf32>
    %662 = vector.broadcast %661 : vector<1x16xf32> to vector<32x16xf32>
    %663 = arith.mulf %644, %662 : vector<32x16xf32>
    %664 = arith.mulf %650, %661 : vector<1x16xf32>
    %665 = arith.subf %646, %664 : vector<1x16xf32>
    %666 = vector.broadcast %665 : vector<1x16xf32> to vector<32x16xf32>
    %667 = arith.addf %663, %666 : vector<32x16xf32>
    %cst_328 = arith.constant 0.000000e+00 : f32
    %668 = vector.broadcast %cst_328 : f32 to vector<32x16xf32>
    %669 = arith.maximumf %667, %668 : vector<32x16xf32>
    %cst_329 = arith.constant 0.000000e+00 : f32
    %670 = vector.broadcast %cst_329 : f32 to vector<72x16xf32>
    %c0_330 = arith.constant 0 : index
    %c0_331 = arith.constant 0 : index
    %671 = vector.load %arg6[%c0_330, %c0_331] : memref<72x16xf32, #tpu.memory_space<vmem>>, vector<72x16xf32>
    tpu.vector_store %arg6[%c0_330, %c0_331], %670 {strides = array<i32>} : memref<72x16xf32, #tpu.memory_space<vmem>>, vector<72x16xf32>,
    %672 = vector.extract_strided_slice %669 {offsets = [0, 0], sizes = [4, 16], strides = [1, 1]} : vector<32x16xf32> to vector<4x16xf32>
    %c7 = arith.constant 7 : index
    %c0_332 = arith.constant 0 : index
    %673 = vector.load %arg6[%c7, %c0_332] : memref<72x16xf32, #tpu.memory_space<vmem>>, vector<4x16xf32>
    tpu.vector_store %arg6[%c7, %c0_332], %672 {strides = array<i32>} : memref<72x16xf32, #tpu.memory_space<vmem>>, vector<4x16xf32>,
    %674 = vector.extract_strided_slice %669 {offsets = [4, 0], sizes = [4, 16], strides = [1, 1]} : vector<32x16xf32> to vector<4x16xf32>
    %c13 = arith.constant 13 : index
    %c0_333 = arith.constant 0 : index
    %675 = vector.load %arg6[%c13, %c0_333] : memref<72x16xf32, #tpu.memory_space<vmem>>, vector<4x16xf32>
    tpu.vector_store %arg6[%c13, %c0_333], %674 {strides = array<i32>} : memref<72x16xf32, #tpu.memory_space<vmem>>, vector<4x16xf32>,
    %676 = vector.extract_strided_slice %669 {offsets = [8, 0], sizes = [4, 16], strides = [1, 1]} : vector<32x16xf32> to vector<4x16xf32>
    %c19_334 = arith.constant 19 : index
    %c0_335 = arith.constant 0 : index
    %677 = vector.load %arg6[%c19_334, %c0_335] : memref<72x16xf32, #tpu.memory_space<vmem>>, vector<4x16xf32>
    tpu.vector_store %arg6[%c19_334, %c0_335], %676 {strides = array<i32>} : memref<72x16xf32, #tpu.memory_space<vmem>>, vector<4x16xf32>,
    %678 = vector.extract_strided_slice %669 {offsets = [12, 0], sizes = [4, 16], strides = [1, 1]} : vector<32x16xf32> to vector<4x16xf32>
    %c25 = arith.constant 25 : index
    %c0_336 = arith.constant 0 : index
    %679 = vector.load %arg6[%c25, %c0_336] : memref<72x16xf32, #tpu.memory_space<vmem>>, vector<4x16xf32>
    tpu.vector_store %arg6[%c25, %c0_336], %678 {strides = array<i32>} : memref<72x16xf32, #tpu.memory_space<vmem>>, vector<4x16xf32>,
    %680 = vector.extract_strided_slice %669 {offsets = [16, 0], sizes = [4, 16], strides = [1, 1]} : vector<32x16xf32> to vector<4x16xf32>
    %c43 = arith.constant 43 : index
    %c0_337 = arith.constant 0 : index
    %681 = vector.load %arg6[%c43, %c0_337] : memref<72x16xf32, #tpu.memory_space<vmem>>, vector<4x16xf32>
    tpu.vector_store %arg6[%c43, %c0_337], %680 {strides = array<i32>} : memref<72x16xf32, #tpu.memory_space<vmem>>, vector<4x16xf32>,
    %682 = vector.extract_strided_slice %669 {offsets = [20, 0], sizes = [4, 16], strides = [1, 1]} : vector<32x16xf32> to vector<4x16xf32>
    %c49 = arith.constant 49 : index
    %c0_338 = arith.constant 0 : index
    %683 = vector.load %arg6[%c49, %c0_338] : memref<72x16xf32, #tpu.memory_space<vmem>>, vector<4x16xf32>
    tpu.vector_store %arg6[%c49, %c0_338], %682 {strides = array<i32>} : memref<72x16xf32, #tpu.memory_space<vmem>>, vector<4x16xf32>,
    %684 = vector.extract_strided_slice %669 {offsets = [24, 0], sizes = [4, 16], strides = [1, 1]} : vector<32x16xf32> to vector<4x16xf32>
    %c55_339 = arith.constant 55 : index
    %c0_340 = arith.constant 0 : index
    %685 = vector.load %arg6[%c55_339, %c0_340] : memref<72x16xf32, #tpu.memory_space<vmem>>, vector<4x16xf32>
    tpu.vector_store %arg6[%c55_339, %c0_340], %684 {strides = array<i32>} : memref<72x16xf32, #tpu.memory_space<vmem>>, vector<4x16xf32>,
    %686 = vector.extract_strided_slice %669 {offsets = [28, 0], sizes = [4, 16], strides = [1, 1]} : vector<32x16xf32> to vector<4x16xf32>
    %c61_341 = arith.constant 61 : index
    %c0_342 = arith.constant 0 : index
    %687 = vector.load %arg6[%c61_341, %c0_342] : memref<72x16xf32, #tpu.memory_space<vmem>>, vector<4x16xf32>
    tpu.vector_store %arg6[%c61_341, %c0_342], %686 {strides = array<i32>} : memref<72x16xf32, #tpu.memory_space<vmem>>, vector<4x16xf32>,
    %c0_343 = arith.constant 0 : index
    %c0_344 = arith.constant 0 : index
    %688 = vector.load %arg6[%c0_343, %c0_344] : memref<72x16xf32, #tpu.memory_space<vmem>>, vector<6x16xf32>
    %689 = vector.extract_strided_slice %688 {offsets = [0, 0], sizes = [3, 16], strides = [1, 1]} : vector<6x16xf32> to vector<3x16xf32>
    %690 = vector.extract_strided_slice %688 {offsets = [1, 0], sizes = [3, 16], strides = [1, 1]} : vector<6x16xf32> to vector<3x16xf32>
    %691 = vector.extract_strided_slice %688 {offsets = [2, 0], sizes = [3, 16], strides = [1, 1]} : vector<6x16xf32> to vector<3x16xf32>
    %692 = vector.extract_strided_slice %688 {offsets = [3, 0], sizes = [3, 16], strides = [1, 1]} : vector<6x16xf32> to vector<3x16xf32>
    %c6 = arith.constant 6 : index
    %c0_345 = arith.constant 0 : index
    %693 = vector.load %arg6[%c6, %c0_345] : memref<72x16xf32, #tpu.memory_space<vmem>>, vector<6x16xf32>
    %694 = vector.extract_strided_slice %693 {offsets = [0, 0], sizes = [3, 16], strides = [1, 1]} : vector<6x16xf32> to vector<3x16xf32>
    %695 = vector.extract_strided_slice %693 {offsets = [1, 0], sizes = [3, 16], strides = [1, 1]} : vector<6x16xf32> to vector<3x16xf32>
    %696 = vector.extract_strided_slice %693 {offsets = [2, 0], sizes = [3, 16], strides = [1, 1]} : vector<6x16xf32> to vector<3x16xf32>
    %697 = vector.extract_strided_slice %693 {offsets = [3, 0], sizes = [3, 16], strides = [1, 1]} : vector<6x16xf32> to vector<3x16xf32>
    %c12 = arith.constant 12 : index
    %c0_346 = arith.constant 0 : index
    %698 = vector.load %arg6[%c12, %c0_346] : memref<72x16xf32, #tpu.memory_space<vmem>>, vector<6x16xf32>
    %699 = vector.extract_strided_slice %698 {offsets = [0, 0], sizes = [3, 16], strides = [1, 1]} : vector<6x16xf32> to vector<3x16xf32>
    %700 = vector.extract_strided_slice %698 {offsets = [1, 0], sizes = [3, 16], strides = [1, 1]} : vector<6x16xf32> to vector<3x16xf32>
    %701 = vector.extract_strided_slice %698 {offsets = [2, 0], sizes = [3, 16], strides = [1, 1]} : vector<6x16xf32> to vector<3x16xf32>
    %702 = vector.extract_strided_slice %698 {offsets = [3, 0], sizes = [3, 16], strides = [1, 1]} : vector<6x16xf32> to vector<3x16xf32>
    %c18_347 = arith.constant 18 : index
    %c0_348 = arith.constant 0 : index
    %703 = vector.load %arg6[%c18_347, %c0_348] : memref<72x16xf32, #tpu.memory_space<vmem>>, vector<6x16xf32>
    %704 = vector.extract_strided_slice %703 {offsets = [0, 0], sizes = [3, 16], strides = [1, 1]} : vector<6x16xf32> to vector<3x16xf32>
    %705 = vector.extract_strided_slice %703 {offsets = [1, 0], sizes = [3, 16], strides = [1, 1]} : vector<6x16xf32> to vector<3x16xf32>
    %706 = vector.extract_strided_slice %703 {offsets = [2, 0], sizes = [3, 16], strides = [1, 1]} : vector<6x16xf32> to vector<3x16xf32>
    %707 = vector.extract_strided_slice %703 {offsets = [3, 0], sizes = [3, 16], strides = [1, 1]} : vector<6x16xf32> to vector<3x16xf32>
    %708 = tpu.concatenate %689, %690, %691, %692, %694, %695, %696, %697, %699, %700, %701, %702, %704, %705, %706, %707 in 1 : vector<3x16xf32>, vector<3x16xf32>, vector<3x16xf32>, vector<3x16xf32>, vector<3x16xf32>, vector<3x16xf32>, vector<3x16xf32>, vector<3x16xf32>, vector<3x16xf32>, vector<3x16xf32>, vector<3x16xf32>, vector<3x16xf32>, vector<3x16xf32>, vector<3x16xf32>, vector<3x16xf32>, vector<3x16xf32> -> vector<3x256xf32>
    %c6_349 = arith.constant 6 : index
    %c0_350 = arith.constant 0 : index
    %709 = vector.load %arg6[%c6_349, %c0_350] : memref<72x16xf32, #tpu.memory_space<vmem>>, vector<6x16xf32>
    %710 = vector.extract_strided_slice %709 {offsets = [0, 0], sizes = [3, 16], strides = [1, 1]} : vector<6x16xf32> to vector<3x16xf32>
    %711 = vector.extract_strided_slice %709 {offsets = [1, 0], sizes = [3, 16], strides = [1, 1]} : vector<6x16xf32> to vector<3x16xf32>
    %712 = vector.extract_strided_slice %709 {offsets = [2, 0], sizes = [3, 16], strides = [1, 1]} : vector<6x16xf32> to vector<3x16xf32>
    %713 = vector.extract_strided_slice %709 {offsets = [3, 0], sizes = [3, 16], strides = [1, 1]} : vector<6x16xf32> to vector<3x16xf32>
    %c12_351 = arith.constant 12 : index
    %c0_352 = arith.constant 0 : index
    %714 = vector.load %arg6[%c12_351, %c0_352] : memref<72x16xf32, #tpu.memory_space<vmem>>, vector<6x16xf32>
    %715 = vector.extract_strided_slice %714 {offsets = [0, 0], sizes = [3, 16], strides = [1, 1]} : vector<6x16xf32> to vector<3x16xf32>
    %716 = vector.extract_strided_slice %714 {offsets = [1, 0], sizes = [3, 16], strides = [1, 1]} : vector<6x16xf32> to vector<3x16xf32>
    %717 = vector.extract_strided_slice %714 {offsets = [2, 0], sizes = [3, 16], strides = [1, 1]} : vector<6x16xf32> to vector<3x16xf32>
    %718 = vector.extract_strided_slice %714 {offsets = [3, 0], sizes = [3, 16], strides = [1, 1]} : vector<6x16xf32> to vector<3x16xf32>
    %c18_353 = arith.constant 18 : index
    %c0_354 = arith.constant 0 : index
    %719 = vector.load %arg6[%c18_353, %c0_354] : memref<72x16xf32, #tpu.memory_space<vmem>>, vector<6x16xf32>
    %720 = vector.extract_strided_slice %719 {offsets = [0, 0], sizes = [3, 16], strides = [1, 1]} : vector<6x16xf32> to vector<3x16xf32>
    %721 = vector.extract_strided_slice %719 {offsets = [1, 0], sizes = [3, 16], strides = [1, 1]} : vector<6x16xf32> to vector<3x16xf32>
    %722 = vector.extract_strided_slice %719 {offsets = [2, 0], sizes = [3, 16], strides = [1, 1]} : vector<6x16xf32> to vector<3x16xf32>
    %723 = vector.extract_strided_slice %719 {offsets = [3, 0], sizes = [3, 16], strides = [1, 1]} : vector<6x16xf32> to vector<3x16xf32>
    %c24 = arith.constant 24 : index
    %c0_355 = arith.constant 0 : index
    %724 = vector.load %arg6[%c24, %c0_355] : memref<72x16xf32, #tpu.memory_space<vmem>>, vector<6x16xf32>
    %725 = vector.extract_strided_slice %724 {offsets = [0, 0], sizes = [3, 16], strides = [1, 1]} : vector<6x16xf32> to vector<3x16xf32>
    %726 = vector.extract_strided_slice %724 {offsets = [1, 0], sizes = [3, 16], strides = [1, 1]} : vector<6x16xf32> to vector<3x16xf32>
    %727 = vector.extract_strided_slice %724 {offsets = [2, 0], sizes = [3, 16], strides = [1, 1]} : vector<6x16xf32> to vector<3x16xf32>
    %728 = vector.extract_strided_slice %724 {offsets = [3, 0], sizes = [3, 16], strides = [1, 1]} : vector<6x16xf32> to vector<3x16xf32>
    %729 = tpu.concatenate %710, %711, %712, %713, %715, %716, %717, %718, %720, %721, %722, %723, %725, %726, %727, %728 in 1 : vector<3x16xf32>, vector<3x16xf32>, vector<3x16xf32>, vector<3x16xf32>, vector<3x16xf32>, vector<3x16xf32>, vector<3x16xf32>, vector<3x16xf32>, vector<3x16xf32>, vector<3x16xf32>, vector<3x16xf32>, vector<3x16xf32>, vector<3x16xf32>, vector<3x16xf32>, vector<3x16xf32>, vector<3x16xf32> -> vector<3x256xf32>
    %c12_356 = arith.constant 12 : index
    %c0_357 = arith.constant 0 : index
    %730 = vector.load %arg6[%c12_356, %c0_357] : memref<72x16xf32, #tpu.memory_space<vmem>>, vector<6x16xf32>
    %731 = vector.extract_strided_slice %730 {offsets = [0, 0], sizes = [3, 16], strides = [1, 1]} : vector<6x16xf32> to vector<3x16xf32>
    %732 = vector.extract_strided_slice %730 {offsets = [1, 0], sizes = [3, 16], strides = [1, 1]} : vector<6x16xf32> to vector<3x16xf32>
    %733 = vector.extract_strided_slice %730 {offsets = [2, 0], sizes = [3, 16], strides = [1, 1]} : vector<6x16xf32> to vector<3x16xf32>
    %734 = vector.extract_strided_slice %730 {offsets = [3, 0], sizes = [3, 16], strides = [1, 1]} : vector<6x16xf32> to vector<3x16xf32>
    %c18_358 = arith.constant 18 : index
    %c0_359 = arith.constant 0 : index
    %735 = vector.load %arg6[%c18_358, %c0_359] : memref<72x16xf32, #tpu.memory_space<vmem>>, vector<6x16xf32>
    %736 = vector.extract_strided_slice %735 {offsets = [0, 0], sizes = [3, 16], strides = [1, 1]} : vector<6x16xf32> to vector<3x16xf32>
    %737 = vector.extract_strided_slice %735 {offsets = [1, 0], sizes = [3, 16], strides = [1, 1]} : vector<6x16xf32> to vector<3x16xf32>
    %738 = vector.extract_strided_slice %735 {offsets = [2, 0], sizes = [3, 16], strides = [1, 1]} : vector<6x16xf32> to vector<3x16xf32>
    %739 = vector.extract_strided_slice %735 {offsets = [3, 0], sizes = [3, 16], strides = [1, 1]} : vector<6x16xf32> to vector<3x16xf32>
    %c24_360 = arith.constant 24 : index
    %c0_361 = arith.constant 0 : index
    %740 = vector.load %arg6[%c24_360, %c0_361] : memref<72x16xf32, #tpu.memory_space<vmem>>, vector<6x16xf32>
    %741 = vector.extract_strided_slice %740 {offsets = [0, 0], sizes = [3, 16], strides = [1, 1]} : vector<6x16xf32> to vector<3x16xf32>
    %742 = vector.extract_strided_slice %740 {offsets = [1, 0], sizes = [3, 16], strides = [1, 1]} : vector<6x16xf32> to vector<3x16xf32>
    %743 = vector.extract_strided_slice %740 {offsets = [2, 0], sizes = [3, 16], strides = [1, 1]} : vector<6x16xf32> to vector<3x16xf32>
    %744 = vector.extract_strided_slice %740 {offsets = [3, 0], sizes = [3, 16], strides = [1, 1]} : vector<6x16xf32> to vector<3x16xf32>
    %c30_362 = arith.constant 30 : index
    %c0_363 = arith.constant 0 : index
    %745 = vector.load %arg6[%c30_362, %c0_363] : memref<72x16xf32, #tpu.memory_space<vmem>>, vector<6x16xf32>
    %746 = vector.extract_strided_slice %745 {offsets = [0, 0], sizes = [3, 16], strides = [1, 1]} : vector<6x16xf32> to vector<3x16xf32>
    %747 = vector.extract_strided_slice %745 {offsets = [1, 0], sizes = [3, 16], strides = [1, 1]} : vector<6x16xf32> to vector<3x16xf32>
    %748 = vector.extract_strided_slice %745 {offsets = [2, 0], sizes = [3, 16], strides = [1, 1]} : vector<6x16xf32> to vector<3x16xf32>
    %749 = vector.extract_strided_slice %745 {offsets = [3, 0], sizes = [3, 16], strides = [1, 1]} : vector<6x16xf32> to vector<3x16xf32>
    %750 = tpu.concatenate %731, %732, %733, %734, %736, %737, %738, %739, %741, %742, %743, %744, %746, %747, %748, %749 in 1 : vector<3x16xf32>, vector<3x16xf32>, vector<3x16xf32>, vector<3x16xf32>, vector<3x16xf32>, vector<3x16xf32>, vector<3x16xf32>, vector<3x16xf32>, vector<3x16xf32>, vector<3x16xf32>, vector<3x16xf32>, vector<3x16xf32>, vector<3x16xf32>, vector<3x16xf32>, vector<3x16xf32>, vector<3x16xf32> -> vector<3x256xf32>
    %c36_364 = arith.constant 36 : index
    %c0_365 = arith.constant 0 : index
    %751 = vector.load %arg6[%c36_364, %c0_365] : memref<72x16xf32, #tpu.memory_space<vmem>>, vector<6x16xf32>
    %752 = vector.extract_strided_slice %751 {offsets = [0, 0], sizes = [3, 16], strides = [1, 1]} : vector<6x16xf32> to vector<3x16xf32>
    %753 = vector.extract_strided_slice %751 {offsets = [1, 0], sizes = [3, 16], strides = [1, 1]} : vector<6x16xf32> to vector<3x16xf32>
    %754 = vector.extract_strided_slice %751 {offsets = [2, 0], sizes = [3, 16], strides = [1, 1]} : vector<6x16xf32> to vector<3x16xf32>
    %755 = vector.extract_strided_slice %751 {offsets = [3, 0], sizes = [3, 16], strides = [1, 1]} : vector<6x16xf32> to vector<3x16xf32>
    %c42 = arith.constant 42 : index
    %c0_366 = arith.constant 0 : index
    %756 = vector.load %arg6[%c42, %c0_366] : memref<72x16xf32, #tpu.memory_space<vmem>>, vector<6x16xf32>
    %757 = vector.extract_strided_slice %756 {offsets = [0, 0], sizes = [3, 16], strides = [1, 1]} : vector<6x16xf32> to vector<3x16xf32>
    %758 = vector.extract_strided_slice %756 {offsets = [1, 0], sizes = [3, 16], strides = [1, 1]} : vector<6x16xf32> to vector<3x16xf32>
    %759 = vector.extract_strided_slice %756 {offsets = [2, 0], sizes = [3, 16], strides = [1, 1]} : vector<6x16xf32> to vector<3x16xf32>
    %760 = vector.extract_strided_slice %756 {offsets = [3, 0], sizes = [3, 16], strides = [1, 1]} : vector<6x16xf32> to vector<3x16xf32>
    %c48 = arith.constant 48 : index
    %c0_367 = arith.constant 0 : index
    %761 = vector.load %arg6[%c48, %c0_367] : memref<72x16xf32, #tpu.memory_space<vmem>>, vector<6x16xf32>
    %762 = vector.extract_strided_slice %761 {offsets = [0, 0], sizes = [3, 16], strides = [1, 1]} : vector<6x16xf32> to vector<3x16xf32>
    %763 = vector.extract_strided_slice %761 {offsets = [1, 0], sizes = [3, 16], strides = [1, 1]} : vector<6x16xf32> to vector<3x16xf32>
    %764 = vector.extract_strided_slice %761 {offsets = [2, 0], sizes = [3, 16], strides = [1, 1]} : vector<6x16xf32> to vector<3x16xf32>
    %765 = vector.extract_strided_slice %761 {offsets = [3, 0], sizes = [3, 16], strides = [1, 1]} : vector<6x16xf32> to vector<3x16xf32>
    %c54_368 = arith.constant 54 : index
    %c0_369 = arith.constant 0 : index
    %766 = vector.load %arg6[%c54_368, %c0_369] : memref<72x16xf32, #tpu.memory_space<vmem>>, vector<6x16xf32>
    %767 = vector.extract_strided_slice %766 {offsets = [0, 0], sizes = [3, 16], strides = [1, 1]} : vector<6x16xf32> to vector<3x16xf32>
    %768 = vector.extract_strided_slice %766 {offsets = [1, 0], sizes = [3, 16], strides = [1, 1]} : vector<6x16xf32> to vector<3x16xf32>
    %769 = vector.extract_strided_slice %766 {offsets = [2, 0], sizes = [3, 16], strides = [1, 1]} : vector<6x16xf32> to vector<3x16xf32>
    %770 = vector.extract_strided_slice %766 {offsets = [3, 0], sizes = [3, 16], strides = [1, 1]} : vector<6x16xf32> to vector<3x16xf32>
    %771 = tpu.concatenate %752, %753, %754, %755, %757, %758, %759, %760, %762, %763, %764, %765, %767, %768, %769, %770 in 1 : vector<3x16xf32>, vector<3x16xf32>, vector<3x16xf32>, vector<3x16xf32>, vector<3x16xf32>, vector<3x16xf32>, vector<3x16xf32>, vector<3x16xf32>, vector<3x16xf32>, vector<3x16xf32>, vector<3x16xf32>, vector<3x16xf32>, vector<3x16xf32>, vector<3x16xf32>, vector<3x16xf32>, vector<3x16xf32> -> vector<3x256xf32>
    %c42_370 = arith.constant 42 : index
    %c0_371 = arith.constant 0 : index
    %772 = vector.load %arg6[%c42_370, %c0_371] : memref<72x16xf32, #tpu.memory_space<vmem>>, vector<6x16xf32>
    %773 = vector.extract_strided_slice %772 {offsets = [0, 0], sizes = [3, 16], strides = [1, 1]} : vector<6x16xf32> to vector<3x16xf32>
    %774 = vector.extract_strided_slice %772 {offsets = [1, 0], sizes = [3, 16], strides = [1, 1]} : vector<6x16xf32> to vector<3x16xf32>
    %775 = vector.extract_strided_slice %772 {offsets = [2, 0], sizes = [3, 16], strides = [1, 1]} : vector<6x16xf32> to vector<3x16xf32>
    %776 = vector.extract_strided_slice %772 {offsets = [3, 0], sizes = [3, 16], strides = [1, 1]} : vector<6x16xf32> to vector<3x16xf32>
    %c48_372 = arith.constant 48 : index
    %c0_373 = arith.constant 0 : index
    %777 = vector.load %arg6[%c48_372, %c0_373] : memref<72x16xf32, #tpu.memory_space<vmem>>, vector<6x16xf32>
    %778 = vector.extract_strided_slice %777 {offsets = [0, 0], sizes = [3, 16], strides = [1, 1]} : vector<6x16xf32> to vector<3x16xf32>
    %779 = vector.extract_strided_slice %777 {offsets = [1, 0], sizes = [3, 16], strides = [1, 1]} : vector<6x16xf32> to vector<3x16xf32>
    %780 = vector.extract_strided_slice %777 {offsets = [2, 0], sizes = [3, 16], strides = [1, 1]} : vector<6x16xf32> to vector<3x16xf32>
    %781 = vector.extract_strided_slice %777 {offsets = [3, 0], sizes = [3, 16], strides = [1, 1]} : vector<6x16xf32> to vector<3x16xf32>
    %c54_374 = arith.constant 54 : index
    %c0_375 = arith.constant 0 : index
    %782 = vector.load %arg6[%c54_374, %c0_375] : memref<72x16xf32, #tpu.memory_space<vmem>>, vector<6x16xf32>
    %783 = vector.extract_strided_slice %782 {offsets = [0, 0], sizes = [3, 16], strides = [1, 1]} : vector<6x16xf32> to vector<3x16xf32>
    %784 = vector.extract_strided_slice %782 {offsets = [1, 0], sizes = [3, 16], strides = [1, 1]} : vector<6x16xf32> to vector<3x16xf32>
    %785 = vector.extract_strided_slice %782 {offsets = [2, 0], sizes = [3, 16], strides = [1, 1]} : vector<6x16xf32> to vector<3x16xf32>
    %786 = vector.extract_strided_slice %782 {offsets = [3, 0], sizes = [3, 16], strides = [1, 1]} : vector<6x16xf32> to vector<3x16xf32>
    %c60_376 = arith.constant 60 : index
    %c0_377 = arith.constant 0 : index
    %787 = vector.load %arg6[%c60_376, %c0_377] : memref<72x16xf32, #tpu.memory_space<vmem>>, vector<6x16xf32>
    %788 = vector.extract_strided_slice %787 {offsets = [0, 0], sizes = [3, 16], strides = [1, 1]} : vector<6x16xf32> to vector<3x16xf32>
    %789 = vector.extract_strided_slice %787 {offsets = [1, 0], sizes = [3, 16], strides = [1, 1]} : vector<6x16xf32> to vector<3x16xf32>
    %790 = vector.extract_strided_slice %787 {offsets = [2, 0], sizes = [3, 16], strides = [1, 1]} : vector<6x16xf32> to vector<3x16xf32>
    %791 = vector.extract_strided_slice %787 {offsets = [3, 0], sizes = [3, 16], strides = [1, 1]} : vector<6x16xf32> to vector<3x16xf32>
    %792 = tpu.concatenate %773, %774, %775, %776, %778, %779, %780, %781, %783, %784, %785, %786, %788, %789, %790, %791 in 1 : vector<3x16xf32>, vector<3x16xf32>, vector<3x16xf32>, vector<3x16xf32>, vector<3x16xf32>, vector<3x16xf32>, vector<3x16xf32>, vector<3x16xf32>, vector<3x16xf32>, vector<3x16xf32>, vector<3x16xf32>, vector<3x16xf32>, vector<3x16xf32>, vector<3x16xf32>, vector<3x16xf32>, vector<3x16xf32> -> vector<3x256xf32>
    %c48_378 = arith.constant 48 : index
    %c0_379 = arith.constant 0 : index
    %793 = vector.load %arg6[%c48_378, %c0_379] : memref<72x16xf32, #tpu.memory_space<vmem>>, vector<6x16xf32>
    %794 = vector.extract_strided_slice %793 {offsets = [0, 0], sizes = [3, 16], strides = [1, 1]} : vector<6x16xf32> to vector<3x16xf32>
    %795 = vector.extract_strided_slice %793 {offsets = [1, 0], sizes = [3, 16], strides = [1, 1]} : vector<6x16xf32> to vector<3x16xf32>
    %796 = vector.extract_strided_slice %793 {offsets = [2, 0], sizes = [3, 16], strides = [1, 1]} : vector<6x16xf32> to vector<3x16xf32>
    %797 = vector.extract_strided_slice %793 {offsets = [3, 0], sizes = [3, 16], strides = [1, 1]} : vector<6x16xf32> to vector<3x16xf32>
    %c54_380 = arith.constant 54 : index
    %c0_381 = arith.constant 0 : index
    %798 = vector.load %arg6[%c54_380, %c0_381] : memref<72x16xf32, #tpu.memory_space<vmem>>, vector<6x16xf32>
    %799 = vector.extract_strided_slice %798 {offsets = [0, 0], sizes = [3, 16], strides = [1, 1]} : vector<6x16xf32> to vector<3x16xf32>
    %800 = vector.extract_strided_slice %798 {offsets = [1, 0], sizes = [3, 16], strides = [1, 1]} : vector<6x16xf32> to vector<3x16xf32>
    %801 = vector.extract_strided_slice %798 {offsets = [2, 0], sizes = [3, 16], strides = [1, 1]} : vector<6x16xf32> to vector<3x16xf32>
    %802 = vector.extract_strided_slice %798 {offsets = [3, 0], sizes = [3, 16], strides = [1, 1]} : vector<6x16xf32> to vector<3x16xf32>
    %c60_382 = arith.constant 60 : index
    %c0_383 = arith.constant 0 : index
    %803 = vector.load %arg6[%c60_382, %c0_383] : memref<72x16xf32, #tpu.memory_space<vmem>>, vector<6x16xf32>
    %804 = vector.extract_strided_slice %803 {offsets = [0, 0], sizes = [3, 16], strides = [1, 1]} : vector<6x16xf32> to vector<3x16xf32>
    %805 = vector.extract_strided_slice %803 {offsets = [1, 0], sizes = [3, 16], strides = [1, 1]} : vector<6x16xf32> to vector<3x16xf32>
    %806 = vector.extract_strided_slice %803 {offsets = [2, 0], sizes = [3, 16], strides = [1, 1]} : vector<6x16xf32> to vector<3x16xf32>
    %807 = vector.extract_strided_slice %803 {offsets = [3, 0], sizes = [3, 16], strides = [1, 1]} : vector<6x16xf32> to vector<3x16xf32>
    %c66 = arith.constant 66 : index
    %c0_384 = arith.constant 0 : index
    %808 = vector.load %arg6[%c66, %c0_384] : memref<72x16xf32, #tpu.memory_space<vmem>>, vector<6x16xf32>
    %809 = vector.extract_strided_slice %808 {offsets = [0, 0], sizes = [3, 16], strides = [1, 1]} : vector<6x16xf32> to vector<3x16xf32>
    %810 = vector.extract_strided_slice %808 {offsets = [1, 0], sizes = [3, 16], strides = [1, 1]} : vector<6x16xf32> to vector<3x16xf32>
    %811 = vector.extract_strided_slice %808 {offsets = [2, 0], sizes = [3, 16], strides = [1, 1]} : vector<6x16xf32> to vector<3x16xf32>
    %812 = vector.extract_strided_slice %808 {offsets = [3, 0], sizes = [3, 16], strides = [1, 1]} : vector<6x16xf32> to vector<3x16xf32>
    %813 = tpu.concatenate %794, %795, %796, %797, %799, %800, %801, %802, %804, %805, %806, %807, %809, %810, %811, %812 in 1 : vector<3x16xf32>, vector<3x16xf32>, vector<3x16xf32>, vector<3x16xf32>, vector<3x16xf32>, vector<3x16xf32>, vector<3x16xf32>, vector<3x16xf32>, vector<3x16xf32>, vector<3x16xf32>, vector<3x16xf32>, vector<3x16xf32>, vector<3x16xf32>, vector<3x16xf32>, vector<3x16xf32>, vector<3x16xf32> -> vector<3x256xf32>
    %814 = tpu.concatenate %708, %729, %750, %771, %792, %813 in 0 : vector<3x256xf32>, vector<3x256xf32>, vector<3x256xf32>, vector<3x256xf32>, vector<3x256xf32>, vector<3x256xf32> -> vector<18x256xf32>
    %c192 = arith.constant 192 : index
    %c0_385 = arith.constant 0 : index
    %815 = vector.load %arg2[%c192, %c0_385] : memref<704x16xf32, #tpu.memory_space<vmem>>, vector<256x16xf32>
    %cst_386 = arith.constant dense<0.000000e+00> : vector<18x16xf32>
    %816 = tpu.matmul %814, %815, %cst_386 {dimension_numbers = #tpu.dot_dimension_numbers<[1], [0], [0], [1], [0, 0, 1, 1], [], []>} : vector<18x256xf32>, vector<256x16xf32>, vector<18x16xf32> -> vector<18x16xf32>
    %c3 = arith.constant 3 : index
    %c0_387 = arith.constant 0 : index
    %817 = vector.load %arg3[%c3, %c0_387] : memref<6x16xf32, #tpu.memory_space<vmem>>, vector<1x16xf32>
    %c4 = arith.constant 4 : index
    %c0_388 = arith.constant 0 : index
    %818 = vector.load %arg3[%c4, %c0_388] : memref<6x16xf32, #tpu.memory_space<vmem>>, vector<1x16xf32>
    %cst_389 = arith.constant dense<0.000000e+00> : vector<16xf32>
    %819 = vector.multi_reduction <add>, %816, %cst_389 [0] : vector<18x16xf32> to vector<16xf32>
    %820 = vector.shape_cast %819 : vector<16xf32> to vector<1x16xf32>
    %cst_390 = arith.constant 0.055555556 : f32
    %821 = vector.broadcast %cst_390 : f32 to vector<1x16xf32>
    %822 = arith.mulf %820, %821 : vector<1x16xf32>
    %823 = arith.mulf %816, %816 : vector<18x16xf32>
    %cst_391 = arith.constant dense<0.000000e+00> : vector<16xf32>
    %824 = vector.multi_reduction <add>, %823, %cst_391 [0] : vector<18x16xf32> to vector<16xf32>
    %825 = vector.shape_cast %824 : vector<16xf32> to vector<1x16xf32>
    %cst_392 = arith.constant 0.055555556 : f32
    %826 = vector.broadcast %cst_392 : f32 to vector<1x16xf32>
    %827 = arith.mulf %825, %826 : vector<1x16xf32>
    %828 = arith.mulf %822, %822 : vector<1x16xf32>
    %829 = arith.subf %827, %828 : vector<1x16xf32>
    %cst_393 = arith.constant 9.99999974E-6 : f32
    %830 = vector.broadcast %cst_393 : f32 to vector<1x16xf32>
    %831 = arith.addf %829, %830 : vector<1x16xf32>
    %832 = math.rsqrt %831 : vector<1x16xf32>
    %833 = arith.mulf %817, %832 : vector<1x16xf32>
    %834 = vector.broadcast %833 : vector<1x16xf32> to vector<18x16xf32>
    %835 = arith.mulf %816, %834 : vector<18x16xf32>
    %836 = arith.mulf %822, %833 : vector<1x16xf32>
    %837 = arith.subf %818, %836 : vector<1x16xf32>
    %838 = vector.broadcast %837 : vector<1x16xf32> to vector<18x16xf32>
    %839 = arith.addf %835, %838 : vector<18x16xf32>
    %cst_394 = arith.constant 0.000000e+00 : f32
    %840 = vector.broadcast %cst_394 : f32 to vector<18x16xf32>
    %841 = arith.maximumf %839, %840 : vector<18x16xf32>
    %cst_395 = arith.constant 0.000000e+00 : f32
    %842 = vector.broadcast %cst_395 : f32 to vector<50x16xf32>
    %c0_396 = arith.constant 0 : index
    %c0_397 = arith.constant 0 : index
    %843 = vector.load %arg7[%c0_396, %c0_397] : memref<50x16xf32, #tpu.memory_space<vmem>>, vector<50x16xf32>
    tpu.vector_store %arg7[%c0_396, %c0_397], %842 {strides = array<i32>} : memref<50x16xf32, #tpu.memory_space<vmem>>, vector<50x16xf32>,
    %844 = vector.extract_strided_slice %841 {offsets = [0, 0], sizes = [3, 16], strides = [1, 1]} : vector<18x16xf32> to vector<3x16xf32>
    %c6_398 = arith.constant 6 : index
    %c0_399 = arith.constant 0 : index
    %845 = vector.load %arg7[%c6_398, %c0_399] : memref<50x16xf32, #tpu.memory_space<vmem>>, vector<3x16xf32>
    tpu.vector_store %arg7[%c6_398, %c0_399], %844 {strides = array<i32>} : memref<50x16xf32, #tpu.memory_space<vmem>>, vector<3x16xf32>,
    %846 = vector.extract_strided_slice %841 {offsets = [3, 0], sizes = [3, 16], strides = [1, 1]} : vector<18x16xf32> to vector<3x16xf32>
    %c11_400 = arith.constant 11 : index
    %c0_401 = arith.constant 0 : index
    %847 = vector.load %arg7[%c11_400, %c0_401] : memref<50x16xf32, #tpu.memory_space<vmem>>, vector<3x16xf32>
    tpu.vector_store %arg7[%c11_400, %c0_401], %846 {strides = array<i32>} : memref<50x16xf32, #tpu.memory_space<vmem>>, vector<3x16xf32>,
    %848 = vector.extract_strided_slice %841 {offsets = [6, 0], sizes = [3, 16], strides = [1, 1]} : vector<18x16xf32> to vector<3x16xf32>
    %c16 = arith.constant 16 : index
    %c0_402 = arith.constant 0 : index
    %849 = vector.load %arg7[%c16, %c0_402] : memref<50x16xf32, #tpu.memory_space<vmem>>, vector<3x16xf32>
    tpu.vector_store %arg7[%c16, %c0_402], %848 {strides = array<i32>} : memref<50x16xf32, #tpu.memory_space<vmem>>, vector<3x16xf32>,
    %850 = vector.extract_strided_slice %841 {offsets = [9, 0], sizes = [3, 16], strides = [1, 1]} : vector<18x16xf32> to vector<3x16xf32>
    %c31_403 = arith.constant 31 : index
    %c0_404 = arith.constant 0 : index
    %851 = vector.load %arg7[%c31_403, %c0_404] : memref<50x16xf32, #tpu.memory_space<vmem>>, vector<3x16xf32>
    tpu.vector_store %arg7[%c31_403, %c0_404], %850 {strides = array<i32>} : memref<50x16xf32, #tpu.memory_space<vmem>>, vector<3x16xf32>,
    %852 = vector.extract_strided_slice %841 {offsets = [12, 0], sizes = [3, 16], strides = [1, 1]} : vector<18x16xf32> to vector<3x16xf32>
    %c36_405 = arith.constant 36 : index
    %c0_406 = arith.constant 0 : index
    %853 = vector.load %arg7[%c36_405, %c0_406] : memref<50x16xf32, #tpu.memory_space<vmem>>, vector<3x16xf32>
    tpu.vector_store %arg7[%c36_405, %c0_406], %852 {strides = array<i32>} : memref<50x16xf32, #tpu.memory_space<vmem>>, vector<3x16xf32>,
    %854 = vector.extract_strided_slice %841 {offsets = [15, 0], sizes = [3, 16], strides = [1, 1]} : vector<18x16xf32> to vector<3x16xf32>
    %c41_407 = arith.constant 41 : index
    %c0_408 = arith.constant 0 : index
    %855 = vector.load %arg7[%c41_407, %c0_408] : memref<50x16xf32, #tpu.memory_space<vmem>>, vector<3x16xf32>
    tpu.vector_store %arg7[%c41_407, %c0_408], %854 {strides = array<i32>} : memref<50x16xf32, #tpu.memory_space<vmem>>, vector<3x16xf32>,
    %c0_409 = arith.constant 0 : index
    %c0_410 = arith.constant 0 : index
    %856 = vector.load %arg7[%c0_409, %c0_410] : memref<50x16xf32, #tpu.memory_space<vmem>>, vector<5x16xf32>
    %857 = vector.extract_strided_slice %856 {offsets = [0, 0], sizes = [2, 16], strides = [1, 1]} : vector<5x16xf32> to vector<2x16xf32>
    %858 = vector.extract_strided_slice %856 {offsets = [1, 0], sizes = [2, 16], strides = [1, 1]} : vector<5x16xf32> to vector<2x16xf32>
    %859 = vector.extract_strided_slice %856 {offsets = [2, 0], sizes = [2, 16], strides = [1, 1]} : vector<5x16xf32> to vector<2x16xf32>
    %860 = vector.extract_strided_slice %856 {offsets = [3, 0], sizes = [2, 16], strides = [1, 1]} : vector<5x16xf32> to vector<2x16xf32>
    %c5 = arith.constant 5 : index
    %c0_411 = arith.constant 0 : index
    %861 = vector.load %arg7[%c5, %c0_411] : memref<50x16xf32, #tpu.memory_space<vmem>>, vector<5x16xf32>
    %862 = vector.extract_strided_slice %861 {offsets = [0, 0], sizes = [2, 16], strides = [1, 1]} : vector<5x16xf32> to vector<2x16xf32>
    %863 = vector.extract_strided_slice %861 {offsets = [1, 0], sizes = [2, 16], strides = [1, 1]} : vector<5x16xf32> to vector<2x16xf32>
    %864 = vector.extract_strided_slice %861 {offsets = [2, 0], sizes = [2, 16], strides = [1, 1]} : vector<5x16xf32> to vector<2x16xf32>
    %865 = vector.extract_strided_slice %861 {offsets = [3, 0], sizes = [2, 16], strides = [1, 1]} : vector<5x16xf32> to vector<2x16xf32>
    %c10_412 = arith.constant 10 : index
    %c0_413 = arith.constant 0 : index
    %866 = vector.load %arg7[%c10_412, %c0_413] : memref<50x16xf32, #tpu.memory_space<vmem>>, vector<5x16xf32>
    %867 = vector.extract_strided_slice %866 {offsets = [0, 0], sizes = [2, 16], strides = [1, 1]} : vector<5x16xf32> to vector<2x16xf32>
    %868 = vector.extract_strided_slice %866 {offsets = [1, 0], sizes = [2, 16], strides = [1, 1]} : vector<5x16xf32> to vector<2x16xf32>
    %869 = vector.extract_strided_slice %866 {offsets = [2, 0], sizes = [2, 16], strides = [1, 1]} : vector<5x16xf32> to vector<2x16xf32>
    %870 = vector.extract_strided_slice %866 {offsets = [3, 0], sizes = [2, 16], strides = [1, 1]} : vector<5x16xf32> to vector<2x16xf32>
    %c15 = arith.constant 15 : index
    %c0_414 = arith.constant 0 : index
    %871 = vector.load %arg7[%c15, %c0_414] : memref<50x16xf32, #tpu.memory_space<vmem>>, vector<5x16xf32>
    %872 = vector.extract_strided_slice %871 {offsets = [0, 0], sizes = [2, 16], strides = [1, 1]} : vector<5x16xf32> to vector<2x16xf32>
    %873 = vector.extract_strided_slice %871 {offsets = [1, 0], sizes = [2, 16], strides = [1, 1]} : vector<5x16xf32> to vector<2x16xf32>
    %874 = vector.extract_strided_slice %871 {offsets = [2, 0], sizes = [2, 16], strides = [1, 1]} : vector<5x16xf32> to vector<2x16xf32>
    %875 = vector.extract_strided_slice %871 {offsets = [3, 0], sizes = [2, 16], strides = [1, 1]} : vector<5x16xf32> to vector<2x16xf32>
    %876 = tpu.concatenate %857, %858, %859, %860, %862, %863, %864, %865, %867, %868, %869, %870, %872, %873, %874, %875 in 1 : vector<2x16xf32>, vector<2x16xf32>, vector<2x16xf32>, vector<2x16xf32>, vector<2x16xf32>, vector<2x16xf32>, vector<2x16xf32>, vector<2x16xf32>, vector<2x16xf32>, vector<2x16xf32>, vector<2x16xf32>, vector<2x16xf32>, vector<2x16xf32>, vector<2x16xf32>, vector<2x16xf32>, vector<2x16xf32> -> vector<2x256xf32>
    %c5_415 = arith.constant 5 : index
    %c0_416 = arith.constant 0 : index
    %877 = vector.load %arg7[%c5_415, %c0_416] : memref<50x16xf32, #tpu.memory_space<vmem>>, vector<5x16xf32>
    %878 = vector.extract_strided_slice %877 {offsets = [0, 0], sizes = [2, 16], strides = [1, 1]} : vector<5x16xf32> to vector<2x16xf32>
    %879 = vector.extract_strided_slice %877 {offsets = [1, 0], sizes = [2, 16], strides = [1, 1]} : vector<5x16xf32> to vector<2x16xf32>
    %880 = vector.extract_strided_slice %877 {offsets = [2, 0], sizes = [2, 16], strides = [1, 1]} : vector<5x16xf32> to vector<2x16xf32>
    %881 = vector.extract_strided_slice %877 {offsets = [3, 0], sizes = [2, 16], strides = [1, 1]} : vector<5x16xf32> to vector<2x16xf32>
    %c10_417 = arith.constant 10 : index
    %c0_418 = arith.constant 0 : index
    %882 = vector.load %arg7[%c10_417, %c0_418] : memref<50x16xf32, #tpu.memory_space<vmem>>, vector<5x16xf32>
    %883 = vector.extract_strided_slice %882 {offsets = [0, 0], sizes = [2, 16], strides = [1, 1]} : vector<5x16xf32> to vector<2x16xf32>
    %884 = vector.extract_strided_slice %882 {offsets = [1, 0], sizes = [2, 16], strides = [1, 1]} : vector<5x16xf32> to vector<2x16xf32>
    %885 = vector.extract_strided_slice %882 {offsets = [2, 0], sizes = [2, 16], strides = [1, 1]} : vector<5x16xf32> to vector<2x16xf32>
    %886 = vector.extract_strided_slice %882 {offsets = [3, 0], sizes = [2, 16], strides = [1, 1]} : vector<5x16xf32> to vector<2x16xf32>
    %c15_419 = arith.constant 15 : index
    %c0_420 = arith.constant 0 : index
    %887 = vector.load %arg7[%c15_419, %c0_420] : memref<50x16xf32, #tpu.memory_space<vmem>>, vector<5x16xf32>
    %888 = vector.extract_strided_slice %887 {offsets = [0, 0], sizes = [2, 16], strides = [1, 1]} : vector<5x16xf32> to vector<2x16xf32>
    %889 = vector.extract_strided_slice %887 {offsets = [1, 0], sizes = [2, 16], strides = [1, 1]} : vector<5x16xf32> to vector<2x16xf32>
    %890 = vector.extract_strided_slice %887 {offsets = [2, 0], sizes = [2, 16], strides = [1, 1]} : vector<5x16xf32> to vector<2x16xf32>
    %891 = vector.extract_strided_slice %887 {offsets = [3, 0], sizes = [2, 16], strides = [1, 1]} : vector<5x16xf32> to vector<2x16xf32>
    %c20_421 = arith.constant 20 : index
    %c0_422 = arith.constant 0 : index
    %892 = vector.load %arg7[%c20_421, %c0_422] : memref<50x16xf32, #tpu.memory_space<vmem>>, vector<5x16xf32>
    %893 = vector.extract_strided_slice %892 {offsets = [0, 0], sizes = [2, 16], strides = [1, 1]} : vector<5x16xf32> to vector<2x16xf32>
    %894 = vector.extract_strided_slice %892 {offsets = [1, 0], sizes = [2, 16], strides = [1, 1]} : vector<5x16xf32> to vector<2x16xf32>
    %895 = vector.extract_strided_slice %892 {offsets = [2, 0], sizes = [2, 16], strides = [1, 1]} : vector<5x16xf32> to vector<2x16xf32>
    %896 = vector.extract_strided_slice %892 {offsets = [3, 0], sizes = [2, 16], strides = [1, 1]} : vector<5x16xf32> to vector<2x16xf32>
    %897 = tpu.concatenate %878, %879, %880, %881, %883, %884, %885, %886, %888, %889, %890, %891, %893, %894, %895, %896 in 1 : vector<2x16xf32>, vector<2x16xf32>, vector<2x16xf32>, vector<2x16xf32>, vector<2x16xf32>, vector<2x16xf32>, vector<2x16xf32>, vector<2x16xf32>, vector<2x16xf32>, vector<2x16xf32>, vector<2x16xf32>, vector<2x16xf32>, vector<2x16xf32>, vector<2x16xf32>, vector<2x16xf32>, vector<2x16xf32> -> vector<2x256xf32>
    %c25_423 = arith.constant 25 : index
    %c0_424 = arith.constant 0 : index
    %898 = vector.load %arg7[%c25_423, %c0_424] : memref<50x16xf32, #tpu.memory_space<vmem>>, vector<5x16xf32>
    %899 = vector.extract_strided_slice %898 {offsets = [0, 0], sizes = [2, 16], strides = [1, 1]} : vector<5x16xf32> to vector<2x16xf32>
    %900 = vector.extract_strided_slice %898 {offsets = [1, 0], sizes = [2, 16], strides = [1, 1]} : vector<5x16xf32> to vector<2x16xf32>
    %901 = vector.extract_strided_slice %898 {offsets = [2, 0], sizes = [2, 16], strides = [1, 1]} : vector<5x16xf32> to vector<2x16xf32>
    %902 = vector.extract_strided_slice %898 {offsets = [3, 0], sizes = [2, 16], strides = [1, 1]} : vector<5x16xf32> to vector<2x16xf32>
    %c30_425 = arith.constant 30 : index
    %c0_426 = arith.constant 0 : index
    %903 = vector.load %arg7[%c30_425, %c0_426] : memref<50x16xf32, #tpu.memory_space<vmem>>, vector<5x16xf32>
    %904 = vector.extract_strided_slice %903 {offsets = [0, 0], sizes = [2, 16], strides = [1, 1]} : vector<5x16xf32> to vector<2x16xf32>
    %905 = vector.extract_strided_slice %903 {offsets = [1, 0], sizes = [2, 16], strides = [1, 1]} : vector<5x16xf32> to vector<2x16xf32>
    %906 = vector.extract_strided_slice %903 {offsets = [2, 0], sizes = [2, 16], strides = [1, 1]} : vector<5x16xf32> to vector<2x16xf32>
    %907 = vector.extract_strided_slice %903 {offsets = [3, 0], sizes = [2, 16], strides = [1, 1]} : vector<5x16xf32> to vector<2x16xf32>
    %c35 = arith.constant 35 : index
    %c0_427 = arith.constant 0 : index
    %908 = vector.load %arg7[%c35, %c0_427] : memref<50x16xf32, #tpu.memory_space<vmem>>, vector<5x16xf32>
    %909 = vector.extract_strided_slice %908 {offsets = [0, 0], sizes = [2, 16], strides = [1, 1]} : vector<5x16xf32> to vector<2x16xf32>
    %910 = vector.extract_strided_slice %908 {offsets = [1, 0], sizes = [2, 16], strides = [1, 1]} : vector<5x16xf32> to vector<2x16xf32>
    %911 = vector.extract_strided_slice %908 {offsets = [2, 0], sizes = [2, 16], strides = [1, 1]} : vector<5x16xf32> to vector<2x16xf32>
    %912 = vector.extract_strided_slice %908 {offsets = [3, 0], sizes = [2, 16], strides = [1, 1]} : vector<5x16xf32> to vector<2x16xf32>
    %c40_428 = arith.constant 40 : index
    %c0_429 = arith.constant 0 : index
    %913 = vector.load %arg7[%c40_428, %c0_429] : memref<50x16xf32, #tpu.memory_space<vmem>>, vector<5x16xf32>
    %914 = vector.extract_strided_slice %913 {offsets = [0, 0], sizes = [2, 16], strides = [1, 1]} : vector<5x16xf32> to vector<2x16xf32>
    %915 = vector.extract_strided_slice %913 {offsets = [1, 0], sizes = [2, 16], strides = [1, 1]} : vector<5x16xf32> to vector<2x16xf32>
    %916 = vector.extract_strided_slice %913 {offsets = [2, 0], sizes = [2, 16], strides = [1, 1]} : vector<5x16xf32> to vector<2x16xf32>
    %917 = vector.extract_strided_slice %913 {offsets = [3, 0], sizes = [2, 16], strides = [1, 1]} : vector<5x16xf32> to vector<2x16xf32>
    %918 = tpu.concatenate %899, %900, %901, %902, %904, %905, %906, %907, %909, %910, %911, %912, %914, %915, %916, %917 in 1 : vector<2x16xf32>, vector<2x16xf32>, vector<2x16xf32>, vector<2x16xf32>, vector<2x16xf32>, vector<2x16xf32>, vector<2x16xf32>, vector<2x16xf32>, vector<2x16xf32>, vector<2x16xf32>, vector<2x16xf32>, vector<2x16xf32>, vector<2x16xf32>, vector<2x16xf32>, vector<2x16xf32>, vector<2x16xf32> -> vector<2x256xf32>
    %c30_430 = arith.constant 30 : index
    %c0_431 = arith.constant 0 : index
    %919 = vector.load %arg7[%c30_430, %c0_431] : memref<50x16xf32, #tpu.memory_space<vmem>>, vector<5x16xf32>
    %920 = vector.extract_strided_slice %919 {offsets = [0, 0], sizes = [2, 16], strides = [1, 1]} : vector<5x16xf32> to vector<2x16xf32>
    %921 = vector.extract_strided_slice %919 {offsets = [1, 0], sizes = [2, 16], strides = [1, 1]} : vector<5x16xf32> to vector<2x16xf32>
    %922 = vector.extract_strided_slice %919 {offsets = [2, 0], sizes = [2, 16], strides = [1, 1]} : vector<5x16xf32> to vector<2x16xf32>
    %923 = vector.extract_strided_slice %919 {offsets = [3, 0], sizes = [2, 16], strides = [1, 1]} : vector<5x16xf32> to vector<2x16xf32>
    %c35_432 = arith.constant 35 : index
    %c0_433 = arith.constant 0 : index
    %924 = vector.load %arg7[%c35_432, %c0_433] : memref<50x16xf32, #tpu.memory_space<vmem>>, vector<5x16xf32>
    %925 = vector.extract_strided_slice %924 {offsets = [0, 0], sizes = [2, 16], strides = [1, 1]} : vector<5x16xf32> to vector<2x16xf32>
    %926 = vector.extract_strided_slice %924 {offsets = [1, 0], sizes = [2, 16], strides = [1, 1]} : vector<5x16xf32> to vector<2x16xf32>
    %927 = vector.extract_strided_slice %924 {offsets = [2, 0], sizes = [2, 16], strides = [1, 1]} : vector<5x16xf32> to vector<2x16xf32>
    %928 = vector.extract_strided_slice %924 {offsets = [3, 0], sizes = [2, 16], strides = [1, 1]} : vector<5x16xf32> to vector<2x16xf32>
    %c40_434 = arith.constant 40 : index
    %c0_435 = arith.constant 0 : index
    %929 = vector.load %arg7[%c40_434, %c0_435] : memref<50x16xf32, #tpu.memory_space<vmem>>, vector<5x16xf32>
    %930 = vector.extract_strided_slice %929 {offsets = [0, 0], sizes = [2, 16], strides = [1, 1]} : vector<5x16xf32> to vector<2x16xf32>
    %931 = vector.extract_strided_slice %929 {offsets = [1, 0], sizes = [2, 16], strides = [1, 1]} : vector<5x16xf32> to vector<2x16xf32>
    %932 = vector.extract_strided_slice %929 {offsets = [2, 0], sizes = [2, 16], strides = [1, 1]} : vector<5x16xf32> to vector<2x16xf32>
    %933 = vector.extract_strided_slice %929 {offsets = [3, 0], sizes = [2, 16], strides = [1, 1]} : vector<5x16xf32> to vector<2x16xf32>
    %c45 = arith.constant 45 : index
    %c0_436 = arith.constant 0 : index
    %934 = vector.load %arg7[%c45, %c0_436] : memref<50x16xf32, #tpu.memory_space<vmem>>, vector<5x16xf32>
    %935 = vector.extract_strided_slice %934 {offsets = [0, 0], sizes = [2, 16], strides = [1, 1]} : vector<5x16xf32> to vector<2x16xf32>
    %936 = vector.extract_strided_slice %934 {offsets = [1, 0], sizes = [2, 16], strides = [1, 1]} : vector<5x16xf32> to vector<2x16xf32>
    %937 = vector.extract_strided_slice %934 {offsets = [2, 0], sizes = [2, 16], strides = [1, 1]} : vector<5x16xf32> to vector<2x16xf32>
    %938 = vector.extract_strided_slice %934 {offsets = [3, 0], sizes = [2, 16], strides = [1, 1]} : vector<5x16xf32> to vector<2x16xf32>
    %939 = tpu.concatenate %920, %921, %922, %923, %925, %926, %927, %928, %930, %931, %932, %933, %935, %936, %937, %938 in 1 : vector<2x16xf32>, vector<2x16xf32>, vector<2x16xf32>, vector<2x16xf32>, vector<2x16xf32>, vector<2x16xf32>, vector<2x16xf32>, vector<2x16xf32>, vector<2x16xf32>, vector<2x16xf32>, vector<2x16xf32>, vector<2x16xf32>, vector<2x16xf32>, vector<2x16xf32>, vector<2x16xf32>, vector<2x16xf32> -> vector<2x256xf32>
    %940 = tpu.concatenate %876, %897, %918, %939 in 0 : vector<2x256xf32>, vector<2x256xf32>, vector<2x256xf32>, vector<2x256xf32> -> vector<8x256xf32>
    %c448 = arith.constant 448 : index
    %c0_437 = arith.constant 0 : index
    %941 = vector.load %arg2[%c448, %c0_437] : memref<704x16xf32, #tpu.memory_space<vmem>>, vector<256x1xf32>
    %cst_438 = arith.constant dense<0.000000e+00> : vector<8x1xf32>
    %942 = tpu.matmul %940, %941, %cst_438 {dimension_numbers = #tpu.dot_dimension_numbers<[1], [0], [0], [1], [0, 0, 1, 1], [], []>} : vector<8x256xf32>, vector<256x1xf32>, vector<8x1xf32> -> vector<8x1xf32>
    %c5_439 = arith.constant 5 : index
    %c0_440 = arith.constant 0 : index
    %943 = vector.load %arg3[%c5_439, %c0_440] : memref<6x16xf32, #tpu.memory_space<vmem>>, vector<1x1xf32>
    %944 = vector.broadcast %943 : vector<1x1xf32> to vector<8x1xf32>
    %945 = arith.addf %942, %944 : vector<8x1xf32>
    %946 = arith.negf %945 : vector<8x1xf32>
    %947 = math.exp %946 : vector<8x1xf32>
    %cst_441 = arith.constant 1.000000e+00 : f32
    %948 = vector.broadcast %cst_441 : f32 to vector<8x1xf32>
    %949 = arith.addf %948, %947 : vector<8x1xf32>
    %950 = arith.divf %948, %949 : vector<8x1xf32>
    %c0_442 = arith.constant 0 : index
    %c0_443 = arith.constant 0 : index
    %951 = vector.load %arg4[%c0_442, %c0_443] : memref<8x1xf32, #tpu.memory_space<vmem>>, vector<8x1xf32>
    tpu.vector_store %arg4[%c0_442, %c0_443], %950 {strides = array<i32>} : memref<8x1xf32, #tpu.memory_space<vmem>>, vector<8x1xf32>,
    return
  }
  func.func @transform_0(%arg0: i32) -> (i32, i32) {
    %c0_i32 = arith.constant 0 : i32
    %c0_i32_0 = arith.constant 0 : i32
    %c0_i32_1 = arith.constant 0 : i32
    return %c0_i32, %c0_i32_0 : i32, i32
  }
  func.func @transform_1(%arg0: i32) -> (i32, i32) {
    %c0_i32 = arith.constant 0 : i32
    %c0_i32_0 = arith.constant 0 : i32
    %c0_i32_1 = arith.constant 0 : i32
    return %c0_i32, %c0_i32_0 : i32, i32
  }
  func.func @transform_2(%arg0: i32) -> (i32, i32) {
    %c0_i32 = arith.constant 0 : i32
    %c0_i32_0 = arith.constant 0 : i32
    %c0_i32_1 = arith.constant 0 : i32
    return %c0_i32, %c0_i32_0 : i32, i32
  }
  func.func @transform_3(%arg0: i32) -> (i32, i32) {
    %c0_i32 = arith.constant 0 : i32
    %c0_i32_0 = arith.constant 0 : i32
    %c0_i32_1 = arith.constant 0 : i32
    return %c0_i32, %c0_i32_0 : i32, i32
  }
}

</mosaic_0001>

<bundles_post_ra>
// kernel: tpu_custom_call.1
= control target key start
LH: loop header
LB: loop body
LE: loop exit
PB: predicated region body
PF: predicated region fallthrough
CT: control target
= control target key end

     0   :  { %s4863_s18 = smov 4   ;;  %vm8534_vm0 = vcmask 1046528   ;;  %s4864_s27 = smov 12   ;;  %vm131_vm1 = vcmask 31744   ;;  %vm133_vm2 = vcmask 64512   ;;  %vm135_vm3 = vcmask 97280   ;;  %s8524_s0 = inlined_call_operand.vmem [shape: f32[648,4], index: 0, kind: input, shape index: {}]   ;;  %s8525_s1 = inlined_call_operand.vmem [shape: f32[704,16], index: 1, kind: input, shape index: {}]   ;;  %s8526_s2 = inlined_call_operand.vmem [shape: f32[6,16], index: 2, kind: input, shape index: {}]   ;;  %s8527_s3 = inlined_call_operand.vmem [shape: f32[8,1], index: 3, kind: output, shape index: {}]  }
   0x1   :  { %v4910_v0 = vld [vmem:[%s8524_s0 + $0x25] ss:$2 sm:$0xff]  ;;  %v4918_v2 = vld [vmem:[%s8524_s0] ss:$2 sm:$0xff]  ;;  %s4865_s30 = smov 8   ;;  %s4866_s6 = smov 16  }
   0x2   :  { %v3734_v1 = vld [vmem:[%s8524_s0 + $0x1] ss:$2 sm:$0xff]  ;;  %177 = vrot.lane.b32.xlu1 %v4910_v0, %s4863_s18  ;;  %v3735_v4 = vld [vmem:[%s8524_s0 + $0x11] ss:$2 sm:$0x1]  ;;  %v52_v5 = vrot.slane %v4918_v2, 1 }
   0x3   :  { %46 = vrot.lane.b32.xlu0 %v3734_v1, %s4863_s18  ;;  %v59_v3 = vrot.slane %v3734_v1, 1  ;;  %v60_v6 = vrot.slane %v3735_v4, 1  ;;  %v3733_v7 = vld [vmem:[%s8524_s0 + $0x10] ss:$2 sm:$0x1]  ;;  %v103_v17 = vrot.slane %v4910_v0, 1 }
   0x4   :  { %v53_v8 = vrot.slane %v3733_v7, 1  ;;  %v4933_v9 = vld [vmem:[%s8524_s0 + $0x24] ss:$2 sm:$0xff]  ;;  %v3741_v11 = vld [vmem:[%s8524_s0 + $0x34] ss:$2 sm:$0x1] }
   0x5   :  { %v61_v10 = vsel %vm8534_vm0, %v59_v3, %v60_v6  ;;  %v96_v12 = vrot.slane %v4933_v9, 1  ;;  %v97_v14 = vrot.slane %v3741_v11, 1  ;;  %v3743_v15 = vld [vmem:[%s8524_s0 + $0x35] ss:$2 sm:$0x1]  ;;  %s4867_s11 = smov 20  }
   0x6   :  { %62 = vrot.lane.b32.xlu1 %v61_v10, %s4864_s27  ;;  %v54_v13 = vsel %vm8534_vm0, %v52_v5, %v53_v8  ;;  %v3736_v16 = vld [vmem:[%s8524_s0 + $0x12] ss:$2 sm:$0xff]  ;;  %v104_v19 = vrot.slane %v3743_v15, 1  ;;  %v3738_v20 = vld [vmem:[%s8524_s0 + $0x13] ss:$2 sm:$0xff]  ;;  %s4868_s28 = smov 24  }
   0x7   :  { %55 = vrot.lane.b32.xlu0 %v54_v13, %s4865_s30  ;;  %v4951_v18 = vsel %vm8534_vm0, %v96_v12, %v97_v14  ;;  %v3737_v22 = vld [vmem:[%s8524_s0 + $0x22] ss:$2 sm:$0x1]  ;;  %v4971_v23 = vld [vmem:[%s8524_s0 + $0x49] ss:$2 sm:$0xff]  ;;  %v74_v24 = vrot.slane %v3736_v16, 1 }
   0x8   :  { %v4960_v21 = vsel %vm8534_vm0, %v103_v17, %v104_v19  ;;  %v4976_v25 = vld [vmem:[%s8524_s0 + $0x36] ss:$2 sm:$0xff]  ;;  %v75_v26 = vrot.slane %v3737_v22, 1  ;;  %v4993_v29 = vld [vmem:[%s8524_s0 + $0x37] ss:$2 sm:$0xff]  ;;  %v81_v35 = vrot.slane %v3738_v20, 1 }
   0x9   :  { %v4981_v27 = vld [vmem:[%s8524_s0 + $0x48] ss:$2 sm:$0xff]  ;;  %v3749_v28 = vld [vmem:[%s8524_s0 + $0x58] ss:$2 sm:$0x1]  ;;  %v118_v36 = vrot.slane %v4976_v25, 1 }
   0xa   :  { %66 = vrot.lane.b32.xlu1 %v3736_v16, %s4866_s6  ;;  %v76_v30 = vsel %vm8534_vm0, %v74_v24, %v75_v26  ;;  %v207_v31 = vrot.slane %v4981_v27, 1  ;;  %v208_v32 = vrot.slane %v3749_v28, 1  ;;  %v3745_v33 = vld [vmem:[%s8524_s0 + $0x46] ss:$2 sm:$0x1]  ;;  %v214_v47 = vrot.slane %v4971_v23, 1 }
   0xb   :  { %180 = vrot.lane.b32.xlu0 %v4951_v18, %s4865_s30  ;;  %v3739_v34 = vld [vmem:[%s8524_s0 + $0x23] ss:$2 sm:$0x1]  ;;  %v5010_v37 = vld [vmem:[%s8524_s0 + $0x6d] ss:$2 sm:$0xff]  ;;  %v119_v38 = vrot.slane %v3745_v33, 1 }
   0xc   :  { %v5013_v39 = vsel %vm8534_vm0, %v207_v31, %v208_v32  ;;  %v82_v40 = vrot.slane %v3739_v34, 1  ;;  %v5018_v41 = vld [vmem:[%s8524_s0 + $0x6c] ss:$2 sm:$0xff]  ;;  %v3757_v42 = vld [vmem:[%s8524_s0 + $0x7c] ss:$2 sm:$0x1] }
   0xd   :  { %v3751_v43 = vld [vmem:[%s8524_s0 + $0x59] ss:$2 sm:$0x1]  ;;  %v5031_v44 = vsel %vm8534_vm0, %v118_v36, %v119_v38  ;;  %v303_v45 = vrot.slane %v5018_v41, 1  ;;  %v304_v46 = vrot.slane %v3757_v42, 1  ;;  %v125_v51 = vrot.slane %v4993_v29, 1 }
   0xe   :  { %70 = vrot.lane.b32.xlu1 %v3738_v20, %s4867_s11  ;;  %v83_v48 = vsel %vm8534_vm0, %v81_v35, %v82_v40  ;;  %v215_v49 = vrot.slane %v3751_v43, 1  ;;  %v3747_v50 = vld [vmem:[%s8524_s0 + $0x47] ss:$2 sm:$0x1]  ;;  %s4869_s15 = smov 28   ;;  %v310_v56 = vrot.slane %v5010_v37, 1 }
   0xf   :  { %183 = vrot.lane.b32.xlu0 %v4960_v21, %s4864_s27  ;;  %v5044_v52 = vsel %vm8534_vm0, %v303_v45, %v304_v46  ;;  %v126_v53 = vrot.slane %v3747_v50, 1  ;;  %v3759_v55 = vld [vmem:[%s8524_s0 + $0x7d] ss:$2 sm:$0x1]  ;;  %s4870_s19 = smov 32   ;;  %s4871_s22 = smov 36  }
  0x10   :  { %v5047_v54 = vsel %vm8534_vm0, %v214_v47, %v215_v49  ;;  %v311_v58 = vrot.slane %v3759_v55, 1  ;;  %v5070_v60 = vld [vmem:[%s8524_s0 + $0x5a] ss:$2 sm:$0xff]  ;;  %v5088_v62 = vld [vmem:[%s8524_s0 + $0x5b] ss:$2 sm:$0xff]  ;;  %s4872_s13 = smov 40  }
  0x11   :  { %v5058_v57 = vsel %vm8534_vm0, %v125_v51, %v126_v53  ;;  %v5083_v61 = vld [vmem:[%s8524_s0 + $0x7e] ss:$2 sm:$0xff]  ;;  %v229_v1 = vrot.slane %v5070_v60, 1  ;;  %v5126_v11 = vld [vmem:[%s8524_s0 + $0x7f] ss:$2 sm:$0xff]  ;;  %v236_v13 = vrot.slane %v5088_v62, 1 }
  0x12   :  { %273 = vrot.lane.b32.xlu1 %v4971_v23, %s4863_s18  ;;  %v5065_v59 = vsel %vm8534_vm0, %v310_v56, %v311_v58  ;;  %v3753_v63 = vld [vmem:[%s8524_s0 + $0x6a] ss:$2 sm:$0x1]  ;;  %v3764_v4 = vld [vmem:[%s8524_s0 + $0x90] ss:$2 sm:$0xff]  ;;  %s4873_s4 = smov 44  }
  0x13   :  { %186 = vrot.lane.b32.xlu0 %v4976_v25, %s4866_s6  ;;  %v230_v3 = vrot.slane %v3753_v63, 1  ;;  %v3765_v5 = vld [vmem:[%s8524_s0 + $0xa0] ss:$2 sm:$0x1]  ;;  %v399_v7 = vrot.slane %v3764_v4, 1  ;;  %v325_v22 = vrot.slane %v5083_v61, 1 }
  0x14   :  { %v400_v8 = vrot.slane %v3765_v5, 1  ;;  %v3755_v12 = vld [vmem:[%s8524_s0 + $0x6b] ss:$2 sm:$0x1]  ;;  %v5139_v15 = vld [vmem:[%s8524_s0 + $0xb5] ss:$2 sm:$0xff] }
  0x15   :  { %v5114_v6 = vsel %vm8534_vm0, %v229_v1, %v230_v3  ;;  %v237_v14 = vrot.slane %v3755_v12, 1  ;;  %v3767_v16 = vld [vmem:[%s8524_s0 + $0xa1] ss:$2 sm:$0x1]  ;;  %v5159_v24 = vld [vmem:[%s8524_s0 + $0xb4] ss:$2 sm:$0xff] }
  0x16   :  { %189 = vrot.lane.b32.xlu1 %v4993_v29, %s4867_s11  ;;  %v5121_v10 = vsel %vm8534_vm0, %v399_v7, %v400_v8  ;;  %v3761_v17 = vld [vmem:[%s8524_s0 + $0x8e] ss:$2 sm:$0x1]  ;;  %v407_v20 = vrot.slane %v3767_v16, 1  ;;  %s4874_s14 = smov 48   ;;  %v332_v34 = vrot.slane %v5126_v11, 1 }
  0x17   :  { %77 = vrot.lane.b32.xlu0 %v76_v30, %s4868_s28  ;;  %v5153_v19 = vsel %vm8534_vm0, %v236_v13, %v237_v14  ;;  %v495_v30 = vrot.slane %v5159_v24, 1  ;;  %v3763_v33 = vld [vmem:[%s8524_s0 + $0x8f] ss:$2 sm:$0x1]  ;;  %v502_v38 = vrot.slane %v5139_v15, 1  ;;  %s4875_s23 = smov 52  }
  0x18   :  { %v333_v35 = vrot.slane %v3763_v33, 1  ;;  %v3775_v36 = vld [vmem:[%s8524_s0 + $0xc5] ss:$2 sm:$0x1]  ;;  %s4876_s10 = smov 56   ;;  %v1639_v56 = vld [vmem:[%s8525_s1 + $0x10] sm:$0xff] }
  0x19   :  { %v503_v40 = vrot.slane %v3775_v36, 1  ;;  %v5224_v42 = vld [vmem:[%s8524_s0 + $0xa3] ss:$2 sm:$0xff]  ;;  %v3769_v43 = vld [vmem:[%s8524_s0 + $0xb2] ss:$2 sm:$0x1] }
  0x1a   :  { %369 = vrot.lane.b32.xlu1 %v5010_v37, %s4863_s18  ;;  %v422_v46 = vrot.slane %v3769_v43, 1  ;;  %v1637_v47 = vld [vmem:[%s8525_s1] sm:$0xff]  ;;  %v1642_v3 = vld [vmem:[%s8525_s1 + $0x28] sm:$0xff]  ;;  %v3777_v7 = vld [vmem:[%s8524_s0 + $0xd6] ss:$2 sm:$0x1] }
  0x1b   :  { %276 = vrot.lane.b32.xlu0 %v5013_v39, %s4865_s30  ;;  %v5260_v49 = vld [vmem:[%s8524_s0 + $0xd8] ss:$2 sm:$0xff]  ;;  %v5272_v51 = vld [vmem:[%s8524_s0 + $0xc7] ss:$2 sm:$0xff]  ;;  %s4877_s17 = smov 60   ;;  %vm137_vm4 = vcmask 130048  }
  0x1c   :  { %v1643_v8 = vld [vmem:[%s8525_s1 + $0x30] sm:$0xff]  ;;  %v1644_v12 = vld [vmem:[%s8525_s1 + $0x38] sm:$0xff]  ;;  %vm139_vm5 = vcmask 162816   ;;  %vm141_vm6 = vcmask 195584   ;;  %vm8533_vm7 = vcmask 228352   ;;  %vm8530_vm8 = vcmask 261120  }
  0x1d   :  { %v3771_v14 = vld [vmem:[%s8524_s0 + $0xb3] ss:$2 sm:$0x1]  ;;  %v4105_v16 = vpack.c.bf16 %v1644_v12, %v1643_v8  ;;  %vm147_vm9 = vcmask 293888   ;;  %vm149_vm10 = vcmask 326656   ;;  %vm8529_vm11 = vcmask 359424  }
  0x1e   :  { %192 = vrot.lane.b32.xlu1 %v5031_v44, %s4868_s28  ;;  %vm153_vm12 = vcmask 392192   ;;  %vm155_vm13 = vcmask 424960   ;;  %vm157_vm14 = vcmask 457728   ;;  %vm159_vm15 = vcmask 490496   ;;  %s4881_s24 = smov 80   ;;  %s4883_s7 = smov 96  }
  0x1f   :  { %84 = vrot.lane.b32.xlu0 %v83_v48, %s4869_s15  ;;  %v1638_v48 = vld [vmem:[%s8525_s1 + $0x8] sm:$0xff]  ;;  %s4884_s16 = smov 104   ;;  %s4886_s12 = smov 120  }
  0x20   :  { %v4093_v50 = vpack.c.bf16 %v1638_v48, %v1637_v47 }
  0x22   :  { %372 = vrot.lane.b32.xlu1 %v5044_v52, %s4865_s30  ;;  %4094 = vmatprep.subr.bf16.mxu0 %v4093_v50 }
  0x23   :  { %279 = vrot.lane.b32.xlu0 %v5047_v54, %s4864_s27  ;;  %4096 = vmatpush3.bf16.msra.mxu0 %v4093_v50  ;;  %v524_v50 = vrot.slane %v5272_v51, 1 }
  0x26   :  { %195 = vrot.lane.b32.xlu1 %v5058_v57, %s4869_s15 }
  0x27   :  { %88 = vrot.lane.b32.xlu0 %v4933_v9, %s4870_s19 }
  0x2a   :  { %375 = vrot.lane.b32.xlu1 %v5065_v59, %s4864_s27 }
  0x2b   :  { %282 = vrot.lane.b32.xlu0 %v5070_v60, %s4866_s6 }
  0x2e   :  { %199 = vrot.lane.b32.xlu1 %v4981_v27, %s4870_s19 }
  0x2f   :  { %92 = vrot.lane.b32.xlu0 %v4910_v0, %s4871_s22  ;;  %v5101_v0 = vld [vmem:[%s8524_s0 + $0x91] ss:$2 sm:$0xff] }
  0x32   :  { %378 = vrot.lane.b32.xlu1 %v5083_v61, %s4866_s6 }
  0x33   :  { %285 = vrot.lane.b32.xlu0 %v5088_v62, %s4867_s11 }
  0x36   :  { %99 = vrot.lane.b32.xlu1 %v4951_v18, %s4872_s13  ;;  %v406_v18 = vrot.slane %v5101_v0, 1 }
  0x37   :  { %465 = vrot.lane.b32.xlu0 %v5101_v0, %s4863_s18 }
  0x38   :  { %v5169_v26 = vsel %vm8534_vm0, %v406_v18, %v407_v20  ;;  %v518_v20 = vrot.slane %v3777_v7, 1 }
  0x3a   :  { %288 = vrot.lane.b32.xlu1 %v5114_v6, %s4868_s28 }
  0x3b   :  { %203 = vrot.lane.b32.xlu0 %v4971_v23, %s4871_s22  ;;  %v326_v23 = vrot.slane %v3761_v17, 1  ;;  %v428_v17 = vrot.slane %v5224_v42, 1 }
  0x3d   :  { %v5172_v28 = vsel %vm8534_vm0, %v325_v22, %v326_v23  ;;  %v429_v23 = vrot.slane %v3771_v14, 1  ;;  %v5443_v14 = vld [vmem:[%s8524_s0 + $0xeb] ss:$2 sm:$0xff] }
  0x3e   :  { %468 = vrot.lane.b32.xlu1 %v5121_v10, %s4865_s30 }
  0x3f   :  { %381 = vrot.lane.b32.xlu0 %v5126_v11, %s4867_s11 }
  0x42   :  { %106 = vrot.lane.b32.xlu1 %v4960_v21, %s4873_s4  ;;  %v3773_v21 = vld [vmem:[%s8524_s0 + $0xc4] ss:$2 sm:$0x1] }
  0x43   :  { %561 = vrot.lane.b32.xlu0 %v5139_v15, %s4863_s18  ;;  %v496_v31 = vrot.slane %v3773_v21, 1  ;;  %v5337_v21 = vld [vmem:[%s8524_s0 + $0xfc] ss:$2 sm:$0xff] }
  0x44   :  { %v687_v33 = vrot.slane %v5337_v21, 1 }
  0x45   :  { %v5180_v32 = vsel %vm8534_vm0, %v495_v30, %v496_v31 }
  0x46   :  { %291 = vrot.lane.b32.xlu1 %v5153_v19, %s4869_s15 }
  0x47   :  { %210 = vrot.lane.b32.xlu0 %v5013_v39, %s4872_s13  ;;  %v5204_v39 = vsel %vm8534_vm0, %v332_v34, %v333_v35 }
  0x4a   :  { %471 = vrot.lane.b32.xlu1 %v5169_v26, %s4864_s27 }
  0x4b   :  { %384 = vrot.lane.b32.xlu0 %v5172_v28, %s4868_s28 }
  0x4e   :  { %110 = vrot.lane.b32.xlu1 %v4976_v25, %s4874_s14  ;;  %v5200_v25 = vld [vmem:[%s8524_s0 + $0xa2] ss:$2 sm:$0xff] }
  0x4f   :  { %564 = vrot.lane.b32.xlu0 %v5180_v32, %s4865_s30  ;;  %v421_v45 = vrot.slane %v5200_v25, 1 }
  0x51   :  { %v5275_v53 = vsel %vm8534_vm0, %v421_v45, %v422_v46 }
  0x52   :  { %295 = vrot.lane.b32.xlu1 %v5018_v41, %s4870_s19  ;;  %v5211_v41 = vsel %vm8534_vm0, %v502_v38, %v503_v40  ;;  %v5359_v38 = vsel %vm8534_vm0, %v428_v17, %v429_v23  ;;  %v5463_v17 = vld [vmem:[%s8524_s0 + $0x10e] ss:$2 sm:$0xff] }
  0x53   :  { %217 = vrot.lane.b32.xlu0 %v5047_v54, %s4873_s4  ;;  %v591_v54 = vrot.slane %v5260_v49, 1  ;;  %v3785_v23 = vld [vmem:[%s8524_s0 + $0xfa] ss:$2 sm:$0x1] }
  0x56   :  { %474 = vrot.lane.b32.xlu1 %v5200_v25, %s4866_s6 }
  0x57   :  { %387 = vrot.lane.b32.xlu0 %v5204_v39, %s4869_s15 }
  0x5a   :  { %114 = vrot.lane.b32.xlu1 %v4993_v29, %s4875_s23  ;;  %v5232_v29 = vld [vmem:[%s8524_s0 + $0xd9] ss:$2 sm:$0xff] }
  0x5b   :  { %567 = vrot.lane.b32.xlu0 %v5211_v41, %s4864_s27  ;;  %v598_v35 = vrot.slane %v5232_v29, 1 }
  0x5e   :  { %299 = vrot.lane.b32.xlu1 %v5010_v37, %s4871_s22  ;;  %v5237_v37 = vld [vmem:[%s8524_s0 + $0xc6] ss:$2 sm:$0xff] }
  0x5f   :  { %221 = vrot.lane.b32.xlu0 %v5070_v60, %s4874_s14  ;;  %v5291_v60 = vld [vmem:[%s8524_s0 + $0xfd] ss:$2 sm:$0xff]  ;;  %v517_v18 = vrot.slane %v5237_v37, 1 }
  0x61   :  { %v5352_v31 = vsel %vm8534_vm0, %v517_v18, %v518_v20 }
  0x62   :  { %477 = vrot.lane.b32.xlu1 %v5224_v42, %s4867_s11 }
  0x63   :  { %391 = vrot.lane.b32.xlu0 %v3764_v4, %s4870_s19 }
  0x66   :  { %657 = vrot.lane.b32.xlu1 %v5232_v29, %s4863_s18 }
  0x67   :  { %570 = vrot.lane.b32.xlu0 %v5237_v37, %s4866_s6 }
  0x6a   :  { %225 = vrot.lane.b32.xlu1 %v5088_v62, %s4875_s23 }
  0x6b   :  { %121 = vrot.lane.b32.xlu0 %v5031_v44, %s4876_s10  ;;  %v3781_v44 = vld [vmem:[%s8524_s0 + $0xe8] ss:$2 sm:$0x1] }
  0x6c   :  { %v592_v55 = vrot.slane %v3781_v44, 1  ;;  %v3779_v44 = vld [vmem:[%s8524_s0 + $0xd7] ss:$2 sm:$0x1] }
  0x6e   :  { %395 = vrot.lane.b32.xlu1 %v5101_v0, %s4871_s22  ;;  %v5298_v1 = vsel %vm8534_vm0, %v591_v54, %v592_v55  ;;  %v1641_v0 = vld [vmem:[%s8525_s1 + $0x20] sm:$0xff]  ;;  %v525_v55 = vrot.slane %v3779_v44, 1 }
  0x6f   :  { %306 = vrot.lane.b32.xlu0 %v5044_v52, %s4872_s13  ;;  %v1640_v52 = vld [vmem:[%s8525_s1 + $0x18] sm:$0xff]  ;;  %v4101_v4 = vpack.c.bf16 %v1642_v3, %v1641_v0 }
  0x70   :  { %v4097_v58 = vpack.c.bf16 %v1640_v52, %v1639_v56  ;;  %v3791_v52 = vld [vmem:[%s8524_s0 + $0x10d] ss:$2 sm:$0x1]  ;;  %v5413_v0 = vsel %vm8534_vm0, %v524_v50, %v525_v55 }
  0x71   :  { %v695_v3 = vrot.slane %v3791_v52, 1 }
  0x72   :  { %573 = vrot.lane.b32.xlu1 %v5272_v51, %s4867_s11  ;;  %4098 = vmatprep.subr.bf16.mxu0 %v4097_v58 }
  0x73   :  { %480 = vrot.lane.b32.xlu0 %v5275_v53, %s4868_s28  ;;  %4100 = vmatpush3.bf16.msra.mxu0 %v4097_v58 }
  0x74   :  { %v5293_v62 = vpop.permute.xlu1 %177  ;;  %4102 = vmatprep.subr.bf16.mxu0 %v4101_v4 }
  0x75   :  { %v5295_v63 = vpop.permute.xlu0 %46 }
  0x76   :  { %753 = vrot.lane.b32.xlu1 %v5291_v60, %s4863_s18 }
  0x77   :  { %660 = vrot.lane.b32.xlu0 %v5298_v1, %s4865_s30  ;;  %4104 = vmatpush3.bf16.msra.mxu0 %v4101_v4 }
  0x78   :  { %v5310_v5 = vpop.permute.xlu1 %62  ;;  %4106 = vmatprep.subr.bf16.mxu0 %v4105_v16 }
  0x79   :  { %v5321_v13 = vpop.permute.xlu0 %55 }
  0x7a   :  { %232 = vrot.lane.b32.xlu1 %v5114_v6, %s4876_s10  ;;  %v3789_v6 = vld [vmem:[%s8524_s0 + $0x10c] ss:$2 sm:$0x1] }
  0x7b   :  { %128 = vrot.lane.b32.xlu0 %v5058_v57, %s4877_s17  ;;  %4108 = vmatpush3.bf16.msra.mxu0 %v4105_v16  ;;  %v3783_v57 = vld [vmem:[%s8524_s0 + $0xe9] ss:$2 sm:$0x1]  ;;  %v688_v34 = vrot.slane %v3789_v6, 1 }
  0x7c   :  { %v5332_v22 = vpop.permute.xlu1 %66  ;;  %v599_v40 = vrot.slane %v3783_v57, 1 }
  0x7d   :  { %v5342_v30 = vpop.permute.xlu0 %180 }
  0x7e   :  { %402 = vrot.lane.b32.xlu1 %v5121_v10, %s4872_s13  ;;  %v5373_v45 = vsel %vm8534_vm0, %v598_v35, %v599_v40  ;;  %v3804_v35 = vld [vmem:[%s8524_s0 + $0x144] ss:$2 sm:$0xff]  ;;  %v3805_v40 = vld [vmem:[%s8524_s0 + $0x154] ss:$2 sm:$0x1] }
  0x7f   :  { %313 = vrot.lane.b32.xlu0 %v5065_v59, %s4873_s4  ;;  %v5368_v59 = vsel %vm8534_vm0, %v687_v33, %v688_v34  ;;  %v614_v33 = vrot.slane %v3785_v23, 1  ;;  %v871_v50 = vrot.slane %v3804_v35, 1  ;;  %v872_v55 = vrot.slane %v3805_v40, 1  ;;  %v3787_v35 = vld [vmem:[%s8524_s0 + $0xfb] ss:$2 sm:$0x1] }
  0x80   :  { %v5356_v36 = vpop.permute.xlu1 %70  ;;  %v620_v40 = vrot.slane %v5443_v14, 1 }
  0x81   :  { %v5361_v43 = vpop.permute.xlu0 %183 }
  0x82   :  { %576 = vrot.lane.b32.xlu1 %v5352_v31, %s4868_s28 }
  0x83   :  { %483 = vrot.lane.b32.xlu0 %v5359_v38, %s4869_s15 }
  0x84   :  { %v5370_v10 = vpop.permute.xlu1 %273 }
  0x85   :  { %v5375_v46 = vpop.permute.xlu0 %186 }
  0x86   :  { %756 = vrot.lane.b32.xlu1 %v5368_v59, %s4865_s30 }
  0x87   :  { %663 = vrot.lane.b32.xlu0 %v5373_v45, %s4864_s27 }
  0x88   :  { %v5381_v47 = vpop.permute.xlu1 %189 }
  0x89   :  { %v5383_v48 = vpop.permute.xlu0 %77 }
  0x8a   :  { %317 = vrot.lane.b32.xlu1 %v5083_v61, %s4874_s14  ;;  %v5407_v61 = vld [vmem:[%s8524_s0 + $0xea] ss:$2 sm:$0xff] }
  0x8b   :  { %239 = vrot.lane.b32.xlu0 %v5153_v19, %s4877_s17  ;;  %v694_v19 = vrot.slane %v5291_v60, 1  ;;  %v613_v6 = vrot.slane %v5407_v61, 1 }
  0x8c   :  { %v5393_v54 = vpop.permute.xlu1 %369 }
  0x8d   :  { %8535 = vst [vmem:[#allocation5_spill] sm:$0xff] %v5393_v54  ;;  %v5395_v56 = vpop.permute.xlu0 %276  ;;  %v5505_v44 = vsel %vm8534_vm0, %v613_v6, %v614_v33  ;;  %v3793_v6 = vld [vmem:[%s8524_s0 + $0x11e] ss:$2 sm:$0x1] }
  0x8e   :  { %487 = vrot.lane.b32.xlu1 %v5159_v24, %s4870_s19 }
  0x8f   :  { %409 = vrot.lane.b32.xlu0 %v5169_v26, %s4873_s4  ;;  %v5424_v26 = vsel %vm8534_vm0, %v694_v19, %v695_v3  ;;  %v873_v19 = vsel %vm8534_vm0, %v871_v50, %v872_v55  ;;  %v709_v50 = vrot.slane %v5463_v17, 1  ;;  %v710_v55 = vrot.slane %v3793_v6, 1 }
  0x90   :  { %v5410_v58 = vpop.permute.xlu1 %192 }
  0x91   :  { %v5415_v4 = vpop.permute.xlu0 %84 }
  0x92   :  { %666 = vrot.lane.b32.xlu1 %v5407_v61, %s4866_s6 }
  0x93   :  { %579 = vrot.lane.b32.xlu0 %v5413_v0, %s4869_s15 }
  0x94   :  { %v5421_v24 = vpop.permute.xlu1 %372 }
  0x95   :  { %8536 = vst [vmem:[#allocation6_spill] sm:$0xff] %v5421_v24  ;;  %v5426_v7 = vpop.permute.xlu0 %279 }
  0x96   :  { %321 = vrot.lane.b32.xlu1 %v5126_v11, %s4875_s23 }
  0x97   :  { %759 = vrot.lane.b32.xlu0 %v5424_v26, %s4864_s27 }
  0x98   :  { %v5432_v8 = vpop.permute.xlu1 %195 }
  0x99   :  { %v5434_v12 = vpop.permute.xlu0 %88 }
  0x9a   :  { %491 = vrot.lane.b32.xlu1 %v5139_v15, %s4871_s22  ;;  %v5456_v15 = vld [vmem:[%s8524_s0 + $0x145] ss:$2 sm:$0xff] }
  0x9b   :  { %413 = vrot.lane.b32.xlu0 %v5200_v25, %s4874_s14 }
  0x9c   :  { %v5445_v16 = vpop.permute.xlu1 %375 }
  0x9d   :  { %8537 = vst [vmem:[#allocation7_spill] sm:$0xff] %v5445_v16  ;;  %v5447_v11 = vpop.permute.xlu0 %282 }
  0x9e   :  { %669 = vrot.lane.b32.xlu1 %v5443_v14, %s4867_s11 }
  0x9f   :  { %583 = vrot.lane.b32.xlu0 %v5260_v49, %s4870_s19 }
  0xa0   :  { %v5458_v25 = vpop.permute.xlu1 %199 }
  0xa1   :  { %v5465_v18 = vpop.permute.xlu0 %92 }
  0xa2   :  { %866 = vrot.lane.b32.xlu1 %v5456_v15, %s4863_s18 }
  0xa3   :  { %762 = vrot.lane.b32.xlu0 %v5463_v17, %s4866_s6 }
  0xa4   :  { %v5471_v49 = vpop.permute.xlu1 %378 }
  0xa5   :  { %8538 = vst [vmem:[#allocation8_spill] sm:$0xff] %v5471_v49  ;;  %v5473_v20 = vpop.permute.xlu0 %285  ;;  %v878_v49 = vrot.slane %v5456_v15, 1 }
  0xa6   :  { %417 = vrot.lane.b32.xlu1 %v5224_v42, %s4875_s23 }
  0xa7   :  { %328 = vrot.lane.b32.xlu0 %v5172_v28, %s4876_s10  ;;  %v5500_v28 = vld [vmem:[%s8524_s0 + $0x10f] ss:$2 sm:$0xff] }
  0xa8   :  { %v5483_v57 = vpop.permute.xlu1 %99 }
  0xa9   :  { %v5485_v34 = vpop.permute.xlu0 %465 }
  0xaa   :  { %8539 = vst [vmem:[#allocation9_spill] sm:$0xff] %v5485_v34  ;;  %587 = vrot.lane.b32.xlu1 %v5232_v29, %s4871_s22 }
  0xab   :  { %498 = vrot.lane.b32.xlu0 %v5180_v32, %s4872_s13  ;;  %v5516_v32 = vld [vmem:[%s8524_s0 + $0x169] ss:$2 sm:$0xff] }
  0xac   :  { %v5502_v42 = vpop.permute.xlu1 %288 }
  0xad   :  { %v5507_v52 = vpop.permute.xlu0 %203 }
  0xae   :  { %765 = vrot.lane.b32.xlu1 %v5500_v28, %s4867_s11 }
  0xaf   :  { %672 = vrot.lane.b32.xlu0 %v5505_v44, %s4868_s28 }
  0xb0   :  { %v5518_v29 = vpop.permute.xlu1 %468 }
  0xb1   :  { %8540 = vst [vmem:[#allocation10_spill] sm:$0xff] %v5518_v29  ;;  %v5521_v3 = vpop.permute.xlu0 %381  ;;  %v621_v29 = vrot.slane %v3787_v35, 1 }
  0xb2   :  { %8541 = vst [vmem:[#allocation11_spill] sm:$0xff] %v5521_v3  ;;  %981 = vrot.lane.b32.xlu1 %v5516_v32, %s4863_s18  ;;  %v3807_v3 = vld [vmem:[%s8524_s0 + $0x155] ss:$2 sm:$0x1] }
  0xb3   :  { %874 = vrot.lane.b32.xlu0 %v873_v19, %s4865_s30  ;;  %v5569_v24 = vsel %vm8534_vm0, %v620_v40, %v621_v29  ;;  %v879_v54 = vrot.slane %v3807_v3, 1  ;;  %v3795_v40 = vld [vmem:[%s8524_s0 + $0x11f] ss:$2 sm:$0x1] }
  0xb4   :  { %v5526_v23 = vpop.permute.xlu1 %106 }
  0xb5   :  { %v5531_v33 = vpop.permute.xlu0 %561  ;;  %v880_v15 = vsel %vm8534_vm0, %v878_v49, %v879_v54  ;;  %v716_v54 = vrot.slane %v5500_v28, 1 }
  0xb6   :  { %8542 = vst [vmem:[#allocation12_spill] sm:$0xff] %v5531_v33  ;;  %424 = vrot.lane.b32.xlu1 %v5275_v53, %s4876_s10  ;;  %v5547_v33 = vld [vmem:[%s8524_s0 + $0x168] ss:$2 sm:$0xff]  ;;  %v3813_v53 = vld [vmem:[%s8524_s0 + $0x178] ss:$2 sm:$0x1] }
  0xb7   :  { %335 = vrot.lane.b32.xlu0 %v5204_v39, %s4877_s17  ;;  %v5562_v39 = vsel %vm8534_vm0, %v709_v50, %v710_v55  ;;  %v915_v6 = vrot.slane %v5547_v33, 1  ;;  %v916_v35 = vrot.slane %v3813_v53, 1  ;;  %v717_v55 = vrot.slane %v3795_v40, 1 }
  0xb8   :  { %v5542_v19 = vpop.permute.xlu1 %291 }
  0xb9   :  { %8543 = vst [vmem:[#allocation13_spill] sm:$0xff] %v5542_v19  ;;  %v5552_v34 = vpop.permute.xlu0 %210 }
  0xba   :  { %594 = vrot.lane.b32.xlu1 %v5298_v1, %s4872_s13 }
  0xbb   :  { %505 = vrot.lane.b32.xlu0 %v5211_v41, %s4873_s4  ;;  %v5578_v41 = vsel %vm8534_vm0, %v915_v6, %v916_v35  ;;  %v3815_v6 = vld [vmem:[%s8524_s0 + $0x179] ss:$2 sm:$0x1] }
  0xbc   :  { %v5566_v16 = vpop.permute.xlu1 %471  ;;  %v923_v40 = vrot.slane %v3815_v6, 1  ;;  %v5650_v6 = vld [vmem:[%s8524_s0 + $0x157] ss:$2 sm:$0xff] }
  0xbd   :  { %8544 = vst [vmem:[#allocation14_spill] sm:$0xff] %v5566_v16  ;;  %v5571_v19 = vpop.permute.xlu0 %384 }
  0xbe   :  { %768 = vrot.lane.b32.xlu1 %v5562_v39, %s4868_s28 }
  0xbf   :  { %675 = vrot.lane.b32.xlu0 %v5569_v24, %s4869_s15 }
  0xc0   :  { %v5580_v1 = vpop.permute.xlu1 %110 }
  0xc1   :  { %v5583_v50 = vpop.permute.xlu0 %564 }
  0xc2   :  { %8545 = vst [vmem:[#allocation15_spill] sm:$0xff] %v5583_v50  ;;  %984 = vrot.lane.b32.xlu1 %v5578_v41, %s4865_s30 }
  0xc3   :  { %881 = vrot.lane.b32.xlu0 %v880_v15, %s4864_s27  ;;  %v5620_v15 = vsel %vm8534_vm0, %v716_v54, %v717_v55 }
  0xc4   :  { %v5588_v29 = vpop.permute.xlu1 %295 }
  0xc5   :  { %v5590_v3 = vpop.permute.xlu0 %217 }
  0xc6   :  { %509 = vrot.lane.b32.xlu1 %v5237_v37, %s4874_s14  ;;  %v5614_v37 = vld [vmem:[%s8524_s0 + $0x156] ss:$2 sm:$0xff] }
  0xc7   :  { %431 = vrot.lane.b32.xlu0 %v5359_v38, %s4877_s17  ;;  %v922_v38 = vrot.slane %v5516_v32, 1 }
  0xc8   :  { %v5600_v49 = vpop.permute.xlu1 %474 }
  0xc9   :  { %8546 = vst [vmem:[#allocation16_spill] sm:$0xff] %v5600_v49  ;;  %v5602_v53 = vpop.permute.xlu0 %387 }
  0xca   :  { %679 = vrot.lane.b32.xlu1 %v5337_v21, %s4870_s19 }
  0xcb   :  { %601 = vrot.lane.b32.xlu0 %v5373_v45, %s4873_s4  ;;  %v5631_v45 = vsel %vm8534_vm0, %v922_v38, %v923_v40 }
  0xcc   :  { %v5617_v35 = vpop.permute.xlu1 %114  ;;  %8548 = vst [vmem:[#allocation18_spill] sm:$0xff] %v5631_v45 }
  0xcd   :  { %v5622_v50 = vpop.permute.xlu0 %567 }
  0xce   :  { %8547 = vst [vmem:[#allocation17_spill] sm:$0xff] %v5622_v50  ;;  %885 = vrot.lane.b32.xlu1 %v5614_v37, %s4866_s6  ;;  %v132_v50 = vsel %vm131_vm1, %v4918_v2, %v5295_v63  ;;  %v3809_v2 = vld [vmem:[%s8524_s0 + $0x166] ss:$2 sm:$0x1] }
  0xcf   :  { %771 = vrot.lane.b32.xlu0 %v5620_v15, %s4869_s15 }
  0xd0   :  { %v5628_v21 = vpop.permute.xlu1 %299 }
  0xd1   :  { %v5633_v49 = vpop.permute.xlu0 %221 }
  0xd2   :  { %513 = vrot.lane.b32.xlu1 %v5272_v51, %s4875_s23  ;;  %v5657_v51 = vld [vmem:[%s8524_s0 + $0x120] ss:$2 sm:$0xff] }
  0xd3   :  { %987 = vrot.lane.b32.xlu0 %v5631_v45, %s4864_s27 }
  0xd4   :  { %v5639_v54 = vpop.permute.xlu1 %477 }
  0xd5   :  { %8549 = vst [vmem:[#allocation19_spill] sm:$0xff] %v5639_v54  ;;  %v5641_v55 = vpop.permute.xlu0 %391  ;;  %v134_v54 = vsel %vm133_vm2, %v132_v50, %v5321_v13  ;;  %v5704_v50 = vld [vmem:[%s8524_s0 + $0x121] ss:$2 sm:$0xff] }
  0xd6   :  { %683 = vrot.lane.b32.xlu1 %v5291_v60, %s4871_s22  ;;  %v5668_v60 = vld [vmem:[%s8524_s0 + $0x18d] ss:$2 sm:$0xff]  ;;  %v136_v63 = vsel %vm135_vm3, %v134_v54, %v5310_v5  ;;  %v893_v5 = vrot.slane %v5614_v37, 1 }
  0xd7   :  { %605 = vrot.lane.b32.xlu0 %v5407_v61, %s4874_s14  ;;  %v138_v13 = vsel %vm137_vm4, %v136_v63, %v5332_v22 }
  0xd8   :  { %v5652_v38 = vpop.permute.xlu1 %657 }
  0xd9   :  { %8550 = vst [vmem:[#allocation20_spill] sm:$0xff] %v5652_v38  ;;  %v5659_v40 = vpop.permute.xlu0 %570  ;;  %v5675_v38 = vld [vmem:[%s8524_s0 + $0x17a] ss:$2 sm:$0xff] }
  0xda   :  { %8551 = vst [vmem:[#allocation21_spill] sm:$0xff] %v5659_v40  ;;  %889 = vrot.lane.b32.xlu1 %v5650_v6, %s4867_s11 }
  0xdb   :  { %775 = vrot.lane.b32.xlu0 %v5657_v51, %s4870_s19 }
  0xdc   :  { %v5670_v61 = vpop.permute.xlu1 %225 }
  0xdd   :  { %v122_v40 = vpop.permute.xlu0 %121 }
  0xde   :  { %1077 = vrot.lane.b32.xlu1 %v5668_v60, %s4863_s18 }
  0xdf   :  { %990 = vrot.lane.b32.xlu0 %v5675_v38, %s4866_s6 }
  0xe0   :  { %v5686_v16 = vpop.permute.xlu1 %395 }
  0xe1   :  { %8552 = vst [vmem:[#allocation22_spill] sm:$0xff] %v5686_v16  ;;  %v5688_v45 = vpop.permute.xlu0 %306  ;;  %v140_v16 = vsel %vm139_vm5, %v138_v13, %v5356_v36  ;;  %v3821_v36 = vld [vmem:[%s8524_s0 + $0x19c] ss:$2 sm:$0x1] }
  0xe2   :  { %609 = vrot.lane.b32.xlu1 %v5443_v14, %s4875_s23  ;;  %v894_v14 = vrot.slane %v3809_v2, 1  ;;  %v142_v22 = vsel %vm141_vm6, %v140_v16, %v5383_v48  ;;  %v5734_v16 = vld [vmem:[%s8524_s0 + $0x17b] ss:$2 sm:$0xff] }
  0xe3   :  { %520 = vrot.lane.b32.xlu0 %v5352_v31, %s4876_s10  ;;  %v5718_v31 = vld [vmem:[%s8524_s0 + $0x18c] ss:$2 sm:$0xff]  ;;  %v144_v37 = vsel %vm8533_vm7, %v142_v22, %v5415_v4 }
  0xe4   :  { %v5709_v54 = vpop.permute.xlu1 %573  ;;  %v146_v48 = vsel %vm8530_vm8, %v144_v37, %v5434_v12  ;;  %v895_v13 = vsel %vm8534_vm0, %v893_v5, %v894_v14  ;;  %v1011_v22 = vrot.slane %v5718_v31, 1  ;;  %v1012_v12 = vrot.slane %v3821_v36, 1  ;;  %v5756_v5 = vld [vmem:[%s8524_s0 + $0x1b1] ss:$2 sm:$0xff] }
  0xe5   :  { %8553 = vst [vmem:[#allocation23_spill] sm:$0xff] %v5709_v54  ;;  %v5713_v63 = vpop.permute.xlu0 %480  ;;  %v148_v4 = vsel %vm147_vm9, %v146_v48, %v5465_v18 }
  0xe6   :  { %779 = vrot.lane.b32.xlu1 %v5704_v50, %s4871_s22  ;;  %v150_v37 = vsel %vm149_vm10, %v148_v4, %v5483_v57  ;;  %v783_v4 = vrot.slane %v5657_v51, 1 }
  0xe7   :  { %690 = vrot.lane.b32.xlu0 %v5368_v59, %s4872_s13  ;;  %v152_v54 = vsel %vm8529_vm11, %v150_v37, %v5526_v23  ;;  %v5761_v23 = vsel %vm8534_vm0, %v1011_v22, %v1012_v12  ;;  %vm1650_vm11 = vcmask 523264   ;;  %v3811_v37 = vld [vmem:[%s8524_s0 + $0x167] ss:$2 sm:$0x1] }
  0xe8   :  { %v5738_v2 = vpop.permute.xlu1 %753  ;;  %v154_v18 = vsel %vm153_vm12, %v152_v54, %v5580_v1  ;;  %v3797_v1 = vld [vmem:[%s8524_s0 + $0x130] ss:$2 sm:$0x1] }
  0xe9   :  { %v5744_v59 = vpop.permute.xlu0 %660  ;;  %v156_v57 = vsel %vm155_vm13, %v154_v18, %v5617_v35  ;;  %v784_v35 = vrot.slane %v3797_v1, 1 }
  0xea   :  { %993 = vrot.lane.b32.xlu1 %v5734_v16, %s4867_s11  ;;  %v158_v54 = vsel %vm157_vm14, %v156_v57, %v122_v40  ;;  %v3817_v40 = vld [vmem:[%s8524_s0 + $0x18a] ss:$2 sm:$0x1]  ;;  %v937_v57 = vrot.slane %v5675_v38, 1 }
  0xeb   :  { %896 = vrot.lane.b32.xlu0 %v895_v13, %s4868_s28  ;;  %v242_v13 = vsel %vm131_vm1, %v4933_v9, %v5293_v62  ;;  %v900_v9 = vrot.slane %v5650_v6, 1  ;;  %v938_v1 = vrot.slane %v3817_v40, 1  ;;  %v901_v6 = vrot.slane %v3811_v37, 1 }
  0xec   :  { %v233_v14 = vpop.permute.xlu1 %232  ;;  %v243_v12 = vsel %vm133_vm2, %v242_v13, %v5342_v30  ;;  %v785_v30 = vsel %vm8534_vm0, %v783_v4, %v784_v35 }
  0xed   :  { %v129_v36 = vpop.permute.xlu0 %128  ;;  %v244_v18 = vsel %vm135_vm3, %v243_v12, %v5361_v43  ;;  %v5827_v35 = vsel %vm8534_vm0, %v937_v57, %v938_v1  ;;  %v1018_v12 = vrot.slane %v5668_v60, 1  ;;  %v902_v37 = vsel %vm8534_vm0, %v900_v9, %v901_v6 }
  0xee   :  { %1173 = vrot.lane.b32.xlu1 %v5756_v5, %s4863_s18  ;;  %v160_v48 = vsel %vm159_vm15, %v158_v54, %v129_v36  ;;  %v245_v62 = vsel %vm137_vm4, %v244_v18, %v5375_v46  ;;  %v3829_v46 = vld [vmem:[%s8524_s0 + $0x1c0] ss:$2 sm:$0x1] }
  0xef   :  { %1080 = vrot.lane.b32.xlu0 %v5761_v23, %s4865_s30  ;;  %4031 = vmatprep.mubr.msk.f32.mxu0 %vm1650_vm11, %v160_v48  ;;  %v246_v54 = vsel %vm139_vm5, %v245_v62, %v5381_v47  ;;  %v3823_v47 = vld [vmem:[%s8524_s0 + $0x19d] ss:$2 sm:$0x1]  ;;  %v1108_v13 = vrot.slane %v3829_v46, 1 }
  0xf0   :  { %v5777_v22 = vpop.permute.xlu1 %402  ;;  %v1019_v18 = vrot.slane %v3823_v47, 1  ;;  %v944_v47 = vrot.slane %v5734_v16, 1 }
  0xf1   :  { %v5784_v51 = vpop.permute.xlu0 %313 }
  0xf2   :  { %616 = vrot.lane.b32.xlu1 %v5505_v44, %s4876_s10  ;;  %v5807_v44 = vld [vmem:[%s8524_s0 + $0x1b0] ss:$2 sm:$0xff] }
  0xf3   :  { %527 = vrot.lane.b32.xlu0 %v5413_v0, %s4877_s17  ;;  %v247_v0 = vsel %vm141_vm6, %v246_v54, %v5410_v58  ;;  %v1107_v58 = vrot.slane %v5807_v44, 1 }
  0xf4   :  { %v5802_v43 = vpop.permute.xlu1 %576  ;;  %v248_v48 = vsel %vm8533_vm7, %v247_v0, %v5432_v8  ;;  %v3819_v0 = vld [vmem:[%s8524_s0 + $0x18b] ss:$2 sm:$0x1] }
  0xf5   :  { %v5814_v36 = vpop.permute.xlu0 %483  ;;  %v249_v4 = vsel %vm8530_vm8, %v248_v48, %v5458_v25  ;;  %vm8554_vm8 = vcmask 359424   ;;  %v5848_v57 = vsel %vm8534_vm0, %v1107_v58, %v1108_v13  ;;  %v3831_v13 = vld [vmem:[%s8524_s0 + $0x1c1] ss:$2 sm:$0x1] }
  0xf6   :  { %786 = vrot.lane.b32.xlu1 %v785_v30, %s4872_s13  ;;  %v250_v40 = vsel %vm147_vm9, %v249_v4, %v5507_v52  ;;  %v5855_v30 = vsel %vm8534_vm0, %v1018_v12, %v1019_v18  ;;  %v945_v4 = vrot.slane %v3819_v0, 1  ;;  %v338_v0 = vsel %vm131_vm1, %v4981_v27, %v5370_v10 }
  0xf7   :  { %697 = vrot.lane.b32.xlu0 %v5424_v26, %s4873_s4  ;;  %v251_v25 = vsel %vm149_vm10, %v250_v40, %v5552_v34 }
  0xf8   :  { %v5833_v8 = vpop.permute.xlu1 %756  ;;  %v252_v62 = vsel %vm8554_vm8, %v251_v25, %v5590_v3  ;;  %v5900_v12 = vsel %vm8534_vm0, %v944_v47, %v945_v4  ;;  %vm8558_vm8 = vcmask 261120  }
  0xf9   :  { %v5838_v26 = vpop.permute.xlu0 %663  ;;  %v253_v52 = vsel %vm153_vm12, %v252_v62, %v5633_v49  ;;  %v3799_v49 = vld [vmem:[%s8524_s0 + $0x131] ss:$2 sm:$0x1] }
  0xfa   :  { %996 = vrot.lane.b32.xlu1 %v5827_v35, %s4868_s28  ;;  %v254_v9 = vsel %vm155_vm13, %v253_v52, %v5670_v61  ;;  %v790_v61 = vrot.slane %v5704_v50, 1 }
  0xfb   :  { %903 = vrot.lane.b32.xlu0 %v902_v37, %s4869_s15  ;;  %v255_v3 = vsel %vm157_vm14, %v254_v9, %v233_v14  ;;  %v791_v14 = vrot.slane %v3799_v49, 1  ;;  %v1115_v37 = vrot.slane %v3831_v13, 1  ;;  %v5924_v9 = vld [vmem:[%s8524_s0 + $0x132] ss:$2 sm:$0xff] }
  0xfc   :  { %v5852_v34 = vpop.permute.xlu1 %317  ;;  %v3825_v13 = vld [vmem:[%s8524_s0 + $0x1ae] ss:$2 sm:$0x1] }
  0xfd   :  { %v240_v1 = vpop.permute.xlu0 %239  ;;  %v792_v50 = vsel %vm8534_vm0, %v790_v61, %v791_v14  ;;  %v5955_v61 = vld [vmem:[%s8524_s0 + $0x1c2] ss:$2 sm:$0xff] }
  0xfe   :  { %v256_v54 = vsel %vm159_vm15, %v255_v3, %v240_v1  ;;  %1176 = vrot.lane.b32.xlu1 %v5848_v57, %s4865_s30 }
  0xff   :  { %1083 = vrot.lane.b32.xlu0 %v5855_v30, %s4864_s27  ;;  %4032 = vmatmul.mubr.msk.f32.vlgmr.msra.gmra.mrb[0].mxu0 %vm1650_vm11, %v256_v54 }
 0x100   :  { %v5868_v6 = vpop.permute.xlu1 %487 }
 0x101   :  { %v5870_v46 = vpop.permute.xlu0 %409 }
 0x102   :  { %701 = vrot.lane.b32.xlu1 %v5463_v17, %s4874_s14  ;;  %v1114_v17 = vrot.slane %v5756_v5, 1 }
 0x103   :  { %623 = vrot.lane.b32.xlu0 %v5569_v24, %s4877_s17  ;;  %v5894_v24 = vld [vmem:[%s8524_s0 + $0x19e] ss:$2 sm:$0xff] }
 0x104   :  { %v5880_v48 = vpop.permute.xlu1 %666  ;;  %v5911_v25 = vsel %vm8534_vm0, %v1114_v17, %v1115_v37 }
 0x105   :  { %v5883_v58 = vpop.permute.xlu0 %579 }
 0x106   :  { %907 = vrot.lane.b32.xlu1 %v5547_v33, %s4870_s19 }
 0x107   :  { %793 = vrot.lane.b32.xlu0 %v792_v50, %s4873_s4  ;;  %v339_v50 = vsel %vm133_vm2, %v338_v0, %v5395_v56  ;;  %v1033_v56 = vrot.slane %v5894_v24, 1  ;;  %v1034_v0 = vrot.slane %v3825_v13, 1  ;;  %v6014_v13 = vld [vmem:[%s8524_s0 + $0x1c3] ss:$2 sm:$0xff] }
 0x108   :  { %v5897_v40 = vpop.permute.xlu1 %321  ;;  %v340_v17 = vsel %vm135_vm3, %v339_v50, %v5426_v7 }
 0x109   :  { %v5902_v18 = vpop.permute.xlu0 %759  ;;  %v341_v27 = vsel %vm137_vm4, %v340_v17, %v5447_v11  ;;  %v5998_v11 = vld [vmem:[%s8524_s0 + $0x1d4] ss:$2 sm:$0xff] }
 0x10a   :  { %1086 = vrot.lane.b32.xlu1 %v5894_v24, %s4866_s6  ;;  %v342_v10 = vsel %vm139_vm5, %v341_v27, %v5473_v20  ;;  %v8557_v20 = vld [vmem:[#allocation13_spill] sm:$0xff] }
 0x10b   :  { %999 = vrot.lane.b32.xlu0 %v5900_v12, %s4869_s15  ;;  %v343_v7 = vsel %vm141_vm6, %v342_v10, %v5502_v42 }
 0x10c   :  { %v5908_v33 = vpop.permute.xlu1 %491  ;;  %v344_v17 = vsel %vm8533_vm7, %v343_v7, %v8557_v20  ;;  %v6021_v7 = vsel %vm8534_vm0, %v1033_v56, %v1034_v0  ;;  %v805_v0 = vrot.slane %v5924_v9, 1 }
 0x10d   :  { %v5913_v62 = vpop.permute.xlu0 %413  ;;  %v345_v42 = vsel %vm8558_vm8, %v344_v17, %v5588_v29  ;;  %vm8561_vm8 = vcmask 359424  }
 0x10e   :  { %705 = vrot.lane.b32.xlu1 %v5500_v28, %s4875_s23  ;;  %v5935_v28 = vld [vmem:[%s8524_s0 + $0x19f] ss:$2 sm:$0xff]  ;;  %v346_v27 = vsel %vm147_vm9, %v345_v42, %v5628_v21 }
 0x10f   :  { %1179 = vrot.lane.b32.xlu0 %v5911_v25, %s4864_s27  ;;  %v347_v29 = vsel %vm149_vm10, %v346_v27, %v5688_v45  ;;  %v6043_v45 = vld [vmem:[%s8524_s0 + $0x1f9] ss:$2 sm:$0xff] }
 0x110   :  { %v5919_v52 = vpop.permute.xlu1 %669  ;;  %v348_v21 = vsel %vm8561_vm8, %v347_v29, %v5784_v51  ;;  %vm8568_vm8 = vcmask 261120  }
 0x111   :  { %v5926_v3 = vpop.permute.xlu0 %583  ;;  %v349_v56 = vsel %vm153_vm12, %v348_v21, %v5852_v34  ;;  %v3833_v21 = vld [vmem:[%s8524_s0 + $0x1d2] ss:$2 sm:$0x1] }
 0x112   :  { %911 = vrot.lane.b32.xlu1 %v5516_v32, %s4871_s22  ;;  %v5948_v32 = vld [vmem:[%s8524_s0 + $0x1d5] ss:$2 sm:$0xff]  ;;  %v350_v51 = vsel %vm155_vm13, %v349_v56, %v5897_v40  ;;  %v4852_v40 = vld [vmem:[%s8524_s0 + $0x6c] ss:$2 sm:$0xff] }
 0x113   :  { %797 = vrot.lane.b32.xlu0 %v5924_v9, %s4874_s14  ;;  %v8563_v56 = vld [vmem:[#allocation6_spill] sm:$0xff] }
 0x114   :  { %v5937_v1 = vpop.permute.xlu1 %866 }
 0x115   :  { %8555 = vst [vmem:[#allocation24_spill] sm:$0xff] %v5937_v1  ;;  %v5939_v49 = vpop.permute.xlu0 %762 }
 0x116   :  { %1089 = vrot.lane.b32.xlu1 %v5935_v28, %s4867_s11 }
 0x117   :  { %1003 = vrot.lane.b32.xlu0 %v5718_v31, %s4870_s19  ;;  %v5964_v31 = vld [vmem:[%s8524_s0 + $0x133] ss:$2 sm:$0xff] }
 0x118   :  { %v5950_v54 = vpop.permute.xlu1 %417 }
 0x119   :  { %v329_v14 = vpop.permute.xlu0 %328 }
 0x11a   :  { %1269 = vrot.lane.b32.xlu1 %v5948_v32, %s4863_s18  ;;  %v351_v34 = vsel %vm157_vm14, %v350_v51, %v329_v14 }
 0x11b   :  { %1182 = vrot.lane.b32.xlu0 %v5955_v61, %s4866_s6 }
 0x11c   :  { %v5969_v47 = vpop.permute.xlu1 %587 }
 0x11d   :  { %v5973_v4 = vpop.permute.xlu0 %498 }
 0x11e   :  { %801 = vrot.lane.b32.xlu1 %v5964_v31, %s4875_s23 }
 0x11f   :  { %712 = vrot.lane.b32.xlu0 %v5562_v39, %s4876_s10  ;;  %v3837_v39 = vld [vmem:[%s8524_s0 + $0x1e4] ss:$2 sm:$0x1] }
 0x120   :  { %v5989_v37 = vpop.permute.xlu1 %765  ;;  %v1204_v20 = vrot.slane %v3837_v39, 1 }
 0x121   :  { %8556 = vst [vmem:[#allocation25_spill] sm:$0xff] %v5989_v37  ;;  %v5993_v50 = vpop.permute.xlu0 %672 }
 0x122   :  { %1007 = vrot.lane.b32.xlu1 %v5668_v60, %s4871_s22  ;;  %v1203_v60 = vrot.slane %v5998_v11, 1 }
 0x123   :  { %918 = vrot.lane.b32.xlu0 %v5578_v41, %s4872_s13  ;;  %v3801_v41 = vld [vmem:[%s8524_s0 + $0x142] ss:$2 sm:$0x1] }
 0x124   :  { %v6018_v10 = vpop.permute.xlu1 %981  ;;  %v806_v39 = vrot.slane %v3801_v41, 1  ;;  %v6048_v27 = vsel %vm8534_vm0, %v1203_v60, %v1204_v20  ;;  %v8562_v60 = vld [vmem:[#allocation5_spill] sm:$0xff] }
 0x125   :  { %8559 = vst [vmem:[#allocation13_spill] sm:$0xff] %v6018_v10  ;;  %v6029_v17 = vpop.permute.xlu0 %874  ;;  %v434_v14 = vsel %vm131_vm1, %v4852_v40, %v8562_v60  ;;  %v1040_v60 = vrot.slane %v5935_v28, 1  ;;  %v1129_v10 = vrot.slane %v5955_v61, 1 }
 0x126   :  { %8560 = vst [vmem:[#allocation26_spill] sm:$0xff] %v6029_v17  ;;  %1185 = vrot.lane.b32.xlu1 %v6014_v13, %s4867_s11  ;;  %v807_v41 = vsel %vm8534_vm0, %v805_v0, %v806_v39  ;;  %v435_v51 = vsel %vm133_vm2, %v434_v14, %v8563_v56  ;;  %v3827_v0 = vld [vmem:[%s8524_s0 + $0x1af] ss:$2 sm:$0x1]  ;;  %v8564_v39 = vld [vmem:[#allocation7_spill] sm:$0xff]  ;;  %v1130_v14 = vrot.slane %v3833_v21, 1 }
 0x127   :  { %1092 = vrot.lane.b32.xlu0 %v6021_v7, %s4868_s28  ;;  %v8566_v56 = vld [vmem:[#allocation11_spill] sm:$0xff]  ;;  %v1041_v37 = vrot.slane %v3827_v0, 1  ;;  %v3839_v21 = vld [vmem:[%s8524_s0 + $0x1e5] ss:$2 sm:$0x1] }
 0x128   :  { %v425_v42 = vpop.permute.xlu1 %424 }
 0x129   :  { %v336_v29 = vpop.permute.xlu0 %335 }
 0x12a   :  { %v352_v9 = vsel %vm159_vm15, %v351_v34, %v336_v29  ;;  %1365 = vrot.lane.b32.xlu1 %v6043_v45, %s4863_s18  ;;  %v436_v29 = vsel %vm135_vm3, %v435_v51, %v8564_v39  ;;  %v3845_v51 = vld [vmem:[%s8524_s0 + $0x208] ss:$2 sm:$0x1] }
 0x12b   :  { %1272 = vrot.lane.b32.xlu0 %v6048_v27, %s4865_s30  ;;  %4034 = vmatprep.mubr.msk.f32.mxu0 %vm1650_vm11, %v352_v9  ;;  %v8565_v9 = vld [vmem:[#allocation8_spill] sm:$0xff] }
 0x12c   :  { %v6063_v20 = vpop.permute.xlu1 %594  ;;  %v437_v40 = vsel %vm137_vm4, %v436_v29, %v8565_v9  ;;  %v8569_v9 = vld [vmem:[#allocation18_spill] sm:$0xff] }
 0x12d   :  { %v6070_v34 = vpop.permute.xlu0 %505  ;;  %v438_v17 = vsel %vm139_vm5, %v437_v40, %v8566_v56  ;;  %v1300_v40 = vrot.slane %v3845_v51, 1  ;;  %v8570_v56 = vld [vmem:[#allocation22_spill] sm:$0xff] }
 0x12e   :  { %808 = vrot.lane.b32.xlu1 %v807_v41, %s4876_s10  ;;  %v6091_v41 = vld [vmem:[%s8524_s0 + $0x1f8] ss:$2 sm:$0xff]  ;;  %v439_v39 = vsel %vm141_vm6, %v438_v17, %v5571_v19  ;;  %v6112_v19 = vsel %vm8534_vm0, %v1129_v10, %v1130_v14  ;;  %v3803_v10 = vld [vmem:[%s8524_s0 + $0x143] ss:$2 sm:$0x1] }
 0x12f   :  { %719 = vrot.lane.b32.xlu0 %v5620_v15, %s4877_s17  ;;  %v440_v0 = vsel %vm8533_vm7, %v439_v39, %v5602_v53  ;;  %v1299_v17 = vrot.slane %v6091_v41, 1  ;;  %v1210_v53 = vrot.slane %v5948_v32, 1 }
 0x130   :  { %v6086_v1 = vpop.permute.xlu1 %768  ;;  %v441_v29 = vsel %vm8568_vm8, %v440_v0, %v5641_v55  ;;  %v1211_v55 = vrot.slane %v3839_v21, 1  ;;  %vm8573_vm8 = vcmask 359424   ;;  %v813_v21 = vrot.slane %v3803_v10, 1  ;;  %v3847_v10 = vld [vmem:[%s8524_s0 + $0x209] ss:$2 sm:$0x1] }
 0x131   :  { %8567 = vst [vmem:[#allocation5_spill] sm:$0xff] %v6086_v1  ;;  %v6098_v15 = vpop.permute.xlu0 %675  ;;  %v442_v1 = vsel %vm147_vm9, %v441_v29, %v8570_v56 }
 0x132   :  { %1014 = vrot.lane.b32.xlu1 %v5761_v23, %s4872_s13  ;;  %v6121_v23 = vsel %vm8534_vm0, %v1040_v60, %v1041_v37  ;;  %v443_v0 = vsel %vm149_vm10, %v442_v1, %v5777_v22  ;;  %v6139_v22 = vsel %vm8534_vm0, %v1299_v17, %v1300_v40  ;;  %v812_v60 = vrot.slane %v5964_v31, 1 }
 0x133   :  { %925 = vrot.lane.b32.xlu0 %v8569_v9, %s4873_s4  ;;  %v444_v14 = vsel %vm8573_vm8, %v443_v0, %v5870_v46  ;;  %v6147_v46 = vsel %vm8534_vm0, %v1210_v53, %v1211_v55  ;;  %v1136_v40 = vrot.slane %v6014_v13, 1  ;;  %vm8587_vm8 = vcmask 261120  }
 0x134   :  { %v6118_v39 = vpop.permute.xlu1 %984  ;;  %v445_v37 = vsel %vm153_vm12, %v444_v14, %v5913_v62  ;;  %v814_v31 = vsel %vm8534_vm0, %v812_v60, %v813_v21  ;;  %v1306_v14 = vrot.slane %v6043_v45, 1  ;;  %v1307_v60 = vrot.slane %v3847_v10, 1 }
 0x135   :  { %8571 = vst [vmem:[#allocation6_spill] sm:$0xff] %v6118_v39  ;;  %v6125_v9 = vpop.permute.xlu0 %881  ;;  %v446_v1 = vsel %vm155_vm13, %v445_v37, %v5950_v54  ;;  %v8531_v10 = vmov 0.0  }
 0x136   :  { %8572 = vst [vmem:[#allocation7_spill] sm:$0xff] %v6125_v9  ;;  %1188 = vrot.lane.b32.xlu1 %v6112_v19, %s4868_s28  ;;  %v447_v29 = vsel %vm157_vm14, %v446_v1, %v425_v42  ;;  %v3835_v42 = vld [vmem:[%s8524_s0 + $0x1d3] ss:$2 sm:$0x1]  ;;  %1862 = vst.msk [vmem:[#allocation2 + $0x10] sm:$0xff] %vm133_vm2, %v8531_v10  ;;  %v8584_v9 = vld [vmem:[#allocation16_spill] sm:$0xff] }
 0x137   :  { %1095 = vrot.lane.b32.xlu0 %v6121_v23, %s4869_s15  ;;  %v1137_v55 = vrot.slane %v3835_v42, 1  ;;  %1863 = vst.msk [vmem:[#allocation2 + $0x18] sm:$0xff] %vm133_vm2, %v8531_v10  ;;  %1860 = vst.msk [vmem:[#allocation2] sm:$0xff] %vm133_vm2, %v8531_v10 }
 0x138   :  { %v6144_v51 = vpop.permute.xlu1 %509  ;;  %1861 = vst.msk [vmem:[#allocation2 + $0x8] sm:$0xff] %vm133_vm2, %v8531_v10  ;;  %1864 = vst.msk [vmem:[#allocation2 + $0x20] sm:$0xff] %vm133_vm2, %v8531_v10 }
 0x139   :  { %v432_v62 = vpop.permute.xlu0 %431  ;;  %v6188_v1 = vsel %vm8534_vm0, %v1136_v40, %v1137_v55  ;;  %v6238_v40 = vld [vmem:[%s8524_s0 + $0x20a] ss:$2 sm:$0xff]  ;;  %1865 = vst.msk [vmem:[#allocation2 + $0x28] sm:$0xff] %vm133_vm2, %v8531_v10  ;;  %1866 = vst.msk [vmem:[#allocation2 + $0x30] sm:$0xff] %vm133_vm2, %v8531_v10 }
 0x13a   :  { %v448_v56 = vsel %vm159_vm15, %v447_v29, %v432_v62  ;;  %1368 = vrot.lane.b32.xlu1 %v6139_v22, %s4865_s30  ;;  %1867 = vst.msk [vmem:[#allocation2 + $0x38] sm:$0xff] %vm133_vm2, %v8531_v10  ;;  %1868 = vst.msk [vmem:[#allocation2 + $0x40] sm:$0xff] %vm133_vm2, %v8531_v10 }
 0x13b   :  { %1275 = vrot.lane.b32.xlu0 %v6147_v46, %s4864_s27  ;;  %4035 = vmatmul.mubr.msk.f32.gmra.mrb[2].mxu0 %vm1650_vm11, %v448_v56  ;;  %1869 = vst.msk [vmem:[#allocation2 + $0x48] sm:$0xff] %vm133_vm2, %v8531_v10  ;;  %1870 = vst.msk [vmem:[#allocation2 + $0x50] sm:$0xff] %vm133_vm2, %v8531_v10 }
 0x13c   :  { %v6156_v54 = vpop.permute.xlu1 %679  ;;  %1871 = vst.msk [vmem:[#allocation2 + $0x58] sm:$0xff] %vm133_vm2, %v8531_v10  ;;  %1872 = vst.msk [vmem:[#allocation2 + $0x60] sm:$0xff] %vm133_vm2, %v8531_v10 }
 0x13d   :  { %v6159_v17 = vpop.permute.xlu0 %601  ;;  %1873 = vst.msk [vmem:[#allocation2 + $0x68] sm:$0xff] %vm133_vm2, %v8531_v10  ;;  %1874 = vst.msk [vmem:[#allocation2 + $0x70] sm:$0xff] %vm133_vm2, %v8531_v10 }
 0x13e   :  { %929 = vrot.lane.b32.xlu1 %v5675_v38, %s4874_s14  ;;  %v6182_v38 = vld [vmem:[%s8524_s0 + $0x1e6] ss:$2 sm:$0xff]  ;;  %1875 = vst.msk [vmem:[#allocation2 + $0x78] sm:$0xff] %vm133_vm2, %v8531_v10  ;;  %1876 = vst.msk [vmem:[#allocation2 + $0x80] sm:$0xff] %vm133_vm2, %v8531_v10 }
 0x13f   :  { %815 = vrot.lane.b32.xlu0 %v814_v31, %s4877_s17  ;;  %v6218_v31 = vld [vmem:[%s8524_s0 + $0x1e7] ss:$2 sm:$0xff]  ;;  %1877 = vst.msk [vmem:[#allocation2 + $0x88] sm:$0xff] %vm133_vm2, %v8531_v10  ;;  %1878 = vst.msk [vmem:[#allocation2 + $0x90] sm:$0xff] %vm133_vm2, %v8531_v10 }
 0x140   :  { %v6168_v53 = vpop.permute.xlu1 %885  ;;  %1879 = vst.msk [vmem:[#allocation2 + $0x98] sm:$0xff] %vm133_vm2, %v8531_v10  ;;  %1880 = vst.msk [vmem:[#allocation2 + $0xa0] sm:$0xff] %vm133_vm2, %v8531_v10 }
 0x141   :  { %8574 = vst [vmem:[#allocation8_spill] sm:$0xff] %v6168_v53  ;;  %v6170_v0 = vpop.permute.xlu0 %771  ;;  %1881 = vst.msk [vmem:[#allocation2 + $0xa8] sm:$0xff] %vm133_vm2, %v8531_v10 }
 0x142   :  { %1099 = vrot.lane.b32.xlu1 %v5807_v44, %s4870_s19  ;;  %1882 = vst.msk [vmem:[#allocation2 + $0xb0] sm:$0xff] %vm133_vm2, %v8531_v10  ;;  %1883 = vst.msk [vmem:[#allocation2 + $0xb8] sm:$0xff] %vm133_vm2, %v8531_v10 }
 0x143   :  { %1021 = vrot.lane.b32.xlu0 %v5855_v30, %s4873_s4  ;;  %v6199_v30 = vsel %vm8534_vm0, %v1306_v14, %v1307_v60  ;;  %1884 = vst.msk [vmem:[#allocation2 + $0xc0] sm:$0xff] %vm133_vm2, %v8531_v10  ;;  %v8580_v14 = vld [vmem:[#allocation9_spill] sm:$0xff] }
 0x144   :  { %v6185_v37 = vpop.permute.xlu1 %513  ;;  %2726 = vst.msk [vmem:[#allocation3] sm:$0xff] %vm137_vm4, %v8531_v10  ;;  %2727 = vst.msk [vmem:[#allocation3 + $0x8] sm:$0xff] %vm137_vm4, %v8531_v10 }
 0x145   :  { %v6190_v21 = vpop.permute.xlu0 %987  ;;  %2728 = vst.msk [vmem:[#allocation3 + $0x10] sm:$0xff] %vm137_vm4, %v8531_v10  ;;  %2729 = vst.msk [vmem:[#allocation3 + $0x18] sm:$0xff] %vm137_vm4, %v8531_v10 }
 0x146   :  { %8575 = vst [vmem:[#allocation11_spill] sm:$0xff] %v6190_v21  ;;  %1278 = vrot.lane.b32.xlu1 %v6182_v38, %s4866_s6  ;;  %2730 = vst.msk [vmem:[#allocation3 + $0x20] sm:$0xff] %vm137_vm4, %v8531_v10 }
 0x147   :  { %1191 = vrot.lane.b32.xlu0 %v6188_v1, %s4869_s15  ;;  %2731 = vst.msk [vmem:[#allocation3 + $0x28] sm:$0xff] %vm137_vm4, %v8531_v10  ;;  %2732 = vst.msk [vmem:[#allocation3 + $0x30] sm:$0xff] %vm137_vm4, %v8531_v10 }
 0x148   :  { %v6196_v44 = vpop.permute.xlu1 %683  ;;  %2733 = vst.msk [vmem:[#allocation3 + $0x38] sm:$0xff] %vm137_vm4, %v8531_v10  ;;  %2734 = vst.msk [vmem:[#allocation3 + $0x40] sm:$0xff] %vm137_vm4, %v8531_v10 }
 0x149   :  { %v6201_v29 = vpop.permute.xlu0 %605  ;;  %3293 = vst.msk [vmem:[#allocation4] sm:$0xff] %vm137_vm4, %v8531_v10  ;;  %3294 = vst.msk [vmem:[#allocation4 + $0x8] sm:$0xff] %vm137_vm4, %v8531_v10 }
 0x14a   :  { %933 = vrot.lane.b32.xlu1 %v5734_v16, %s4875_s23  ;;  %3295 = vst.msk [vmem:[#allocation4 + $0x10] sm:$0xff] %vm137_vm4, %v8531_v10  ;;  %3296 = vst.msk [vmem:[#allocation4 + $0x18] sm:$0xff] %vm137_vm4, %v8531_v10 }
 0x14b   :  { %1371 = vrot.lane.b32.xlu0 %v6199_v30, %s4864_s27  ;;  %3297 = vst.msk [vmem:[#allocation4 + $0x20] sm:$0xff] %vm137_vm4, %v8531_v10  ;;  %3298 = vst.msk [vmem:[#allocation4 + $0x28] sm:$0xff] %vm137_vm4, %v8531_v10  ;;  %v3841_v10 = vld [vmem:[%s8524_s0 + $0x1f6] ss:$2 sm:$0x1] }
 0x14c   :  { %v6207_v62 = vpop.permute.xlu1 %889 }
 0x14d   :  { %8576 = vst [vmem:[#allocation18_spill] sm:$0xff] %v6207_v62  ;;  %v6209_v56 = vpop.permute.xlu0 %775  ;;  %v8583_v62 = vld [vmem:[#allocation14_spill] sm:$0xff] }
 0x14e   :  { %8577 = vst [vmem:[#allocation22_spill] sm:$0xff] %v6209_v56  ;;  %1103 = vrot.lane.b32.xlu1 %v5756_v5, %s4871_s22  ;;  %v6231_v5 = vld [vmem:[%s8524_s0 + $0x21d] ss:$2 sm:$0xff]  ;;  %v1226_v56 = vrot.slane %v3841_v10, 1 }
 0x14f   :  { %1025 = vrot.lane.b32.xlu0 %v5894_v24, %s4874_s14 }
 0x150   :  { %v6220_v42 = vpop.permute.xlu1 %1077 }
 0x151   :  { %8578 = vst [vmem:[#allocation27_spill] sm:$0xff] %v6220_v42  ;;  %v6222_v16 = vpop.permute.xlu0 %990 }
 0x152   :  { %8579 = vst [vmem:[#allocation28_spill] sm:$0xff] %v6222_v16  ;;  %1281 = vrot.lane.b32.xlu1 %v6218_v31, %s4867_s11  ;;  %v8582_v16 = vld [vmem:[#allocation10_spill] sm:$0xff] }
 0x153   :  { %1195 = vrot.lane.b32.xlu0 %v5998_v11, %s4870_s19  ;;  %v4853_v11 = vld [vmem:[%s8524_s0 + $0x90] ss:$2 sm:$0xff] }
 0x154   :  { %v6233_v24 = vpop.permute.xlu1 %609  ;;  %v530_v60 = vsel %vm131_vm1, %v4853_v11, %v8580_v14  ;;  %v8585_v14 = vld [vmem:[#allocation19_spill] sm:$0xff] }
 0x155   :  { %v6240_v55 = vpop.permute.xlu0 %520  ;;  %v531_v21 = vsel %vm133_vm2, %v530_v60, %v8582_v16  ;;  %v1225_v60 = vrot.slane %v6182_v38, 1 }
 0x156   :  { %1461 = vrot.lane.b32.xlu1 %v6231_v5, %s4863_s18  ;;  %v532_v53 = vsel %vm135_vm3, %v531_v21, %v8583_v62 }
 0x157   :  { %1374 = vrot.lane.b32.xlu0 %v6238_v40, %s4866_s6  ;;  %v533_v11 = vsel %vm137_vm4, %v532_v53, %v8584_v9  ;;  %v6376_v53 = vld [vmem:[%s8524_s0 + $0x20b] ss:$2 sm:$0xff] }
 0x158   :  { %v6331_v42 = vpop.permute.xlu1 %779  ;;  %v534_v16 = vsel %vm139_vm5, %v533_v11, %v8585_v14 }
 0x159   :  { %8581 = vst [vmem:[#allocation9_spill] sm:$0xff] %v6331_v42  ;;  %v6335_v39 = vpop.permute.xlu0 %690  ;;  %v535_v21 = vsel %vm141_vm6, %v534_v16, %v5713_v63 }
 0x15a   :  { %1029 = vrot.lane.b32.xlu1 %v5935_v28, %s4875_s23  ;;  %v6360_v28 = vld [vmem:[%s8524_s0 + $0x21c] ss:$2 sm:$0xff]  ;;  %v536_v9 = vsel %vm8533_vm7, %v535_v21, %v5814_v36  ;;  %v6383_v36 = vsel %vm8534_vm0, %v1225_v60, %v1226_v56  ;;  %v6401_v56 = vld [vmem:[%s8524_s0 + $0x241] ss:$2 sm:$0xff] }
 0x15b   :  { %940 = vrot.lane.b32.xlu0 %v5827_v35, %s4876_s10  ;;  %8586 = vst [vmem:[#allocation10_spill] sm:$0xff] %v6360_v28  ;;  %v3853_v35 = vld [vmem:[%s8524_s0 + $0x22c] ss:$2 sm:$0x1]  ;;  %v537_v63 = vsel %vm8587_vm8, %v536_v9, %v5868_v6  ;;  %vm8589_vm8 = vcmask 359424   ;;  %v8590_v9 = vld [vmem:[#allocation12_spill] sm:$0xff] }
 0x15c   :  { %v6351_v42 = vpop.permute.xlu1 %993  ;;  %v538_v10 = vsel %vm147_vm9, %v537_v63, %v5908_v33  ;;  %v1396_v14 = vrot.slane %v3853_v35, 1 }
 0x15d   :  { %v6355_v62 = vpop.permute.xlu0 %896  ;;  %v539_v6 = vsel %vm149_vm10, %v538_v10, %v5973_v4 }
 0x15e   :  { %1199 = vrot.lane.b32.xlu1 %v5948_v32, %s4871_s22  ;;  %v1395_v32 = vrot.slane %v6360_v28, 1  ;;  %v540_v16 = vsel %vm8589_vm8, %v539_v6, %v6070_v34  ;;  %vm8595_vm8 = vcmask 261120  }
 0x15f   :  { %1110 = vrot.lane.b32.xlu0 %v5848_v57, %s4872_s13  ;;  %v541_v33 = vsel %vm153_vm12, %v540_v16, %v6144_v51  ;;  %v3843_v16 = vld [vmem:[%s8524_s0 + $0x1f7] ss:$2 sm:$0x1] }
 0x160   :  { %v6380_v11 = vpop.permute.xlu1 %1173  ;;  %v542_v4 = vsel %vm155_vm13, %v541_v33, %v6185_v37  ;;  %v6406_v34 = vsel %vm8534_vm0, %v1395_v32, %v1396_v14  ;;  %v4854_v37 = vld [vmem:[%s8524_s0 + $0xb4] ss:$2 sm:$0xff]  ;;  %v8592_v33 = vld [vmem:[#allocation17_spill] sm:$0xff] }
 0x161   :  { %8588 = vst [vmem:[#allocation14_spill] sm:$0xff] %v6380_v11  ;;  %v6388_v57 = vpop.permute.xlu0 %1080  ;;  %v543_v21 = vsel %vm157_vm14, %v542_v4, %v6240_v55  ;;  %v626_v63 = vsel %vm131_vm1, %v4854_v37, %v8590_v9  ;;  %v3849_v55 = vld [vmem:[%s8524_s0 + $0x21a] ss:$2 sm:$0x1]  ;;  %v1321_v37 = vrot.slane %v6238_v40, 1 }
 0x162   :  { %1377 = vrot.lane.b32.xlu1 %v6376_v53, %s4867_s11  ;;  %v8591_v32 = vld [vmem:[#allocation15_spill] sm:$0xff]  ;;  %v1322_v9 = vrot.slane %v3849_v55, 1  ;;  %v3855_v55 = vld [vmem:[%s8524_s0 + $0x22d] ss:$2 sm:$0x1] }
 0x163   :  { %1284 = vrot.lane.b32.xlu0 %v6383_v36, %s4868_s28  ;;  %v627_v14 = vsel %vm133_vm2, %v626_v63, %v8591_v32  ;;  %v8594_v63 = vld [vmem:[#allocation23_spill] sm:$0xff] }
 0x164   :  { %v617_v60 = vpop.permute.xlu1 %616  ;;  %v628_v4 = vsel %vm135_vm3, %v627_v14, %v8592_v33  ;;  %v1233_v14 = vrot.slane %v3843_v16, 1  ;;  %v3861_v33 = vld [vmem:[%s8524_s0 + $0x250] ss:$2 sm:$0x1] }
 0x165   :  { %v528_v35 = vpop.permute.xlu0 %527 }
 0x166   :  { %v544_v51 = vsel %vm159_vm15, %v543_v21, %v528_v35  ;;  %1557 = vrot.lane.b32.xlu1 %v6401_v56, %s4863_s18  ;;  %v8593_v21 = vld [vmem:[#allocation21_spill] sm:$0xff] }
 0x167   :  { %1464 = vrot.lane.b32.xlu0 %v6406_v34, %s4865_s30  ;;  %4037 = vmatprep.mubr.msk.f32.mxu0 %vm1650_vm11, %v544_v51  ;;  %v629_v35 = vsel %vm137_vm4, %v628_v4, %v8593_v21  ;;  %v1232_v51 = vrot.slane %v6218_v31, 1 }
 0x168   :  { %v6421_v10 = vpop.permute.xlu1 %786  ;;  %v630_v32 = vsel %vm139_vm5, %v629_v35, %v8594_v63  ;;  %v1492_v63 = vrot.slane %v3861_v33, 1 }
 0x169   :  { %v6428_v6 = vpop.permute.xlu0 %697  ;;  %v631_v4 = vsel %vm141_vm6, %v630_v32, %v5802_v43  ;;  %v6471_v43 = vsel %vm8534_vm0, %v1321_v37, %v1322_v9 }
 0x16a   :  { %1036 = vrot.lane.b32.xlu1 %v6021_v7, %s4876_s10  ;;  %v6450_v7 = vld [vmem:[%s8524_s0 + $0x240] ss:$2 sm:$0xff]  ;;  %v632_v16 = vsel %vm8533_vm7, %v631_v4, %v5883_v58  ;;  %v1402_v58 = vrot.slane %v6231_v5, 1 }
 0x16b   :  { %947 = vrot.lane.b32.xlu0 %v5900_v12, %s4877_s17  ;;  %v633_v21 = vsel %vm8595_vm8, %v632_v16, %v5926_v3  ;;  %v1491_v35 = vrot.slane %v6450_v7, 1  ;;  %v1403_v3 = vrot.slane %v3855_v55, 1  ;;  %vm8597_vm8 = vcmask 359424  }
 0x16c   :  { %v6445_v11 = vpop.permute.xlu1 %996  ;;  %v634_v32 = vsel %vm147_vm9, %v633_v21, %v5969_v47  ;;  %v3851_v21 = vld [vmem:[%s8524_s0 + $0x21b] ss:$2 sm:$0x1] }
 0x16d   :  { %v6457_v12 = vpop.permute.xlu0 %903 }
 0x16e   :  { %1206 = vrot.lane.b32.xlu1 %v6048_v27, %s4872_s13  ;;  %v6480_v27 = vsel %vm8534_vm0, %v1232_v51, %v1233_v14  ;;  %v6495_v51 = vsel %vm8534_vm0, %v1491_v35, %v1492_v63  ;;  %v6502_v14 = vsel %vm8534_vm0, %v1402_v58, %v1403_v3  ;;  %v1329_v63 = vrot.slane %v3851_v21, 1  ;;  %v3863_v58 = vld [vmem:[%s8524_s0 + $0x251] ss:$2 sm:$0x1] }
 0x16f   :  { %1117 = vrot.lane.b32.xlu0 %v5911_v25, %s4873_s4  ;;  %v635_v25 = vsel %vm149_vm10, %v634_v32, %v6063_v20 }
 0x170   :  { %v6477_v4 = vpop.permute.xlu1 %1176  ;;  %v636_v37 = vsel %vm8597_vm8, %v635_v25, %v6159_v17  ;;  %vm8602_vm8 = vcmask 261120  }
 0x171   :  { %8596 = vst [vmem:[#allocation16_spill] sm:$0xff] %v6477_v4  ;;  %v6484_v16 = vpop.permute.xlu0 %1083  ;;  %v637_v47 = vsel %vm153_vm12, %v636_v37, %v6201_v29  ;;  %v1499_v37 = vrot.slane %v3863_v58, 1 }
 0x172   :  { %1380 = vrot.lane.b32.xlu1 %v6471_v43, %s4868_s28  ;;  %v638_v20 = vsel %vm155_vm13, %v637_v47, %v6233_v24 }
 0x173   :  { %1287 = vrot.lane.b32.xlu0 %v6480_v27, %s4869_s15  ;;  %v639_v17 = vsel %vm157_vm14, %v638_v20, %v617_v60  ;;  %v1328_v60 = vrot.slane %v6376_v53, 1 }
 0x174   :  { %v6499_v9 = vpop.permute.xlu1 %701 }
 0x175   :  { %v624_v33 = vpop.permute.xlu0 %623  ;;  %v6541_v25 = vsel %vm8534_vm0, %v1328_v60, %v1329_v63 }
 0x176   :  { %v640_v55 = vsel %vm159_vm15, %v639_v17, %v624_v33  ;;  %1560 = vrot.lane.b32.xlu1 %v6495_v51, %s4865_s30 }
 0x177   :  { %1467 = vrot.lane.b32.xlu0 %v6502_v14, %s4864_s27  ;;  %4038 = vmatmul.mubr.msk.f32.gmra.mrb[4].mxu0 %vm1650_vm11, %v640_v55  ;;  %v6571_v55 = vld [vmem:[%s8524_s0 + $0x22f] ss:$2 sm:$0xff] }
 0x178   :  { %v6511_v29 = vpop.permute.xlu1 %907 }
 0x179   :  { %v6513_v24 = vpop.permute.xlu0 %793 }
 0x17a   :  { %1121 = vrot.lane.b32.xlu1 %v5955_v61, %s4874_s14  ;;  %v6537_v61 = vld [vmem:[%s8524_s0 + $0x22e] ss:$2 sm:$0xff] }
 0x17b   :  { %1043 = vrot.lane.b32.xlu0 %v6121_v23, %s4877_s17  ;;  %v1498_v23 = vrot.slane %v6401_v56, 1  ;;  %v1417_v58 = vrot.slane %v6537_v61, 1 }
 0x17c   :  { %v6523_v35 = vpop.permute.xlu1 %1086 }
 0x17d   :  { %v6525_v32 = vpop.permute.xlu0 %999 }
 0x17e   :  { %1291 = vrot.lane.b32.xlu1 %v6091_v41, %s4870_s19 }
 0x17f   :  { %1213 = vrot.lane.b32.xlu0 %v6147_v46, %s4873_s4  ;;  %v6552_v46 = vsel %vm8534_vm0, %v1498_v23, %v1499_v37  ;;  %v4855_v37 = vld [vmem:[%s8524_s0 + $0xd8] ss:$2 sm:$0xff] }
 0x180   :  { %v706_v3 = vpop.permute.xlu1 %705 }
 0x181   :  { %v6543_v47 = vpop.permute.xlu0 %1179 }
 0x182   :  { %8598 = vst [vmem:[#allocation19_spill] sm:$0xff] %v6543_v47  ;;  %1470 = vrot.lane.b32.xlu1 %v6537_v61, %s4866_s6 }
 0x183   :  { %1383 = vrot.lane.b32.xlu0 %v6541_v25, %s4869_s15 }
 0x184   :  { %v6549_v41 = vpop.permute.xlu1 %911 }
 0x185   :  { %v6554_v20 = vpop.permute.xlu0 %797 }
 0x186   :  { %1125 = vrot.lane.b32.xlu1 %v6014_v13, %s4875_s23 }
 0x187   :  { %1563 = vrot.lane.b32.xlu0 %v6552_v46, %s4864_s27  ;;  %s4885_s27 = smov 112  }
 0x188   :  { %v6560_v17 = vpop.permute.xlu1 %1089 }
 0x189   :  { %v6562_v33 = vpop.permute.xlu0 %1003 }
 0x18a   :  { %1295 = vrot.lane.b32.xlu1 %v6043_v45, %s4871_s22  ;;  %v6586_v45 = vld [vmem:[%s8524_s0 + $0x252] ss:$2 sm:$0xff] }
 0x18b   :  { %1217 = vrot.lane.b32.xlu0 %v6182_v38, %s4874_s14  ;;  %v3857_v38 = vld [vmem:[%s8524_s0 + $0x23e] ss:$2 sm:$0x1] }
 0x18c   :  { %v6573_v21 = vpop.permute.xlu1 %1269  ;;  %v1418_v23 = vrot.slane %v3857_v38, 1 }
 0x18d   :  { %8599 = vst [vmem:[#allocation12_spill] sm:$0xff] %v6573_v21  ;;  %v6575_v13 = vpop.permute.xlu0 %1182 }
 0x18e   :  { %8600 = vst [vmem:[#allocation15_spill] sm:$0xff] %v6575_v13  ;;  %1473 = vrot.lane.b32.xlu1 %v6571_v55, %s4867_s11 }
 0x18f   :  { %1387 = vrot.lane.b32.xlu0 %v6360_v28, %s4870_s19  ;;  %v8601_v28 = vld [vmem:[#allocation20_spill] sm:$0xff] }
 0x190   :  { %v6581_v60 = vpop.permute.xlu1 %801  ;;  %v722_v21 = vsel %vm131_vm1, %v4855_v37, %v8601_v28  ;;  %v6616_v28 = vsel %vm8534_vm0, %v1417_v58, %v1418_v23  ;;  %v1424_v23 = vrot.slane %v6571_v55, 1 }
 0x191   :  { %v713_v63 = vpop.permute.xlu0 %712  ;;  %v723_v47 = vsel %vm133_vm2, %v722_v21, %v5744_v59 }
 0x192   :  { %1132 = vrot.lane.b32.xlu1 %v6112_v19, %s4876_s10  ;;  %v724_v19 = vsel %vm135_vm3, %v723_v47, %v5838_v26 }
 0x193   :  { %1566 = vrot.lane.b32.xlu0 %v6586_v45, %s4866_s6  ;;  %v725_v38 = vsel %vm137_vm4, %v724_v19, %v5880_v48 }
 0x194   :  { %v6601_v13 = vpop.permute.xlu1 %1007  ;;  %v726_v59 = vsel %vm139_vm5, %v725_v38, %v5919_v52 }
 0x195   :  { %v6605_v4 = vpop.permute.xlu0 %918  ;;  %v727_v26 = vsel %vm141_vm6, %v726_v59, %v5993_v50  ;;  %v6641_v50 = vld [vmem:[%s8524_s0 + $0x253] ss:$2 sm:$0xff] }
 0x196   :  { %1302 = vrot.lane.b32.xlu1 %v6139_v22, %s4872_s13  ;;  %v728_v22 = vsel %vm8533_vm7, %v727_v26, %v6098_v15  ;;  %v3859_v15 = vld [vmem:[%s8524_s0 + $0x23f] ss:$2 sm:$0x1]  ;;  %v1513_v26 = vrot.slane %v6586_v45, 1 }
 0x197   :  { %1221 = vrot.lane.b32.xlu0 %v6218_v31, %s4875_s23  ;;  %v729_v48 = vsel %vm8602_vm8, %v728_v22, %v6156_v54  ;;  %vm8603_vm8 = vcmask 359424   ;;  %v1425_v37 = vrot.slane %v3859_v15, 1 }
 0x198   :  { %v6620_v21 = vpop.permute.xlu1 %1185  ;;  %v730_v52 = vsel %vm147_vm9, %v729_v48, %v6196_v44 }
 0x199   :  { %v6624_v47 = vpop.permute.xlu0 %1092  ;;  %v731_v54 = vsel %vm149_vm10, %v730_v52, %v6335_v39 }
 0x19a   :  { %1476 = vrot.lane.b32.xlu1 %v6616_v28, %s4868_s28 }
 0x19b   :  { %1391 = vrot.lane.b32.xlu0 %v6231_v5, %s4871_s22  ;;  %v732_v5 = vsel %vm8603_vm8, %v731_v54, %v6428_v6  ;;  %v3865_v6 = vld [vmem:[%s8524_s0 + $0x262] ss:$2 sm:$0x1]  ;;  %vm8607_vm8 = vcmask 261120  }
 0x19c   :  { %v6636_v31 = vpop.permute.xlu1 %1365  ;;  %v733_v44 = vsel %vm153_vm12, %v732_v5, %v6499_v9  ;;  %v6671_v9 = vsel %vm8534_vm0, %v1424_v23, %v1425_v37 }
 0x19d   :  { %v6648_v58 = vpop.permute.xlu0 %1272  ;;  %v734_v19 = vsel %vm155_vm13, %v733_v44, %v706_v3  ;;  %v4856_v3 = vld [vmem:[%s8524_s0 + $0xfc] ss:$2 sm:$0xff] }
 0x19e   :  { %1139 = vrot.lane.b32.xlu1 %v6188_v1, %s4877_s17  ;;  %v735_v38 = vsel %vm157_vm14, %v734_v19, %v713_v63  ;;  %v818_v63 = vsel %vm131_vm1, %v4856_v3, %v5738_v2  ;;  %v8604_v2 = vld [vmem:[#allocation25_spill] sm:$0xff] }
 0x19f   :  { %1569 = vrot.lane.b32.xlu0 %v6641_v50, %s4867_s11  ;;  %v8605_v44 = vld [vmem:[#allocation5_spill] sm:$0xff] }
 0x1a0   :  { %v809_v39 = vpop.permute.xlu1 %808 }
 0x1a1   :  { %v720_v59 = vpop.permute.xlu0 %719 }
 0x1a2   :  { %v736_v1 = vsel %vm159_vm15, %v735_v38, %v720_v59  ;;  %1309 = vrot.lane.b32.xlu1 %v6199_v30, %s4873_s4  ;;  %v1514_v30 = vrot.slane %v3865_v6, 1  ;;  %v1520_v38 = vrot.slane %v6641_v50, 1  ;;  %v8608_v6 = vld [vmem:[#allocation9_spill] sm:$0xff] }
 0x1a3   :  { %1228 = vrot.lane.b32.xlu0 %v6383_v36, %s4876_s10  ;;  %4040 = vmatprep.mubr.msk.f32.mxu0 %vm1650_vm11, %v736_v1  ;;  %v819_v36 = vsel %vm133_vm2, %v818_v63, %v5833_v8 }
 0x1a4   :  { %v6679_v22 = vpop.permute.xlu1 %1014  ;;  %v820_v52 = vsel %vm135_vm3, %v819_v36, %v5902_v18  ;;  %v6698_v8 = vsel %vm8534_vm0, %v1513_v26, %v1514_v30  ;;  %v3867_v18 = vld [vmem:[%s8524_s0 + $0x263] ss:$2 sm:$0x1] }
 0x1a5   :  { %v6683_v48 = vpop.permute.xlu0 %925  ;;  %v821_v15 = vsel %vm137_vm4, %v820_v52, %v5939_v49  ;;  %v1521_v59 = vrot.slane %v3867_v18, 1 }
 0x1a6   :  { %1479 = vrot.lane.b32.xlu1 %v6671_v9, %s4869_s15  ;;  %v822_v54 = vsel %vm139_vm5, %v821_v15, %v8604_v2 }
 0x1a7   :  { %1398 = vrot.lane.b32.xlu0 %v6406_v34, %s4872_s13  ;;  %v823_v23 = vsel %vm141_vm6, %v822_v54, %v8605_v44  ;;  %v8606_v34 = vld [vmem:[#allocation22_spill] sm:$0xff]  ;;  %v6733_v30 = vsel %vm8534_vm0, %v1520_v38, %v1521_v59 }
 0x1a8   :  { %v6695_v5 = vpop.permute.xlu1 %1188  ;;  %v824_v49 = vsel %vm8533_vm7, %v823_v23, %v6170_v0  ;;  %vm8609_vm7 = vcmask 359424  }
 0x1a9   :  { %v6705_v37 = vpop.permute.xlu0 %1095  ;;  %v825_v19 = vsel %vm8607_vm8, %v824_v49, %v8606_v34 }
 0x1aa   :  { %1235 = vrot.lane.b32.xlu1 %v6480_v27, %s4877_s17  ;;  %v826_v1 = vsel %vm147_vm9, %v825_v19, %v8608_v6  ;;  %v4857_v6 = vld [vmem:[%s8524_s0 + $0x144] ss:$2 sm:$0xff] }
 0x1ab   :  { %1572 = vrot.lane.b32.xlu0 %v6698_v8, %s4868_s28  ;;  %v827_v0 = vsel %vm149_vm10, %v826_v1, %v6421_v10  ;;  %v8610_v1 = vld [vmem:[#allocation24_spill] sm:$0xff] }
 0x1ac   :  { %v6718_v3 = vpop.permute.xlu1 %1368  ;;  %v828_v27 = vsel %vm8609_vm7, %v827_v0, %v6513_v24  ;;  %v950_v0 = vsel %vm131_vm1, %v4857_v6, %v8610_v1  ;;  %vm8615_vm7 = vcmask 228352  }
 0x1ad   :  { %v6722_v63 = vpop.permute.xlu0 %1275  ;;  %v829_v26 = vsel %vm153_vm12, %v828_v27, %v6554_v20  ;;  %v3868_v20 = vld [vmem:[%s8524_s0 + $0x264] ss:$2 sm:$0xff] }
 0x1ae   :  { %1405 = vrot.lane.b32.xlu1 %v6502_v14, %s4873_s4  ;;  %v830_v10 = vsel %vm155_vm13, %v829_v26, %v6581_v60  ;;  %v1587_v44 = vrot.slane %v3868_v20, 1 }
 0x1af   :  { %1313 = vrot.lane.b32.xlu0 %v6238_v40, %s4874_s14  ;;  %v831_v52 = vsel %vm157_vm14, %v830_v10, %v809_v39 }
 0x1b0   :  { %v6737_v36 = vpop.permute.xlu1 %929 }
 0x1b1   :  { %v816_v24 = vpop.permute.xlu0 %815 }
 0x1b2   :  { %v832_v15 = vsel %vm159_vm15, %v831_v52, %v816_v24  ;;  %1575 = vrot.lane.b32.xlu1 %v6733_v30, %s4869_s15  ;;  %v8612_v52 = vld [vmem:[#allocation7_spill] sm:$0xff] }
 0x1b3   :  { %1483 = vrot.lane.b32.xlu0 %v6450_v7, %s4870_s19  ;;  %4041 = vmatmul.mubr.msk.f32.gmra.mrb[6].mxu0 %vm1650_vm11, %v832_v15 }
 0x1b4   :  { %v6746_v40 = vpop.permute.xlu1 %1099 }
 0x1b5   :  { %v6748_v14 = vpop.permute.xlu0 %1021 }
 0x1b6   :  { %1409 = vrot.lane.b32.xlu1 %v6537_v61, %s4874_s14 }
 0x1b7   :  { %1317 = vrot.lane.b32.xlu0 %v6376_v53, %s4875_s23  ;;  %v3870_v53 = vld [vmem:[%s8524_s0 + $0x265] ss:$2 sm:$0xff] }
 0x1b8   :  { %v6757_v60 = vpop.permute.xlu1 %1278  ;;  %v1594_v38 = vrot.slane %v3870_v53, 1 }
 0x1b9   :  { %v6759_v39 = vpop.permute.xlu0 %1191 }
 0x1ba   :  { %1579 = vrot.lane.b32.xlu1 %v3868_v20, %s4870_s19  ;;  %v8613_v20 = vld [vmem:[#allocation8_spill] sm:$0xff] }
 0x1bb   :  { %1487 = vrot.lane.b32.xlu0 %v6401_v56, %s4871_s22  ;;  %v3869_v56 = vld [vmem:[%s8524_s0 + $0x274] ss:$2 sm:$0x1] }
 0x1bc   :  { %v6764_v2 = vpop.permute.xlu1 %933 }
 0x1bd   :  { %v6766_v54 = vpop.permute.xlu0 %1371 }
 0x1be   :  { %1413 = vrot.lane.b32.xlu1 %v6571_v55, %s4875_s23  ;;  %v1588_v55 = vrot.slane %v3869_v56, 1 }
 0x1bf   :  { %1324 = vrot.lane.b32.xlu0 %v6471_v43, %s4876_s10 }
 0x1c0   :  { %v6775_v61 = vpop.permute.xlu1 %1103  ;;  %v1589_v49 = vsel %vm8534_vm0, %v1587_v44, %v1588_v55  ;;  %v8614_v55 = vld [vmem:[#allocation18_spill] sm:$0xff] }
 0x1c1   :  { %v6780_v18 = vpop.permute.xlu0 %1025 }
 0x1c2   :  { %1583 = vrot.lane.b32.xlu1 %v3870_v53, %s4871_s22 }
 0x1c3   :  { %1494 = vrot.lane.b32.xlu0 %v6495_v51, %s4872_s13  ;;  %v3871_v51 = vld [vmem:[%s8524_s0 + $0x275] ss:$2 sm:$0x1] }
 0x1c4   :  { %v6785_v43 = vpop.permute.xlu1 %1281  ;;  %v1595_v59 = vrot.slane %v3871_v51, 1 }
 0x1c5   :  { %v6787_v23 = vpop.permute.xlu0 %1195 }
 0x1c6   :  { %1420 = vrot.lane.b32.xlu1 %v6616_v28, %s4876_s10  ;;  %v1596_v26 = vsel %vm8534_vm0, %v1594_v38, %v1595_v59  ;;  %v3872_v59 = vld [vmem:[%s8524_s0 + $0x276] ss:$2 sm:$0xff] }
 0x1c7   :  { %1331 = vrot.lane.b32.xlu0 %v6541_v25, %s4877_s17 }
 0x1c8   :  { %v6794_v34 = vpop.permute.xlu1 %1461 }
 0x1c9   :  { %v6796_v19 = vpop.permute.xlu0 %1374 }
 0x1ca   :  { %1590 = vrot.lane.b32.xlu1 %v1589_v49, %s4872_s13 }
 0x1cb   :  { %1501 = vrot.lane.b32.xlu0 %v6552_v46, %s4873_s4  ;;  %v6820_v46 = vld [vmem:[%s8526_s2] ss:$0 sm:$0xff] }
 0x1cc   :  { %v6804_v28 = vpop.permute.xlu1 %1029 }
 0x1cd   :  { %v941_v25 = vpop.permute.xlu0 %940 }
 0x1ce   :  { %1505 = vrot.lane.b32.xlu1 %v6586_v45, %s4874_s14  ;;  %v8611_v45 = vld [vmem:[#allocation26_spill] sm:$0xff] }
 0x1cf   :  { %1427 = vrot.lane.b32.xlu0 %v6671_v9, %s4877_s17  ;;  %v951_v10 = vsel %vm133_vm2, %v950_v0, %v8611_v45 }
 0x1d0   :  { %v6815_v27 = vpop.permute.xlu1 %1199  ;;  %v952_v24 = vsel %vm135_vm3, %v951_v10, %v8612_v52  ;;  %v3874_v52 = vld [vmem:[%s8524_s0 + $0x277] ss:$2 sm:$0xff] }
 0x1d1   :  { %v6825_v9 = vpop.permute.xlu0 %1110  ;;  %v953_v53 = vsel %vm137_vm4, %v952_v24, %v8613_v20  ;;  %v1616_v24 = vrot.slane %v3874_v52, 1  ;;  %v1609_v20 = vrot.slane %v3872_v59, 1 }
 0x1d2   :  { %v4033_v15 = vpop.f32.mrb[0].mxu0  ;;  %1509 = vrot.lane.b32.xlu1 %v6641_v50, %s4875_s23  ;;  %v954_v49 = vsel %vm139_vm5, %v953_v53, %v8614_v55  ;;  %v3875_v50 = vld [vmem:[%s8524_s0 + $0x287] ss:$2 sm:$0x1] }
 0x1d3   :  { %v1771_v56 = vadd.f32 %v4033_v15, %v6820_v46  ;;  %v1765_v44 = vpop.f32.mrb[1].mxu0  ;;  %1597 = vrot.lane.b32.xlu0 %v1596_v26, %s4873_s4  ;;  %v955_v6 = vsel %vm141_vm6, %v954_v49, %v6355_v62  ;;  %v3873_v26 = vld [vmem:[%s8524_s0 + $0x286] ss:$2 sm:$0x1]  ;;  %v1617_v15 = vrot.slane %v3875_v50, 1 }
 0x1d4   :  { %v1766_v51 = vadd.f32 %v6820_v46, %v1765_v44  ;;  %v6838_v38 = vpop.permute.xlu1 %1377  ;;  %v956_v45 = vsel %vm8615_vm7, %v955_v6, %v6457_v12  ;;  %v1610_v53 = vrot.slane %v3873_v26, 1  ;;  %vm8616_vm7 = vcmask 359424  }
 0x1d5   :  { %v1845_v1 = vmax.f32 %v1771_v56, 0.0  ;;  %v6848_v0 = vpop.permute.xlu0 %1284  ;;  %v957_v62 = vsel %vm8607_vm8, %v956_v45, %v6511_v29  ;;  %v1618_v55 = vsel %vm8534_vm0, %v1616_v24, %v1617_v15  ;;  %v8619_v45 = vld [vmem:[#allocation11_spill] sm:$0xff]  ;;  %vm8621_vm8 = vcmask 228352  }
 0x1d6   :  { %v1844_v10 = vmax.f32 %v1766_v51, 0.0  ;;  %1516 = vrot.lane.b32.xlu1 %v6698_v8, %s4876_s10  ;;  %v958_v12 = vsel %vm147_vm9, %v957_v62, %v6549_v41 }
 0x1d7   :  { %1886 = vst.msk [vmem:[#allocation2 + $0x15] sm:$0xff] %vm133_vm2, %v1845_v1  ;;  %1601 = vrot.lane.b32.xlu0 %v3872_v59, %s4874_s14  ;;  %v959_v56 = vsel %vm149_vm10, %v958_v12, %v6605_v4  ;;  %v1611_v4 = vsel %vm8534_vm0, %v1609_v20, %v1610_v53  ;;  %v8618_v1 = vld [vmem:[#allocation6_spill] sm:$0xff]  ;;  %vm8623_vm0 = vcmask 359424  }
 0x1d8   :  { %1885 = vst.msk [vmem:[#allocation2 + $0xb] sm:$0xff] %vm133_vm2, %v1844_v10  ;;  %v6867_v8 = vpop.permute.xlu1 %1557  ;;  %v960_v29 = vsel %vm8616_vm7, %v959_v56, %v6683_v48  ;;  %vm8622_vm7 = vcmask 261120  }
 0x1d9   :  { %v6871_v44 = vpop.permute.xlu0 %1464  ;;  %v961_v41 = vsel %vm153_vm12, %v960_v29, %v6737_v36  ;;  %v8617_v36 = vld [vmem:[#allocation13_spill] sm:$0xff] }
 0x1da   :  { %1523 = vrot.lane.b32.xlu1 %v6733_v30, %s4877_s17  ;;  %v962_v49 = vsel %vm155_vm13, %v961_v41, %v6764_v2  ;;  %v4858_v30 = vld [vmem:[%s8524_s0 + $0x168] ss:$2 sm:$0xff] }
 0x1db   :  { %1605 = vrot.lane.b32.xlu0 %v3874_v52, %s4875_s23  ;;  %v963_v59 = vsel %vm157_vm14, %v962_v49, %v941_v25  ;;  %v1046_v2 = vsel %vm131_vm1, %v4858_v30, %v8617_v36  ;;  %v8620_v52 = vld [vmem:[#allocation28_spill] sm:$0xff] }
 0x1dc   :  { %v1037_v51 = vpop.permute.xlu1 %1036  ;;  %v1047_v25 = vsel %vm133_vm2, %v1046_v2, %v8618_v1  ;;  %v4859_v1 = vld [vmem:[%s8524_s0 + $0x18c] ss:$2 sm:$0xff] }
 0x1dd   :  { %v948_v50 = vpop.permute.xlu0 %947  ;;  %v1048_v10 = vsel %vm135_vm3, %v1047_v25, %v8619_v45  ;;  %v8624_v25 = vld [vmem:[#allocation27_spill] sm:$0xff] }
 0x1de   :  { %v964_v48 = vsel %vm159_vm15, %v963_v59, %v948_v50  ;;  %1619 = vrot.lane.b32.xlu1 %v1618_v55, %s4877_s17  ;;  %v1049_v62 = vsel %vm137_vm4, %v1048_v10, %v8620_v52  ;;  %v1142_v45 = vsel %vm131_vm1, %v4859_v1, %v8624_v25  ;;  %v8629_v1 = vld [vmem:[#allocation16_spill] sm:$0xff] }
 0x1df   :  { %1612 = vrot.lane.b32.xlu0 %v1611_v4, %s4876_s10  ;;  %4043 = vmatprep.mubr.msk.f32.mxu0 %vm1650_vm11, %v964_v48  ;;  %v1050_v24 = vsel %vm139_vm5, %v1049_v62, %v6351_v42  ;;  %v1143_v10 = vsel %vm133_vm2, %v1142_v45, %v6388_v57 }
 0x1e0   :  { %v6894_v6 = vpop.permute.xlu1 %1206  ;;  %v1051_v12 = vsel %vm141_vm6, %v1050_v24, %v6445_v11  ;;  %v1144_v62 = vsel %vm135_vm3, %v1143_v10, %v6484_v16  ;;  %v8630_v10 = vld [vmem:[#allocation19_spill] sm:$0xff] }
 0x1e1   :  { %v1118_v26 = vpop.permute.xlu0 %1117  ;;  %v1052_v53 = vsel %vm8621_vm8, %v1051_v12, %v6525_v32  ;;  %v1145_v12 = vsel %vm137_vm4, %v1144_v62, %v6523_v35 }
 0x1e2   :  { %v1053_v56 = vsel %vm8622_vm7, %v1052_v53, %v6562_v33  ;;  %v1146_v53 = vsel %vm139_vm5, %v1145_v12, %v6560_v17 }
 0x1e3   :  { %v1054_v29 = vsel %vm147_vm9, %v1053_v56, %v6601_v13  ;;  %v1147_v56 = vsel %vm141_vm6, %v1146_v53, %v6624_v47 }
 0x1e4   :  { %v6904_v15 = vpop.permute.xlu1 %1380  ;;  %v1055_v42 = vsel %vm149_vm10, %v1054_v29, %v6679_v22 }
 0x1e5   :  { %v6908_v20 = vpop.permute.xlu0 %1287  ;;  %v1056_v11 = vsel %vm8623_vm0, %v1055_v42, %v6748_v14  ;;  %vm8625_vm0 = vmmov %vm8621_vm8 }
 0x1e6   :  { %v1057_v49 = vsel %vm153_vm12, %v1056_v11, %v6780_v18  ;;  %v1148_v57 = vsel %vm8625_vm0, %v1147_v56, %v6705_v37  ;;  %vm8626_vm8 = vmmov %vm8622_vm7  ;;  %vm8627_vm7 = vcmask 359424   ;;  %v4860_v37 = vld [vmem:[%s8524_s0 + $0x1b0] ss:$2 sm:$0xff] }
 0x1e7   :  { %v1058_v32 = vsel %vm155_vm13, %v1057_v49, %v6804_v28  ;;  %v1149_v16 = vsel %vm8626_vm8, %v1148_v57, %v6746_v40  ;;  %v8628_v40 = vld [vmem:[#allocation14_spill] sm:$0xff] }
 0x1e8   :  { %v6916_v41 = vpop.permute.xlu1 %1560  ;;  %v1059_v4 = vsel %vm157_vm14, %v1058_v32, %v1037_v51  ;;  %v1150_v11 = vsel %vm147_vm9, %v1149_v16, %v6775_v61 }
 0x1e9   :  { %v6920_v55 = vpop.permute.xlu0 %1467  ;;  %v1151_v35 = vsel %vm149_vm10, %v1150_v11, %v6825_v9 }
 0x1ea   :  { %v1152_v17 = vsel %vm8627_vm7, %v1151_v35, %v1118_v26 }
 0x1ec   :  { %v1122_v33 = vpop.permute.xlu1 %1121 }
 0x1ed   :  { %v1044_v13 = vpop.permute.xlu0 %1043  ;;  %v1153_v32 = vsel %vm153_vm12, %v1152_v17, %v1122_v33 }
 0x1ee   :  { %v1060_v59 = vsel %vm159_vm15, %v1059_v4, %v1044_v13  ;;  %v1238_v13 = vsel %vm131_vm1, %v4860_v37, %v8628_v40 }
 0x1ef   :  { %4044 = vmatmul.mubr.msk.f32.gmra.mrb[8].mxu0 %vm1650_vm11, %v1060_v59  ;;  %v1239_v26 = vsel %vm133_vm2, %v1238_v13, %v8629_v1 }
 0x1f0   :  { %v6931_v22 = vpop.permute.xlu1 %1291  ;;  %v1240_v62 = vsel %vm135_vm3, %v1239_v26, %v8630_v10 }
 0x1f1   :  { %v1214_v50 = vpop.permute.xlu0 %1213 }
 0x1f4   :  { %v6933_v48 = vpop.permute.xlu1 %1470 }
 0x1f5   :  { %v6935_v14 = vpop.permute.xlu0 %1383 }
 0x1f8   :  { %v1126_v30 = vpop.permute.xlu1 %1125 }
 0x1f9   :  { %v6937_v18 = vpop.permute.xlu0 %1563  ;;  %v1154_v61 = vsel %vm155_vm13, %v1153_v32, %v1126_v30  ;;  %v8631_v30 = vld [vmem:[#allocation15_spill] sm:$0xff] }
 0x1fa   :  { %v1241_v57 = vsel %vm137_vm4, %v1240_v62, %v8631_v30 }
 0x1fc   :  { %v6939_v36 = vpop.permute.xlu1 %1295 }
 0x1fd   :  { %v1218_v28 = vpop.permute.xlu0 %1217 }
 0x200   :  { %v6941_v2 = vpop.permute.xlu1 %1473 }
 0x201   :  { %v6943_v51 = vpop.permute.xlu0 %1387 }
 0x204   :  { %v1133_v52 = vpop.permute.xlu1 %1132 }
 0x205   :  { %v6954_v24 = vpop.permute.xlu0 %1566  ;;  %v1155_v25 = vsel %vm157_vm14, %v1154_v61, %v1133_v52  ;;  %v1242_v52 = vsel %vm139_vm5, %v1241_v57, %v6620_v21 }
 0x206   :  { %v1243_v11 = vsel %vm141_vm6, %v1242_v52, %v6695_v5 }
 0x207   :  { %v1244_v17 = vsel %vm8625_vm0, %v1243_v11, %v6759_v39 }
 0x208   :  { %v6962_v29 = vpop.permute.xlu1 %1302 }
 0x209   :  { %v1222_v42 = vpop.permute.xlu0 %1221 }
 0x20c   :  { %v6972_v49 = vpop.permute.xlu1 %1476 }
 0x20d   :  { %v6975_v47 = vpop.permute.xlu0 %1391 }
 0x20e   :  { %v4036_v4 = vpop.f32.mrb[2].mxu0 }
 0x20f   :  { %v1781_v9 = vadd.f32 %v4036_v4, %v6820_v46  ;;  %v1775_v59 = vpop.f32.mrb[3].mxu0  ;;  %v1245_v4 = vsel %vm8626_vm8, %v1244_v17, %v6787_v23 }
 0x210   :  { %v1776_v33 = vadd.f32 %v6820_v46, %v1775_v59  ;;  %v1140_v45 = vpop.permute.xlu1 %1139  ;;  %v1246_v37 = vsel %vm147_vm9, %v1245_v4, %v6815_v27 }
 0x211   :  { %v1847_v12 = vmax.f32 %v1781_v9, 0.0  ;;  %v1156_v53 = vsel %vm159_vm15, %v1155_v25, %v1140_v45  ;;  %v6992_v56 = vpop.permute.xlu0 %1569  ;;  %v1247_v21 = vsel %vm149_vm10, %v1246_v37, %v6894_v6 }
 0x212   :  { %v1846_v16 = vmax.f32 %v1776_v33, 0.0  ;;  %4046 = vmatprep.mubr.msk.f32.mxu0 %vm1650_vm11, %v1156_v53  ;;  %v1248_v5 = vsel %vm8627_vm7, %v1247_v21, %v1214_v50 }
 0x213   :  { %1888 = vst.msk [vmem:[#allocation2 + $0x29] sm:$0xff] %vm133_vm2, %v1847_v12  ;;  %v1249_v61 = vsel %vm153_vm12, %v1248_v5, %v1218_v28  ;;  %v4861_v28 = vld [vmem:[%s8524_s0 + $0x1d4] ss:$2 sm:$0xff] }
 0x214   :  { %1887 = vst.msk [vmem:[#allocation2 + $0x1f] sm:$0xff] %vm133_vm2, %v1846_v16  ;;  %v1310_v35 = vpop.permute.xlu1 %1309  ;;  %v1250_v9 = vsel %vm155_vm13, %v1249_v61, %v1222_v42  ;;  %v8632_v42 = vld [vmem:[#allocation12_spill] sm:$0xff] }
 0x215   :  { %v1229_v32 = vpop.permute.xlu0 %1228  ;;  %v1334_v45 = vsel %vm131_vm1, %v4861_v28, %v8632_v42 }
 0x216   :  { %v1251_v39 = vsel %vm157_vm14, %v1250_v9, %v1229_v32  ;;  %v1335_v62 = vsel %vm133_vm2, %v1334_v45, %v6648_v58 }
 0x217   :  { %v1336_v53 = vsel %vm135_vm3, %v1335_v62, %v6722_v63  ;;  %v4862_v63 = vld [vmem:[%s8524_s0 + $0x1f8] ss:$2 sm:$0xff]  ;;  %s4879_s0 = smov 64  }
 0x218   :  { %v7011_v40 = vpop.permute.xlu1 %1479  ;;  %v1337_v30 = vsel %vm137_vm4, %v1336_v53, %v6757_v60  ;;  %v1430_v60 = vsel %vm131_vm1, %v4862_v63, %v6636_v31 }
 0x219   :  { %v1399_v13 = vpop.permute.xlu0 %1398  ;;  %v1338_v57 = vsel %vm139_vm5, %v1337_v30, %v6785_v43 }
 0x21a   :  { %v1339_v52 = vsel %vm141_vm6, %v1338_v57, %v6848_v0  ;;  %v1431_v0 = vsel %vm133_vm2, %v1430_v60, %v6718_v3 }
 0x21b   :  { %v1340_v17 = vsel %vm8625_vm0, %v1339_v52, %v6908_v20 }
 0x21c   :  { %v1236_v59 = vpop.permute.xlu1 %1235  ;;  %v1341_v58 = vsel %vm8626_vm8, %v1340_v17, %v6931_v22  ;;  %v1432_v22 = vsel %vm135_vm3, %v1431_v0, %v6766_v54 }
 0x21d   :  { %v1252_v23 = vsel %vm159_vm15, %v1251_v39, %v1236_v59  ;;  %v7018_v1 = vpop.permute.xlu0 %1572  ;;  %v1342_v43 = vsel %vm147_vm9, %v1341_v58, %v6939_v36  ;;  %v1433_v21 = vsel %vm137_vm4, %v1432_v22, %v6796_v19 }
 0x21e   :  { %4047 = vmatmul.mubr.msk.f32.gmra.mrb[10].mxu0 %vm1650_vm11, %v1252_v23  ;;  %v1343_v20 = vsel %vm149_vm10, %v1342_v43, %v6962_v29  ;;  %v1434_v36 = vsel %vm139_vm5, %v1433_v21, %v6838_v38 }
 0x21f   :  { %v1344_v37 = vsel %vm8627_vm7, %v1343_v20, %v1310_v35  ;;  %v1435_v29 = vsel %vm141_vm6, %v1434_v36, %v6904_v15 }
 0x220   :  { %v1406_v27 = vpop.permute.xlu1 %1405  ;;  %v1436_v54 = vsel %vm8625_vm0, %v1435_v29, %v6935_v14  ;;  %v1911_v29 = vld [vmem:[#allocation2 + $0x15] ss:$2 sm:$0x1f] }
 0x221   :  { %v1314_v6 = vpop.permute.xlu0 %1313  ;;  %v1437_v19 = vsel %vm8626_vm8, %v1436_v54, %v6943_v51 }
 0x222   :  { %v1345_v31 = vsel %vm153_vm12, %v1344_v37, %v1314_v6  ;;  %v1438_v38 = vsel %vm147_vm9, %v1437_v19, %v6975_v47  ;;  %v8633_v6 = vld [vmem:[#allocation10_spill] sm:$0xff] }
 0x223   :  { %v1439_v59 = vsel %vm149_vm10, %v1438_v38, %v1399_v13  ;;  %v1526_v14 = vsel %vm131_vm1, %v8633_v6, %v6794_v34  ;;  %v7147_v6 = vld [vmem:[#allocation2 + $0x28] ss:$2 sm:$0x1f] }
 0x224   :  { %v7021_v26 = vpop.permute.xlu1 %1575  ;;  %v1440_v23 = vsel %vm8627_vm7, %v1439_v59, %v1406_v27  ;;  %v1527_v51 = vsel %vm133_vm2, %v1526_v14, %v6871_v44 }
 0x225   :  { %v1484_v25 = vpop.permute.xlu0 %1483  ;;  %v1528_v47 = vsel %vm135_vm3, %v1527_v51, %v6920_v55  ;;  %v1622_v55 = vsel %vm131_vm1, %v6450_v7, %v6867_v8  ;;  %vm8634_vm1 = vmmov %vm8627_vm7 }
 0x226   :  { %v1529_v27 = vsel %vm137_vm4, %v1528_v47, %v6933_v48  ;;  %v1623_v48 = vsel %vm133_vm2, %v1622_v55, %v6916_v41  ;;  %vm8636_vm7 = vmmov %vm8626_vm8 }
 0x227   :  { %v1530_v34 = vsel %vm139_vm5, %v1529_v27, %v6941_v2  ;;  %v1624_v2 = vsel %vm135_vm3, %v1623_v48, %v6937_v18  ;;  %vm8635_vm3 = vmmov %vm8625_vm0  ;;  %v1915_v48 = vld [vmem:[#allocation2 + $0x1f] ss:$2 sm:$0x1f] }
 0x228   :  { %v1410_v50 = vpop.permute.xlu1 %1409  ;;  %v1531_v44 = vsel %vm141_vm6, %v1530_v34, %v6972_v49  ;;  %v1625_v49 = vsel %vm137_vm4, %v1624_v2, %v6954_v24 }
 0x229   :  { %v1318_v33 = vpop.permute.xlu0 %1317  ;;  %v1532_v53 = vsel %vm8625_vm0, %v1531_v44, %v7011_v40  ;;  %v1626_v8 = vsel %vm139_vm5, %v1625_v49, %v6992_v56  ;;  %vm8637_vm5 = vmmov %vm8634_vm1 }
 0x22a   :  { %v1346_v5 = vsel %vm155_vm13, %v1345_v31, %v1318_v33  ;;  %v1441_v33 = vsel %vm153_vm12, %v1440_v23, %v1410_v50  ;;  %v1533_v57 = vsel %vm8626_vm8, %v1532_v53, %v1484_v25  ;;  %v1627_v41 = vsel %vm141_vm6, %v1626_v8, %v7018_v1  ;;  %v7145_v23 = vld [vmem:[#allocation2 + $0x29] ss:$2 sm:$0x1f]  ;;  %vm8641_vm0 = vmmov %vm8636_vm7 }
 0x22b   :  { %vm1985_vm8 = vcmask 588800  }
 0x22c   :  { %v7028_v10 = vpop.permute.xlu1 %1579 }
 0x22d   :  { %v1488_v12 = vpop.permute.xlu0 %1487 }
 0x230   :  { %v1414_v16 = vpop.permute.xlu1 %1413 }
 0x231   :  { %v1325_v11 = vpop.permute.xlu0 %1324  ;;  %v1442_v28 = vsel %vm155_vm13, %v1441_v33, %v1414_v16  ;;  %v1534_v16 = vsel %vm147_vm9, %v1533_v57, %v1488_v12  ;;  %v1628_v12 = vsel %vm8635_vm3, %v1627_v41, %v7021_v26  ;;  %vm1989_vm3 = vcmask 719872  }
 0x232   :  { %v1347_v61 = vsel %vm157_vm14, %v1346_v5, %v1325_v11  ;;  %v1629_v56 = vsel %vm8636_vm7, %v1628_v12, %v7028_v10  ;;  %v7133_v5 = vld [vmem:[#allocation2 + $0x14] ss:$2 sm:$0x1f] }
 0x234   :  { %v1584_v32 = vpop.permute.xlu1 %1583 }
 0x235   :  { %v1495_v4 = vpop.permute.xlu0 %1494  ;;  %v1630_v1 = vsel %vm147_vm9, %v1629_v56, %v1584_v32  ;;  %vm8638_vm9 = vmmov %vm8636_vm7 }
 0x236   :  { %v1535_v52 = vsel %vm149_vm10, %v1534_v16, %v1495_v4 }
 0x238   :  { %v1421_v3 = vpop.permute.xlu1 %1420 }
 0x239   :  { %v1332_v9 = vpop.permute.xlu0 %1331  ;;  %v1443_v13 = vsel %vm157_vm14, %v1442_v28, %v1421_v3 }
 0x23a   :  { %v1348_v35 = vsel %vm159_vm15, %v1347_v61, %v1332_v9  ;;  %v1953_v61 = vrot.slane %v7133_v5, 1 }
 0x23b   :  { %4049 = vmatprep.mubr.msk.f32.mxu0 %vm1650_vm11, %v1348_v35  ;;  %v1903_v35 = vld [vmem:[#allocation2 + $0x1] ss:$2 sm:$0x1f] }
 0x23c   :  { %v1591_v39 = vpop.permute.xlu1 %1590  ;;  %v4239_v51 = vpack.i.bf16 %v7145_v23, %v1903_v35 }
 0x23d   :  { %v1502_v15 = vpop.permute.xlu0 %1501  ;;  %v1631_v26 = vsel %vm149_vm10, %v1630_v1, %v1591_v39  ;;  %v1957_v39 = vrot.slane %v1911_v29, 1 }
 0x23e   :  { %v1536_v40 = vsel %vm8634_vm1, %v1535_v52, %v1502_v15  ;;  %v7143_v15 = vld [vmem:[#allocation2] ss:$2 sm:$0x1f]  ;;  %vm1987_vm1 = vcmask 654336  }
 0x23f   :  { %v1921_v28 = vrot.slane %v7143_v15, 1 }
 0x240   :  { %v1506_v42 = vpop.permute.xlu1 %1505 }
 0x241   :  { %v1428_v45 = vpop.permute.xlu0 %1427  ;;  %v1537_v25 = vsel %vm153_vm12, %v1536_v40, %v1506_v42  ;;  %v2036_v42 = vrot.slane %v7147_v6, 1 }
 0x242   :  { %v1444_v62 = vsel %vm159_vm15, %v1443_v13, %v1428_v45  ;;  %v1925_v13 = vrot.slane %v1903_v35, 1  ;;  %v2040_v45 = vrot.slane %v7145_v23, 1 }
 0x243   :  { %4050 = vmatmul.mubr.msk.f32.gmra.mrb[12].mxu0 %vm1650_vm11, %v1444_v62  ;;  %v4249_v47 = vpack.i.bf16 %v2036_v42, %v1921_v28 }
 0x244   :  { %v1510_v50 = vpop.permute.xlu1 %1509  ;;  %v4259_v27 = vpack.i.bf16 %v2040_v45, %v1925_v13 }
 0x245   :  { %v1598_v30 = vpop.permute.xlu0 %1597  ;;  %v1538_v24 = vsel %vm155_vm13, %v1537_v25, %v1510_v50 }
 0x246   :  { %v1632_v37 = vsel %vm8637_vm5, %v1631_v26, %v1598_v30  ;;  %v1913_v30 = vld [vmem:[#allocation2 + $0x1e] ss:$2 sm:$0x1f]  ;;  %vm8643_vm5 = vmmov %vm8641_vm0 }
 0x247   :  { %v1969_v57 = vrot.slane %v1913_v30, 1 }
 0x248   :  { %v1517_v7 = vpop.permute.xlu1 %1516 }
 0x249   :  { %v1602_v11 = vpop.permute.xlu0 %1601  ;;  %v1539_v63 = vsel %vm157_vm14, %v1538_v24, %v1517_v7  ;;  %v1973_v7 = vrot.slane %v1915_v48, 1 }
 0x24a   :  { %v4039_v18 = vpop.f32.mrb[4].mxu0  ;;  %v1633_v10 = vsel %vm153_vm12, %v1632_v37, %v1602_v11 }
 0x24b   :  { %v1791_v17 = vadd.f32 %v4039_v18, %v6820_v46  ;;  %v1785_v58 = vpop.f32.mrb[5].mxu0  ;;  %v7188_v18 = vld [vmem:[#allocation2 + $0xa] ss:$2 sm:$0x1f] }
 0x24c   :  { %v1786_v60 = vadd.f32 %v6820_v46, %v1785_v58  ;;  %v1524_v43 = vpop.permute.xlu1 %1523 }
 0x24d   :  { %v1849_v0 = vmax.f32 %v1791_v17, 0.0  ;;  %v1540_v20 = vsel %vm159_vm15, %v1539_v63, %v1524_v43  ;;  %v1606_v4 = vpop.permute.xlu0 %1605 }
 0x24e   :  { %v1848_v22 = vmax.f32 %v1786_v60, 0.0  ;;  %4052 = vmatprep.mubr.msk.f32.mxu0 %vm1650_vm11, %v1540_v20  ;;  %v1634_v32 = vsel %vm155_vm13, %v1633_v10, %v1606_v4  ;;  %vm8639_vm13 = vmmov %vm8636_vm7 }
 0x24f   :  { %1890 = vst.msk [vmem:[#allocation2 + $0x3d] sm:$0xff] %vm133_vm2, %v1849_v0 }
 0x250   :  { %1889 = vst.msk [vmem:[#allocation2 + $0x33] sm:$0xff] %vm133_vm2, %v1848_v22  ;;  %v1620_v21 = vpop.permute.xlu1 %1619 }
 0x251   :  { %v1613_v31 = vpop.permute.xlu0 %1612 }
 0x252   :  { %v1635_v36 = vsel %vm157_vm14, %v1634_v32, %v1613_v31 }
 0x253   :  { %v1636_v3 = vsel %vm159_vm15, %v1635_v36, %v1620_v21  ;;  %vm8640_vm15 = vmmov %vm8636_vm7 }
 0x254   :  { %4053 = vmatmul.mubr.msk.f32.gmra.mrb[14].mxu0 %vm1650_vm11, %v1636_v3  ;;  %vm8642_vm7 = vmmov %vm8641_vm0 }
 0x256   :  { %v2078_v9 = vld [vmem:[#allocation2 + $0x3d] ss:$2 sm:$0x1f]  ;;  %v7138_v54 = vld [vmem:[#allocation2 + $0x3c] ss:$2 sm:$0x1f] }
 0x257   :  { %v7140_v19 = vpack.i.bf16 %v2078_v9, %v1911_v29  ;;  %v2112_v38 = vrot.slane %v7138_v54, 1  ;;  %v2116_v59 = vrot.slane %v2078_v9, 1  ;;  %v7184_v25 = vld [vmem:[#allocation2 + $0x32] ss:$2 sm:$0x1f] }
 0x258   :  { %v4274_v12 = vpack.i.bf16 %v7184_v25, %v7188_v18 }
 0x259   :  { %4230 = vrot.lane.b32.xlu0 %v7140_v19, %s4865_s30  ;;  %v7151_v14 = vpack.i.bf16 %v2112_v38, %v1953_v61  ;;  %v7153_v33 = vpack.i.bf16 %v2116_v59, %v1957_v39 }
 0x25b   :  { %4235 = vrot.lane.b32.xlu1 %v7151_v14, %s4866_s6 }
 0x25d   :  { %4240 = vrot.lane.b32.xlu0 %v4239_v51, %s4865_s30 }
 0x25f   :  { %4245 = vrot.lane.b32.xlu1 %v7153_v33, %s4868_s28 }
 0x261   :  { %4250 = vrot.lane.b32.xlu0 %v4249_v47, %s4866_s6 }
 0x265   :  { %4260 = vrot.lane.b32.xlu0 %v4259_v27, %s4868_s28 }
 0x286   :  { %v4042_v62 = vpop.f32.mrb[6].mxu0 }
 0x287   :  { %v1801_v34 = vadd.f32 %v4042_v62, %v6820_v46  ;;  %v1795_v44 = vpop.f32.mrb[7].mxu0  ;;  %v7222_v62 = vld [vmem:[#allocation2 + $0x33] ss:$2 sm:$0x1f] }
 0x288   :  { %v1796_v50 = vadd.f32 %v6820_v46, %v1795_v44 }
 0x289   :  { %v1851_v55 = vmax.f32 %v1801_v34, 0.0 }
 0x28a   :  { %v1850_v53 = vmax.f32 %v1796_v50, 0.0  ;;  %v1907_v50 = vld [vmem:[#allocation2 + $0xb] ss:$2 sm:$0x1f] }
 0x28b   :  { %1892 = vst.msk [vmem:[#allocation2 + $0x51] sm:$0xff] %vm133_vm2, %v1851_v55 }
 0x28c   :  { %1891 = vst.msk [vmem:[#allocation2 + $0x47] sm:$0xff] %vm133_vm2, %v1850_v53  ;;  %v4289_v53 = vpack.i.bf16 %v7222_v62, %v1907_v50 }
 0x293   :  { %v2080_v2 = vld [vmem:[#allocation2 + $0x46] ss:$2 sm:$0x1f]  ;;  %v2082_v16 = vld [vmem:[#allocation2 + $0x47] ss:$2 sm:$0x1f] }
 0x294   :  { %v7174_v49 = vpack.i.bf16 %v2080_v2, %v1913_v30  ;;  %v2128_v52 = vrot.slane %v2080_v2, 1  ;;  %v2132_v8 = vrot.slane %v2082_v16, 1  ;;  %v7182_v41 = vpack.i.bf16 %v2082_v16, %v1915_v48  ;;  %v2230_v30 = vld [vmem:[#allocation2 + $0x65] ss:$2 sm:$0x1f] }
 0x295   :  { %v2052_v2 = vrot.slane %v7184_v25, 1  ;;  %v7239_v16 = vld [vmem:[#allocation2 + $0x64] ss:$2 sm:$0x1f] }
 0x296   :  { %4255 = vrot.lane.b32.xlu1 %v7174_v49, %s4870_s19  ;;  %v7178_v40 = vpack.i.bf16 %v2128_v52, %v1969_v57  ;;  %v7180_v11 = vpack.i.bf16 %v2132_v8, %v1973_v7  ;;  %v1937_v8 = vrot.slane %v7188_v18, 1 }
 0x29a   :  { %4265 = vrot.lane.b32.xlu1 %v7182_v41, %s4872_s13 }
 0x29e   :  { %4275 = vrot.lane.b32.xlu1 %v4274_v12, %s4870_s19 }
 0x2c2   :  { %v4045_v24 = vpop.f32.mrb[8].mxu0 }
 0x2c3   :  { %v1811_v17 = vadd.f32 %v4045_v24, %v6820_v46  ;;  %v1805_v58 = vpop.f32.mrb[9].mxu0  ;;  %v4309_v24 = vpack.i.bf16 %v2052_v2, %v1937_v8  ;;  %v2567_v8 = vld [vmem:[%s8525_s1 + $0x58] sm:$0xff] }
 0x2c4   :  { %v1806_v56 = vadd.f32 %v6820_v46, %v1805_v58 }
 0x2c5   :  { %v1853_v63 = vmax.f32 %v1811_v17, 0.0  ;;  %v2248_v17 = vrot.slane %v7239_v16, 1 }
 0x2c6   :  { %v1852_v60 = vmax.f32 %v1806_v56, 0.0 }
 0x2c7   :  { %1894 = vst.msk [vmem:[#allocation2 + $0x79] sm:$0xff] %vm133_vm2, %v1853_v63 }
 0x2c8   :  { %1893 = vst.msk [vmem:[#allocation2 + $0x6f] sm:$0xff] %vm133_vm2, %v1852_v60 }
 0x2ce   :  { %v7205_v36 = vld [vmem:[#allocation2 + $0x78] ss:$2 sm:$0x1f]  ;;  %v2238_v3 = vld [vmem:[#allocation2 + $0x79] ss:$2 sm:$0x1f] }
 0x2cf   :  { %v2280_v35 = vrot.slane %v7205_v36, 1  ;;  %v2284_v59 = vrot.slane %v2238_v3, 1 }
 0x2f1   :  { %v4048_v43 = vpop.f32.mrb[10].mxu0 }
 0x2f2   :  { %v1821_v1 = vadd.f32 %v4048_v43, %v6820_v46  ;;  %v1815_v0 = vpop.f32.mrb[11].mxu0 }
 0x2f3   :  { %v1816_v20 = vadd.f32 %v6820_v46, %v1815_v0  ;;  %v2154_v0 = vld [vmem:[#allocation2 + $0x51] ss:$2 sm:$0x1f] }
 0x2f4   :  { %v1855_v4 = vmax.f32 %v1821_v1, 0.0 }
 0x2f5   :  { %v1854_v26 = vmax.f32 %v1816_v20, 0.0 }
 0x2f6   :  { %1896 = vst.msk [vmem:[#allocation2 + $0x8d] sm:$0xff] %vm133_vm2, %v1855_v4 }
 0x2f7   :  { %1895 = vst.msk [vmem:[#allocation2 + $0x83] sm:$0xff] %vm133_vm2, %v1854_v26  ;;  %v2056_v26 = vrot.slane %v7222_v62, 1 }
 0x2fd   :  { %v7231_v48 = vld [vmem:[#allocation2 + $0x8d] ss:$2 sm:$0x1f]  ;;  %v7241_v52 = vld [vmem:[#allocation2 + $0x8c] ss:$2 sm:$0x1f] }
 0x2fe   :  { %v4299_v57 = vpack.i.bf16 %v7231_v48, %v2230_v30  ;;  %v2240_v12 = vld [vmem:[#allocation2 + $0x82] ss:$2 sm:$0x1f]  ;;  %v2356_v58 = vrot.slane %v7241_v52, 1 }
 0x2ff   :  { %v2242_v43 = vld [vmem:[#allocation2 + $0x83] ss:$2 sm:$0x1f]  ;;  %v2296_v1 = vrot.slane %v2240_v12, 1 }
 0x300   :  { %v4319_v4 = vpack.i.bf16 %v2356_v58, %v2248_v17 }
 0x316   :  { %v4051_v22 = vpop.f32.mrb[12].mxu0 }
 0x317   :  { %v1831_v37 = vadd.f32 %v4051_v22, %v6820_v46  ;;  %v1825_v10 = vpop.f32.mrb[13].mxu0 }
 0x318   :  { %v1826_v21 = vadd.f32 %v6820_v46, %v1825_v10  ;;  %v1941_v10 = vrot.slane %v1907_v50, 1 }
 0x319   :  { %v1857_v32 = vmax.f32 %v1831_v37, 0.0  ;;  %v4334_v37 = vpack.i.bf16 %v2154_v0, %v7145_v23  ;;  %v2565_v23 = vld [vmem:[%s8525_s1 + $0x48] sm:$0xff] }
 0x31a   :  { %v1856_v31 = vmax.f32 %v1826_v21, 0.0  ;;  %v4329_v21 = vpack.i.bf16 %v2056_v26, %v1941_v10  ;;  %v2571_v10 = vld [vmem:[%s8525_s1 + $0x78] sm:$0xff] }
 0x31b   :  { %1898 = vst.msk [vmem:[#allocation2 + $0xa1] sm:$0xff] %vm133_vm2, %v1857_v32  ;;  %v2252_v32 = vrot.slane %v2230_v30, 1  ;;  %v2564_v30 = vld [vmem:[%s8525_s1 + $0x40] sm:$0xff] }
 0x31c   :  { %1897 = vst.msk [vmem:[#allocation2 + $0x97] sm:$0xff] %vm133_vm2, %v1856_v31  ;;  %v2360_v31 = vrot.slane %v7231_v48, 1 }
 0x322   :  { %v2398_v29 = vld [vmem:[#allocation2 + $0xa1] ss:$2 sm:$0x1f]  ;;  %v7207_v61 = vld [vmem:[#allocation2 + $0xa0] ss:$2 sm:$0x1f] }
 0x323   :  { %v7209_v9 = vpack.i.bf16 %v2398_v29, %v2238_v3  ;;  %v2432_v38 = vrot.slane %v7207_v61, 1  ;;  %v2436_v39 = vrot.slane %v2398_v29, 1  ;;  %v4339_v29 = vpack.i.bf16 %v2360_v31, %v2252_v32 }
 0x325   :  { %4270 = vrot.lane.b32.xlu0 %v7209_v9, %s4865_s30  ;;  %v7215_v51 = vpack.i.bf16 %v2432_v38, %v2280_v35  ;;  %v7217_v28 = vpack.i.bf16 %v2436_v39, %v2284_v59  ;;  %v4349_v38 = vpack.i.bf16 %v7138_v54, %v7133_v5  ;;  %v7280_v39 = vld [vmem:[#allocation2 + $0x96] ss:$2 sm:$0x1f]  ;;  %v2192_v59 = vrot.slane %v2154_v0, 1 }
 0x327   :  { %4285 = vrot.lane.b32.xlu1 %v7215_v51, %s4866_s6  ;;  %v4054_v47 = vpop.f32.mrb[14].mxu0 }
 0x328   :  { %v1841_v13 = vadd.f32 %v4054_v47, %v6820_v46  ;;  %v1835_v27 = vpop.f32.mrb[15].mxu0  ;;  %v2232_v47 = vld [vmem:[#allocation2 + $0x6e] ss:$2 sm:$0x1f] }
 0x329   :  { %v1836_v34 = vadd.f32 %v6820_v46, %v1835_v27  ;;  %4280 = vrot.lane.b32.xlu0 %v7178_v40, %s4874_s14  ;;  %v2152_v46 = vld [vmem:[#allocation2 + $0x50] ss:$2 sm:$0x1f] }
 0x32a   :  { %v1859_v44 = vmax.f32 %v1841_v13, 0.0  ;;  %v4314_v7 = vpack.i.bf16 %v2152_v46, %v7147_v6  ;;  %v2188_v3 = vrot.slane %v2152_v46, 1  ;;  %v4359_v13 = vpack.i.bf16 %v7280_v39, %v2232_v47 }
 0x32b   :  { %v1858_v55 = vmax.f32 %v1836_v34, 0.0  ;;  %4295 = vrot.lane.b32.xlu1 %v7180_v11, %s4876_s10  ;;  %v2300_v34 = vrot.slane %v2242_v43, 1  ;;  %v4109_v46 = vpack.c.bf16 %v2565_v23, %v2564_v30  ;;  %v2577_v30 = vld [vmem:[%s8525_s1 + $0xa8] sm:$0xff]  ;;  %v4439_v23 = vpack.i.bf16 %v7207_v61, %v7205_v36 }
 0x32c   :  { %1900 = vst.msk [vmem:[#allocation2 + $0xb5] sm:$0xff] %vm133_vm2, %v1859_v44  ;;  %v4354_v35 = vpack.i.bf16 %v2188_v3, %v2036_v42  ;;  %v4374_v42 = vpack.i.bf16 %v2192_v59, %v2040_v45  ;;  %v7290_v44 = vld [vmem:[#allocation2 + $0x97] ss:$2 sm:$0x1f]  ;;  %v2573_v59 = vld [vmem:[%s8525_s1 + $0x88] sm:$0xff] }
 0x32d   :  { %1899 = vst.msk [vmem:[#allocation2 + $0xab] sm:$0xff] %vm133_vm2, %v1858_v55  ;;  %4290 = vrot.lane.b32.xlu0 %v4289_v53, %s4872_s13  ;;  %v2156_v55 = vld [vmem:[#allocation2 + $0x5a] ss:$2 sm:$0x1f]  ;;  %4110 = vmatprep.subr.bf16.mxu1 %v4109_v46 }
 0x32e   :  { %v2234_v53 = vld [vmem:[#allocation2 + $0x6f] ss:$2 sm:$0x1f]  ;;  %4112 = vmatpush3.bf16.msra.mxu1 %v4109_v46 }
 0x32f   :  { %4305 = vrot.lane.b32.xlu1 %v7217_v28, %s4868_s28  ;;  %v4379_v45 = vpack.i.bf16 %v7290_v44, %v2234_v53  ;;  %v2578_v46 = vld [vmem:[%s8525_s1 + $0xb0] sm:$0xff] }
 0x331   :  { %4300 = vrot.lane.b32.xlu0 %v4299_v57, %s4865_s30  ;;  %s4880_s30 = smov 72  }
 0x333   :  { %4315 = vrot.lane.b32.xlu1 %v4314_v7, %s4879_s0  ;;  %v2472_v57 = vld [vmem:[#allocation2 + $0xb4] ss:$2 sm:$0x1f] }
 0x334   :  { %v2400_v56 = vld [vmem:[#allocation2 + $0xaa] ss:$2 sm:$0x1f]  ;;  %v2402_v63 = vld [vmem:[#allocation2 + $0xab] ss:$2 sm:$0x1f]  ;;  %v4404_v17 = vpack.i.bf16 %v2472_v57, %v7241_v52 }
 0x335   :  { %4310 = vrot.lane.b32.xlu0 %v4309_v24, %s4874_s14  ;;  %v7252_v60 = vpack.i.bf16 %v2400_v56, %v2240_v12  ;;  %v2448_v18 = vrot.slane %v2400_v56, 1  ;;  %v7254_v20 = vpack.i.bf16 %v2402_v63, %v2242_v43  ;;  %v2452_v27 = vrot.slane %v2402_v63, 1  ;;  %v2566_v7 = vld [vmem:[%s8525_s1 + $0x50] sm:$0xff]  ;;  %v2158_v63 = vld [vmem:[#allocation2 + $0x5b] ss:$2 sm:$0x1f] }
 0x336   :  { %v2372_v12 = vrot.slane %v7280_v39, 1  ;;  %v4113_v24 = vpack.c.bf16 %v2567_v8, %v2566_v7  ;;  %v2264_v56 = vrot.slane %v2232_v47, 1  ;;  %v2568_v43 = vld [vmem:[%s8525_s1 + $0x60] sm:$0xff]  ;;  %v4414_v0 = vpack.i.bf16 %v2158_v63, %v7222_v62 }
 0x337   :  { %4325 = vrot.lane.b32.xlu1 %v7252_v60, %s4870_s19  ;;  %v7261_v22 = vpack.i.bf16 %v2448_v18, %v2296_v1  ;;  %v7294_v50 = vpack.i.bf16 %v2452_v27, %v2300_v34  ;;  %v2569_v1 = vld [vmem:[%s8525_s1 + $0x68] sm:$0xff]  ;;  %v2574_v27 = vld [vmem:[%s8525_s1 + $0x90] sm:$0xff]  ;;  %v2575_v34 = vld [vmem:[%s8525_s1 + $0x98] sm:$0xff] }
 0x338   :  { %4114 = vmatprep.subr.bf16.mxu1 %v4113_v24  ;;  %v4399_v18 = vpack.i.bf16 %v2372_v12, %v2264_v56  ;;  %v2478_v7 = vld [vmem:[#allocation2 + $0xbf] ss:$2 sm:$0x1f] }
 0x339   :  { %4320 = vrot.lane.b32.xlu0 %v4319_v4, %s4866_s6  ;;  %4116 = vmatpush3.bf16.msra.mxu1 %v4113_v24  ;;  %v2474_v4 = vld [vmem:[#allocation2 + $0xb5] ss:$2 sm:$0x1f] }
 0x33a   :  { %v4424_v3 = vpack.i.bf16 %v2474_v4, %v7231_v48  ;;  %v4494_v48 = vpack.i.bf16 %v2478_v7, %v7290_v44 }
 0x33b   :  { %4335 = vrot.lane.b32.xlu1 %v4334_v37, %s4880_s30  ;;  %v2570_v37 = vld [vmem:[%s8525_s1 + $0x70] sm:$0xff] }
 0x33c   :  { %v4121_v32 = vpack.c.bf16 %v2571_v10, %v2570_v37 }
 0x33d   :  { %4330 = vrot.lane.b32.xlu0 %v4329_v21, %s4876_s10  ;;  %v2376_v21 = vrot.slane %v7290_v44, 1 }
 0x33f   :  { %4345 = vrot.lane.b32.xlu1 %v7254_v20, %s4872_s13 }
 0x341   :  { %4340 = vrot.lane.b32.xlu0 %v4339_v29, %s4868_s28  ;;  %s4882_s28 = smov 88   ;;  %v2268_v29 = vrot.slane %v2234_v53, 1  ;;  %v2576_v53 = vld [vmem:[%s8525_s1 + $0xa0] sm:$0xff] }
 0x343   :  { %4355 = vrot.lane.b32.xlu1 %v4354_v35, %s4881_s24  ;;  %v2204_v35 = vrot.slane %v2156_v55, 1  ;;  %v4419_v47 = vpack.i.bf16 %v2376_v21, %v2268_v29 }
 0x345   :  { %4350 = vrot.lane.b32.xlu0 %v4349_v38, %s4879_s0  ;;  %v2572_v38 = vld [vmem:[%s8525_s1 + $0x80] sm:$0xff] }
 0x347   :  { %4365 = vrot.lane.b32.xlu1 %v7261_v22, %s4874_s14 }
 0x349   :  { %4360 = vrot.lane.b32.xlu0 %v4359_v13, %s4870_s19  ;;  %v4434_v13 = vpack.i.bf16 %v2204_v35, %v2052_v2  ;;  %v2208_v2 = vrot.slane %v2158_v63, 1 }
 0x34b   :  { %4375 = vrot.lane.b32.xlu1 %v4374_v42, %s4882_s28  ;;  %v2508_v42 = vrot.slane %v2472_v57, 1 }
 0x34d   :  { %4370 = vrot.lane.b32.xlu0 %v7140_v19, %s4880_s30  ;;  %v4394_v19 = vpack.i.bf16 %v2156_v55, %v7184_v25  ;;  %v4129_v55 = vpack.c.bf16 %v2575_v34, %v2574_v27  ;;  %v4444_v25 = vpack.i.bf16 %v2508_v42, %v2356_v58  ;;  %v4454_v58 = vpack.i.bf16 %v2208_v2, %v2056_v26  ;;  %v2476_v26 = vld [vmem:[#allocation2 + $0xbe] ss:$2 sm:$0x1f] }
 0x34f   :  { %4385 = vrot.lane.b32.xlu1 %v7294_v50, %s4876_s10 }
 0x351   :  { %4380 = vrot.lane.b32.xlu0 %v4379_v45, %s4872_s13  ;;  %v2512_v45 = vrot.slane %v2474_v4, 1 }
 0x353   :  { %4395 = vrot.lane.b32.xlu1 %v4394_v19, %s4883_s7  ;;  %v2579_v19 = vld [vmem:[%s8525_s1 + $0xb8] sm:$0xff]  ;;  %v4464_v62 = vpack.i.bf16 %v2512_v45, %v2360_v31  ;;  %v2524_v31 = vrot.slane %v2476_v26, 1 }
 0x354   :  { %v4137_v57 = vpack.c.bf16 %v2579_v19, %v2578_v46 }
 0x355   :  { %4390 = vrot.lane.b32.xlu0 %v7151_v14, %s4881_s24  ;;  %v4117_v14 = vpack.c.bf16 %v2569_v1, %v2568_v43 }
 0x357   :  { %4405 = vrot.lane.b32.xlu1 %v4404_v17, %s4879_s0  ;;  %4118 = vmatprep.subr.bf16.mxu1 %v4117_v14 }
 0x358   :  { %4120 = vmatpush3.bf16.msra.mxu1 %v4117_v14 }
 0x359   :  { %4400 = vrot.lane.b32.xlu0 %v4399_v18, %s4874_s14  ;;  %4122 = vmatprep.subr.bf16.mxu1 %v4121_v32 }
 0x35b   :  { %4415 = vrot.lane.b32.xlu1 %v4414_v0, %s4884_s16 }
 0x35c   :  { %4124 = vmatpush3.bf16.msra.mxu1 %v4121_v32 }
 0x35d   :  { %4410 = vrot.lane.b32.xlu0 %v7153_v33, %s4882_s28  ;;  %v4125_v33 = vpack.c.bf16 %v2573_v59, %v2572_v38 }
 0x35f   :  { %4425 = vrot.lane.b32.xlu1 %v4424_v3, %s4880_s30  ;;  %4126 = vmatprep.subr.bf16.mxu1 %v4125_v33 }
 0x360   :  { %4128 = vmatpush3.bf16.msra.mxu1 %v4125_v33 }
 0x361   :  { %4420 = vrot.lane.b32.xlu0 %v4419_v47, %s4876_s10  ;;  %4130 = vmatprep.subr.bf16.mxu1 %v4129_v55 }
 0x363   :  { %4435 = vrot.lane.b32.xlu1 %v4434_v13, %s4885_s27 }
 0x364   :  { %4132 = vmatpush3.bf16.msra.mxu1 %v4129_v55 }
 0x365   :  { %4430 = vrot.lane.b32.xlu0 %v7174_v49, %s4883_s7  ;;  %v4133_v49 = vpack.c.bf16 %v2577_v30, %v2576_v53 }
 0x367   :  { %4445 = vrot.lane.b32.xlu1 %v4444_v25, %s4881_s24  ;;  %4134 = vmatprep.subr.bf16.mxu1 %v4133_v49 }
 0x368   :  { %4136 = vmatpush3.bf16.msra.mxu1 %v4133_v49 }
 0x369   :  { %4440 = vrot.lane.b32.xlu0 %v4439_v23, %s4879_s0  ;;  %4138 = vmatprep.subr.bf16.mxu1 %v4137_v57 }
 0x36b   :  { %4455 = vrot.lane.b32.xlu1 %v4454_v58, %s4886_s12 }
 0x36c   :  { %4140 = vmatpush3.bf16.msra.mxu1 %v4137_v57 }
 0x36d   :  { %4450 = vrot.lane.b32.xlu0 %v7182_v41, %s4884_s16  ;;  %v4479_v41 = vpack.i.bf16 %v2476_v26, %v7280_v39 }
 0x36f   :  { %4465 = vrot.lane.b32.xlu1 %v4464_v62, %s4882_s28 }
 0x371   :  { %4460 = vrot.lane.b32.xlu0 %v7209_v9, %s4880_s30  ;;  %v4504_v9 = vpack.i.bf16 %v2524_v31, %v2372_v12 }
 0x373   :  { %4475 = vrot.lane.b32.xlu1 %v7215_v51, %s4881_s24  ;;  %v4236_v51 = vpop.permute.xlu1 %4235 }
 0x374   :  { %v4238_v42 = vunpack.i.h.bf16 %v4236_v51  ;;  %v4237_v27 = vunpack.i.l.bf16 %v4236_v51 }
 0x375   :  { %4470 = vrot.lane.b32.xlu0 %v7178_v40, %s4885_s27  ;;  %v2528_v40 = vrot.slane %v2478_v7, 1 }
 0x377   :  { %4485 = vrot.lane.b32.xlu1 %v7180_v11, %s4886_s12  ;;  %v4231_v11 = vpop.permute.xlu0 %4230  ;;  %v4514_v8 = vpack.i.bf16 %v2528_v40, %v2376_v21  ;;  %v4246_v24 = vpop.permute.xlu1 %4245 }
 0x378   :  { %v4233_v59 = vunpack.i.h.bf16 %v4231_v11  ;;  %v4232_v47 = vunpack.i.l.bf16 %v4231_v11  ;;  %v4247_v30 = vunpack.i.l.bf16 %v4246_v24  ;;  %v4248_v49 = vunpack.i.h.bf16 %v4246_v24 }
 0x379   :  { %4480 = vrot.lane.b32.xlu0 %v4479_v41, %s4883_s7 }
 0x37a   :  { %v2212_v34 = vsel %vm133_vm2, %v7138_v54, %v4233_v59  ;;  %v2060_v55 = vsel %vm133_vm2, %v7133_v5, %v4232_v47 }
 0x37b   :  { %4495 = vrot.lane.b32.xlu1 %v4494_v48, %s4884_s16  ;;  %v7413_v39 = vpop.permute.xlu1 %4255  ;;  %v2061_v19 = vsel %vm137_vm4, %v2060_v55, %v4237_v27  ;;  %v2213_v57 = vsel %vm137_vm4, %v2212_v34, %v4238_v42 }
 0x37c   :  { %v4258_v54 = vunpack.i.h.bf16 %v7413_v39  ;;  %v4257_v5 = vunpack.i.l.bf16 %v7413_v39  ;;  %v2062_v31 = vsel %vm141_vm6, %v2061_v19, %v4247_v30  ;;  %v2214_v11 = vsel %vm141_vm6, %v2213_v57, %v4248_v49 }
 0x37d   :  { %4490 = vrot.lane.b32.xlu0 %v7217_v28, %s4882_s28  ;;  %v4241_v28 = vpop.permute.xlu0 %4240 }
 0x37e   :  { %v4243_v25 = vunpack.i.h.bf16 %v4241_v28  ;;  %v4242_v2 = vunpack.i.l.bf16 %v4241_v28  ;;  %v2063_v28 = vsel %vm8638_vm9, %v2062_v31, %v4257_v5  ;;  %v2215_v39 = vsel %vm8639_vm13, %v2214_v11, %v4258_v54 }
 0x37f   :  { %4505 = vrot.lane.b32.xlu1 %v4504_v9, %s4885_s27  ;;  %vm1993_vm9 = vcmask 850944   ;;  %vm1995_vm13 = vcmask 916480  }
 0x380   :  { %v2136_v62 = vsel %vm133_vm2, %v7147_v6, %v4243_v25  ;;  %v1977_v26 = vsel %vm133_vm2, %v7143_v15, %v4242_v2 }
 0x381   :  { %4500 = vrot.lane.b32.xlu0 %v7252_v60, %s4883_s7  ;;  %v4251_v12 = vpop.permute.xlu0 %4250  ;;  %v7417_v60 = vpop.permute.xlu1 %4265 }
 0x382   :  { %v4252_v23 = vunpack.i.l.bf16 %v4251_v12  ;;  %v4253_v58 = vunpack.i.h.bf16 %v4251_v12  ;;  %v4268_v7 = vunpack.i.h.bf16 %v7417_v60  ;;  %v4267_v41 = vunpack.i.l.bf16 %v7417_v60 }
 0x383   :  { %4515 = vrot.lane.b32.xlu1 %v4514_v8, %s4886_s12 }
 0x384   :  { %v1978_v9 = vsel %vm137_vm4, %v1977_v26, %v4252_v23  ;;  %v2137_v6 = vsel %vm137_vm4, %v2136_v62, %v4253_v58  ;;  %v2216_v59 = vsel %vm149_vm10, %v2215_v39, %v4268_v7 }
 0x385   :  { %4510 = vrot.lane.b32.xlu0 %v7254_v20, %s4884_s16  ;;  %v7419_v44 = vpop.permute.xlu0 %4260  ;;  %v7421_v17 = vpop.permute.xlu1 %4275 }
 0x386   :  { %v4262_v45 = vunpack.i.l.bf16 %v7419_v44  ;;  %v4263_v15 = vunpack.i.h.bf16 %v7419_v44  ;;  %v4278_v47 = vunpack.i.h.bf16 %v7421_v17  ;;  %v4277_v44 = vunpack.i.l.bf16 %v7421_v17 }
 0x387   :  { %4525 = vrot.lane.b32.xlu1 %v7294_v50, %s4886_s12 }
 0x388   :  { %v1979_v8 = vsel %vm141_vm6, %v1978_v9, %v4262_v45 }
 0x389   :  { %4520 = vrot.lane.b32.xlu0 %v7261_v22, %s4885_s27  ;;  %v1980_v45 = vsel %vm8640_vm15, %v1979_v8, %v4277_v44  ;;  %vm1997_vm15 = vcmask 982016  }
 0x397   :  { %v7423_v56 = vpop.permute.xlu0 %4270 }
 0x398   :  { %v4273_v40 = vunpack.i.h.bf16 %v7423_v56  ;;  %v4272_v51 = vunpack.i.l.bf16 %v7423_v56  ;;  %v2064_v56 = vsel %vm149_vm10, %v2063_v28, %v4267_v41 }
 0x399   :  { %v7425_v63 = vpop.permute.xlu1 %4285 }
 0x39a   :  { %v2532_v27 = vsel %vm133_vm2, %v7207_v61, %v4273_v40  ;;  %v2380_v34 = vsel %vm133_vm2, %v7205_v36, %v4272_v51  ;;  %v4288_v55 = vunpack.i.h.bf16 %v7425_v63 }
 0x39b   :  { %v7427_v20 = vpop.permute.xlu0 %4280 }
 0x39c   :  { %v4283_v12 = vunpack.i.h.bf16 %v7427_v20  ;;  %v4282_v60 = vunpack.i.l.bf16 %v7427_v20  ;;  %v4287_v20 = vunpack.i.l.bf16 %v7425_v63  ;;  %v2138_v63 = vsel %vm141_vm6, %v2137_v6, %v4263_v15 }
 0x39d   :  { %v7429_v43 = vpop.permute.xlu1 %4295  ;;  %v2533_v57 = vsel %vm137_vm4, %v2532_v27, %v4288_v55 }
 0x39e   :  { %v4298_v25 = vunpack.i.h.bf16 %v7429_v43  ;;  %v4297_v2 = vunpack.i.l.bf16 %v7429_v43  ;;  %v2065_v49 = vsel %vm153_vm12, %v2064_v56, %v4282_v60  ;;  %v2217_v61 = vsel %vm153_vm12, %v2216_v59, %v4283_v12 }
 0x39f   :  { %v7431_v50 = vpop.permute.xlu0 %4290  ;;  %v2139_v43 = vsel %vm8641_vm0, %v2138_v63, %v4278_v47 }
 0x3a0   :  { %v4293_v30 = vunpack.i.h.bf16 %v7431_v50  ;;  %v4292_v17 = vunpack.i.l.bf16 %v7431_v50  ;;  %v2381_v50 = vsel %vm137_vm4, %v2380_v34, %v4287_v20  ;;  %v2066_v54 = vsel %vm157_vm14, %v2065_v49, %v4297_v2 }
 0x3a1   :  { %v7433_v1 = vpop.permute.xlu1 %4305  ;;  %v2218_v5 = vsel %vm157_vm14, %v2217_v61, %v4298_v25 }
 0x3a2   :  { %v4308_v36 = vunpack.i.h.bf16 %v7433_v1  ;;  %v4307_v58 = vunpack.i.l.bf16 %v7433_v1  ;;  %v1981_v62 = vsel %vm149_vm10, %v1980_v45, %v4292_v17  ;;  %v2140_v1 = vsel %vm149_vm10, %v2139_v43, %v4293_v30 }
 0x3a3   :  { %v7435_v22 = vpop.permute.xlu0 %4300 }
 0x3a4   :  { %v2382_v7 = vsel %vm141_vm6, %v2381_v50, %v4307_v58  ;;  %v2534_v41 = vsel %vm141_vm6, %v2533_v57, %v4308_v36  ;;  %v4303_v31 = vunpack.i.h.bf16 %v7435_v22  ;;  %v4302_v9 = vunpack.i.l.bf16 %v7435_v22 }
 0x3a5   :  { %v7437_v18 = vpop.permute.xlu1 %4315 }
 0x3a6   :  { %v4318_v40 = vunpack.i.h.bf16 %v7437_v18  ;;  %v4317_v51 = vunpack.i.l.bf16 %v7437_v18  ;;  %v2456_v59 = vsel %vm133_vm2, %v7241_v52, %v4303_v31 }
 0x3a7   :  { %v7439_v14 = vpop.permute.xlu0 %4310 }
 0x3a8   :  { %v4313_v11 = vunpack.i.h.bf16 %v7439_v14  ;;  %v4312_v6 = vunpack.i.l.bf16 %v7439_v14  ;;  %v2067_v44 = vsel %vm1650_vm11, %v2066_v54, %v4317_v51 }
 0x3a9   :  { %v7441_v0 = vpop.permute.xlu1 %4325 }
 0x3aa   :  { %v4328_v8 = vunpack.i.h.bf16 %v7441_v0  ;;  %v4327_v28 = vunpack.i.l.bf16 %v7441_v0  ;;  %v2304_v0 = vsel %vm133_vm2, %v7239_v16, %v4302_v9  ;;  %v1982_v27 = vsel %vm153_vm12, %v1981_v62, %v4312_v6 }
 0x3ab   :  { %v7443_v4 = vpop.permute.xlu0 %4320  ;;  %vm1991_vm2 = vcmask 785408  }
 0x3ac   :  { %v4323_v39 = vunpack.i.h.bf16 %v7443_v4  ;;  %v4322_v12 = vunpack.i.l.bf16 %v7443_v4  ;;  %v2383_v52 = vsel %vm8642_vm7, %v2382_v7, %v4327_v28  ;;  %v2535_v55 = vsel %vm8643_vm5, %v2534_v41, %v4328_v8  ;;  %vm8647_vm5 = vmmov %vm8641_vm0 }
 0x3ad   :  { %v7445_v37 = vpop.permute.xlu1 %4335  ;;  %vm2559_vm7 = vcmask 1043456  }
 0x3ae   :  { %v4338_v22 = vunpack.i.h.bf16 %v7445_v37  ;;  %v4337_v60 = vunpack.i.l.bf16 %v7445_v37  ;;  %v2219_v37 = vsel %vm1650_vm11, %v2218_v5, %v4318_v40  ;;  %v2305_v16 = vsel %vm137_vm4, %v2304_v0, %v4322_v12 }
 0x3af   :  { %v7447_v10 = vpop.permute.xlu0 %4330  ;;  %v2457_v20 = vsel %vm137_vm4, %v2456_v59, %v4323_v39 }
 0x3b0   :  { %v4333_v18 = vunpack.i.h.bf16 %v7447_v10  ;;  %v4332_v56 = vunpack.i.l.bf16 %v7447_v10  ;;  %v2141_v10 = vsel %vm153_vm12, %v2140_v1, %v4313_v11  ;;  %v2220_v25 = vsel %vm1985_vm8, %v2219_v37, %v4338_v22 }
 0x3b1   :  { %v7449_v21 = vpop.permute.xlu1 %4345 }
 0x3b2   :  { %v4348_v47 = vunpack.i.h.bf16 %v7449_v21  ;;  %v4347_v4 = vunpack.i.l.bf16 %v7449_v21  ;;  %v2068_v21 = vsel %vm1985_vm8, %v2067_v44, %v4337_v60  ;;  %v1983_v2 = vsel %vm157_vm14, %v1982_v27, %v4332_v56 }
 0x3b3   :  { %v7451_v32 = vpop.permute.xlu0 %4340  ;;  %v2142_v30 = vsel %vm157_vm14, %v2141_v10, %v4333_v18 }
 0x3b4   :  { %v2384_v49 = vsel %vm149_vm10, %v2383_v52, %v4347_v4  ;;  %v2536_v61 = vsel %vm149_vm10, %v2535_v55, %v4348_v47  ;;  %v4343_v36 = vunpack.i.h.bf16 %v7451_v32  ;;  %v4342_v58 = vunpack.i.l.bf16 %v7451_v32 }
 0x3b5   :  { %v7453_v3 = vpop.permute.xlu1 %4355 }
 0x3b6   :  { %v4358_v63 = vunpack.i.h.bf16 %v7453_v3  ;;  %v4357_v45 = vunpack.i.l.bf16 %v7453_v3  ;;  %v2306_v31 = vsel %vm141_vm6, %v2305_v16, %v4342_v58  ;;  %v2458_v9 = vsel %vm141_vm6, %v2457_v20, %v4343_v36  ;;  %vm8644_vm6 = vmmov %vm8641_vm0 }
 0x3b7   :  { %v7455_v29 = vpop.permute.xlu0 %4350 }
 0x3b8   :  { %v4353_v43 = vunpack.i.h.bf16 %v7455_v29  ;;  %v4352_v50 = vunpack.i.l.bf16 %v7455_v29 }
 0x3b9   :  { %v7457_v35 = vpop.permute.xlu1 %4365 }
 0x3ba   :  { %v4368_v54 = vunpack.i.h.bf16 %v7457_v35  ;;  %v4367_v5 = vunpack.i.l.bf16 %v7457_v35  ;;  %v1984_v51 = vsel %vm1650_vm11, %v1983_v2, %v4352_v50 }
 0x3bb   :  { %v7459_v38 = vpop.permute.xlu0 %4360 }
 0x3bc   :  { %v4363_v62 = vunpack.i.h.bf16 %v7459_v38  ;;  %v4362_v1 = vunpack.i.l.bf16 %v7459_v38  ;;  %v2069_v38 = vsel %vm1987_vm1, %v2068_v21, %v4357_v45  ;;  %v2385_v6 = vsel %vm153_vm12, %v2384_v49, %v4367_v5 }
 0x3bd   :  { %v7461_v33 = vpop.permute.xlu1 %4375  ;;  %v2537_v8 = vsel %vm153_vm12, %v2536_v61, %v4368_v54 }
 0x3be   :  { %v4378_v32 = vunpack.i.h.bf16 %v7461_v33  ;;  %v4377_v7 = vunpack.i.l.bf16 %v7461_v33  ;;  %v2221_v33 = vsel %vm1987_vm1, %v2220_v25, %v4358_v63  ;;  %v2307_v28 = vsel %vm8644_vm6, %v2306_v31, %v4362_v1 }
 0x3bf   :  { %v7463_v13 = vpop.permute.xlu0 %4370  ;;  %v2459_v39 = vsel %vm8641_vm0, %v2458_v9, %v4363_v62  ;;  %vm3117_vm6 = vcmask 1045504  }
 0x3c0   :  { %v4373_v3 = vunpack.i.h.bf16 %v7463_v13  ;;  %v4372_v41 = vunpack.i.l.bf16 %v7463_v13  ;;  %v2143_v13 = vsel %vm1650_vm11, %v2142_v30, %v4353_v43  ;;  %v2222_v12 = vsel %vm1989_vm3, %v2221_v33, %v4378_v32 }
 0x3c1   :  { %v7469_v53 = vpop.permute.xlu1 %4385 }
 0x3c2   :  { %v4388_v35 = vunpack.i.h.bf16 %v7469_v53  ;;  %v4387_v40 = vunpack.i.l.bf16 %v7469_v53  ;;  %v2070_v53 = vsel %vm1989_vm3, %v2069_v38, %v4377_v7  ;;  %v1986_v22 = vsel %vm1985_vm8, %v1984_v51, %v4372_v41 }
 0x3c3   :  { %v7472_v46 = vpop.permute.xlu0 %4380  ;;  %v2144_v60 = vsel %vm1985_vm8, %v2143_v13, %v4373_v3 }
 0x3c4   :  { %v7614_v56 = vsel %vm157_vm14, %v2385_v6, %v4387_v40  ;;  %v7617_v59 = vsel %vm157_vm14, %v2537_v8, %v4388_v35  ;;  %v4383_v4 = vunpack.i.h.bf16 %v7472_v46  ;;  %v4382_v44 = vunpack.i.l.bf16 %v7472_v46 }
 0x3c5   :  { %v7484_v48 = vpop.permute.xlu1 %4395 }
 0x3c6   :  { %v4398_v0 = vunpack.i.h.bf16 %v7484_v48  ;;  %v4397_v47 = vunpack.i.l.bf16 %v7484_v48  ;;  %v2308_v6 = vsel %vm149_vm10, %v2307_v28, %v4382_v44  ;;  %v2460_v8 = vsel %vm149_vm10, %v2459_v39, %v4383_v4 }
 0x3c7   :  { %v7494_v24 = vpop.permute.xlu0 %4390  ;;  %vm2735_vm10 = vcmask 125952  }
 0x3c8   :  { %v4393_v37 = vunpack.i.h.bf16 %v7494_v24  ;;  %v4392_v27 = vunpack.i.l.bf16 %v7494_v24  ;;  %v2071_v2 = vsel %vm1991_vm2, %v2070_v53, %v4397_v47  ;;  %v2223_v30 = vsel %vm1991_vm2, %v2222_v12, %v4398_v0 }
 0x3c9   :  { %v7504_v42 = vpop.permute.xlu1 %4405 }
 0x3ca   :  { %v1988_v61 = vsel %vm1987_vm1, %v1986_v22, %v4392_v27  ;;  %v4408_v31 = vunpack.i.h.bf16 %v7504_v42  ;;  %v4407_v9 = vunpack.i.l.bf16 %v7504_v42 }
 0x3cb   :  { %v7516_v23 = vpop.permute.xlu0 %4400 }
 0x3cc   :  { %v4403_v42 = vunpack.i.h.bf16 %v7516_v23  ;;  %v2387_v4 = vsel %vm1650_vm11, %v7614_v56, %v4407_v9  ;;  %v2539_v44 = vsel %vm1650_vm11, %v7617_v59, %v4408_v31 }
 0x3cd   :  { %v7524_v19 = vpop.permute.xlu1 %4415 }
 0x3ce   :  { %v4418_v52 = vunpack.i.h.bf16 %v7524_v19  ;;  %v4417_v55 = vunpack.i.l.bf16 %v7524_v19 }
 0x3cf   :  { %v7533_v26 = vpop.permute.xlu0 %4410 }
 0x3d0   :  { %v4413_v16 = vunpack.i.h.bf16 %v7533_v26  ;;  %v4412_v20 = vunpack.i.l.bf16 %v7533_v26  ;;  %v2145_v26 = vsel %vm1987_vm1, %v2144_v60, %v4393_v37  ;;  %v4402_v60 = vunpack.i.l.bf16 %v7516_v23 }
 0x3d1   :  { %v7543_v15 = vpop.permute.xlu1 %4425 }
 0x3d2   :  { %v1990_v45 = vsel %vm1989_vm3, %v1988_v61, %v4412_v20  ;;  %v2146_v43 = vsel %vm1989_vm3, %v2145_v26, %v4413_v16  ;;  %v4428_v47 = vunpack.i.h.bf16 %v7543_v15  ;;  %v4427_v37 = vunpack.i.l.bf16 %v7543_v15 }
 0x3d3   :  { %v7553_v14 = vpop.permute.xlu0 %4420 }
 0x3d4   :  { %v4423_v23 = vunpack.i.h.bf16 %v7553_v14 }
 0x3d5   :  { %v7565_v34 = vpop.permute.xlu1 %4435 }
 0x3d6   :  { %v4438_v48 = vunpack.i.h.bf16 %v7565_v34  ;;  %v4437_v21 = vunpack.i.l.bf16 %v7565_v34  ;;  %v2072_v34 = vsel %vm1993_vm9, %v2071_v2, %v4417_v55  ;;  %v2540_v2 = vsel %vm1985_vm8, %v2539_v44, %v4428_v47 }
 0x3d7   :  { %v7575_v17 = vpop.permute.xlu0 %4430 }
 0x3d8   :  { %v4433_v46 = vunpack.i.h.bf16 %v7575_v17  ;;  %v4432_v25 = vunpack.i.l.bf16 %v7575_v17  ;;  %v2224_v17 = vsel %vm1993_vm9, %v2223_v30, %v4418_v52  ;;  %v2073_v50 = vsel %vm1995_vm13, %v2072_v34, %v4437_v21 }
 0x3d9   :  { %v7585_v57 = vpop.permute.xlu1 %4445  ;;  %v2225_v54 = vsel %vm1995_vm13, %v2224_v17, %v4438_v48  ;;  %v4422_v52 = vunpack.i.l.bf16 %v7553_v14  ;;  %v2309_v14 = vsel %vm153_vm12, %v2308_v6, %v4402_v60 }
 0x3da   :  { %v1992_v5 = vsel %vm1991_vm2, %v1990_v45, %v4432_v25  ;;  %v2147_v62 = vsel %vm1991_vm2, %v2146_v43, %v4433_v46  ;;  %v4448_v55 = vunpack.i.h.bf16 %v7585_v57  ;;  %v4447_v15 = vunpack.i.l.bf16 %v7585_v57 }
 0x3db   :  { %v7595_v29 = vpop.permute.xlu0 %4440  ;;  %v2461_v25 = vsel %vm153_vm12, %v2460_v8, %v4403_v42  ;;  %v2388_v57 = vsel %vm1985_vm8, %v2387_v4, %v4427_v37 }
 0x3dc   :  { %v4443_v16 = vunpack.i.h.bf16 %v7595_v29  ;;  %v4442_v20 = vunpack.i.l.bf16 %v7595_v29  ;;  %v2310_v29 = vsel %vm157_vm14, %v2309_v14, %v4422_v52  ;;  %v2541_v26 = vsel %vm1987_vm1, %v2540_v2, %v4448_v55 }
 0x3dd   :  { %v4456_v11 = vpop.permute.xlu1 %4455 }
 0x3de   :  { %v4458_v19 = vunpack.i.h.bf16 %v4456_v11  ;;  %v4457_v49 = vunpack.i.l.bf16 %v4456_v11 }
 0x3df   :  { %v4451_v18 = vpop.permute.xlu0 %4450 }
 0x3e0   :  { %v4453_v36 = vunpack.i.h.bf16 %v4451_v18  ;;  %v4452_v58 = vunpack.i.l.bf16 %v4451_v18  ;;  %v2226_v32 = vsel %vm1997_vm15, %v2225_v54, %v4458_v19  ;;  %v2074_v41 = vsel %vm1997_vm15, %v2073_v50, %v4457_v49 }
 0x3e1   :  { %v7625_v10 = vpop.permute.xlu1 %4465  ;;  %v2548_v12 = vrot.slane %v2074_v41, 4  ;;  %v2551_v22 = vrot.slane %v2226_v32, 4  ;;  %v2462_v19 = vsel %vm157_vm14, %v2461_v25, %v4423_v23  ;;  %vm2737_vm14 = vcmask 130052  }
 0x3e2   :  { %v1994_v35 = vsel %vm1993_vm9, %v1992_v5, %v4452_v58  ;;  %v2148_v40 = vsel %vm1993_vm9, %v2147_v62, %v4453_v36  ;;  %v4468_v56 = vunpack.i.h.bf16 %v7625_v10  ;;  %v4467_v21 = vunpack.i.l.bf16 %v7625_v10 }
 0x3e3   :  { %v7635_v24 = vpop.permute.xlu0 %4460  ;;  %v2389_v10 = vsel %vm1987_vm1, %v2388_v57, %v4447_v15  ;;  %v2463_v36 = vsel %vm1650_vm11, %v2462_v19, %v4443_v16 }
 0x3e4   :  { %v4463_v59 = vunpack.i.h.bf16 %v7635_v24  ;;  %v4462_v46 = vunpack.i.l.bf16 %v7635_v24  ;;  %v2311_v24 = vsel %vm1650_vm11, %v2310_v29, %v4442_v20  ;;  %v2390_v34 = vsel %vm1989_vm3, %v2389_v10, %v4467_v21 }
 0x3e5   :  { %v7641_v63 = vpop.permute.xlu1 %4475  ;;  %v2542_v17 = vsel %vm1989_vm3, %v2541_v26, %v4468_v56 }
 0x3e6   :  { %v2312_v45 = vsel %vm1985_vm8, %v2311_v24, %v4462_v46  ;;  %v2464_v43 = vsel %vm1985_vm8, %v2463_v36, %v4463_v59  ;;  %v4478_v50 = vunpack.i.h.bf16 %v7641_v63  ;;  %v4477_v54 = vunpack.i.l.bf16 %v7641_v63  ;;  %vm8645_vm8 = vmmov %vm8641_vm0 }
 0x3e7   :  { %v4471_v1 = vpop.permute.xlu0 %4470 }
 0x3e8   :  { %v4473_v7 = vunpack.i.h.bf16 %v4471_v1  ;;  %v4472_v3 = vunpack.i.l.bf16 %v4471_v1  ;;  %v2313_v8 = vsel %vm1987_vm1, %v2312_v45, %v4477_v54 }
 0x3e9   :  { %v4486_v38 = vpop.permute.xlu1 %4485 }
 0x3ea   :  { %v4488_v33 = vunpack.i.h.bf16 %v4486_v38  ;;  %v4487_v51 = vunpack.i.l.bf16 %v4486_v38  ;;  %v1996_v13 = vsel %vm1995_vm13, %v1994_v35, %v4472_v3  ;;  %v2149_v11 = vsel %vm1995_vm13, %v2148_v40, %v4473_v7 }
 0x3eb   :  { %v4481_v53 = vpop.permute.xlu0 %4480 }
 0x3ec   :  { %v1998_v18 = vsel %vm1997_vm15, %v1996_v13, %v4487_v51  ;;  %v2150_v0 = vsel %vm1997_vm15, %v2149_v11, %v4488_v33  ;;  %v4483_v49 = vunpack.i.h.bf16 %v4481_v53  ;;  %v4482_v61 = vunpack.i.l.bf16 %v4481_v53 }
 0x3ed   :  { %v4496_v27 = vpop.permute.xlu1 %4495  ;;  %v2560_v28 = vsel %vm2559_vm7, %v1998_v18, %v2548_v12  ;;  %v2561_v39 = vsel %vm2559_vm7, %v2150_v0, %v2551_v22  ;;  %v2465_v53 = vsel %vm1987_vm1, %v2464_v43, %v4478_v50 }
 0x3ee   :  { %4087 = vmatprep.mubr.f32.mxu1 %v2560_v28  ;;  %v4498_v5 = vunpack.i.h.bf16 %v4496_v27  ;;  %v4497_v62 = vunpack.i.l.bf16 %v4496_v27  ;;  %v2391_v32 = vsel %vm1991_vm2, %v2390_v34, %v4482_v61  ;;  %v2543_v7 = vsel %vm1991_vm2, %v2542_v17, %v4483_v49 }
 0x3ef   :  { %v4491_v48 = vpop.permute.xlu0 %4490  ;;  %4088 = vmatmul.mubr.f32.vlgmr.msra.gmra.mrb[0].mxu1 %v2561_v39 }
 0x3f0   :  { %v4493_v31 = vunpack.i.h.bf16 %v4491_v48  ;;  %v4492_v9 = vunpack.i.l.bf16 %v4491_v48  ;;  %v2392_v13 = vsel %vm1993_vm9, %v2391_v32, %v4497_v62  ;;  %v2544_v63 = vsel %vm1993_vm9, %v2543_v7, %v4498_v5 }
 0x3f1   :  { %v4506_v30 = vpop.permute.xlu1 %4505 }
 0x3f2   :  { %v4508_v3 = vunpack.i.h.bf16 %v4506_v30  ;;  %v4507_v41 = vunpack.i.l.bf16 %v4506_v30  ;;  %v2314_v60 = vsel %vm1989_vm3, %v2313_v8, %v4492_v9  ;;  %v2466_v18 = vsel %vm1989_vm3, %v2465_v53, %v4493_v31  ;;  %vm8646_vm3 = vmmov %vm8641_vm0 }
 0x3f3   :  { %v4501_v58 = vpop.permute.xlu0 %4500  ;;  %v2704_v53 = vlaneseq }
 0x3f4   :  { %v4503_v33 = vunpack.i.h.bf16 %v4501_v58  ;;  %v4502_v51 = vunpack.i.l.bf16 %v4501_v58  ;;  %v2393_v12 = vsel %vm1995_vm13, %v2392_v13, %v4507_v41  ;;  %v2545_v22 = vsel %vm1995_vm13, %v2544_v63, %v4508_v3 }
 0x3f5   :  { %v4516_v1 = vpop.permute.xlu1 %4515 }
 0x3f6   :  { %v4518_v35 = vunpack.i.h.bf16 %v4516_v1  ;;  %v4517_v40 = vunpack.i.l.bf16 %v4516_v1  ;;  %v2315_v27 = vsel %vm1991_vm2, %v2314_v60, %v4502_v51  ;;  %v2467_v28 = vsel %vm1991_vm2, %v2466_v18, %v4503_v33 }
 0x3f7   :  { %v4511_v38 = vpop.permute.xlu0 %4510 }
 0x3f8   :  { %v4513_v11 = vunpack.i.h.bf16 %v4511_v38  ;;  %v4512_v6 = vunpack.i.l.bf16 %v4511_v38  ;;  %v2394_v0 = vsel %vm1997_vm15, %v2393_v12, %v4517_v40  ;;  %v2546_v47 = vsel %vm1997_vm15, %v2545_v22, %v4518_v35  ;;  %v2665_v22 = vld [vmem:[%s8526_s2 + $0x1] sm:$0x1] }
 0x3f9   :  { %v4526_v42 = vpop.permute.xlu1 %4525  ;;  %v2554_v16 = vrot.slane %v2394_v0, 4  ;;  %v2557_v48 = vrot.slane %v2546_v47, 4  ;;  %v2705_v12 = vshrl.u32 %v2704_v53, 7  ;;  %v2666_v0 = vld [vmem:[%s8526_s2 + $0x2] sm:$0x1] }
 0x3fa   :  { %v2316_v44 = vsel %vm1993_vm9, %v2315_v27, %v4512_v6  ;;  %v2468_v23 = vsel %vm1993_vm9, %v2467_v28, %v4513_v11  ;;  %v4528_v52 = vunpack.i.h.bf16 %v4526_v42  ;;  %v4527_v55 = vunpack.i.l.bf16 %v4526_v42  ;;  %vm8648_vm9 = vmmov %vm8641_vm0 }
 0x3fb   :  { %v4521_v37 = vpop.permute.xlu0 %4520  ;;  %v7732_v42 = vsub.s32 0, %v2705_v12 }
 0x3fc   :  { %v4523_v39 = vunpack.i.h.bf16 %v4521_v37  ;;  %v4522_v4 = vunpack.i.l.bf16 %v4521_v37 }
 0x3fe   :  { %v2317_v15 = vsel %vm1995_vm13, %v2316_v44, %v4522_v4  ;;  %v2469_v20 = vsel %vm1995_vm13, %v2468_v23, %v4523_v39 }
 0x3ff   :  { %v2318_v56 = vsel %vm1997_vm15, %v2317_v15, %v4527_v55  ;;  %v2470_v21 = vsel %vm1997_vm15, %v2469_v20, %v4528_v52  ;;  %vm3114_vm15 = vcmask 1042432  }
 0x400   :  { %v2562_v59 = vsel %vm2559_vm7, %v2318_v56, %v2554_v16  ;;  %v2563_v46 = vsel %vm2559_vm7, %v2470_v21, %v2557_v48 }
 0x401   :  { %4090 = vmatprep.mubr.f32.mxu1 %v2562_v59 }
 0x402   :  { %4091 = vmatmul.mubr.f32.gmra.mrb[2].mxu1 %v2563_v46 }
 0x4c2   :  { %v4089_v14 = vpop.f32.mrb[0].mxu1 }
 0x4c3   :  { %v2668_v25 = vsel %vm137_vm4, %v4089_v14, 0.0  ;;  %v2682_v57 = vmul.f32 %v4089_v14, %v4089_v14  ;;  %v2646_v2 = vpop.f32.mrb[1].mxu1 }
 0x4c4   :  { %v2667_v30 = vsel %vm137_vm4, %v2646_v2, 0.0  ;;  %v2681_v29 = vmul.f32 %v2646_v2, %v2646_v2 }
 0x4c5   :  { %v2686_v19 = vsel %vm137_vm4, %v2682_v57, 0.0  ;;  %v2669_v49 = vadd.f32 %v2668_v25, %v2667_v30 }
 0x4c6   :  { %v2685_v61 = vsel %vm137_vm4, %v2681_v29, 0.0  ;;  %v7753_v29 = vld [vmem:[#allocation3 + $0x1e] sm:$0x3f] }
 0x4c7   :  { %v2687_v10 = vadd.f32 %v2686_v19, %v2685_v61 }
 0x4d5   :  { %v4092_v26 = vpop.f32.mrb[2].mxu1 }
 0x4d6   :  { %v2656_v24 = vpop.f32.mrb[3].mxu1  ;;  %v2684_v36 = vmul.f32 %v4092_v26, %v4092_v26  ;;  %v2672_v45 = vsel %vm137_vm4, %v4092_v26, 0.0 }
 0x4d7   :  { %v2670_v58 = vsel %vm137_vm4, %v2656_v24, 0.0  ;;  %v2683_v34 = vmul.f32 %v2656_v24, %v2656_v24 }
 0x4d8   :  { %v2671_v17 = vadd.f32 %v2670_v58, %v2669_v49  ;;  %v2690_v5 = vsel %vm137_vm4, %v2684_v36, 0.0 }
 0x4d9   :  { %v2688_v43 = vsel %vm137_vm4, %v2683_v34, 0.0 }
 0x4da   :  { %v2673_v50 = vadd.f32 %v2672_v45, %v2671_v17  ;;  %v2689_v54 = vadd.f32 %v2688_v43, %v2687_v10  ;;  %v7774_v17 = vld [vmem:[#allocation3] sm:$0x3f] }
 0x4dc   :  { %v2674_v62 = vrot.slane %v2673_v50, 4  ;;  %v2691_v1 = vadd.f32 %v2690_v5, %v2689_v54  ;;  %v2750_v54 = vrot.slane %v7774_v17, 1 }
 0x4de   :  { %v2675_v32 = vadd.f32 %v2674_v62, %v2673_v50  ;;  %v2692_v7 = vrot.slane %v2691_v1, 4  ;;  %v7783_v50 = vld [vmem:[#allocation3 + $0x42] sm:$0x3f] }
 0x4e0   :  { %v2676_v3 = vrot.slane %v2675_v32, 2  ;;  %v2693_v41 = vadd.f32 %v2692_v7, %v2691_v1 }
 0x4e2   :  { %v2677_v31 = vadd.f32 %v2676_v3, %v2675_v32  ;;  %v2694_v9 = vrot.slane %v2693_v41, 2 }
 0x4e4   :  { %v2678_v35 = vrot.slane %v2677_v31, 1  ;;  %v2695_v40 = vadd.f32 %v2694_v9, %v2693_v41 }
 0x4e6   :  { %v2679_v38 = vadd.f32 %v2678_v35, %v2677_v31  ;;  %v2696_v33 = vrot.slane %v2695_v40, 1 }
 0x4e8   :  { %v2680_v51 = vmul.f32 0.03125, %v2679_v38  ;;  %v2697_v13 = vadd.f32 %v2696_v33, %v2695_v40  ;;  %v7808_v38 = vld [vmem:[#allocation3 + $0x24] sm:$0x3f] }
 0x4ea   :  { %v2698_v63 = vmul.f32 0.03125, %v2697_v13  ;;  %v2699_v11 = vmul.f32 %v2680_v51, %v2680_v51 }
 0x4ec   :  { %v2700_v6 = vsub.f32 %v2698_v63, %v2699_v11  ;;  %v3143_v63 = vld [vmem:[%s8525_s1 + $0x140] sm:$0xff]  ;;  %v3144_v11 = vld [vmem:[%s8525_s1 + $0x148] sm:$0xff] }
 0x4ed   :  { %v4141_v12 = vpack.c.bf16 %v3144_v11, %v3143_v63  ;;  %v3152_v63 = vld [vmem:[%s8525_s1 + $0x188] sm:$0xff]  ;;  %v3135_v11 = vld [vmem:[%s8525_s1 + $0x100] sm:$0xff] }
 0x4ee   :  { %v2701_v8 = vadd.f32 1e-05, %v2700_v6  ;;  %v3127_v6 = vld [vmem:[%s8525_s1 + $0xc0] sm:$0xff] }
 0x4ef   :  { %4142 = vmatprep.subr.bf16.mxu0 %v4141_v12 }
 0x4f0   :  { %4844 = vrsqrt.f32 %v2701_v8  ;;  %v2920_v8 = vrot.slane %v7808_v38, 1 }
 0x4fa   :  { %v4845_v60 = vpop.eup %4844 }
 0x4fb   :  { %v2703_v18 = vmul.f32 %v4845_v60, %v2665_v22  ;;  %v3128_v22 = vld [vmem:[%s8525_s1 + $0xc8] sm:$0xff] }
 0x4fc   :  { %v4143_v60 = vpack.c.bf16 %v3128_v22, %v3127_v6  ;;  %v3136_v22 = vld [vmem:[%s8525_s1 + $0x108] sm:$0xff] }
 0x4fd   :  { %v2707_v47 = vrot.slane %v2703_v18, %v7732_v42  ;;  %v2712_v37 = vmul.f32 %v2703_v18, %v2680_v51 }
 0x4fe   :  { %4144 = vmatpush3.bf16.msra.mxu0 %v4143_v60  ;;  %v4159_v60 = vpack.c.bf16 %v3136_v22, %v3135_v11 }
 0x4ff   :  { %v2708_v27 = vmul.f32 %v2707_v47, %v2646_v2  ;;  %v2709_v28 = vmul.f32 %v4089_v14, %v2707_v47  ;;  %v2710_v39 = vmul.f32 %v2707_v47, %v2656_v24  ;;  %v2711_v4 = vmul.f32 %v4092_v26, %v2707_v47 }
 0x500   :  { %v2713_v44 = vsub.f32 %v2666_v0, %v2712_v37  ;;  %v2754_v0 = vrot.slane %v7774_v17, 2  ;;  %v3145_v37 = vld [vmem:[%s8525_s1 + $0x150] sm:$0xff] }
 0x502   :  { %v2717_v23 = vrot.slane %v2713_v44, %v7732_v42  ;;  %v3130_v44 = vld [vmem:[%s8525_s1 + $0xd8] sm:$0xff] }
 0x504   :  { %v2718_v52 = vadd.f32 %v2717_v23, %v2708_v27  ;;  %v2719_v55 = vadd.f32 %v2717_v23, %v2709_v28  ;;  %v2720_v15 = vadd.f32 %v2717_v23, %v2710_v39  ;;  %v2721_v16 = vadd.f32 %v2717_v23, %v2711_v4  ;;  %v3146_v27 = vld [vmem:[%s8525_s1 + $0x158] sm:$0xff]  ;;  %v3129_v28 = vld [vmem:[%s8525_s1 + $0xd0] sm:$0xff] }
 0x505   :  { %v4145_v4 = vpack.c.bf16 %v3146_v27, %v3145_v37  ;;  %v4147_v23 = vpack.c.bf16 %v3130_v44, %v3129_v28  ;;  %v3137_v37 = vld [vmem:[%s8525_s1 + $0x110] sm:$0xff]  ;;  %v2904_v28 = vrot.slane %v7753_v29, 3 }
 0x506   :  { %v2722_v20 = vmax.f32 %v2718_v52, 0.0  ;;  %v2723_v48 = vmax.f32 %v2719_v55, 0.0  ;;  %v2724_v56 = vmax.f32 %v2720_v15, 0.0  ;;  %v2725_v21 = vmax.f32 %v2721_v16, 0.0  ;;  %v3147_v52 = vld [vmem:[%s8525_s1 + $0x160] sm:$0xff]  ;;  %v3148_v55 = vld [vmem:[%s8525_s1 + $0x168] sm:$0xff] }
 0x507   :  { %4146 = vmatprep.subr.bf16.mxu0 %v4145_v4  ;;  %v3131_v15 = vld [vmem:[%s8525_s1 + $0xe0] sm:$0xff]  ;;  %v3138_v4 = vld [vmem:[%s8525_s1 + $0x118] sm:$0xff] }
 0x508   :  { %2736 = vst.msk [vmem:[#allocation3 + $0x7] sm:$0xf] %vm2735_vm10, %v2722_v20  ;;  %2739 = vst.msk [vmem:[#allocation3 + $0x13] sm:$0xf] %vm2735_vm10, %v2723_v48  ;;  %4148 = vmatpush3.bf16.msra.mxu0 %v4147_v23  ;;  %v4163_v44 = vpack.c.bf16 %v3138_v4, %v3137_v37  ;;  %v2928_v23 = vrot.slane %v7808_v38, 3 }
 0x509   :  { %2738 = vst.msk [vmem:[#allocation3 + $0x9] sm:$0xf0] %vm2737_vm14, %v2722_v20  ;;  %2740 = vst.msk [vmem:[#allocation3 + $0x15] sm:$0xf0] %vm2737_vm14, %v2723_v48  ;;  %v2758_v20 = vrot.slane %v7774_v17, 3 }
 0x50a   :  { %2741 = vst.msk [vmem:[#allocation3 + $0x2b] sm:$0xf] %vm2735_vm10, %v2724_v56  ;;  %2743 = vst.msk [vmem:[#allocation3 + $0x37] sm:$0xf] %vm2735_vm10, %v2725_v21 }
 0x50b   :  { %2742 = vst.msk [vmem:[#allocation3 + $0x2d] sm:$0xf0] %vm2737_vm14, %v2724_v56  ;;  %2744 = vst.msk [vmem:[#allocation3 + $0x39] sm:$0xf0] %vm2737_vm14, %v2725_v21  ;;  %v4149_v56 = vpack.c.bf16 %v3148_v55, %v3147_v52  ;;  %v3132_v21 = vld [vmem:[%s8525_s1 + $0xe8] sm:$0xff] }
 0x50c   :  { %v3156_v55 = vld [vmem:[%s8525_s1 + $0x1a8] sm:$0xff]  ;;  %vm8649_vm10 = vmmov %vm8641_vm0 }
 0x50d   :  { %4150 = vmatprep.subr.bf16.mxu0 %v4149_v56  ;;  %vm8650_vm14 = vmmov %vm8641_vm0 }
 0x50f   :  { %v7743_v14 = vld [vmem:[#allocation3 + $0x6] sm:$0x3f]  ;;  %v7749_v2 = vld [vmem:[#allocation3 + $0x12] sm:$0x3f] }
 0x510   :  { %v7739_v59 = vld [vmem:[#allocation3 + $0xc] sm:$0x3f]  ;;  %v7741_v46 = vld [vmem:[#allocation3 + $0x18] sm:$0x3f]  ;;  %v2770_v19 = vrot.slane %v7743_v14, 2  ;;  %v2799_v49 = vrot.slane %v7749_v2, 2  ;;  %v4534_v61 = vpack.i.bf16 %v7749_v2, %v7753_v29 }
 0x511   :  { %v4529_v25 = vpack.i.bf16 %v7739_v59, %v7741_v46  ;;  %v7747_v57 = vld [vmem:[#allocation3 + $0x36] sm:$0x3f]  ;;  %v7765_v26 = vld [vmem:[#allocation3 + $0x2a] sm:$0x3f]  ;;  %v2774_v36 = vrot.slane %v7743_v14, 3  ;;  %v2803_v58 = vrot.slane %v7749_v2, 3 }
 0x512   :  { %v4539_v30 = vpack.i.bf16 %v7747_v57, %v7743_v14  ;;  %v4559_v10 = vpack.i.bf16 %v2770_v19, %v2799_v49  ;;  %v7767_v24 = vld [vmem:[#allocation3 + $0x3c] sm:$0x3f]  ;;  %v7772_v34 = vld [vmem:[#allocation3 + $0x30] sm:$0x3f]  ;;  %v2766_v1 = vrot.slane %v7743_v14, 1  ;;  %v2795_v32 = vrot.slane %v7749_v2, 1 }
 0x513   :  { %4530 = vrot.lane.b32.xlu0 %v4529_v25, %s4879_s0  ;;  %v4544_v45 = vpack.i.bf16 %v7767_v24, %v7765_v26  ;;  %v4569_v43 = vpack.i.bf16 %v2774_v36, %v2803_v58  ;;  %v2949_v5 = vrot.slane %v7772_v34, 1  ;;  %v4549_v62 = vpack.i.bf16 %v7783_v50, %v7772_v34 }
 0x514   :  { %4540 = vrot.lane.b32.xlu1 %v4539_v30, %s4879_s0  ;;  %v2787_v3 = vrot.slane %v7739_v59, 3  ;;  %v2864_v41 = vrot.slane %v7741_v46, 3  ;;  %v4554_v31 = vpack.i.bf16 %v2766_v1, %v2795_v32  ;;  %v2779_v9 = vrot.slane %v7739_v59, 1 }
 0x515   :  { %v4579_v7 = vpack.i.bf16 %v2949_v5, %v2750_v54  ;;  %v2856_v35 = vrot.slane %v7741_v46, 1  ;;  %v2783_v51 = vrot.slane %v7739_v59, 2  ;;  %v2860_v13 = vrot.slane %v7741_v46, 2 }
 0x516   :  { %v7805_v40 = vpack.i.bf16 %v2787_v3, %v2864_v41  ;;  %v2965_v53 = vrot.slane %v7747_v57, 1  ;;  %v2953_v47 = vrot.slane %v7772_v34, 2  ;;  %v2957_v48 = vrot.slane %v7772_v34, 3  ;;  %v3134_v3 = vld [vmem:[%s8525_s1 + $0xf8] sm:$0xff] }
 0x517   :  { %4535 = vrot.lane.b32.xlu0 %v4534_v61, %s4879_s0  ;;  %v4564_v33 = vpack.i.bf16 %v2779_v9, %v2856_v35  ;;  %v4574_v18 = vpack.i.bf16 %v2783_v51, %v2860_v13  ;;  %v2924_v25 = vrot.slane %v7808_v38, 2  ;;  %v2969_v30 = vrot.slane %v7747_v57, 2  ;;  %v3151_v13 = vld [vmem:[%s8525_s1 + $0x180] sm:$0xff] }
 0x518   :  { %4560 = vrot.lane.b32.xlu1 %v4559_v10, %s4870_s19  ;;  %v4599_v39 = vpack.i.bf16 %v2965_v53, %v2920_v8  ;;  %v4589_v16 = vpack.i.bf16 %v2953_v47, %v2754_v0  ;;  %v4151_v61 = vpack.c.bf16 %v3132_v21, %v3131_v15  ;;  %v3149_v10 = vld [vmem:[%s8525_s1 + $0x170] sm:$0xff]  ;;  %v4604_v54 = vpack.i.bf16 %v2957_v48, %v2758_v20  ;;  %v3154_v0 = vld [vmem:[%s8525_s1 + $0x198] sm:$0xff]  ;;  %v3139_v15 = vld [vmem:[%s8525_s1 + $0x120] sm:$0xff] }
 0x519   :  { %v4619_v41 = vpack.i.bf16 %v2969_v30, %v2924_v25  ;;  %v3026_v51 = vrot.slane %v7767_v24, 1  ;;  %v2940_v6 = vrot.slane %v7765_v26, 2  ;;  %v3030_v8 = vrot.slane %v7767_v24, 2  ;;  %v3140_v25 = vld [vmem:[%s8525_s1 + $0x128] sm:$0xff] }
 0x51a   :  { %4152 = vmatpush3.bf16.msra.mxu0 %v4151_v61  ;;  %v4157_v12 = vpack.c.bf16 %v3152_v63, %v3151_v13  ;;  %v2973_v52 = vrot.slane %v7747_v57, 3  ;;  %v2944_v20 = vrot.slane %v7765_v26, 3  ;;  %v3034_v56 = vrot.slane %v7767_v24, 3 }
 0x51b   :  { %4545 = vrot.lane.b32.xlu0 %v4544_v45, %s4879_s0  ;;  %v3150_v45 = vld [vmem:[%s8525_s1 + $0x178] sm:$0xff]  ;;  %v4644_v27 = vpack.i.bf16 %v3030_v8, %v2940_v6  ;;  %v4167_v61 = vpack.c.bf16 %v3140_v25, %v3139_v15 }
 0x51c   :  { %4570 = vrot.lane.b32.xlu1 %v4569_v43, %s4874_s14  ;;  %v3133_v43 = vld [vmem:[%s8525_s1 + $0xf0] sm:$0xff] }
 0x51d   :  { %v4155_v9 = vpack.c.bf16 %v3134_v3, %v3133_v43  ;;  %v3158_v43 = vld [vmem:[%s8525_s1 + $0x1b8] sm:$0xff]  ;;  %v4649_v3 = vpack.i.bf16 %v2965_v53, %v2766_v1  ;;  %v3070_v53 = vrot.slane %v7783_v50, 2 }
 0x51f   :  { %4550 = vrot.lane.b32.xlu0 %v4549_v62, %s4879_s0  ;;  %v2896_v62 = vrot.slane %v7753_v29, 1 }
 0x520   :  { %4580 = vrot.lane.b32.xlu1 %v4579_v7, %s4866_s6  ;;  %v4153_v7 = vpack.c.bf16 %v3150_v45, %v3149_v10  ;;  %v4639_v10 = vpack.i.bf16 %v2973_v52, %v2928_v23  ;;  %v4659_v45 = vpack.i.bf16 %v3034_v56, %v2944_v20 }
 0x521   :  { %v4614_v35 = vpack.i.bf16 %v2795_v32, %v2896_v62  ;;  %v3142_v62 = vld [vmem:[%s8525_s1 + $0x138] sm:$0xff] }
 0x522   :  { %4154 = vmatprep.subr.bf16.mxu0 %v4153_v7 }
 0x523   :  { %4555 = vrot.lane.b32.xlu0 %v4554_v31, %s4866_s6  ;;  %v2900_v31 = vrot.slane %v7753_v29, 2  ;;  %4156 = vmatpush3.bf16.msra.mxu0 %v4155_v9  ;;  %v3155_v29 = vld [vmem:[%s8525_s1 + $0x1a0] sm:$0xff]  ;;  %v3066_v9 = vrot.slane %v7783_v50, 1 }
 0x524   :  { %4585 = vrot.lane.b32.xlu1 %v7805_v40, %s4874_s14  ;;  %4158 = vmatprep.subr.bf16.mxu0 %v4157_v12  ;;  %v4165_v21 = vpack.c.bf16 %v3156_v55, %v3155_v29 }
 0x525   :  { %v4634_v32 = vpack.i.bf16 %v2799_v49, %v2900_v31  ;;  %v3153_v49 = vld [vmem:[%s8525_s1 + $0x190] sm:$0xff]  ;;  %v4674_v31 = vpack.i.bf16 %v2973_v52, %v2774_v36  ;;  %v4684_v1 = vpack.i.bf16 %v3066_v9, %v2949_v5  ;;  %v4694_v36 = vpack.i.bf16 %v3070_v53, %v2953_v47 }
 0x527   :  { %4565 = vrot.lane.b32.xlu0 %v4564_v33, %s4866_s6  ;;  %4160 = vmatpush3.bf16.msra.mxu0 %v4159_v60 }
 0x528   :  { %4595 = vrot.lane.b32.xlu1 %v4564_v33, %s4881_s24  ;;  %v2936_v33 = vrot.slane %v7765_v26, 1 }
 0x52b   :  { %4575 = vrot.lane.b32.xlu0 %v4574_v18, %s4870_s19 }
 0x52c   :  { %4600 = vrot.lane.b32.xlu1 %v4599_v39, %s4866_s6  ;;  %v4161_v39 = vpack.c.bf16 %v3154_v0, %v3153_v49 }
 0x52e   :  { %4162 = vmatprep.subr.bf16.mxu0 %v4161_v39 }
 0x52f   :  { %4590 = vrot.lane.b32.xlu0 %v4589_v16, %s4870_s19  ;;  %4164 = vmatpush3.bf16.msra.mxu0 %v4163_v44  ;;  %v4654_v16 = vpack.i.bf16 %v2803_v58, %v2904_v28  ;;  %v3157_v58 = vld [vmem:[%s8525_s1 + $0x1b0] sm:$0xff] }
 0x530   :  { %4610 = vrot.lane.b32.xlu1 %v4574_v18, %s4883_s7  ;;  %v4624_v18 = vpack.i.bf16 %v3026_v51, %v2936_v33  ;;  %4166 = vmatprep.subr.bf16.mxu0 %v4165_v21 }
 0x533   :  { %4605 = vrot.lane.b32.xlu0 %v4604_v54, %s4874_s14  ;;  %4168 = vmatpush3.bf16.msra.mxu0 %v4167_v61  ;;  %v3141_v54 = vld [vmem:[%s8525_s1 + $0x130] sm:$0xff] }
 0x534   :  { %4620 = vrot.lane.b32.xlu1 %v4619_v41, %s4870_s19  ;;  %v4171_v7 = vpack.c.bf16 %v3142_v62, %v3141_v54  ;;  %v4664_v41 = vpack.i.bf16 %v2969_v30, %v2770_v19  ;;  %v3074_v19 = vrot.slane %v7783_v50, 3 }
 0x536   :  { %v4699_v30 = vpack.i.bf16 %v3074_v19, %v2957_v48 }
 0x537   :  { %4615 = vrot.lane.b32.xlu0 %v4614_v35, %s4881_s24 }
 0x538   :  { %4635 = vrot.lane.b32.xlu1 %v4634_v32, %s4883_s7 }
 0x53b   :  { %4625 = vrot.lane.b32.xlu0 %v4624_v18, %s4866_s6 }
 0x53c   :  { %4645 = vrot.lane.b32.xlu1 %v4644_v27, %s4870_s19 }
 0x53f   :  { %4630 = vrot.lane.b32.xlu0 %v7805_v40, %s4885_s27  ;;  %v4169_v40 = vpack.c.bf16 %v3158_v43, %v3157_v58 }
 0x540   :  { %4655 = vrot.lane.b32.xlu1 %v4654_v16, %s4885_s27 }
 0x541   :  { %4170 = vmatprep.subr.bf16.mxu0 %v4169_v40 }
 0x542   :  { %4172 = vmatpush3.bf16.msra.mxu0 %v4171_v7 }
 0x543   :  { %4640 = vrot.lane.b32.xlu0 %v4639_v10, %s4874_s14 }
 0x544   :  { %4660 = vrot.lane.b32.xlu1 %v4659_v45, %s4874_s14 }
 0x547   :  { %4650 = vrot.lane.b32.xlu0 %v4649_v3, %s4881_s24 }
 0x548   :  { %4670 = vrot.lane.b32.xlu1 %v4624_v18, %s4881_s24 }
 0x54b   :  { %4665 = vrot.lane.b32.xlu0 %v4664_v41, %s4883_s7 }
 0x54c   :  { %4675 = vrot.lane.b32.xlu1 %v4674_v31, %s4885_s27 }
 0x54f   :  { %4680 = vrot.lane.b32.xlu0 %v4644_v27, %s4883_s7 }
 0x550   :  { %4685 = vrot.lane.b32.xlu1 %v4684_v1, %s4881_s24 }
 0x553   :  { %4690 = vrot.lane.b32.xlu0 %v4659_v45, %s4885_s27 }
 0x554   :  { %4695 = vrot.lane.b32.xlu1 %v4694_v36, %s4883_s7 }
 0x557   :  { %4700 = vrot.lane.b32.xlu0 %v4699_v30, %s4885_s27 }
 0x585   :  { %v7988_v5 = vpop.permute.xlu0 %4530 }
 0x586   :  { %v7990_v35 = vpop.permute.xlu1 %4540  ;;  %v4533_v55 = vunpack.i.h.bf16 %v7988_v5  ;;  %v4532_v15 = vunpack.i.l.bf16 %v7988_v5 }
 0x587   :  { %v4543_v16 = vunpack.i.h.bf16 %v7990_v35  ;;  %v4542_v58 = vunpack.i.l.bf16 %v7990_v35 }
 0x589   :  { %v7992_v33 = vpop.permute.xlu0 %4535 }
 0x58a   :  { %v4561_v51 = vpop.permute.xlu1 %4560  ;;  %v4538_v43 = vunpack.i.h.bf16 %v7992_v33 }
 0x58b   :  { %v4563_v23 = vunpack.i.h.bf16 %v4561_v51  ;;  %v4562_v52 = vunpack.i.l.bf16 %v4561_v51 }
 0x58d   :  { %v7994_v50 = vpop.permute.xlu0 %4545 }
 0x58e   :  { %v4571_v13 = vpop.permute.xlu1 %4570  ;;  %v4548_v51 = vunpack.i.h.bf16 %v7994_v50 }
 0x58f   :  { %v4573_v21 = vunpack.i.h.bf16 %v4571_v13  ;;  %v4572_v25 = vunpack.i.l.bf16 %v4571_v13 }
 0x591   :  { %v7996_v47 = vpop.permute.xlu0 %4550 }
 0x592   :  { %v7998_v63 = vpop.permute.xlu1 %4580 }
 0x593   :  { %v4583_v62 = vunpack.i.h.bf16 %v7998_v63  ;;  %v4582_v41 = vunpack.i.l.bf16 %v7998_v63 }
 0x595   :  { %v4556_v11 = vpop.permute.xlu0 %4555 }
 0x596   :  { %v4586_v32 = vpop.permute.xlu1 %4585  ;;  %v4558_v60 = vunpack.i.h.bf16 %v4556_v11  ;;  %v4557_v18 = vunpack.i.l.bf16 %v4556_v11  ;;  %v4547_v11 = vunpack.i.l.bf16 %v7994_v50 }
 0x597   :  { %v4587_v54 = vunpack.i.l.bf16 %v4586_v32  ;;  %v4588_v7 = vunpack.i.h.bf16 %v4586_v32  ;;  %v2984_v32 = vsel %vm137_vm4, %v7772_v34, %v4583_v62 }
 0x598   :  { %v2868_v27 = vsel %vm137_vm4, %v7743_v14, %v4558_v60  ;;  %v2875_v28 = vsel %vm137_vm4, %v7749_v2, %v4557_v18 }
 0x599   :  { %v4566_v6 = vpop.permute.xlu0 %4565  ;;  %v2869_v20 = vsel %vm8645_vm8, %v2868_v27, %v4563_v23  ;;  %v2876_v14 = vsel %vm8646_vm3, %v2875_v28, %v4562_v52  ;;  %vm8651_vm8 = vmmov %vm8641_vm0 }
 0x59a   :  { %v8000_v48 = vpop.permute.xlu1 %4595  ;;  %v4567_v0 = vunpack.i.l.bf16 %v4566_v6  ;;  %v4568_v39 = vunpack.i.h.bf16 %v4566_v6  ;;  %v2877_v3 = vsel %vm153_vm12, %v2876_v14, %v4572_v25  ;;  %vm8652_vm3 = vmmov %vm8641_vm0 }
 0x59b   :  { %v4598_v53 = vunpack.i.h.bf16 %v8000_v48  ;;  %v4597_v19 = vunpack.i.l.bf16 %v8000_v48  ;;  %v2878_v13 = vsel %vm1650_vm11, %v2877_v3, %v4532_v15 }
 0x59c   :  { %v2908_v2 = vsel %vm137_vm4, %v7741_v46, %v4567_v0  ;;  %v2814_v61 = vsel %vm137_vm4, %v7739_v59, %v4568_v39  ;;  %v2870_v46 = vsel %vm153_vm12, %v2869_v20, %v4573_v21  ;;  %v4537_v59 = vunpack.i.l.bf16 %v7992_v33 }
 0x59d   :  { %v4576_v8 = vpop.permute.xlu0 %4575  ;;  %v2871_v33 = vsel %vm1650_vm11, %v2870_v46, %v4533_v55  ;;  %v2879_v39 = vsel %vm1987_vm1, %v2878_v13, %v4597_v19 }
 0x59e   :  { %v8002_v12 = vpop.permute.xlu1 %4600  ;;  %v4577_v4 = vunpack.i.l.bf16 %v4576_v8  ;;  %v4578_v29 = vunpack.i.h.bf16 %v4576_v8  ;;  %v2807_v8 = vsel %vm137_vm4, %v7774_v17, %v4582_v41  ;;  %v2872_v28 = vsel %vm1987_vm1, %v2871_v33, %v4598_v53 }
 0x59f   :  { %v4603_v52 = vunpack.i.h.bf16 %v8002_v12  ;;  %v4602_v15 = vunpack.i.l.bf16 %v8002_v12 }
 0x5a0   :  { %v2909_v10 = vsel %vm8647_vm5, %v2908_v2, %v4577_v4  ;;  %v2815_v40 = vsel %vm8648_vm9, %v2814_v61, %v4578_v29  ;;  %vm8653_vm5 = vmmov %vm8641_vm0  ;;  %vm3120_vm9 = vcmask 1040384  }
 0x5a1   :  { %v8004_v22 = vpop.permute.xlu0 %4590  ;;  %v2910_v31 = vsel %vm153_vm12, %v2909_v10, %v4587_v54  ;;  %v2816_v36 = vsel %vm153_vm12, %v2815_v40, %v4588_v7 }
 0x5a2   :  { %v8006_v49 = vpop.permute.xlu1 %4610  ;;  %v2911_v48 = vsel %vm1650_vm11, %v2910_v31, %v4537_v59  ;;  %v2817_v18 = vsel %vm1650_vm11, %v2816_v36, %v4538_v43  ;;  %v4593_v20 = vunpack.i.h.bf16 %v8004_v22  ;;  %v3045_v31 = vsel %vm137_vm4, %v7747_v57, %v4603_v52 }
 0x5a3   :  { %v4612_v63 = vunpack.i.l.bf16 %v8006_v49 }
 0x5a5   :  { %v8008_v37 = vpop.permute.xlu0 %4605  ;;  %v2880_v29 = vsel %vm1991_vm2, %v2879_v39, %v4612_v63 }
 0x5a6   :  { %v8014_v44 = vpop.permute.xlu1 %4620  ;;  %v4607_v43 = vunpack.i.l.bf16 %v8008_v37 }
 0x5a7   :  { %v4623_v3 = vunpack.i.h.bf16 %v8014_v44 }
 0x5a9   :  { %v4616_v56 = vpop.permute.xlu0 %4615 }
 0x5aa   :  { %v4636_v45 = vpop.permute.xlu1 %4635  ;;  %v4617_v9 = vunpack.i.l.bf16 %v4616_v56  ;;  %v4618_v30 = vunpack.i.h.bf16 %v4616_v56  ;;  %v4592_v56 = vunpack.i.l.bf16 %v8004_v22  ;;  %v4613_v22 = vunpack.i.h.bf16 %v8006_v49 }
 0x5ab   :  { %v4637_v6 = vunpack.i.l.bf16 %v4636_v45  ;;  %v4638_v60 = vunpack.i.h.bf16 %v4636_v45  ;;  %v4608_v45 = vunpack.i.h.bf16 %v8008_v37  ;;  %v4622_v37 = vunpack.i.l.bf16 %v8014_v44 }
 0x5ac   :  { %v2912_v0 = vsel %vm1987_vm1, %v2911_v48, %v4617_v9  ;;  %v2818_v4 = vsel %vm1987_vm1, %v2817_v18, %v4618_v30  ;;  %v2977_v49 = vsel %vm137_vm4, %v7808_v38, %v4602_v15  ;;  %v2985_v9 = vsel %vm8641_vm0, %v2984_v32, %v4593_v20 }
 0x5ad   :  { %v8035_v1 = vpop.permute.xlu0 %4625  ;;  %v2913_v14 = vsel %vm1991_vm2, %v2912_v0, %v4637_v6  ;;  %v2819_v10 = vsel %vm1991_vm2, %v2818_v4, %v4638_v60  ;;  %v2986_v44 = vsel %vm153_vm12, %v2985_v9, %v4608_v45  ;;  %v2873_v57 = vsel %vm1991_vm2, %v2872_v28, %v4613_v22 }
 0x5ae   :  { %v8040_v5 = vpop.permute.xlu1 %4645  ;;  %v4628_v62 = vunpack.i.h.bf16 %v8035_v1  ;;  %v4627_v7 = vunpack.i.l.bf16 %v8035_v1  ;;  %v2808_v1 = vsel %vm8649_vm10, %v2807_v8, %v4592_v56  ;;  %v4553_v32 = vunpack.i.h.bf16 %v7996_v47 }
 0x5af   :  { %v2809_v19 = vsel %vm153_vm12, %v2808_v1, %v4607_v43  ;;  %v4648_v36 = vunpack.i.h.bf16 %v8040_v5  ;;  %v4647_v30 = vunpack.i.l.bf16 %v8040_v5  ;;  %v2978_v6 = vsel %vm8650_vm14, %v2977_v49, %v4622_v37 }
 0x5b0   :  { %v3078_v38 = vsel %vm137_vm4, %v7767_v24, %v4628_v62  ;;  %v3038_v13 = vsel %vm137_vm4, %v7765_v26, %v4627_v7  ;;  %v3046_v48 = vsel %vm8651_vm8, %v3045_v31, %v4623_v3  ;;  %v2810_v18 = vsel %vm1650_vm11, %v2809_v19, %v4542_v58 }
 0x5b1   :  { %v4631_v27 = vpop.permute.xlu0 %4630  ;;  %v2987_v24 = vsel %vm1650_vm11, %v2986_v44, %v4543_v16  ;;  %v3039_v0 = vsel %vm8652_vm3, %v3038_v13, %v4647_v30  ;;  %v4552_v62 = vunpack.i.l.bf16 %v7996_v47  ;;  %vm3244_vm10 = vcmask 123904  }
 0x5b2   :  { %v4656_v23 = vpop.permute.xlu1 %4655  ;;  %v4632_v34 = vunpack.i.l.bf16 %v4631_v27  ;;  %v4633_v59 = vunpack.i.h.bf16 %v4631_v27  ;;  %v3079_v27 = vsel %vm8653_vm5, %v3078_v38, %v4648_v36  ;;  %vm3300_vm14 = vcmask 124928  }
 0x5b3   :  { %v4658_v55 = vunpack.i.h.bf16 %v4656_v23  ;;  %v4657_v17 = vunpack.i.l.bf16 %v4656_v23  ;;  %vm3302_vm8 = vcmask 128003   ;;  %vm3304_vm3 = vcmask 130054  }
 0x5b4   :  { %v2881_v2 = vsel %vm1995_vm13, %v2880_v29, %v4632_v34  ;;  %v2874_v8 = vsel %vm1995_vm13, %v2873_v57, %v4633_v59  ;;  %vm3306_vm5 = vcmask 122880  }
 0x5b5   :  { %v8065_v21 = vsel %vm1995_vm13, %v2913_v14, %v4657_v17  ;;  %v3088_v25 = vrot.slane %v2881_v2, 5  ;;  %v4641_v61 = vpop.permute.xlu0 %4640  ;;  %v8073_v54 = vsel %vm1995_vm13, %v2819_v10, %v4658_v55  ;;  %v3087_v23 = vrot.slane %v2874_v8, 5 }
 0x5b6   :  { %v8070_v12 = vpop.permute.xlu1 %4660  ;;  %v3094_v40 = vrot.slane %v8065_v21, 2  ;;  %v4643_v60 = vunpack.i.h.bf16 %v4641_v61  ;;  %v4642_v5 = vunpack.i.l.bf16 %v4641_v61  ;;  %v3093_v35 = vrot.slane %v8073_v54, 2 }
 0x5b7   :  { %v3116_v46 = vsel %vm3114_vm15, %v8073_v54, %v3088_v25  ;;  %v4663_v55 = vunpack.i.h.bf16 %v8070_v12  ;;  %v4662_v58 = vunpack.i.l.bf16 %v8070_v12 }
 0x5b8   :  { %v3119_v41 = vsel %vm3117_vm6, %v3116_v46, %v3094_v40  ;;  %v3047_v17 = vsel %vm153_vm12, %v3046_v48, %v4643_v60  ;;  %v2979_v15 = vsel %vm153_vm12, %v2978_v6, %v4642_v5 }
 0x5b9   :  { %v4651_v53 = vpop.permute.xlu0 %4650  ;;  %3223 = vmatprep.mubr.f32.mxu0 %v3119_v41  ;;  %v3040_v7 = vsel %vm153_vm12, %v3039_v0, %v4662_v58  ;;  %v3080_v46 = vsel %vm153_vm12, %v3079_v27, %v4663_v55  ;;  %v2980_v3 = vsel %vm1650_vm11, %v2979_v15, %v4547_v11  ;;  %v3048_v59 = vsel %vm1650_vm11, %v3047_v17, %v4548_v51 }
 0x5ba   :  { %v4671_v33 = vpop.permute.xlu1 %4670  ;;  %v4652_v63 = vunpack.i.l.bf16 %v4651_v53  ;;  %v4653_v28 = vunpack.i.h.bf16 %v4651_v53  ;;  %v3041_v50 = vsel %vm1650_vm11, %v3040_v7, %v4552_v62  ;;  %v3081_v51 = vsel %vm1650_vm11, %v3080_v46, %v4553_v32 }
 0x5bb   :  { %v4672_v20 = vunpack.i.l.bf16 %v4671_v33  ;;  %v4673_v56 = vunpack.i.h.bf16 %v4671_v33  ;;  %v8656_v55 = vmov 0.0  }
 0x5bc   :  { %v2811_v34 = vsel %vm1987_vm1, %v2810_v18, %v4652_v63  ;;  %v2988_v25 = vsel %vm1987_vm1, %v2987_v24, %v4653_v28  ;;  %3299 = vst.msk [vmem:[#allocation4 + $0x30] sm:$0x3] %vm3244_vm10, %v8656_v55 }
 0x5bd   :  { %v4666_v26 = vpop.permute.xlu0 %4665  ;;  %v2981_v37 = vsel %vm1987_vm1, %v2980_v3, %v4672_v20  ;;  %v3049_v47 = vsel %vm1987_vm1, %v3048_v59, %v4673_v56 }
 0x5be   :  { %v4676_v39 = vpop.permute.xlu1 %4675  ;;  %v4667_v4 = vunpack.i.l.bf16 %v4666_v26  ;;  %v4668_v29 = vunpack.i.h.bf16 %v4666_v26 }
 0x5bf   :  { %v4677_v52 = vunpack.i.l.bf16 %v4676_v39  ;;  %v4678_v61 = vunpack.i.h.bf16 %v4676_v39 }
 0x5c0   :  { %v2812_v16 = vsel %vm1991_vm2, %v2811_v34, %v4667_v4  ;;  %v2989_v43 = vsel %vm1991_vm2, %v2988_v25, %v4668_v29 }
 0x5c1   :  { %v2813_v14 = vsel %vm1995_vm13, %v2812_v16, %v4677_v52  ;;  %v4681_v2 = vpop.permute.xlu0 %4680  ;;  %v2990_v9 = vsel %vm1995_vm13, %v2989_v43, %v4678_v61 }
 0x5c2   :  { %v4686_v10 = vpop.permute.xlu1 %4685  ;;  %v3115_v45 = vsel %vm3114_vm15, %v2813_v14, %v3087_v23  ;;  %v4683_v12 = vunpack.i.h.bf16 %v4681_v2  ;;  %v4682_v54 = vunpack.i.l.bf16 %v4681_v2  ;;  %v3100_v38 = vrot.slane %v2990_v9, 7 }
 0x5c3   :  { %v3118_v22 = vsel %vm3117_vm6, %v3115_v45, %v3093_v35  ;;  %v4688_v41 = vunpack.i.h.bf16 %v4686_v10  ;;  %v4687_v31 = vunpack.i.l.bf16 %v4686_v10  ;;  %v3110_v4 = vrot.slane %v2990_v9, 1 }
 0x5c4   :  { %3224 = vmatmul.mubr.f32.vlgmr.msra.gmra.mrb[16].mxu0 %v3118_v22  ;;  %v2982_v44 = vsel %vm1991_vm2, %v2981_v37, %v4682_v54  ;;  %v3050_v11 = vsel %vm1991_vm2, %v3049_v47, %v4683_v12  ;;  %v3122_v28 = vsel %vm3120_vm9, %v3094_v40, %v3100_v38  ;;  %vm8654_vm15 = vcmask 1046528  }
 0x5c5   :  { %v4691_v49 = vpop.permute.xlu0 %4690  ;;  %v3042_v13 = vsel %vm1987_vm1, %v3041_v50, %v4687_v31  ;;  %v3082_v63 = vsel %vm1987_vm1, %v3081_v51, %v4688_v41  ;;  %vm8655_vm0 = vmmov %vm8654_vm15 }
 0x5c6   :  { %v4696_v1 = vpop.permute.xlu1 %4695  ;;  %v4693_v53 = vunpack.i.h.bf16 %v4691_v49  ;;  %v4692_v19 = vunpack.i.l.bf16 %v4691_v49 }
 0x5c7   :  { %v4698_v36 = vunpack.i.h.bf16 %v4696_v1  ;;  %v4697_v30 = vunpack.i.l.bf16 %v4696_v1 }
 0x5c8   :  { %v2983_v33 = vsel %vm1995_vm13, %v2982_v44, %v4692_v19  ;;  %v3051_v57 = vsel %vm1995_vm13, %v3050_v11, %v4693_v53 }
 0x5c9   :  { %v4701_v6 = vpop.permute.xlu0 %4700  ;;  %v3099_v48 = vrot.slane %v2983_v33, 7  ;;  %v3106_v8 = vrot.slane %v3051_v57, 4  ;;  %v3043_v18 = vsel %vm1991_vm2, %v3042_v13, %v4697_v30  ;;  %v3083_v24 = vsel %vm1991_vm2, %v3082_v63, %v4698_v36  ;;  %v3239_v33 = vld [vmem:[%s8526_s2 + $0x3] sm:$0x1]  ;;  %v3240_v13 = vld [vmem:[%s8526_s2 + $0x4] sm:$0x1] }
 0x5ca   :  { %v4703_v60 = vunpack.i.h.bf16 %v4701_v6  ;;  %v4702_v5 = vunpack.i.l.bf16 %v4701_v6 }
 0x5cb   :  { %v3124_v39 = vsel %vm2559_vm7, %v3122_v28, %v3106_v8  ;;  %v3121_v23 = vsel %vm3120_vm9, %v3093_v35, %v3099_v48  ;;  %vm3308_vm9 = vcmask 125953  }
 0x5cc   :  { %v3044_v32 = vsel %vm1995_vm13, %v3043_v18, %v4702_v5  ;;  %v3084_v26 = vsel %vm1995_vm13, %v3083_v24, %v4703_v60 }
 0x5cd   :  { %v3105_v0 = vrot.slane %v3044_v32, 4  ;;  %v3111_v27 = vrot.slane %v3084_v26, 1 }
 0x5cf   :  { %v3126_v34 = vsel %vm8654_vm15, %v3124_v39, %v3111_v27  ;;  %v3123_v52 = vsel %vm2559_vm7, %v3121_v23, %v3105_v0  ;;  %vm3310_vm15 = vcmask 129028   ;;  %v8174_v39 = vld [vmem:[#allocation4 + $0x14] sm:$0x1f] }
 0x5d0   :  { %3228 = vmatprep.mubr.f32.mxu0 %v3126_v34  ;;  %v3125_v29 = vsel %vm8655_vm0, %v3123_v52, %v3110_v4  ;;  %vm3312_vm0 = vcmask 130055  }
 0x5d1   :  { %3229 = vmatmul.mubr.f32.gmra.mrb[18].mxu0 %v3125_v29 }
 0x5d2   :  { %3233 = vmatprep.mubr.f32.mxu0 %v3111_v27 }
 0x5d5   :  { %3234 = vmatmul.mubr.f32.gmra.mrb[20].mxu0 %v3110_v4 }
 0x697   :  { %v3971_v21 = vpop.f32.mrb[16].mxu0 }
 0x698   :  { %v3972_v40 = vpop.f32.mrb[17].mxu0 }
 0x699   :  { %v3973_v58 = vadd.f32 %v3972_v40, %v3971_v21 }
 0x69b   :  { %v3254_v35 = vmul.f32 %v3973_v58, %v3973_v58  ;;  %v3241_v20 = vsel %vm137_vm4, %v3973_v58, 0.0 }
 0x69d   :  { %v3257_v10 = vsel %vm137_vm4, %v3254_v35, 0.0 }
 0x6a4   :  { %v3974_v16 = vpop.f32.mrb[18].mxu0 }
 0x6a5   :  { %v3975_v17 = vpop.f32.mrb[19].mxu0 }
 0x6a6   :  { %v3976_v15 = vadd.f32 %v3975_v17, %v3974_v16 }
 0x6a8   :  { %v3242_v14 = vsel %vm137_vm4, %v3976_v15, 0.0  ;;  %v3255_v2 = vmul.f32 %v3976_v15, %v3976_v15  ;;  %v3977_v56 = vpop.f32.mrb[20].mxu0 }
 0x6a9   :  { %v3243_v25 = vadd.f32 %v3242_v14, %v3241_v20  ;;  %v3978_v61 = vpop.f32.mrb[21].mxu0 }
 0x6aa   :  { %v3258_v45 = vsel %vm137_vm4, %v3255_v2, 0.0  ;;  %v3979_v43 = vadd.f32 %v3978_v61, %v3977_v56 }
 0x6ab   :  { %v3259_v12 = vadd.f32 %v3258_v45, %v3257_v10  ;;  %v8216_v45 = vld [vmem:[#allocation4 + $0x19] sm:$0x1f] }
 0x6ac   :  { %v3245_v54 = vsel %vm3244_vm10, %v3979_v43, 0.0  ;;  %v3256_v22 = vmul.f32 %v3979_v43, %v3979_v43 }
 0x6ad   :  { %v3246_v62 = vadd.f32 %v3245_v54, %v3243_v25 }
 0x6ae   :  { %v3260_v7 = vsel %vm3244_vm10, %v3256_v22, 0.0 }
 0x6af   :  { %v3247_v46 = vrot.slane %v3246_v62, 4  ;;  %v3261_v3 = vadd.f32 %v3260_v7, %v3259_v12  ;;  %v3457_v12 = vrot.slane %v8216_v45, 1 }
 0x6b1   :  { %v3248_v37 = vadd.f32 %v3247_v46, %v3246_v62  ;;  %v3262_v59 = vrot.slane %v3261_v3, 4  ;;  %v8230_v46 = vld [vmem:[#allocation4] sm:$0x1f] }
 0x6b3   :  { %v3249_v41 = vrot.slane %v3248_v37, 2  ;;  %v3263_v31 = vadd.f32 %v3262_v59, %v3261_v3  ;;  %v3320_v59 = vrot.slane %v8230_v46, 1 }
 0x6b5   :  { %v3250_v49 = vadd.f32 %v3249_v41, %v3248_v37  ;;  %v3264_v47 = vrot.slane %v3263_v31, 2  ;;  %v3630_v41 = vld [vmem:[%s8525_s1 + $0x240] sm:$0xff] }
 0x6b7   :  { %v3251_v9 = vrot.slane %v3250_v49, 1  ;;  %v3265_v1 = vadd.f32 %v3264_v47, %v3263_v31  ;;  %v3631_v31 = vld [vmem:[%s8525_s1 + $0x248] sm:$0xff] }
 0x6b9   :  { %v3252_v53 = vadd.f32 %v3251_v9, %v3250_v49  ;;  %v3266_v19 = vrot.slane %v3265_v1, 1 }
 0x6bb   :  { %v3253_v44 = vmul.f32 0.055555556, %v3252_v53  ;;  %v3267_v11 = vadd.f32 %v3266_v19, %v3265_v1  ;;  %v4173_v1 = vpack.c.bf16 %v3631_v31, %v3630_v41  ;;  %v3426_v53 = vrot.slane %v8174_v39, 1 }
 0x6bc   :  { %v3461_v19 = vrot.slane %v8216_v45, 2 }
 0x6bd   :  { %v3268_v36 = vmul.f32 0.055555556, %v3267_v11  ;;  %v3269_v30 = vmul.f32 %v3253_v44, %v3253_v44  ;;  %4174 = vmatprep.subr.bf16.mxu1 %v4173_v1  ;;  %v3615_v11 = vld [vmem:[%s8525_s1 + $0x1c8] sm:$0xff] }
 0x6bf   :  { %v3270_v50 = vsub.f32 %v3268_v36, %v3269_v30  ;;  %v3632_v36 = vld [vmem:[%s8525_s1 + $0x250] sm:$0xff] }
 0x6c1   :  { %v3271_v51 = vadd.f32 1e-05, %v3270_v50 }
 0x6c3   :  { %4846 = vrsqrt.f32 %v3271_v51 }
 0x6cd   :  { %v4847_v57 = vpop.eup %4846 }
 0x6ce   :  { %v3273_v38 = vmul.f32 %v4847_v57, %v3239_v33  ;;  %v3633_v57 = vld [vmem:[%s8525_s1 + $0x258] sm:$0xff] }
 0x6d0   :  { %v3277_v63 = vrot.slane %v3273_v38, %v7732_v42  ;;  %v3281_v6 = vmul.f32 %v3273_v38, %v3253_v44  ;;  %v3614_v44 = vld [vmem:[%s8525_s1 + $0x1c0] sm:$0xff]  ;;  %v4177_v38 = vpack.c.bf16 %v3633_v57, %v3632_v36 }
 0x6d1   :  { %v4175_v33 = vpack.c.bf16 %v3615_v11, %v3614_v44 }
 0x6d2   :  { %v3278_v48 = vmul.f32 %v3973_v58, %v3277_v63  ;;  %v3279_v8 = vmul.f32 %v3976_v15, %v3277_v63  ;;  %v3280_v60 = vmul.f32 %v3979_v43, %v3277_v63  ;;  %v3282_v5 = vsub.f32 %v3240_v13, %v3281_v6  ;;  %v3616_v6 = vld [vmem:[%s8525_s1 + $0x1d0] sm:$0xff] }
 0x6d3   :  { %v3430_v13 = vrot.slane %v8174_v39, 2  ;;  %v3324_v63 = vrot.slane %v8230_v46, 2  ;;  %4176 = vmatpush3.bf16.msra.mxu1 %v4175_v33 }
 0x6d4   :  { %v3286_v18 = vrot.slane %v3282_v5, %v7732_v42  ;;  %v8172_v42 = vld [vmem:[#allocation4 + $0x2d] sm:$0x1f]  ;;  %4178 = vmatprep.subr.bf16.mxu1 %v4177_v38  ;;  %v3624_v38 = vld [vmem:[%s8525_s1 + $0x210] sm:$0xff] }
 0x6d5   :  { %v3563_v11 = vrot.slane %v8172_v42, 1  ;;  %v3567_v57 = vrot.slane %v8172_v42, 2 }
 0x6d6   :  { %v3287_v24 = vadd.f32 %v3286_v18, %v3278_v48  ;;  %v3288_v32 = vadd.f32 %v3286_v18, %v3279_v8  ;;  %v3289_v26 = vadd.f32 %v3286_v18, %v3280_v60  ;;  %v3617_v48 = vld [vmem:[%s8525_s1 + $0x1d8] sm:$0xff]  ;;  %v3634_v8 = vld [vmem:[%s8525_s1 + $0x260] sm:$0xff] }
 0x6d8   :  { %v3290_v0 = vmax.f32 %v3287_v24, 0.0  ;;  %v3291_v27 = vmax.f32 %v3288_v32, 0.0  ;;  %v3292_v28 = vmax.f32 %v3289_v26, 0.0  ;;  %v4179_v24 = vpack.c.bf16 %v3617_v48, %v3616_v6  ;;  %v3635_v32 = vld [vmem:[%s8525_s1 + $0x268] sm:$0xff] }
 0x6d9   :  { %v4181_v26 = vpack.c.bf16 %v3635_v32, %v3634_v8  ;;  %v3626_v8 = vld [vmem:[%s8525_s1 + $0x220] sm:$0xff] }
 0x6da   :  { %3301 = vst.msk [vmem:[#allocation4 + $0x6] sm:$0x7] %vm3300_vm14, %v3290_v0  ;;  %4180 = vmatpush3.bf16.msra.mxu1 %v4179_v24 }
 0x6db   :  { %3303 = vst.msk [vmem:[#allocation4 + $0x8] sm:$0x38] %vm3302_vm8, %v3290_v0  ;;  %4182 = vmatprep.subr.bf16.mxu1 %v4181_v26 }
 0x6dc   :  { %3305 = vst.msk [vmem:[#allocation4 + $0xa] sm:$0xc0] %vm3304_vm3, %v3290_v0 }
 0x6dd   :  { %3307 = vst.msk [vmem:[#allocation4 + $0x12] sm:$0x1] %vm3306_vm5, %v3291_v27 }
 0x6de   :  { %3309 = vst.msk [vmem:[#allocation4 + $0x1e] sm:$0xe] %vm3308_vm9, %v3291_v27  ;;  %vm3607_vm9 = vcmask 1041408  }
 0x6df   :  { %3311 = vst.msk [vmem:[#allocation4 + $0x20] sm:$0x70] %vm3310_vm15, %v3291_v27 }
 0x6e0   :  { %3313 = vst.msk [vmem:[#allocation4 + $0x22] sm:$0x80] %vm3312_vm0, %v3291_v27 }
 0x6e1   :  { %3314 = vst.msk [vmem:[#allocation4 + $0x2a] sm:$0x3] %vm3244_vm10, %v3292_v28  ;;  %v8188_v21 = vld [vmem:[#allocation4 + $0x5] sm:$0x1f]  ;;  %v3465_v28 = vrot.slane %v8216_v45, 3  ;;  %vm8657_vm10 = vcmask 261120  }
 0x6e2   :  { %v8178_v23 = vld [vmem:[#allocation4 + $0xa] sm:$0x1f]  ;;  %v3340_v17 = vrot.slane %v8188_v21, 2  ;;  %v3336_v15 = vrot.slane %v8188_v21, 1  ;;  %v3344_v14 = vrot.slane %v8188_v21, 3  ;;  %vm8658_vm14 = vmmov %vm8657_vm10 }
 0x6e3   :  { %v4704_v29 = vpack.i.bf16 %v8178_v23, %v8174_v39  ;;  %v3349_v61 = vrot.slane %v8178_v23, 1  ;;  %v3353_v43 = vrot.slane %v8178_v23, 2  ;;  %v3357_v3 = vrot.slane %v8178_v23, 3  ;;  %vm8659_vm8 = vmmov %vm8657_vm10 }
 0x6e4   :  { %v8180_v34 = vld [vmem:[#allocation4 + $0xf] sm:$0x1f]  ;;  %vm8660_vm3 = vmmov %vm8659_vm8 }
 0x6e5   :  { %v8176_v4 = vld [vmem:[#allocation4 + $0x1e] sm:$0x1f]  ;;  %4705 = vrot.lane.b32.xlu0 %v4704_v29, %s4879_s0  ;;  %v3369_v35 = vrot.slane %v8180_v34, 2  ;;  %v3365_v20 = vrot.slane %v8180_v34, 1  ;;  %v3373_v2 = vrot.slane %v8180_v34, 3  ;;  %v4774_v60 = vpack.i.bf16 %v3349_v61, %v3426_v53  ;;  %v3618_v29 = vld [vmem:[%s8525_s1 + $0x1e0] sm:$0xff]  ;;  %vm8662_vm5 = vmmov %vm8660_vm3 }
 0x6e6   :  { %v4714_v52 = vpack.i.bf16 %v8172_v42, %v8176_v4  ;;  %v8190_v40 = vld [vmem:[#allocation4 + $0x23] sm:$0x1f]  ;;  %v3473_v9 = vrot.slane %v8176_v4, 1  ;;  %v3477_v18 = vrot.slane %v8176_v4, 2  ;;  %v4789_v0 = vpack.i.bf16 %v3353_v43, %v3430_v13  ;;  %v3625_v13 = vld [vmem:[%s8525_s1 + $0x218] sm:$0xff]  ;;  %vm8663_vm15 = vmmov %vm8660_vm3 }
 0x6e7   :  { %v4719_v16 = vpack.i.bf16 %v8190_v40, %v8188_v21  ;;  %v4729_v56 = vpack.i.bf16 %v3340_v17, %v3369_v35  ;;  %v4724_v25 = vpack.i.bf16 %v3336_v15, %v3365_v20  ;;  %v3486_v10 = vrot.slane %v8190_v40, 1  ;;  %v3640_v53 = vld [vmem:[%s8525_s1 + $0x290] sm:$0xff]  ;;  %vm8664_vm0 = vmmov %vm8660_vm3 }
 0x6e8   :  { %v8186_v55 = vld [vmem:[#allocation4 + $0x28] sm:$0x1f]  ;;  %4715 = vrot.lane.b32.xlu1 %v4714_v52, %s4879_s0  ;;  %v4739_v54 = vpack.i.bf16 %v3344_v14, %v3373_v2  ;;  %v3490_v62 = vrot.slane %v8190_v40, 2  ;;  %v3494_v37 = vrot.slane %v8190_v40, 3  ;;  %v4754_v50 = vpack.i.bf16 %v3473_v9, %v3320_v59  ;;  %v3638_v59 = vld [vmem:[%s8525_s1 + $0x280] sm:$0xff] }
 0x6e9   :  { %v4709_v58 = vpack.i.bf16 %v8180_v34, %v8186_v55  ;;  %v4734_v22 = vpack.i.bf16 %v3349_v61, %v3486_v10  ;;  %v3502_v7 = vrot.slane %v8186_v55, 1  ;;  %v3506_v51 = vrot.slane %v8186_v55, 2 }
 0x6ea   :  { %v4749_v49 = vpack.i.bf16 %v3353_v43, %v3490_v62  ;;  %v4764_v30 = vpack.i.bf16 %v3357_v3, %v3494_v37  ;;  %v4769_v27 = vpack.i.bf16 %v3477_v18, %v3324_v63  ;;  %v3510_v52 = vrot.slane %v8186_v55, 3  ;;  %v3642_v63 = vld [vmem:[%s8525_s1 + $0x2a0] sm:$0xff] }
 0x6eb   :  { %4710 = vrot.lane.b32.xlu0 %v4709_v58, %s4879_s0  ;;  %v4744_v47 = vpack.i.bf16 %v3502_v7, %v3457_v12  ;;  %v4759_v5 = vpack.i.bf16 %v3506_v51, %v3461_v19  ;;  %v3619_v58 = vld [vmem:[%s8525_s1 + $0x1e8] sm:$0xff]  ;;  %v3434_v43 = vrot.slane %v8174_v39, 3  ;;  %v3328_v12 = vrot.slane %v8230_v46, 3 }
 0x6ec   :  { %4720 = vrot.lane.b32.xlu1 %v4719_v16, %s4879_s0  ;;  %v3636_v16 = vld [vmem:[%s8525_s1 + $0x270] sm:$0xff]  ;;  %v4794_v39 = vpack.i.bf16 %v3365_v20, %v3502_v7  ;;  %v4779_v41 = vpack.i.bf16 %v3510_v52, %v3465_v28  ;;  %v3481_v31 = vrot.slane %v8176_v4, 3  ;;  %v3622_v20 = vld [vmem:[%s8525_s1 + $0x200] sm:$0xff]  ;;  %v3623_v7 = vld [vmem:[%s8525_s1 + $0x208] sm:$0xff]  ;;  %v4804_v33 = vpack.i.bf16 %v3563_v11, %v3473_v9 }
 0x6ed   :  { %v4799_v19 = vpack.i.bf16 %v3357_v3, %v3434_v43  ;;  %v4191_v36 = vpack.c.bf16 %v3623_v7, %v3622_v20  ;;  %v4809_v3 = vpack.i.bf16 %v3369_v35, %v3506_v51  ;;  %v4195_v6 = vpack.c.bf16 %v3625_v13, %v3624_v38  ;;  %v3643_v35 = vld [vmem:[%s8525_s1 + $0x2a8] sm:$0xff] }
 0x6ee   :  { %v4784_v44 = vpack.i.bf16 %v3481_v31, %v3328_v12  ;;  %v4197_v9 = vpack.c.bf16 %v3643_v35, %v3642_v63  ;;  %v4819_v51 = vpack.i.bf16 %v3567_v57, %v3477_v18  ;;  %v4814_v48 = vpack.i.bf16 %v3486_v10, %v3336_v15  ;;  %v3645_v18 = vld [vmem:[%s8525_s1 + $0x2b8] sm:$0xff]  ;;  %v3628_v15 = vld [vmem:[%s8525_s1 + $0x230] sm:$0xff] }
 0x6ef   :  { %4730 = vrot.lane.b32.xlu0 %v4729_v56, %s4870_s19  ;;  %v4183_v56 = vpack.c.bf16 %v3619_v58, %v3618_v29  ;;  %v3629_v10 = vld [vmem:[%s8525_s1 + $0x238] sm:$0xff]  ;;  %v3571_v28 = vrot.slane %v8172_v42, 3  ;;  %v4839_v29 = vpack.i.bf16 %v3494_v37, %v3344_v14 }
 0x6f0   :  { %4725 = vrot.lane.b32.xlu1 %v4724_v25, %s4866_s6  ;;  %v3637_v25 = vld [vmem:[%s8525_s1 + $0x278] sm:$0xff]  ;;  %v4203_v26 = vpack.c.bf16 %v3629_v10, %v3628_v15 }
 0x6f1   :  { %v4185_v61 = vpack.c.bf16 %v3637_v25, %v3636_v16  ;;  %4184 = vmatpush3.bf16.msra.mxu1 %v4183_v56  ;;  %v4834_v58 = vpack.i.bf16 %v3571_v28, %v3481_v31 }
 0x6f3   :  { %4740 = vrot.lane.b32.xlu0 %v4739_v54, %s4874_s14  ;;  %v3620_v54 = vld [vmem:[%s8525_s1 + $0x1f0] sm:$0xff]  ;;  %4186 = vmatprep.subr.bf16.mxu1 %v4185_v61 }
 0x6f4   :  { %4735 = vrot.lane.b32.xlu1 %v4734_v22, %s4866_s6  ;;  %v3621_v22 = vld [vmem:[%s8525_s1 + $0x1f8] sm:$0xff] }
 0x6f7   :  { %4750 = vrot.lane.b32.xlu0 %v4749_v49, %s4870_s19  ;;  %v4187_v49 = vpack.c.bf16 %v3621_v22, %v3620_v54 }
 0x6f8   :  { %4745 = vrot.lane.b32.xlu1 %v4744_v47, %s4866_s6  ;;  %v3639_v47 = vld [vmem:[%s8525_s1 + $0x288] sm:$0xff] }
 0x6f9   :  { %v4189_v1 = vpack.c.bf16 %v3639_v47, %v3638_v59  ;;  %4188 = vmatpush3.bf16.msra.mxu1 %v4187_v49 }
 0x6fb   :  { %4765 = vrot.lane.b32.xlu0 %v4764_v30, %s4874_s14  ;;  %4190 = vmatprep.subr.bf16.mxu1 %v4189_v1  ;;  %v3641_v30 = vld [vmem:[%s8525_s1 + $0x298] sm:$0xff] }
 0x6fc   :  { %4755 = vrot.lane.b32.xlu1 %v4754_v50, %s4866_s6  ;;  %v4193_v50 = vpack.c.bf16 %v3641_v30, %v3640_v53 }
 0x6fd   :  { %4192 = vmatpush3.bf16.msra.mxu1 %v4191_v36 }
 0x6fe   :  { %4194 = vmatprep.subr.bf16.mxu1 %v4193_v50 }
 0x6ff   :  { %4775 = vrot.lane.b32.xlu0 %v4774_v60, %s4881_s24  ;;  %v3627_v60 = vld [vmem:[%s8525_s1 + $0x228] sm:$0xff] }
 0x700   :  { %4760 = vrot.lane.b32.xlu1 %v4759_v5, %s4870_s19  ;;  %v3644_v5 = vld [vmem:[%s8525_s1 + $0x2b0] sm:$0xff]  ;;  %v4199_v24 = vpack.c.bf16 %v3627_v60, %v3626_v8 }
 0x701   :  { %4196 = vmatpush3.bf16.msra.mxu1 %v4195_v6  ;;  %v4201_v32 = vpack.c.bf16 %v3645_v18, %v3644_v5 }
 0x702   :  { %4198 = vmatprep.subr.bf16.mxu1 %v4197_v9 }
 0x703   :  { %4790 = vrot.lane.b32.xlu0 %v4789_v0, %s4883_s7  ;;  %v4829_v0 = vpack.i.bf16 %v3490_v62, %v3340_v17 }
 0x704   :  { %4770 = vrot.lane.b32.xlu1 %v4769_v27, %s4870_s19  ;;  %v4824_v27 = vpack.i.bf16 %v3373_v2, %v3510_v52 }
 0x705   :  { %4200 = vmatpush3.bf16.msra.mxu1 %v4199_v24 }
 0x706   :  { %4202 = vmatprep.subr.bf16.mxu1 %v4201_v32 }
 0x707   :  { %4795 = vrot.lane.b32.xlu0 %v4794_v39, %s4881_s24 }
 0x708   :  { %4780 = vrot.lane.b32.xlu1 %v4779_v41, %s4874_s14 }
 0x709   :  { %4204 = vmatpush3.bf16.msra.mxu1 %v4203_v26 }
 0x70b   :  { %4800 = vrot.lane.b32.xlu0 %v4799_v19, %s4885_s27 }
 0x70c   :  { %4785 = vrot.lane.b32.xlu1 %v4784_v44, %s4874_s14 }
 0x70f   :  { %4810 = vrot.lane.b32.xlu0 %v4809_v3, %s4883_s7 }
 0x710   :  { %4805 = vrot.lane.b32.xlu1 %v4804_v33, %s4881_s24 }
 0x713   :  { %4820 = vrot.lane.b32.xlu0 %v4819_v51, %s4883_s7 }
 0x714   :  { %4815 = vrot.lane.b32.xlu1 %v4814_v48, %s4881_s24 }
 0x717   :  { %4830 = vrot.lane.b32.xlu0 %v4829_v0, %s4883_s7 }
 0x718   :  { %4825 = vrot.lane.b32.xlu1 %v4824_v27, %s4885_s27 }
 0x71b   :  { %4840 = vrot.lane.b32.xlu0 %v4839_v29, %s4885_s27 }
 0x71c   :  { %4835 = vrot.lane.b32.xlu1 %v4834_v58, %s4885_s27 }
 0x757   :  { %v4706_v2 = vpop.permute.xlu0 %4705 }
 0x758   :  { %v4708_v3 = vunpack.i.h.bf16 %v4706_v2  ;;  %v4707_v5 = vunpack.i.l.bf16 %v4706_v2 }
 0x75a   :  { %v8414_v17 = vpop.permute.xlu1 %4715 }
 0x75b   :  { %v4718_v19 = vunpack.i.h.bf16 %v8414_v17  ;;  %v4717_v36 = vunpack.i.l.bf16 %v8414_v17 }
 0x75d   :  { %v8416_v42 = vpop.permute.xlu0 %4710 }
 0x75e   :  { %v8418_v62 = vpop.permute.xlu1 %4720  ;;  %v4713_v24 = vunpack.i.h.bf16 %v8416_v42 }
 0x75f   :  { %v4723_v10 = vunpack.i.h.bf16 %v8418_v62  ;;  %v4722_v32 = vunpack.i.l.bf16 %v8418_v62 }
 0x761   :  { %v4731_v52 = vpop.permute.xlu0 %4730 }
 0x762   :  { %v4726_v16 = vpop.permute.xlu1 %4725  ;;  %v4733_v39 = vunpack.i.h.bf16 %v4731_v52  ;;  %v4732_v41 = vunpack.i.l.bf16 %v4731_v52 }
 0x763   :  { %v4728_v37 = vunpack.i.h.bf16 %v4726_v16  ;;  %v4727_v54 = vunpack.i.l.bf16 %v4726_v16 }
 0x765   :  { %v4741_v56 = vpop.permute.xlu0 %4740  ;;  %v3438_v31 = vsel %vm137_vm4, %v8188_v21, %v4728_v37  ;;  %v3445_v47 = vsel %vm137_vm4, %v8180_v34, %v4727_v54 }
 0x766   :  { %v4736_v25 = vpop.permute.xlu1 %4735  ;;  %v4743_v49 = vunpack.i.h.bf16 %v4741_v56  ;;  %v4742_v1 = vunpack.i.l.bf16 %v4741_v56  ;;  %v3439_v30 = vsel %vm8657_vm10, %v3438_v31, %v4733_v39  ;;  %v3446_v34 = vsel %vm8658_vm14, %v3445_v47, %v4732_v41 }
 0x767   :  { %v4738_v20 = vunpack.i.h.bf16 %v4736_v25  ;;  %v4737_v44 = vunpack.i.l.bf16 %v4736_v25 }
 0x768   :  { %v3440_v33 = vsel %vm153_vm12, %v3439_v30, %v4743_v49  ;;  %v3447_v38 = vsel %vm153_vm12, %v3446_v34, %v4742_v1 }
 0x769   :  { %v4751_v61 = vpop.permute.xlu0 %4750  ;;  %v3384_v13 = vsel %vm137_vm4, %v8178_v23, %v4738_v20  ;;  %v3521_v51 = vsel %vm137_vm4, %v8190_v40, %v4737_v44  ;;  %v4712_v23 = vunpack.i.l.bf16 %v8416_v42  ;;  %v3441_v27 = vsel %vm1650_vm11, %v3440_v33, %v4708_v3 }
 0x76a   :  { %v4746_v43 = vpop.permute.xlu1 %4745  ;;  %v4753_v11 = vunpack.i.h.bf16 %v4751_v61  ;;  %v4752_v50 = vunpack.i.l.bf16 %v4751_v61  ;;  %v3448_v28 = vsel %vm1650_vm11, %v3447_v38, %v4707_v5 }
 0x76b   :  { %v4748_v63 = vunpack.i.h.bf16 %v4746_v43  ;;  %v4747_v6 = vunpack.i.l.bf16 %v4746_v43 }
 0x76c   :  { %v3385_v48 = vsel %vm8659_vm8, %v3384_v13, %v4753_v11  ;;  %v3522_v18 = vsel %vm8660_vm3, %v3521_v51, %v4752_v50 }
 0x76d   :  { %v4766_v12 = vpop.permute.xlu0 %4765  ;;  %v3582_v40 = vsel %vm137_vm4, %v8186_v55, %v4748_v63  ;;  %v3514_v0 = vsel %vm137_vm4, %v8216_v45, %v4747_v6 }
 0x76e   :  { %v4756_v14 = vpop.permute.xlu1 %4755  ;;  %v4768_v21 = vunpack.i.h.bf16 %v4766_v12  ;;  %v4767_v57 = vunpack.i.l.bf16 %v4766_v12 }
 0x76f   :  { %v4758_v8 = vunpack.i.h.bf16 %v4756_v14  ;;  %v4757_v60 = vunpack.i.l.bf16 %v4756_v14 }
 0x770   :  { %v3386_v15 = vsel %vm153_vm12, %v3385_v48, %v4768_v21  ;;  %v3523_v26 = vsel %vm153_vm12, %v3522_v18, %v4767_v57 }
 0x771   :  { %v8420_v22 = vpop.permute.xlu0 %4775  ;;  %v3575_v2 = vsel %vm137_vm4, %v8176_v4, %v4758_v8  ;;  %v3377_v42 = vsel %vm137_vm4, %v8230_v46, %v4757_v60  ;;  %v3387_v16 = vsel %vm1650_vm11, %v3386_v15, %v4713_v24  ;;  %v3524_v25 = vsel %vm1650_vm11, %v3523_v26, %v4712_v23  ;;  %vm8661_vm4 = vmmov %vm8660_vm3 }
 0x772   :  { %v8422_v59 = vpop.permute.xlu1 %4760  ;;  %v4778_v52 = vunpack.i.h.bf16 %v8420_v22  ;;  %v4777_v55 = vunpack.i.l.bf16 %v8420_v22 }
 0x773   :  { %v4763_v45 = vunpack.i.h.bf16 %v8422_v59  ;;  %v4762_v56 = vunpack.i.l.bf16 %v8422_v59 }
 0x774   :  { %v3442_v41 = vsel %vm1987_vm1, %v3441_v27, %v4778_v52  ;;  %v3449_v47 = vsel %vm1987_vm1, %v3448_v28, %v4777_v55 }
 0x775   :  { %v8428_v7 = vpop.permute.xlu0 %4790  ;;  %v3515_v1 = vsel %vm8661_vm4, %v3514_v0, %v4762_v56  ;;  %v3583_v20 = vsel %vm8662_vm5, %v3582_v40, %v4763_v45 }
 0x776   :  { %v8430_v53 = vpop.permute.xlu1 %4770  ;;  %v4793_v61 = vunpack.i.h.bf16 %v8428_v7  ;;  %v4792_v43 = vunpack.i.l.bf16 %v8428_v7 }
 0x777   :  { %v4773_v46 = vunpack.i.h.bf16 %v8430_v53  ;;  %v4772_v14 = vunpack.i.l.bf16 %v8430_v53 }
 0x778   :  { %v3443_v44 = vsel %vm1991_vm2, %v3442_v41, %v4793_v61  ;;  %v3450_v53 = vsel %vm1991_vm2, %v3449_v47, %v4792_v43 }
 0x779   :  { %v4796_v35 = vpop.permute.xlu0 %4795  ;;  %v3378_v50 = vsel %vm8663_vm15, %v3377_v42, %v4772_v14  ;;  %v3576_v21 = vsel %vm8664_vm0, %v3575_v2, %v4773_v46 }
 0x77a   :  { %v4781_v9 = vpop.permute.xlu1 %4780  ;;  %v4798_v31 = vunpack.i.h.bf16 %v4796_v35  ;;  %v4797_v59 = vunpack.i.l.bf16 %v4796_v35 }
 0x77b   :  { %v4783_v4 = vunpack.i.h.bf16 %v4781_v9  ;;  %v4782_v12 = vunpack.i.l.bf16 %v4781_v9 }
 0x77c   :  { %v3388_v38 = vsel %vm1987_vm1, %v3387_v16, %v4798_v31  ;;  %v3525_v13 = vsel %vm1987_vm1, %v3524_v25, %v4797_v59 }
 0x77d   :  { %v4801_v29 = vpop.permute.xlu0 %4800  ;;  %v3516_v11 = vsel %vm153_vm12, %v3515_v1, %v4782_v12  ;;  %v3584_v30 = vsel %vm153_vm12, %v3583_v20, %v4783_v4 }
 0x77e   :  { %v4786_v58 = vpop.permute.xlu1 %4785  ;;  %v4803_v37 = vunpack.i.h.bf16 %v4801_v29  ;;  %v4802_v54 = vunpack.i.l.bf16 %v4801_v29  ;;  %v3517_v51 = vsel %vm1650_vm11, %v3516_v11, %v4717_v36  ;;  %v3585_v48 = vsel %vm1650_vm11, %v3584_v30, %v4718_v19  ;;  %v3893_v30 = vld [vmem:[%s8526_s2 + $0x5] ss:$0 sm:$0xff] }
 0x77f   :  { %v4787_v49 = vunpack.i.l.bf16 %v4786_v58  ;;  %v4788_v7 = vunpack.i.h.bf16 %v4786_v58 }
 0x780   :  { %v3444_v3 = vsel %vm1995_vm13, %v3443_v44, %v4803_v37  ;;  %v3451_v33 = vsel %vm1995_vm13, %v3450_v53, %v4802_v54 }
 0x781   :  { %v4811_v39 = vpop.permute.xlu0 %4810  ;;  %v3379_v63 = vsel %vm153_vm12, %v3378_v50, %v4787_v49  ;;  %v3577_v35 = vsel %vm153_vm12, %v3576_v21, %v4788_v7  ;;  %v3591_v8 = vrot.slane %v3444_v3, 6  ;;  %v3592_v60 = vrot.slane %v3451_v33, 6 }
 0x782   :  { %v4806_v22 = vpop.permute.xlu1 %4805  ;;  %v4813_v6 = vunpack.i.h.bf16 %v4811_v39  ;;  %v4812_v9 = vunpack.i.l.bf16 %v4811_v39  ;;  %v3380_v26 = vsel %vm1650_vm11, %v3379_v63, %v4722_v32  ;;  %v3578_v36 = vsel %vm1650_vm11, %v3577_v35, %v4723_v10 }
 0x783   :  { %v4808_v5 = vunpack.i.h.bf16 %v4806_v22  ;;  %v4807_v24 = vunpack.i.l.bf16 %v4806_v22  ;;  %vm3727_vm11 = vcmask 7168  }
 0x784   :  { %v3389_v27 = vsel %vm1991_vm2, %v3388_v38, %v4813_v6  ;;  %v3526_v19 = vsel %vm1991_vm2, %v3525_v13, %v4812_v9 }
 0x785   :  { %v4821_v34 = vpop.permute.xlu0 %4820  ;;  %v3518_v42 = vsel %vm1987_vm1, %v3517_v51, %v4807_v24  ;;  %v3586_v52 = vsel %vm1987_vm1, %v3585_v48, %v4808_v5 }
 0x786   :  { %v4816_v57 = vpop.permute.xlu1 %4815  ;;  %v4822_v18 = vunpack.i.l.bf16 %v4821_v34  ;;  %v4823_v29 = vunpack.i.h.bf16 %v4821_v34 }
 0x787   :  { %v4818_v15 = vunpack.i.h.bf16 %v4816_v57  ;;  %v4817_v23 = vunpack.i.l.bf16 %v4816_v57 }
 0x788   :  { %v3519_v55 = vsel %vm1991_vm2, %v3518_v42, %v4822_v18  ;;  %v3587_v46 = vsel %vm1991_vm2, %v3586_v52, %v4823_v29 }
 0x789   :  { %v4831_v40 = vpop.permute.xlu0 %4830  ;;  %v3381_v62 = vsel %vm1987_vm1, %v3380_v26, %v4817_v23  ;;  %v3579_v10 = vsel %vm1987_vm1, %v3578_v36, %v4818_v15 }
 0x78a   :  { %v4826_v0 = vpop.permute.xlu1 %4825  ;;  %v4833_v58 = vunpack.i.h.bf16 %v4831_v40  ;;  %v4832_v2 = vunpack.i.l.bf16 %v4831_v40 }
 0x78b   :  { %v4828_v17 = vunpack.i.h.bf16 %v4826_v0  ;;  %v4827_v28 = vunpack.i.l.bf16 %v4826_v0 }
 0x78c   :  { %v3382_v14 = vsel %vm1991_vm2, %v3381_v62, %v4832_v2  ;;  %v3580_v37 = vsel %vm1991_vm2, %v3579_v10, %v4833_v58 }
 0x78d   :  { %v3390_v32 = vsel %vm1995_vm13, %v3389_v27, %v4828_v17  ;;  %v3527_v16 = vsel %vm1995_vm13, %v3526_v19, %v4827_v28  ;;  %v4841_v56 = vpop.permute.xlu0 %4840 }
 0x78e   :  { %v3598_v45 = vrot.slane %v3527_v16, 4  ;;  %v4836_v25 = vpop.permute.xlu1 %4835  ;;  %v4843_v61 = vunpack.i.h.bf16 %v4841_v56  ;;  %v4842_v43 = vunpack.i.l.bf16 %v4841_v56  ;;  %v3609_v54 = vsel %vm3607_vm9, %v3390_v32, %v3592_v60 }
 0x78f   :  { %v4838_v4 = vunpack.i.h.bf16 %v4836_v25  ;;  %v4837_v12 = vunpack.i.l.bf16 %v4836_v25 }
 0x790   :  { %v3383_v39 = vsel %vm1995_vm13, %v3382_v14, %v4842_v43  ;;  %v3581_v22 = vsel %vm1995_vm13, %v3580_v37, %v4843_v61  ;;  %v3611_v20 = vsel %vm2559_vm7, %v3609_v54, %v3598_v45 }
 0x791   :  { %v3520_v41 = vsel %vm1995_vm13, %v3519_v55, %v4837_v12  ;;  %v3588_v31 = vsel %vm1995_vm13, %v3587_v46, %v4838_v4  ;;  %v3603_v59 = vrot.slane %v3581_v22, 2  ;;  %v3608_v49 = vsel %vm3607_vm9, %v3383_v39, %v3591_v8 }
 0x792   :  { %v3597_v47 = vrot.slane %v3520_v41, 4  ;;  %v3604_v1 = vrot.slane %v3588_v31, 2 }
 0x794   :  { %v3613_v7 = vsel %vm3117_vm6, %v3611_v20, %v3604_v1  ;;  %v3610_v44 = vsel %vm2559_vm7, %v3608_v49, %v3597_v47 }
 0x795   :  { %3715 = vmatprep.mubr.f32.mxu1 %v3613_v7  ;;  %v3612_v53 = vsel %vm3117_vm6, %v3610_v44, %v3603_v59 }
 0x796   :  { %3716 = vmatmul.mubr.f32.vlgmr.msra.gmra.mrb[4].mxu1 %v3612_v53 }
 0x869   :  { %v4012_v11 = vpop.f32.mrb[4].mxu1 }
 0x86a   :  { %v4013_v50 = vpop.f32.mrb[5].mxu1 }
 0x86b   :  { %v4014_v21 = vadd.f32 %v4013_v50, %v4012_v11 }
 0x86d   :  { %v3718_v3 = vadd.f32 %v4014_v21, %v3893_v30 }
 0x86f   :  { %v3894_v33 = vmul.f32 -1.442695, %v3718_v3 }
 0x871   :  { %4848 = vpow2.f32 %v3894_v33 }
 0x87b   :  { %v4849_v34 = vpop.eup %4848 }
 0x87c   :  { %v3724_v57 = vadd.f32 1.0, %v4849_v34 }
 0x87e   :  { %4850 = vrcp.f32 %v3724_v57 }
 0x888   :  { %v4851_v38 = vpop.eup %4850 }
 0x889   :  { %3728 = vst.msk [vmem:[%s8527_s3] sm:$0xff] %vm3727_vm11, %v4851_v38 }

</bundles_post_ra>
